<compile_context>
chip_gen: v7x
topology: tpu7x:2x2x1
jax: 0.10.0
libtpu: 0.0.40
codegen_flags: <defaults>
</compile_context>

<pallas_src>
import functools

import jax
import jax.numpy as jnp
from jax import lax
from jax.experimental import pallas as pl
from jax.experimental.pallas import tpu as pltpu

# ----------------------------- configuration --------------------------------
BLOCK_EXPANSION = 8
NUM_BLOCKS = 2
MAX_FEATURES = 32
NUM_CHANNELS = 3

LEFT_EYE_IDX = list(range(0, 6))
RIGHT_EYE_IDX = list(range(6, 12))
LIP_IDX = list(range(12, 22))
SEGMENTS = (LEFT_EYE_IDX, RIGHT_EYE_IDX, LIP_IDX)
NUM_PRIORS = (5, 5, 10)
NUM_KP = sum(NUM_PRIORS)                       # 20
N_MESH = 24                                    # raw mesh points fed to priors
MASK_ROWS = NUM_KP + 1 + len(SEGMENTS)         # 24 = 21 real rows + 3 zero pad

T_SOFTMAX = 0.1
BN_EPS = 1e-5
BN_SCALE = 1.0 / (1.0 + BN_EPS) ** 0.5         # eval BatchNorm, default stats

PAD_C = 32                                     # staging-line channel capacity

# conv layer table: (name, cin, cin padded to sublane multiple, cout, ksize)
_CONVS = (("e0", 1, 8, 16, 3),
          ("e1", 16, 16, 32, 3),
          ("d0", 32, 32, 16, 3),
          ("d1", 32, 32, 8, 3),
          ("mk", 9, 16, 24, 7))


def _conv_table():
    tab, row = {}, 0
    for name, cin, cinp, cout, ksz in _CONVS:
        tab[name] = dict(cin=cin, cinp=cinp, cout=cout, ksz=ksz,
                         wrow=row, K=ksz * ksz * cinp + 8)   # +8 = bias tail
        row += cout
    return tab, row


CONV_TAB, WROWS = _conv_table()                 # WROWS = 96
PATCH_ROWS = max(t['K'] for t in CONV_TAB.values())          # 792
WCOLS = ((PATCH_ROWS + 127) // 128) * 128                    # 896


def _layout(H, W):
    """Static (Python int) layout shared by weight prep and the kernel."""
    assert H % 4 == 0 and W % 4 == 0
    HW = H * W
    H1, W1 = H // 2, W // 2
    HW1 = H1 * W1
    HW2 = (H // 4) * (W // 4)
    lay = dict(H=H, W=W)
    off = 0
    for key, n in (('pool1', HW), ('pool2', HW1), ('up1', HW2), ('up2', HW1),
                   ('btail', 8), ('xm0_3', 3), ('xm1_3', 3), ('xm0_7', 7)):
        lay[key] = off
        off += n
    lay['crows'] = ((off + 7) // 8) * 8
    halo0 = 3 * W + 3                 # max 7x7 halo at full resolution
    halo1 = W1 + 1                    # 3x3 halo at half resolution
    lay['b0'] = ((halo0 + 127) // 128) * 128
    lay['b1'] = ((lay['b0'] + HW + halo0 + 127) // 128) * 128
    lay['padw'] = ((lay['b1'] + HW1 + halo1 + 127) // 128) * 128
    return lay


# ----------------------------- fused Pallas kernel ---------------------------
def _fused_kernel(w_ref, c_ref, xin_ref, mask_ref, def_ref, pad_ref, patch_ref,
                  *, lay):
    f32 = jnp.float32
    H, W = lay['H'], lay['W']
    HW = H * W
    H1, W1 = H // 2, W // 2
    HW1 = H1 * W1
    HW2 = (H // 4) * (W // 4)
    B0, B1 = lay['b0'], lay['b1']

    # One scratch-hygiene fill per grid step: keeps the never-written halo
    # columns exactly zero (vertical SAME padding) and everything finite.
    pad_ref[...] = jnp.zeros_like(pad_ref)

    def conv(name, base, h, w, mrow, relu):
        """SAME conv whose input is already staged in pad_ref at `base`."""
        t = CONV_TAB[name]
        cinp, ksz, K = t['cinp'], t['ksz'], t['K']
        ktap = K - 8
        hw = h * w
        r = ksz // 2
        # bias tail: ones row + 7 zero rows (bias folded into the matmul)
        patch_ref[ktap:K, 0:hw] = c_ref[lay['btail']:lay['btail'] + 8, 0:hw]
        for dxi in range(ksz):
            dx = dxi - r
            xm = c_ref[mrow + dxi:mrow + dxi + 1, 0:hw]   # precomputed lane mask
            for dyi in range(ksz):
                s = (dyi - r) * w + dx
                ti = dyi * ksz + dxi
                patch_ref[ti * cinp:(ti + 1) * cinp, 0:hw] = (
                    pad_ref[0:cinp, base + s:base + s + hw] * xm)
        y = jnp.dot(w_ref[t['wrow']:t['wrow'] + t['cout'], 0:K],
                    patch_ref[0:K, 0:hw], preferred_element_type=f32)
        return jnp.maximum(y, 0.0) if relu else y

    x0 = xin_ref[0, 0:1, :]                                        # (1, HW)

    # ---- hourglass encoder ----
    pad_ref[0:1, B0:B0 + HW] = x0
    e0 = conv('e0', B0, H, W, lay['xm0_3'], True)                  # (16, HW)
    p0 = jnp.dot(e0, c_ref[lay['pool1']:lay['pool1'] + HW, 0:HW1],
                 preferred_element_type=f32)                       # (16, HW1)
    pad_ref[0:16, B1:B1 + HW1] = p0
    e1 = conv('e1', B1, H1, W1, lay['xm1_3'], True)                # (32, HW1)
    p1 = jnp.dot(e1, c_ref[lay['pool2']:lay['pool2'] + HW1, 0:HW2],
                 preferred_element_type=f32)                       # (32, HW2)

    # ---- hourglass decoder (nearest x2 via matmul + conv + skip concat) ----
    u0 = jnp.dot(p1, c_ref[lay['up1']:lay['up1'] + HW2, 0:HW1],
                 preferred_element_type=f32)                       # (32, HW1)
    pad_ref[0:32, B1:B1 + HW1] = u0
    d0 = conv('d0', B1, H1, W1, lay['xm1_3'], True)                # (16, HW1)
    c0 = jnp.concatenate([d0, p0], axis=0)                         # (32, HW1)
    u1 = jnp.dot(c0, c_ref[lay['up2']:lay['up2'] + HW1, 0:HW],
                 preferred_element_type=f32)                       # (32, HW)
    pad_ref[0:32, B0:B0 + HW] = u1
    d1 = conv('d1', B0, H, W, lay['xm0_3'], True)                  # (8, HW)

    # ---- 7x7 mask head on concat([d1, x0]) ----
    pad_ref[0:8, B0:B0 + HW] = d1
    pad_ref[8:9, B0:B0 + HW] = x0
    m = conv('mk', B0, H, W, lay['xm0_7'], False)                  # (24, HW)

    # ---- segment-softmax weights (assembled once, stored once) ----
    def softmax_rows(z):
        z = z - jnp.max(z, axis=0, keepdims=True)
        e = jnp.exp(z)
        s = jnp.sum(e, axis=0, keepdims=True)
        rcp = pl.reciprocal(s, approx=True)        # EUP slot
        rcp = rcp * (2.0 - s * rcp)                # one Newton step
        return e * rcp

    seg = softmax_rows(m[NUM_KP:, :] * f32(1.0 / T_SOFTMAX))       # (4, HW)
    pieces = [seg[0:1, :]]
    off = 0
    for i, n in enumerate(NUM_PRIORS):
        pieces.append(softmax_rows(m[off:off + n, :]) * seg[i + 1:i + 2, :])
        off += n
    pieces.append(jnp.zeros((MASK_ROWS - (NUM_KP + 1), HW), f32))  # zero pad
    wall = jnp.concatenate(pieces, axis=0)                         # (24, HW)
    mask_ref[0, :, :] = wall                                       # one store

    # ---- dense deformation: d_base * sum(mask) - Off @ mask ----
    d_base = xin_ref[0, 1:3, :]                                    # (2, HW)
    wsum = jnp.sum(wall, axis=0, keepdims=True)                    # pads are 0
    corr = jnp.dot(xin_ref[0, 3:5, 0:MASK_ROWS], wall,
                   preferred_element_type=f32)                     # (2, HW)
    def_ref[0, :, :] = d_base * wsum - corr


def _hourglass_pallas(wbuf, cbuf, xin, lay):
    B = xin.shape[0]
    HW = lay['H'] * lay['W']
    kernel = functools.partial(_fused_kernel, lay=lay)
    return pl.pallas_call(
        kernel,
        out_shape=(jax.ShapeDtypeStruct((B, MASK_ROWS, HW), jnp.float32),
                   jax.ShapeDtypeStruct((B, 2, HW), jnp.float32)),
        grid=(B,),
        in_specs=[pl.BlockSpec(wbuf.shape, lambda b: (0, 0)),
                  pl.BlockSpec(cbuf.shape, lambda b: (0, 0)),
                  pl.BlockSpec((1, 8, HW), lambda b: (b, 0, 0))],
        out_specs=(pl.BlockSpec((1, MASK_ROWS, HW), lambda b: (b, 0, 0)),
                   pl.BlockSpec((1, 2, HW), lambda b: (b, 0, 0))),
        scratch_shapes=[pltpu.VMEM((PAD_C, lay['padw']), jnp.float32),
                        pltpu.VMEM((PATCH_ROWS, HW), jnp.float32)],
        compiler_params=pltpu.CompilerParams(
            dimension_semantics=("parallel",)),
    )(wbuf, cbuf, xin)


# ----------------------------- parameter prep --------------------------------
def _build_constants(lay):
    H, W = lay['H'], lay['W']
    HW = H * W
    H1, W1 = H // 2, W // 2
    HW1 = H1 * W1
    f32 = jnp.float32

    def pool_mat(h, w):
        ho, wo = h // 2, w // 2
        pin = jnp.arange(h * w)[:, None]
        pout = jnp.arange(ho * wo)[None, :]
        sel = ((pin // w) // 2 == pout // wo) & ((pin % w) // 2 == pout % wo)
        return jnp.where(sel, 0.25, 0.0).astype(f32)

    def up_mat(h, w):
        ho, wo = 2 * h, 2 * w
        pin = jnp.arange(h * w)[:, None]
        pout = jnp.arange(ho * wo)[None, :]
        sel = pin == ((pout // wo) // 2) * w + (pout % wo) // 2
        return jnp.where(sel, 1.0, 0.0).astype(f32)

    def xmask(w, hw, rw):
        px = jnp.arange(hw)[None, :] % w
        dx = jnp.arange(-rw, rw + 1)[:, None]
        return ((px + dx >= 0) & (px + dx < w)).astype(f32)

    btail = jnp.zeros((8, HW), f32).at[0, :].set(1.0)
    cbuf = jnp.zeros((lay['crows'], HW), f32)
    for key, arr in (('pool1', pool_mat(H, W)),
                     ('pool2', pool_mat(H1, W1)),
                     ('up1', up_mat(H // 4, W // 4)),
                     ('up2', up_mat(H1, W1)),
                     ('btail', btail),
                     ('xm0_3', xmask(W, HW, 1)),
                     ('xm1_3', xmask(W1, HW1, 1)),
                     ('xm0_7', xmask(W, HW, 3))):
        r = lay[key]
        cbuf = cbuf.at[r:r + arr.shape[0], 0:arr.shape[1]].set(arr)
    return cbuf


def prepare_params(params, H, W):
    """BN fold, im2col weight matrices (Cin padded, bias column), constants."""
    lay = _layout(H, W)
    f32 = jnp.float32

    def prep_conv(blk, scale, cinp):
        w = blk['w'].astype(f32)                        # (KH, KW, Cin, Cout)
        KH, KW, Cin, Cout = w.shape
        w = jnp.transpose(w, (3, 0, 1, 2)) * scale      # (Cout, KH, KW, Cin)
        w = jnp.pad(w, ((0, 0), (0, 0), (0, 0), (0, cinp - Cin)))
        w = w.reshape(Cout, KH * KW * cinp)
        bcol = jnp.zeros((Cout, 8), f32).at[:, 0].set(blk['b'].astype(f32) * scale)
        return jnp.concatenate([w, bcol], axis=1)       # (Cout, K)

    blocks = {'e0': (params['enc'][0], BN_SCALE),
              'e1': (params['enc'][1], BN_SCALE),
              'd0': (params['dec'][0], BN_SCALE),
              'd1': (params['dec'][1], BN_SCALE),
              'mk': (params['mask'], 1.0)}
    wbuf = jnp.zeros((WROWS, WCOLS), f32)
    for name, (blk, scale) in blocks.items():
        t = CONV_TAB[name]
        mat = prep_conv(blk, scale, t['cinp'])
        wbuf = wbuf.at[t['wrow']:t['wrow'] + t['cout'], 0:t['K']].set(mat)

    return {'wbuf': wbuf, 'cbuf': _build_constants(lay), 'prior': params['prior']}


# ----------------------------- model glue (plain JAX) -------------------------
def get_segment_priors(mesh, prior_params):
    # TODO(synk): motion_prior nn.Linear layers are O(bs*20) flops; kept in JAX glue.
    outs = []
    for (Wl, bl), seg in zip(prior_params, SEGMENTS):
        x = mesh[:, jnp.array(seg), :].reshape(mesh.shape[0], -1)
        outs.append(x @ Wl.T + bl)
    return jnp.concatenate(outs, axis=1)


def mesh_dense_motion_forward(prep, source_image, kp_driving, kp_source,
                              driving_mesh_image):
    f32 = jnp.float32
    bs_, _, h, w = source_image.shape
    HW = h * w
    lay = _layout(h, w)
    assert prep['cbuf'].shape == (lay['crows'], HW)
    assert prep['wbuf'].shape == (WROWS, WCOLS)

    # motion priors -> effective keypoints (kp = v_source - v_driving)
    v_d = get_segment_priors(kp_driving['value'], prep['prior']).reshape(bs_, -1, 2)
    v_s = get_segment_priors(kp_source['value'], prep['prior']).reshape(bs_, -1, 2)
    kp = v_s - v_d                                                 # (bs, 20, 2)

    # per-batch affine motion parameters (tiny; includes 3x3 inverse -> JAX)
    Rd = kp_driving['R']
    td = kp_driving['t'][..., 0]
    cd = kp_driving['c']
    Ad = cd[:, None, None] * Rd[:, :2, :] / 128.0                  # (bs,2,3)
    bd = td[:, :2] / 128.0 - 1.0                                   # (bs,2)
    Ri = jnp.linalg.inv(kp_source['R'])
    ts = kp_source['t'][..., 0]
    cs = kp_source['c']
    Ms = 128.0 * Ri[:, :2, :] / cs[:, None, None]                  # (bs,2,3)
    bsv = (Ri[:, :2, :] * (128.0 - ts)[:, None, :]).sum(-1) / cs[:, None]
    Off = (Ms[:, :, None, :2] * kp[:, None, :, :]).sum(-1)         # (bs,2,20)

    # identity-grid (keypoint-independent) deformation component d_base,
    # folded analytically and packed lane-dense (no in-kernel scalar splats).
    pix = jnp.arange(HW)
    gx = (2.0 * (pix % w) / (w - 1) - 1.0).astype(f32)             # (HW,)
    gy = (2.0 * (pix // w) / (h - 1) - 1.0).astype(f32)
    zd = kp_driving['z'].reshape(bs_, HW).astype(f32)
    zs = kp_source['normed_z'].reshape(bs_, HW).astype(f32)
    ngx = Ad[:, 0, 0:1] * gx + Ad[:, 0, 1:2] * gy + Ad[:, 0, 2:3] * zd + bd[:, 0:1]
    ngy = Ad[:, 1, 0:1] * gx + Ad[:, 1, 1:2] * gy + Ad[:, 1, 2:3] * zd + bd[:, 1:2]
    dbx = Ms[:, 0, 0:1] * ngx + Ms[:, 0, 1:2] * ngy + Ms[:, 0, 2:3] * zs + bsv[:, 0:1]
    dby = Ms[:, 1, 0:1] * ngx + Ms[:, 1, 1:2] * ngy + Ms[:, 1, 2:3] * zs + bsv[:, 1:2]

    # single lane-dense per-batch input: x0 | d_base | correction coefficients
    xin = jnp.zeros((bs_, 8, HW), f32)
    xin = xin.at[:, 0, :].set(driving_mesh_image[:, 0].reshape(bs_, HW).astype(f32))
    xin = xin.at[:, 1, :].set(dbx)
    xin = xin.at[:, 2, :].set(dby)
    xin = xin.at[:, 3:5, 1:NUM_KP + 1].set(Off.astype(f32))        # wall24 layout

    mask_full, deform = _hourglass_pallas(prep['wbuf'], prep['cbuf'], xin, lay)

    mask = mask_full[:, :NUM_KP + 1].reshape(bs_, NUM_KP + 1, h, w)
    deformation = jnp.transpose(deform.reshape(bs_, 2, h, w), (0, 2, 3, 1))
    return {'mask': mask, 'deformation': deformation}


# ----------------------------- pure-JAX reference -----------------------------
def _conv_ref(x, w, b):
    y = lax.conv_general_dilated(x, w, (1, 1), 'SAME',
                                 dimension_numbers=('NCHW', 'HWIO', 'NCHW'),
                                 precision=lax.Precision.HIGHEST)
    return y + b[None, :, None, None]


def forward_reference(params, source_image, kp_driving, kp_source, driving_mesh_image):
    bs_, _, h, w = source_image.shape
    v_d = get_segment_priors(kp_driving['value'], params['prior']).reshape(bs_, -1, 2)
    v_s = get_segment_priors(kp_source['value'], params['prior']).reshape(bs_, -1, 2)
    kp = v_s - v_d

    # sparse motion (follows PyTorch op order)
    xg = 2.0 * (jnp.arange(w, dtype=jnp.float32) / (w - 1)) - 1.0
    yg = 2.0 * (jnp.arange(h, dtype=jnp.float32) / (h - 1)) - 1.0
    xx = jnp.tile(xg[None, :], (h, 1))
    yy = jnp.tile(yg[:, None], (1, w))
    grid = jnp.broadcast_to(jnp.stack([xx, yy], -1)[None, None], (bs_, 1, h, w, 2))
    id3 = jnp.concatenate([grid, kp_driving['z'][:, None]], axis=4)
    Rd, td, cd = kp_driving['R'], kp_driving['t'][..., 0], kp_driving['c']
    tmp = (Rd[:, None, None, None, :, :] * id3[..., None, :]).sum(-1)
    tmp = tmp * cd[:, None, None, None, None] + td[:, None, None, None, :]
    normalized = (tmp / 128.0 - 1.0)[..., :2]
    coord = normalized - kp.reshape(bs_, NUM_KP, 1, 1, 2)
    d2s = jnp.concatenate([normalized, coord], axis=1)
    zsrc = jnp.broadcast_to(kp_source['normed_z'][:, None], (bs_, NUM_KP + 1, h, w, 1))
    d2s = jnp.concatenate([d2s, zsrc], axis=4)
    Ri = jnp.linalg.inv(kp_source['R'])
    ts, cs = kp_source['t'][..., 0], kp_source['c']
    tmp = 128.0 * (d2s + 1.0) - ts[:, None, None, None, :]
    tmp = (Ri[:, None, None, None, :, :] * tmp[..., None, :]).sum(-1)
    sparse_motion = (tmp / cs[:, None, None, None, None])[..., :2]

    # hourglass + mask conv
    outs = [driving_mesh_image[:, 0:1]]
    for blk in params['enc']:
        yv = jnp.maximum(_conv_ref(outs[-1], blk['w'], blk['b']) * BN_SCALE, 0.0)
        b2, c2, H2, W2 = yv.shape
        yv = yv.reshape(b2, c2, H2 // 2, 2, W2 // 2, 2).mean(axis=(3, 5))
        outs.append(yv)
    out = outs.pop()
    for blk in params['dec']:
        out = jnp.repeat(jnp.repeat(out, 2, axis=2), 2, axis=3)
        out = jnp.maximum(_conv_ref(out, blk['w'], blk['b']) * BN_SCALE, 0.0)
        out = jnp.concatenate([out, outs.pop()], axis=1)
    ml = _conv_ref(out, params['mask']['w'], params['mask']['b'])

    seg = jax.nn.softmax(ml[:, NUM_KP:] / T_SOFTMAX, axis=1)
    weights = [seg[:, 0:1]]
    off = 0
    for i, n in enumerate(NUM_PRIORS):
        wgt = jax.nn.softmax(ml[:, off:off + n], axis=1)
        weights.append(wgt * seg[:, i + 1:i + 2])
        off += n
    mask = jnp.concatenate(weights, axis=1)

    sm = jnp.transpose(sparse_motion, (0, 1, 4, 2, 3))
    deformation = (sm * mask[:, :, None]).sum(axis=1)
    return {'mask': mask, 'deformation': jnp.transpose(deformation, (0, 2, 3, 1))}


# ----------------------------- init / main ------------------------------------
def init_params(key):
    keys = jax.random.split(key, 16)
    ki = iter(keys)

    def conv_init(k, kh, kw, cin, cout):
        k1, k2 = jax.random.split(k)
        return {'w': 0.1 * jax.random.normal(k1, (kh, kw, cin, cout), jnp.float32),
                'b': 0.1 * jax.random.normal(k2, (cout,), jnp.float32)}

    enc_dims, dec_dims = [], []
    for i in range(NUM_BLOCKS):
        cin = 1 if i == 0 else min(MAX_FEATURES, BLOCK_EXPANSION * (2 ** i))
        cout = min(MAX_FEATURES, BLOCK_EXPANSION * (2 ** (i + 1)))
        enc_dims.append((cin, cout))
    for i in reversed(range(NUM_BLOCKS)):
        cin = (1 if i == NUM_BLOCKS - 1 else 2) * min(MAX_FEATURES, BLOCK_EXPANSION * (2 ** (i + 1)))
        cout = min(MAX_FEATURES, BLOCK_EXPANSION * (2 ** i))
        dec_dims.append((cin, cout))
    out_filters = BLOCK_EXPANSION + 1

    enc = [conv_init(next(ki), 3, 3, ci, co) for ci, co in enc_dims]
    dec = [conv_init(next(ki), 3, 3, ci, co) for ci, co in dec_dims]
    mask = conv_init(next(ki), 7, 7, out_filters, NUM_KP + 1 + len(SEGMENTS))
    prior = []
    for seg, npri in zip(SEGMENTS, NUM_PRIORS):
        k1, k2 = jax.random.split(next(ki))
        prior.append((0.1 * jax.random.normal(k1, (npri * 2, len(seg) * 2), jnp.float32),
                      0.1 * jax.random.normal(k2, (npri * 2,), jnp.float32)))
    return {'enc': enc, 'dec': dec, 'mask': mask, 'prior': prior}


def make_kp(key, bs_, h, w):
    k = jax.random.split(key, 6)
    R, _ = jnp.linalg.qr(jax.random.normal(k[2], (bs_, 3, 3), jnp.float32))
    return {'value': jax.random.normal(k[0], (bs_, N_MESH, 2), jnp.float32),
            'z': 0.1 * jax.random.normal(k[1], (bs_, h, w, 1), jnp.float32),
            'normed_z': 0.1 * jax.random.normal(k[5], (bs_, h, w, 1), jnp.float32),
            'R': R.astype(jnp.float32),
            't': 5.0 * jax.random.normal(k[3], (bs_, 3, 1), jnp.float32),
            'c': jax.random.uniform(k[4], (bs_,), jnp.float32, 0.8, 1.2)}


if __name__ == "__main__":
    bs_, h, w = 2, 16, 16
    root = jax.random.PRNGKey(0)
    k_par, k_src, k_drv, k_im1, k_im2 = jax.random.split(root, 5)

    params = init_params(k_par)
    prep = prepare_params(params, h, w)     # one-time: BN fold, im2col weights, constants
    kp_source = make_kp(k_src, bs_, h, w)
    kp_driving = make_kp(k_drv, bs_, h, w)
    source_image = jax.random.normal(k_im1, (bs_, NUM_CHANNELS, h, w), jnp.float32)
    driving_mesh_image = jax.random.normal(k_im2, (bs_, NUM_CHANNELS, h, w), jnp.float32)

    fwd = jax.jit(mesh_dense_motion_forward)
    out = fwd(prep, source_image, kp_driving, kp_source, driving_mesh_image)
    jax.block_until_ready(out)

    ref = forward_reference(params, source_image, kp_driving, kp_source, driving_mesh_image)

    assert out['mask'].shape == (bs_, NUM_KP + 1, h, w)
    assert out['deformation'].shape == (bs_, h, w, 2)
    assert bool(jnp.allclose(out['mask'], ref['mask'], rtol=1e-2, atol=2e-3)), \
        float(jnp.max(jnp.abs(out['mask'] - ref['mask'])))
    assert bool(jnp.allclose(out['deformation'], ref['deformation'], rtol=1e-2, atol=5e-2)), \
        float(jnp.max(jnp.abs(out['deformation'] - ref['deformation'])))

    print("KERNEL_OK")
</pallas_src>

<mosaic_0001>
module attributes {stable_mosaic.version = 11 : i64} {
  func.func @_fused_kernel(%arg0: i32, %arg1: memref<96x896xf32, #tpu.memory_space<vmem>>, %arg2: memref<424x256xf32, #tpu.memory_space<vmem>>, %arg3: memref<1x8x256xf32, #tpu.memory_space<vmem>>, %arg4: memref<1x24x256xf32, #tpu.memory_space<vmem>>, %arg5: memref<1x2x256xf32, #tpu.memory_space<vmem>>, %arg6: memref<32x640xf32, #tpu.memory_space<vmem>>, %arg7: memref<792x256xf32, #tpu.memory_space<vmem>>) attributes {dimension_semantics = [#tpu.dimension_semantics<parallel>], iteration_bounds = array<i64: 2>, scalar_prefetch = 0 : i64, scratch_operands = 2 : i64, tpu.core_type = #tpu.core_type<tc>, window_params = [{pipeline_mode = #tpu.pipeline_mode<synchronous>, transform_indices = @transform_0, window_bounds = array<i64: 96, 896>}, {pipeline_mode = #tpu.pipeline_mode<synchronous>, transform_indices = @transform_1, window_bounds = array<i64: 424, 256>}, {transform_indices = @transform_2, window_bounds = array<i64: 1, 8, 256>}, {transform_indices = @transform_3, window_bounds = array<i64: 1, 24, 256>}, {transform_indices = @transform_4, window_bounds = array<i64: 1, 2, 256>}]} {
    %cst = arith.constant 0.000000e+00 : f32
    %0 = vector.broadcast %cst : f32 to vector<32x640xf32>
    %c0 = arith.constant 0 : index
    %c0_0 = arith.constant 0 : index
    %1 = vector.load %arg6[%c0, %c0_0] : memref<32x640xf32, #tpu.memory_space<vmem>>, vector<32x640xf32>
    tpu.vector_store %arg6[%c0, %c0_0], %0 {strides = array<i32>} : memref<32x640xf32, #tpu.memory_space<vmem>>, vector<32x640xf32>,
    %c0_1 = arith.constant 0 : index
    %c0_2 = arith.constant 0 : index
    %c0_3 = arith.constant 0 : index
    %2 = vector.load %arg3[%c0_1, %c0_2, %c0_3] : memref<1x8x256xf32, #tpu.memory_space<vmem>>, vector<1x1x256xf32>
    %3 = vector.shape_cast %2 : vector<1x1x256xf32> to vector<1x256xf32>
    %c0_4 = arith.constant 0 : index
    %c128 = arith.constant 128 : index
    %4 = vector.load %arg6[%c0_4, %c128] : memref<32x640xf32, #tpu.memory_space<vmem>>, vector<1x256xf32>
    tpu.vector_store %arg6[%c0_4, %c128], %3 {strides = array<i32>} : memref<32x640xf32, #tpu.memory_space<vmem>>, vector<1x256xf32>,
    %c400 = arith.constant 400 : index
    %c0_5 = arith.constant 0 : index
    %5 = vector.load %arg2[%c400, %c0_5] : memref<424x256xf32, #tpu.memory_space<vmem>>, vector<8x256xf32>
    %c72 = arith.constant 72 : index
    %c0_6 = arith.constant 0 : index
    %6 = vector.load %arg7[%c72, %c0_6] : memref<792x256xf32, #tpu.memory_space<vmem>>, vector<8x256xf32>
    tpu.vector_store %arg7[%c72, %c0_6], %5 {strides = array<i32>} : memref<792x256xf32, #tpu.memory_space<vmem>>, vector<8x256xf32>,
    %c408 = arith.constant 408 : index
    %c0_7 = arith.constant 0 : index
    %7 = vector.load %arg2[%c408, %c0_7] : memref<424x256xf32, #tpu.memory_space<vmem>>, vector<1x256xf32>
    %c0_8 = arith.constant 0 : index
    %c111 = arith.constant 111 : index
    %8 = vector.load %arg6[%c0_8, %c111] : memref<32x640xf32, #tpu.memory_space<vmem>>, vector<8x256xf32>
    %9 = vector.broadcast %7 : vector<1x256xf32> to vector<8x256xf32>
    %10 = arith.mulf %8, %9 : vector<8x256xf32>
    %c0_9 = arith.constant 0 : index
    %c0_10 = arith.constant 0 : index
    %11 = vector.load %arg7[%c0_9, %c0_10] : memref<792x256xf32, #tpu.memory_space<vmem>>, vector<8x256xf32>
    tpu.vector_store %arg7[%c0_9, %c0_10], %10 {strides = array<i32>} : memref<792x256xf32, #tpu.memory_space<vmem>>, vector<8x256xf32>,
    %c0_11 = arith.constant 0 : index
    %c127 = arith.constant 127 : index
    %12 = vector.load %arg6[%c0_11, %c127] : memref<32x640xf32, #tpu.memory_space<vmem>>, vector<8x256xf32>
    %13 = vector.broadcast %7 : vector<1x256xf32> to vector<8x256xf32>
    %14 = arith.mulf %12, %13 : vector<8x256xf32>
    %c24 = arith.constant 24 : index
    %c0_12 = arith.constant 0 : index
    %15 = vector.load %arg7[%c24, %c0_12] : memref<792x256xf32, #tpu.memory_space<vmem>>, vector<8x256xf32>
    tpu.vector_store %arg7[%c24, %c0_12], %14 {strides = array<i32>} : memref<792x256xf32, #tpu.memory_space<vmem>>, vector<8x256xf32>,
    %c0_13 = arith.constant 0 : index
    %c143 = arith.constant 143 : index
    %16 = vector.load %arg6[%c0_13, %c143] : memref<32x640xf32, #tpu.memory_space<vmem>>, vector<8x256xf32>
    %17 = vector.broadcast %7 : vector<1x256xf32> to vector<8x256xf32>
    %18 = arith.mulf %16, %17 : vector<8x256xf32>
    %c48 = arith.constant 48 : index
    %c0_14 = arith.constant 0 : index
    %19 = vector.load %arg7[%c48, %c0_14] : memref<792x256xf32, #tpu.memory_space<vmem>>, vector<8x256xf32>
    tpu.vector_store %arg7[%c48, %c0_14], %18 {strides = array<i32>} : memref<792x256xf32, #tpu.memory_space<vmem>>, vector<8x256xf32>,
    %c409 = arith.constant 409 : index
    %c0_15 = arith.constant 0 : index
    %20 = vector.load %arg2[%c409, %c0_15] : memref<424x256xf32, #tpu.memory_space<vmem>>, vector<1x256xf32>
    %c0_16 = arith.constant 0 : index
    %c112 = arith.constant 112 : index
    %21 = vector.load %arg6[%c0_16, %c112] : memref<32x640xf32, #tpu.memory_space<vmem>>, vector<8x256xf32>
    %22 = vector.broadcast %20 : vector<1x256xf32> to vector<8x256xf32>
    %23 = arith.mulf %21, %22 : vector<8x256xf32>
    %c8 = arith.constant 8 : index
    %c0_17 = arith.constant 0 : index
    %24 = vector.load %arg7[%c8, %c0_17] : memref<792x256xf32, #tpu.memory_space<vmem>>, vector<8x256xf32>
    tpu.vector_store %arg7[%c8, %c0_17], %23 {strides = array<i32>} : memref<792x256xf32, #tpu.memory_space<vmem>>, vector<8x256xf32>,
    %c0_18 = arith.constant 0 : index
    %c128_19 = arith.constant 128 : index
    %25 = vector.load %arg6[%c0_18, %c128_19] : memref<32x640xf32, #tpu.memory_space<vmem>>, vector<8x256xf32>
    %26 = vector.broadcast %20 : vector<1x256xf32> to vector<8x256xf32>
    %27 = arith.mulf %25, %26 : vector<8x256xf32>
    %c32 = arith.constant 32 : index
    %c0_20 = arith.constant 0 : index
    %28 = vector.load %arg7[%c32, %c0_20] : memref<792x256xf32, #tpu.memory_space<vmem>>, vector<8x256xf32>
    tpu.vector_store %arg7[%c32, %c0_20], %27 {strides = array<i32>} : memref<792x256xf32, #tpu.memory_space<vmem>>, vector<8x256xf32>,
    %c0_21 = arith.constant 0 : index
    %c144 = arith.constant 144 : index
    %29 = vector.load %arg6[%c0_21, %c144] : memref<32x640xf32, #tpu.memory_space<vmem>>, vector<8x256xf32>
    %30 = vector.broadcast %20 : vector<1x256xf32> to vector<8x256xf32>
    %31 = arith.mulf %29, %30 : vector<8x256xf32>
    %c56 = arith.constant 56 : index
    %c0_22 = arith.constant 0 : index
    %32 = vector.load %arg7[%c56, %c0_22] : memref<792x256xf32, #tpu.memory_space<vmem>>, vector<8x256xf32>
    tpu.vector_store %arg7[%c56, %c0_22], %31 {strides = array<i32>} : memref<792x256xf32, #tpu.memory_space<vmem>>, vector<8x256xf32>,
    %c410 = arith.constant 410 : index
    %c0_23 = arith.constant 0 : index
    %33 = vector.load %arg2[%c410, %c0_23] : memref<424x256xf32, #tpu.memory_space<vmem>>, vector<1x256xf32>
    %c0_24 = arith.constant 0 : index
    %c113 = arith.constant 113 : index
    %34 = vector.load %arg6[%c0_24, %c113] : memref<32x640xf32, #tpu.memory_space<vmem>>, vector<8x256xf32>
    %35 = vector.broadcast %33 : vector<1x256xf32> to vector<8x256xf32>
    %36 = arith.mulf %34, %35 : vector<8x256xf32>
    %c16 = arith.constant 16 : index
    %c0_25 = arith.constant 0 : index
    %37 = vector.load %arg7[%c16, %c0_25] : memref<792x256xf32, #tpu.memory_space<vmem>>, vector<8x256xf32>
    tpu.vector_store %arg7[%c16, %c0_25], %36 {strides = array<i32>} : memref<792x256xf32, #tpu.memory_space<vmem>>, vector<8x256xf32>,
    %c0_26 = arith.constant 0 : index
    %c129 = arith.constant 129 : index
    %38 = vector.load %arg6[%c0_26, %c129] : memref<32x640xf32, #tpu.memory_space<vmem>>, vector<8x256xf32>
    %39 = vector.broadcast %33 : vector<1x256xf32> to vector<8x256xf32>
    %40 = arith.mulf %38, %39 : vector<8x256xf32>
    %c40 = arith.constant 40 : index
    %c0_27 = arith.constant 0 : index
    %41 = vector.load %arg7[%c40, %c0_27] : memref<792x256xf32, #tpu.memory_space<vmem>>, vector<8x256xf32>
    tpu.vector_store %arg7[%c40, %c0_27], %40 {strides = array<i32>} : memref<792x256xf32, #tpu.memory_space<vmem>>, vector<8x256xf32>,
    %c0_28 = arith.constant 0 : index
    %c145 = arith.constant 145 : index
    %42 = vector.load %arg6[%c0_28, %c145] : memref<32x640xf32, #tpu.memory_space<vmem>>, vector<8x256xf32>
    %43 = vector.broadcast %33 : vector<1x256xf32> to vector<8x256xf32>
    %44 = arith.mulf %42, %43 : vector<8x256xf32>
    %c64 = arith.constant 64 : index
    %c0_29 = arith.constant 0 : index
    %45 = vector.load %arg7[%c64, %c0_29] : memref<792x256xf32, #tpu.memory_space<vmem>>, vector<8x256xf32>
    tpu.vector_store %arg7[%c64, %c0_29], %44 {strides = array<i32>} : memref<792x256xf32, #tpu.memory_space<vmem>>, vector<8x256xf32>,
    %c0_30 = arith.constant 0 : index
    %c0_31 = arith.constant 0 : index
    %46 = vector.load %arg1[%c0_30, %c0_31] : memref<96x896xf32, #tpu.memory_space<vmem>>, vector<16x80xf32>
    %c0_32 = arith.constant 0 : index
    %c0_33 = arith.constant 0 : index
    %47 = vector.load %arg7[%c0_32, %c0_33] : memref<792x256xf32, #tpu.memory_space<vmem>>, vector<80x256xf32>
    %cst_34 = arith.constant dense<0.000000e+00> : vector<16x256xf32>
    %48 = tpu.matmul %46, %47, %cst_34 {dimension_numbers = #tpu.dot_dimension_numbers<[1], [0], [0], [1], [0, 0, 1, 1], [], []>} : vector<16x80xf32>, vector<80x256xf32>, vector<16x256xf32> -> vector<16x256xf32>
    %cst_35 = arith.constant 0.000000e+00 : f32
    %49 = vector.broadcast %cst_35 : f32 to vector<16x256xf32>
    %50 = arith.maximumf %48, %49 : vector<16x256xf32>
    %c0_36 = arith.constant 0 : index
    %c0_37 = arith.constant 0 : index
    %51 = vector.load %arg2[%c0_36, %c0_37] : memref<424x256xf32, #tpu.memory_space<vmem>>, vector<256x64xf32>
    %cst_38 = arith.constant dense<0.000000e+00> : vector<16x64xf32>
    %52 = tpu.matmul %50, %51, %cst_38 {dimension_numbers = #tpu.dot_dimension_numbers<[1], [0], [0], [1], [0, 0, 1, 1], [], []>} : vector<16x256xf32>, vector<256x64xf32>, vector<16x64xf32> -> vector<16x64xf32>
    %c0_39 = arith.constant 0 : index
    %c512 = arith.constant 512 : index
    %53 = vector.load %arg6[%c0_39, %c512] : memref<32x640xf32, #tpu.memory_space<vmem>>, vector<16x64xf32>
    tpu.vector_store %arg6[%c0_39, %c512], %52 {strides = array<i32>} : memref<32x640xf32, #tpu.memory_space<vmem>>, vector<16x64xf32>,
    %c400_40 = arith.constant 400 : index
    %c0_41 = arith.constant 0 : index
    %54 = vector.load %arg2[%c400_40, %c0_41] : memref<424x256xf32, #tpu.memory_space<vmem>>, vector<8x64xf32>
    %c144_42 = arith.constant 144 : index
    %c0_43 = arith.constant 0 : index
    %55 = vector.load %arg7[%c144_42, %c0_43] : memref<792x256xf32, #tpu.memory_space<vmem>>, vector<8x64xf32>
    tpu.vector_store %arg7[%c144_42, %c0_43], %54 {strides = array<i32>} : memref<792x256xf32, #tpu.memory_space<vmem>>, vector<8x64xf32>,
    %c411 = arith.constant 411 : index
    %c0_44 = arith.constant 0 : index
    %56 = vector.load %arg2[%c411, %c0_44] : memref<424x256xf32, #tpu.memory_space<vmem>>, vector<1x64xf32>
    %c0_45 = arith.constant 0 : index
    %c503 = arith.constant 503 : index
    %57 = vector.load %arg6[%c0_45, %c503] : memref<32x640xf32, #tpu.memory_space<vmem>>, vector<16x64xf32>
    %58 = vector.broadcast %56 : vector<1x64xf32> to vector<16x64xf32>
    %59 = arith.mulf %57, %58 : vector<16x64xf32>
    %c0_46 = arith.constant 0 : index
    %c0_47 = arith.constant 0 : index
    %60 = vector.load %arg7[%c0_46, %c0_47] : memref<792x256xf32, #tpu.memory_space<vmem>>, vector<16x64xf32>
    tpu.vector_store %arg7[%c0_46, %c0_47], %59 {strides = array<i32>} : memref<792x256xf32, #tpu.memory_space<vmem>>, vector<16x64xf32>,
    %c0_48 = arith.constant 0 : index
    %c511 = arith.constant 511 : index
    %61 = vector.load %arg6[%c0_48, %c511] : memref<32x640xf32, #tpu.memory_space<vmem>>, vector<16x64xf32>
    %62 = vector.broadcast %56 : vector<1x64xf32> to vector<16x64xf32>
    %63 = arith.mulf %61, %62 : vector<16x64xf32>
    %c48_49 = arith.constant 48 : index
    %c0_50 = arith.constant 0 : index
    %64 = vector.load %arg7[%c48_49, %c0_50] : memref<792x256xf32, #tpu.memory_space<vmem>>, vector<16x64xf32>
    tpu.vector_store %arg7[%c48_49, %c0_50], %63 {strides = array<i32>} : memref<792x256xf32, #tpu.memory_space<vmem>>, vector<16x64xf32>,
    %c0_51 = arith.constant 0 : index
    %c519 = arith.constant 519 : index
    %65 = vector.load %arg6[%c0_51, %c519] : memref<32x640xf32, #tpu.memory_space<vmem>>, vector<16x64xf32>
    %66 = vector.broadcast %56 : vector<1x64xf32> to vector<16x64xf32>
    %67 = arith.mulf %65, %66 : vector<16x64xf32>
    %c96 = arith.constant 96 : index
    %c0_52 = arith.constant 0 : index
    %68 = vector.load %arg7[%c96, %c0_52] : memref<792x256xf32, #tpu.memory_space<vmem>>, vector<16x64xf32>
    tpu.vector_store %arg7[%c96, %c0_52], %67 {strides = array<i32>} : memref<792x256xf32, #tpu.memory_space<vmem>>, vector<16x64xf32>,
    %c412 = arith.constant 412 : index
    %c0_53 = arith.constant 0 : index
    %69 = vector.load %arg2[%c412, %c0_53] : memref<424x256xf32, #tpu.memory_space<vmem>>, vector<1x64xf32>
    %c0_54 = arith.constant 0 : index
    %c504 = arith.constant 504 : index
    %70 = vector.load %arg6[%c0_54, %c504] : memref<32x640xf32, #tpu.memory_space<vmem>>, vector<16x64xf32>
    %71 = vector.broadcast %69 : vector<1x64xf32> to vector<16x64xf32>
    %72 = arith.mulf %70, %71 : vector<16x64xf32>
    %c16_55 = arith.constant 16 : index
    %c0_56 = arith.constant 0 : index
    %73 = vector.load %arg7[%c16_55, %c0_56] : memref<792x256xf32, #tpu.memory_space<vmem>>, vector<16x64xf32>
    tpu.vector_store %arg7[%c16_55, %c0_56], %72 {strides = array<i32>} : memref<792x256xf32, #tpu.memory_space<vmem>>, vector<16x64xf32>,
    %c0_57 = arith.constant 0 : index
    %c512_58 = arith.constant 512 : index
    %74 = vector.load %arg6[%c0_57, %c512_58] : memref<32x640xf32, #tpu.memory_space<vmem>>, vector<16x64xf32>
    %75 = vector.broadcast %69 : vector<1x64xf32> to vector<16x64xf32>
    %76 = arith.mulf %74, %75 : vector<16x64xf32>
    %c64_59 = arith.constant 64 : index
    %c0_60 = arith.constant 0 : index
    %77 = vector.load %arg7[%c64_59, %c0_60] : memref<792x256xf32, #tpu.memory_space<vmem>>, vector<16x64xf32>
    tpu.vector_store %arg7[%c64_59, %c0_60], %76 {strides = array<i32>} : memref<792x256xf32, #tpu.memory_space<vmem>>, vector<16x64xf32>,
    %c0_61 = arith.constant 0 : index
    %c520 = arith.constant 520 : index
    %78 = vector.load %arg6[%c0_61, %c520] : memref<32x640xf32, #tpu.memory_space<vmem>>, vector<16x64xf32>
    %79 = vector.broadcast %69 : vector<1x64xf32> to vector<16x64xf32>
    %80 = arith.mulf %78, %79 : vector<16x64xf32>
    %c112_62 = arith.constant 112 : index
    %c0_63 = arith.constant 0 : index
    %81 = vector.load %arg7[%c112_62, %c0_63] : memref<792x256xf32, #tpu.memory_space<vmem>>, vector<16x64xf32>
    tpu.vector_store %arg7[%c112_62, %c0_63], %80 {strides = array<i32>} : memref<792x256xf32, #tpu.memory_space<vmem>>, vector<16x64xf32>,
    %c413 = arith.constant 413 : index
    %c0_64 = arith.constant 0 : index
    %82 = vector.load %arg2[%c413, %c0_64] : memref<424x256xf32, #tpu.memory_space<vmem>>, vector<1x64xf32>
    %c0_65 = arith.constant 0 : index
    %c505 = arith.constant 505 : index
    %83 = vector.load %arg6[%c0_65, %c505] : memref<32x640xf32, #tpu.memory_space<vmem>>, vector<16x64xf32>
    %84 = vector.broadcast %82 : vector<1x64xf32> to vector<16x64xf32>
    %85 = arith.mulf %83, %84 : vector<16x64xf32>
    %c32_66 = arith.constant 32 : index
    %c0_67 = arith.constant 0 : index
    %86 = vector.load %arg7[%c32_66, %c0_67] : memref<792x256xf32, #tpu.memory_space<vmem>>, vector<16x64xf32>
    tpu.vector_store %arg7[%c32_66, %c0_67], %85 {strides = array<i32>} : memref<792x256xf32, #tpu.memory_space<vmem>>, vector<16x64xf32>,
    %c0_68 = arith.constant 0 : index
    %c513 = arith.constant 513 : index
    %87 = vector.load %arg6[%c0_68, %c513] : memref<32x640xf32, #tpu.memory_space<vmem>>, vector<16x64xf32>
    %88 = vector.broadcast %82 : vector<1x64xf32> to vector<16x64xf32>
    %89 = arith.mulf %87, %88 : vector<16x64xf32>
    %c80 = arith.constant 80 : index
    %c0_69 = arith.constant 0 : index
    %90 = vector.load %arg7[%c80, %c0_69] : memref<792x256xf32, #tpu.memory_space<vmem>>, vector<16x64xf32>
    tpu.vector_store %arg7[%c80, %c0_69], %89 {strides = array<i32>} : memref<792x256xf32, #tpu.memory_space<vmem>>, vector<16x64xf32>,
    %c0_70 = arith.constant 0 : index
    %c521 = arith.constant 521 : index
    %91 = vector.load %arg6[%c0_70, %c521] : memref<32x640xf32, #tpu.memory_space<vmem>>, vector<16x64xf32>
    %92 = vector.broadcast %82 : vector<1x64xf32> to vector<16x64xf32>
    %93 = arith.mulf %91, %92 : vector<16x64xf32>
    %c128_71 = arith.constant 128 : index
    %c0_72 = arith.constant 0 : index
    %94 = vector.load %arg7[%c128_71, %c0_72] : memref<792x256xf32, #tpu.memory_space<vmem>>, vector<16x64xf32>
    tpu.vector_store %arg7[%c128_71, %c0_72], %93 {strides = array<i32>} : memref<792x256xf32, #tpu.memory_space<vmem>>, vector<16x64xf32>,
    %c16_73 = arith.constant 16 : index
    %c0_74 = arith.constant 0 : index
    %95 = vector.load %arg1[%c16_73, %c0_74] : memref<96x896xf32, #tpu.memory_space<vmem>>, vector<32x152xf32>
    %c0_75 = arith.constant 0 : index
    %c0_76 = arith.constant 0 : index
    %96 = vector.load %arg7[%c0_75, %c0_76] : memref<792x256xf32, #tpu.memory_space<vmem>>, vector<152x64xf32>
    %cst_77 = arith.constant dense<0.000000e+00> : vector<32x64xf32>
    %97 = tpu.matmul %95, %96, %cst_77 {dimension_numbers = #tpu.dot_dimension_numbers<[1], [0], [0], [1], [0, 0, 1, 1], [], []>} : vector<32x152xf32>, vector<152x64xf32>, vector<32x64xf32> -> vector<32x64xf32>
    %cst_78 = arith.constant 0.000000e+00 : f32
    %98 = vector.broadcast %cst_78 : f32 to vector<32x64xf32>
    %99 = arith.maximumf %97, %98 : vector<32x64xf32>
    %c256 = arith.constant 256 : index
    %c0_79 = arith.constant 0 : index
    %100 = vector.load %arg2[%c256, %c0_79] : memref<424x256xf32, #tpu.memory_space<vmem>>, vector<64x16xf32>
    %cst_80 = arith.constant dense<0.000000e+00> : vector<32x16xf32>
    %101 = tpu.matmul %99, %100, %cst_80 {dimension_numbers = #tpu.dot_dimension_numbers<[1], [0], [0], [1], [0, 0, 1, 1], [], []>} : vector<32x64xf32>, vector<64x16xf32>, vector<32x16xf32> -> vector<32x16xf32>
    %c320 = arith.constant 320 : index
    %c0_81 = arith.constant 0 : index
    %102 = vector.load %arg2[%c320, %c0_81] : memref<424x256xf32, #tpu.memory_space<vmem>>, vector<16x64xf32>
    %cst_82 = arith.constant dense<0.000000e+00> : vector<32x64xf32>
    %103 = tpu.matmul %101, %102, %cst_82 {dimension_numbers = #tpu.dot_dimension_numbers<[1], [0], [0], [1], [0, 0, 1, 1], [], []>} : vector<32x16xf32>, vector<16x64xf32>, vector<32x64xf32> -> vector<32x64xf32>
    %c0_83 = arith.constant 0 : index
    %c512_84 = arith.constant 512 : index
    %104 = vector.load %arg6[%c0_83, %c512_84] : memref<32x640xf32, #tpu.memory_space<vmem>>, vector<32x64xf32>
    tpu.vector_store %arg6[%c0_83, %c512_84], %103 {strides = array<i32>} : memref<32x640xf32, #tpu.memory_space<vmem>>, vector<32x64xf32>,
    %c400_85 = arith.constant 400 : index
    %c0_86 = arith.constant 0 : index
    %105 = vector.load %arg2[%c400_85, %c0_86] : memref<424x256xf32, #tpu.memory_space<vmem>>, vector<8x64xf32>
    %c288 = arith.constant 288 : index
    %c0_87 = arith.constant 0 : index
    %106 = vector.load %arg7[%c288, %c0_87] : memref<792x256xf32, #tpu.memory_space<vmem>>, vector<8x64xf32>
    tpu.vector_store %arg7[%c288, %c0_87], %105 {strides = array<i32>} : memref<792x256xf32, #tpu.memory_space<vmem>>, vector<8x64xf32>,
    %c411_88 = arith.constant 411 : index
    %c0_89 = arith.constant 0 : index
    %107 = vector.load %arg2[%c411_88, %c0_89] : memref<424x256xf32, #tpu.memory_space<vmem>>, vector<1x64xf32>
    %c0_90 = arith.constant 0 : index
    %c503_91 = arith.constant 503 : index
    %108 = vector.load %arg6[%c0_90, %c503_91] : memref<32x640xf32, #tpu.memory_space<vmem>>, vector<32x64xf32>
    %109 = vector.broadcast %107 : vector<1x64xf32> to vector<32x64xf32>
    %110 = arith.mulf %108, %109 : vector<32x64xf32>
    %c0_92 = arith.constant 0 : index
    %c0_93 = arith.constant 0 : index
    %111 = vector.load %arg7[%c0_92, %c0_93] : memref<792x256xf32, #tpu.memory_space<vmem>>, vector<32x64xf32>
    tpu.vector_store %arg7[%c0_92, %c0_93], %110 {strides = array<i32>} : memref<792x256xf32, #tpu.memory_space<vmem>>, vector<32x64xf32>,
    %c0_94 = arith.constant 0 : index
    %c511_95 = arith.constant 511 : index
    %112 = vector.load %arg6[%c0_94, %c511_95] : memref<32x640xf32, #tpu.memory_space<vmem>>, vector<32x64xf32>
    %113 = vector.broadcast %107 : vector<1x64xf32> to vector<32x64xf32>
    %114 = arith.mulf %112, %113 : vector<32x64xf32>
    %c96_96 = arith.constant 96 : index
    %c0_97 = arith.constant 0 : index
    %115 = vector.load %arg7[%c96_96, %c0_97] : memref<792x256xf32, #tpu.memory_space<vmem>>, vector<32x64xf32>
    tpu.vector_store %arg7[%c96_96, %c0_97], %114 {strides = array<i32>} : memref<792x256xf32, #tpu.memory_space<vmem>>, vector<32x64xf32>,
    %c0_98 = arith.constant 0 : index
    %c519_99 = arith.constant 519 : index
    %116 = vector.load %arg6[%c0_98, %c519_99] : memref<32x640xf32, #tpu.memory_space<vmem>>, vector<32x64xf32>
    %117 = vector.broadcast %107 : vector<1x64xf32> to vector<32x64xf32>
    %118 = arith.mulf %116, %117 : vector<32x64xf32>
    %c192 = arith.constant 192 : index
    %c0_100 = arith.constant 0 : index
    %119 = vector.load %arg7[%c192, %c0_100] : memref<792x256xf32, #tpu.memory_space<vmem>>, vector<32x64xf32>
    tpu.vector_store %arg7[%c192, %c0_100], %118 {strides = array<i32>} : memref<792x256xf32, #tpu.memory_space<vmem>>, vector<32x64xf32>,
    %c412_101 = arith.constant 412 : index
    %c0_102 = arith.constant 0 : index
    %120 = vector.load %arg2[%c412_101, %c0_102] : memref<424x256xf32, #tpu.memory_space<vmem>>, vector<1x64xf32>
    %c0_103 = arith.constant 0 : index
    %c504_104 = arith.constant 504 : index
    %121 = vector.load %arg6[%c0_103, %c504_104] : memref<32x640xf32, #tpu.memory_space<vmem>>, vector<32x64xf32>
    %122 = vector.broadcast %120 : vector<1x64xf32> to vector<32x64xf32>
    %123 = arith.mulf %121, %122 : vector<32x64xf32>
    %c32_105 = arith.constant 32 : index
    %c0_106 = arith.constant 0 : index
    %124 = vector.load %arg7[%c32_105, %c0_106] : memref<792x256xf32, #tpu.memory_space<vmem>>, vector<32x64xf32>
    tpu.vector_store %arg7[%c32_105, %c0_106], %123 {strides = array<i32>} : memref<792x256xf32, #tpu.memory_space<vmem>>, vector<32x64xf32>,
    %c0_107 = arith.constant 0 : index
    %c512_108 = arith.constant 512 : index
    %125 = vector.load %arg6[%c0_107, %c512_108] : memref<32x640xf32, #tpu.memory_space<vmem>>, vector<32x64xf32>
    %126 = vector.broadcast %120 : vector<1x64xf32> to vector<32x64xf32>
    %127 = arith.mulf %125, %126 : vector<32x64xf32>
    %c128_109 = arith.constant 128 : index
    %c0_110 = arith.constant 0 : index
    %128 = vector.load %arg7[%c128_109, %c0_110] : memref<792x256xf32, #tpu.memory_space<vmem>>, vector<32x64xf32>
    tpu.vector_store %arg7[%c128_109, %c0_110], %127 {strides = array<i32>} : memref<792x256xf32, #tpu.memory_space<vmem>>, vector<32x64xf32>,
    %c0_111 = arith.constant 0 : index
    %c520_112 = arith.constant 520 : index
    %129 = vector.load %arg6[%c0_111, %c520_112] : memref<32x640xf32, #tpu.memory_space<vmem>>, vector<32x64xf32>
    %130 = vector.broadcast %120 : vector<1x64xf32> to vector<32x64xf32>
    %131 = arith.mulf %129, %130 : vector<32x64xf32>
    %c224 = arith.constant 224 : index
    %c0_113 = arith.constant 0 : index
    %132 = vector.load %arg7[%c224, %c0_113] : memref<792x256xf32, #tpu.memory_space<vmem>>, vector<32x64xf32>
    tpu.vector_store %arg7[%c224, %c0_113], %131 {strides = array<i32>} : memref<792x256xf32, #tpu.memory_space<vmem>>, vector<32x64xf32>,
    %c413_114 = arith.constant 413 : index
    %c0_115 = arith.constant 0 : index
    %133 = vector.load %arg2[%c413_114, %c0_115] : memref<424x256xf32, #tpu.memory_space<vmem>>, vector<1x64xf32>
    %c0_116 = arith.constant 0 : index
    %c505_117 = arith.constant 505 : index
    %134 = vector.load %arg6[%c0_116, %c505_117] : memref<32x640xf32, #tpu.memory_space<vmem>>, vector<32x64xf32>
    %135 = vector.broadcast %133 : vector<1x64xf32> to vector<32x64xf32>
    %136 = arith.mulf %134, %135 : vector<32x64xf32>
    %c64_118 = arith.constant 64 : index
    %c0_119 = arith.constant 0 : index
    %137 = vector.load %arg7[%c64_118, %c0_119] : memref<792x256xf32, #tpu.memory_space<vmem>>, vector<32x64xf32>
    tpu.vector_store %arg7[%c64_118, %c0_119], %136 {strides = array<i32>} : memref<792x256xf32, #tpu.memory_space<vmem>>, vector<32x64xf32>,
    %c0_120 = arith.constant 0 : index
    %c513_121 = arith.constant 513 : index
    %138 = vector.load %arg6[%c0_120, %c513_121] : memref<32x640xf32, #tpu.memory_space<vmem>>, vector<32x64xf32>
    %139 = vector.broadcast %133 : vector<1x64xf32> to vector<32x64xf32>
    %140 = arith.mulf %138, %139 : vector<32x64xf32>
    %c160 = arith.constant 160 : index
    %c0_122 = arith.constant 0 : index
    %141 = vector.load %arg7[%c160, %c0_122] : memref<792x256xf32, #tpu.memory_space<vmem>>, vector<32x64xf32>
    tpu.vector_store %arg7[%c160, %c0_122], %140 {strides = array<i32>} : memref<792x256xf32, #tpu.memory_space<vmem>>, vector<32x64xf32>,
    %c0_123 = arith.constant 0 : index
    %c521_124 = arith.constant 521 : index
    %142 = vector.load %arg6[%c0_123, %c521_124] : memref<32x640xf32, #tpu.memory_space<vmem>>, vector<32x64xf32>
    %143 = vector.broadcast %133 : vector<1x64xf32> to vector<32x64xf32>
    %144 = arith.mulf %142, %143 : vector<32x64xf32>
    %c256_125 = arith.constant 256 : index
    %c0_126 = arith.constant 0 : index
    %145 = vector.load %arg7[%c256_125, %c0_126] : memref<792x256xf32, #tpu.memory_space<vmem>>, vector<32x64xf32>
    tpu.vector_store %arg7[%c256_125, %c0_126], %144 {strides = array<i32>} : memref<792x256xf32, #tpu.memory_space<vmem>>, vector<32x64xf32>,
    %c48_127 = arith.constant 48 : index
    %c0_128 = arith.constant 0 : index
    %146 = vector.load %arg1[%c48_127, %c0_128] : memref<96x896xf32, #tpu.memory_space<vmem>>, vector<16x296xf32>
    %c0_129 = arith.constant 0 : index
    %c0_130 = arith.constant 0 : index
    %147 = vector.load %arg7[%c0_129, %c0_130] : memref<792x256xf32, #tpu.memory_space<vmem>>, vector<296x64xf32>
    %cst_131 = arith.constant dense<0.000000e+00> : vector<16x64xf32>
    %148 = tpu.matmul %146, %147, %cst_131 {dimension_numbers = #tpu.dot_dimension_numbers<[1], [0], [0], [1], [0, 0, 1, 1], [], []>} : vector<16x296xf32>, vector<296x64xf32>, vector<16x64xf32> -> vector<16x64xf32>
    %cst_132 = arith.constant 0.000000e+00 : f32
    %149 = vector.broadcast %cst_132 : f32 to vector<16x64xf32>
    %150 = arith.maximumf %148, %149 : vector<16x64xf32>
    %151 = tpu.concatenate %150, %52 in 0 : vector<16x64xf32>, vector<16x64xf32> -> vector<32x64xf32>
    %c336 = arith.constant 336 : index
    %c0_133 = arith.constant 0 : index
    %152 = vector.load %arg2[%c336, %c0_133] : memref<424x256xf32, #tpu.memory_space<vmem>>, vector<64x256xf32>
    %cst_134 = arith.constant dense<0.000000e+00> : vector<32x256xf32>
    %153 = tpu.matmul %151, %152, %cst_134 {dimension_numbers = #tpu.dot_dimension_numbers<[1], [0], [0], [1], [0, 0, 1, 1], [], []>} : vector<32x64xf32>, vector<64x256xf32>, vector<32x256xf32> -> vector<32x256xf32>
    %c0_135 = arith.constant 0 : index
    %c128_136 = arith.constant 128 : index
    %154 = vector.load %arg6[%c0_135, %c128_136] : memref<32x640xf32, #tpu.memory_space<vmem>>, vector<32x256xf32>
    tpu.vector_store %arg6[%c0_135, %c128_136], %153 {strides = array<i32>} : memref<32x640xf32, #tpu.memory_space<vmem>>, vector<32x256xf32>,
    %c400_137 = arith.constant 400 : index
    %c0_138 = arith.constant 0 : index
    %155 = vector.load %arg2[%c400_137, %c0_138] : memref<424x256xf32, #tpu.memory_space<vmem>>, vector<8x256xf32>
    %c288_139 = arith.constant 288 : index
    %c0_140 = arith.constant 0 : index
    %156 = vector.load %arg7[%c288_139, %c0_140] : memref<792x256xf32, #tpu.memory_space<vmem>>, vector<8x256xf32>
    tpu.vector_store %arg7[%c288_139, %c0_140], %155 {strides = array<i32>} : memref<792x256xf32, #tpu.memory_space<vmem>>, vector<8x256xf32>,
    %c408_141 = arith.constant 408 : index
    %c0_142 = arith.constant 0 : index
    %157 = vector.load %arg2[%c408_141, %c0_142] : memref<424x256xf32, #tpu.memory_space<vmem>>, vector<1x256xf32>
    %c0_143 = arith.constant 0 : index
    %c111_144 = arith.constant 111 : index
    %158 = vector.load %arg6[%c0_143, %c111_144] : memref<32x640xf32, #tpu.memory_space<vmem>>, vector<32x256xf32>
    %159 = vector.broadcast %157 : vector<1x256xf32> to vector<32x256xf32>
    %160 = arith.mulf %158, %159 : vector<32x256xf32>
    %c0_145 = arith.constant 0 : index
    %c0_146 = arith.constant 0 : index
    %161 = vector.load %arg7[%c0_145, %c0_146] : memref<792x256xf32, #tpu.memory_space<vmem>>, vector<32x256xf32>
    tpu.vector_store %arg7[%c0_145, %c0_146], %160 {strides = array<i32>} : memref<792x256xf32, #tpu.memory_space<vmem>>, vector<32x256xf32>,
    %c0_147 = arith.constant 0 : index
    %c127_148 = arith.constant 127 : index
    %162 = vector.load %arg6[%c0_147, %c127_148] : memref<32x640xf32, #tpu.memory_space<vmem>>, vector<32x256xf32>
    %163 = vector.broadcast %157 : vector<1x256xf32> to vector<32x256xf32>
    %164 = arith.mulf %162, %163 : vector<32x256xf32>
    %c96_149 = arith.constant 96 : index
    %c0_150 = arith.constant 0 : index
    %165 = vector.load %arg7[%c96_149, %c0_150] : memref<792x256xf32, #tpu.memory_space<vmem>>, vector<32x256xf32>
    tpu.vector_store %arg7[%c96_149, %c0_150], %164 {strides = array<i32>} : memref<792x256xf32, #tpu.memory_space<vmem>>, vector<32x256xf32>,
    %c0_151 = arith.constant 0 : index
    %c143_152 = arith.constant 143 : index
    %166 = vector.load %arg6[%c0_151, %c143_152] : memref<32x640xf32, #tpu.memory_space<vmem>>, vector<32x256xf32>
    %167 = vector.broadcast %157 : vector<1x256xf32> to vector<32x256xf32>
    %168 = arith.mulf %166, %167 : vector<32x256xf32>
    %c192_153 = arith.constant 192 : index
    %c0_154 = arith.constant 0 : index
    %169 = vector.load %arg7[%c192_153, %c0_154] : memref<792x256xf32, #tpu.memory_space<vmem>>, vector<32x256xf32>
    tpu.vector_store %arg7[%c192_153, %c0_154], %168 {strides = array<i32>} : memref<792x256xf32, #tpu.memory_space<vmem>>, vector<32x256xf32>,
    %c409_155 = arith.constant 409 : index
    %c0_156 = arith.constant 0 : index
    %170 = vector.load %arg2[%c409_155, %c0_156] : memref<424x256xf32, #tpu.memory_space<vmem>>, vector<1x256xf32>
    %c0_157 = arith.constant 0 : index
    %c112_158 = arith.constant 112 : index
    %171 = vector.load %arg6[%c0_157, %c112_158] : memref<32x640xf32, #tpu.memory_space<vmem>>, vector<32x256xf32>
    %172 = vector.broadcast %170 : vector<1x256xf32> to vector<32x256xf32>
    %173 = arith.mulf %171, %172 : vector<32x256xf32>
    %c32_159 = arith.constant 32 : index
    %c0_160 = arith.constant 0 : index
    %174 = vector.load %arg7[%c32_159, %c0_160] : memref<792x256xf32, #tpu.memory_space<vmem>>, vector<32x256xf32>
    tpu.vector_store %arg7[%c32_159, %c0_160], %173 {strides = array<i32>} : memref<792x256xf32, #tpu.memory_space<vmem>>, vector<32x256xf32>,
    %c0_161 = arith.constant 0 : index
    %c128_162 = arith.constant 128 : index
    %175 = vector.load %arg6[%c0_161, %c128_162] : memref<32x640xf32, #tpu.memory_space<vmem>>, vector<32x256xf32>
    %176 = vector.broadcast %170 : vector<1x256xf32> to vector<32x256xf32>
    %177 = arith.mulf %175, %176 : vector<32x256xf32>
    %c128_163 = arith.constant 128 : index
    %c0_164 = arith.constant 0 : index
    %178 = vector.load %arg7[%c128_163, %c0_164] : memref<792x256xf32, #tpu.memory_space<vmem>>, vector<32x256xf32>
    tpu.vector_store %arg7[%c128_163, %c0_164], %177 {strides = array<i32>} : memref<792x256xf32, #tpu.memory_space<vmem>>, vector<32x256xf32>,
    %c0_165 = arith.constant 0 : index
    %c144_166 = arith.constant 144 : index
    %179 = vector.load %arg6[%c0_165, %c144_166] : memref<32x640xf32, #tpu.memory_space<vmem>>, vector<32x256xf32>
    %180 = vector.broadcast %170 : vector<1x256xf32> to vector<32x256xf32>
    %181 = arith.mulf %179, %180 : vector<32x256xf32>
    %c224_167 = arith.constant 224 : index
    %c0_168 = arith.constant 0 : index
    %182 = vector.load %arg7[%c224_167, %c0_168] : memref<792x256xf32, #tpu.memory_space<vmem>>, vector<32x256xf32>
    tpu.vector_store %arg7[%c224_167, %c0_168], %181 {strides = array<i32>} : memref<792x256xf32, #tpu.memory_space<vmem>>, vector<32x256xf32>,
    %c410_169 = arith.constant 410 : index
    %c0_170 = arith.constant 0 : index
    %183 = vector.load %arg2[%c410_169, %c0_170] : memref<424x256xf32, #tpu.memory_space<vmem>>, vector<1x256xf32>
    %c0_171 = arith.constant 0 : index
    %c113_172 = arith.constant 113 : index
    %184 = vector.load %arg6[%c0_171, %c113_172] : memref<32x640xf32, #tpu.memory_space<vmem>>, vector<32x256xf32>
    %185 = vector.broadcast %183 : vector<1x256xf32> to vector<32x256xf32>
    %186 = arith.mulf %184, %185 : vector<32x256xf32>
    %c64_173 = arith.constant 64 : index
    %c0_174 = arith.constant 0 : index
    %187 = vector.load %arg7[%c64_173, %c0_174] : memref<792x256xf32, #tpu.memory_space<vmem>>, vector<32x256xf32>
    tpu.vector_store %arg7[%c64_173, %c0_174], %186 {strides = array<i32>} : memref<792x256xf32, #tpu.memory_space<vmem>>, vector<32x256xf32>,
    %c0_175 = arith.constant 0 : index
    %c129_176 = arith.constant 129 : index
    %188 = vector.load %arg6[%c0_175, %c129_176] : memref<32x640xf32, #tpu.memory_space<vmem>>, vector<32x256xf32>
    %189 = vector.broadcast %183 : vector<1x256xf32> to vector<32x256xf32>
    %190 = arith.mulf %188, %189 : vector<32x256xf32>
    %c160_177 = arith.constant 160 : index
    %c0_178 = arith.constant 0 : index
    %191 = vector.load %arg7[%c160_177, %c0_178] : memref<792x256xf32, #tpu.memory_space<vmem>>, vector<32x256xf32>
    tpu.vector_store %arg7[%c160_177, %c0_178], %190 {strides = array<i32>} : memref<792x256xf32, #tpu.memory_space<vmem>>, vector<32x256xf32>,
    %c0_179 = arith.constant 0 : index
    %c145_180 = arith.constant 145 : index
    %192 = vector.load %arg6[%c0_179, %c145_180] : memref<32x640xf32, #tpu.memory_space<vmem>>, vector<32x256xf32>
    %193 = vector.broadcast %183 : vector<1x256xf32> to vector<32x256xf32>
    %194 = arith.mulf %192, %193 : vector<32x256xf32>
    %c256_181 = arith.constant 256 : index
    %c0_182 = arith.constant 0 : index
    %195 = vector.load %arg7[%c256_181, %c0_182] : memref<792x256xf32, #tpu.memory_space<vmem>>, vector<32x256xf32>
    tpu.vector_store %arg7[%c256_181, %c0_182], %194 {strides = array<i32>} : memref<792x256xf32, #tpu.memory_space<vmem>>, vector<32x256xf32>,
    %c64_183 = arith.constant 64 : index
    %c0_184 = arith.constant 0 : index
    %196 = vector.load %arg1[%c64_183, %c0_184] : memref<96x896xf32, #tpu.memory_space<vmem>>, vector<8x296xf32>
    %c0_185 = arith.constant 0 : index
    %c0_186 = arith.constant 0 : index
    %197 = vector.load %arg7[%c0_185, %c0_186] : memref<792x256xf32, #tpu.memory_space<vmem>>, vector<296x256xf32>
    %cst_187 = arith.constant dense<0.000000e+00> : vector<8x256xf32>
    %198 = tpu.matmul %196, %197, %cst_187 {dimension_numbers = #tpu.dot_dimension_numbers<[1], [0], [0], [1], [0, 0, 1, 1], [], []>} : vector<8x296xf32>, vector<296x256xf32>, vector<8x256xf32> -> vector<8x256xf32>
    %cst_188 = arith.constant 0.000000e+00 : f32
    %199 = vector.broadcast %cst_188 : f32 to vector<8x256xf32>
    %200 = arith.maximumf %198, %199 : vector<8x256xf32>
    %c0_189 = arith.constant 0 : index
    %c128_190 = arith.constant 128 : index
    %201 = vector.load %arg6[%c0_189, %c128_190] : memref<32x640xf32, #tpu.memory_space<vmem>>, vector<8x256xf32>
    tpu.vector_store %arg6[%c0_189, %c128_190], %200 {strides = array<i32>} : memref<32x640xf32, #tpu.memory_space<vmem>>, vector<8x256xf32>,
    %c8_191 = arith.constant 8 : index
    %c128_192 = arith.constant 128 : index
    %202 = vector.load %arg6[%c8_191, %c128_192] : memref<32x640xf32, #tpu.memory_space<vmem>>, vector<1x256xf32>
    tpu.vector_store %arg6[%c8_191, %c128_192], %3 {strides = array<i32>} : memref<32x640xf32, #tpu.memory_space<vmem>>, vector<1x256xf32>,
    %c400_193 = arith.constant 400 : index
    %c0_194 = arith.constant 0 : index
    %203 = vector.load %arg2[%c400_193, %c0_194] : memref<424x256xf32, #tpu.memory_space<vmem>>, vector<8x256xf32>
    %c784 = arith.constant 784 : index
    %c0_195 = arith.constant 0 : index
    %204 = vector.load %arg7[%c784, %c0_195] : memref<792x256xf32, #tpu.memory_space<vmem>>, vector<8x256xf32>
    tpu.vector_store %arg7[%c784, %c0_195], %203 {strides = array<i32>} : memref<792x256xf32, #tpu.memory_space<vmem>>, vector<8x256xf32>,
    %c414 = arith.constant 414 : index
    %c0_196 = arith.constant 0 : index
    %205 = vector.load %arg2[%c414, %c0_196] : memref<424x256xf32, #tpu.memory_space<vmem>>, vector<1x256xf32>
    %c0_197 = arith.constant 0 : index
    %c77 = arith.constant 77 : index
    %206 = vector.load %arg6[%c0_197, %c77] : memref<32x640xf32, #tpu.memory_space<vmem>>, vector<16x256xf32>
    %207 = vector.broadcast %205 : vector<1x256xf32> to vector<16x256xf32>
    %208 = arith.mulf %206, %207 : vector<16x256xf32>
    %c0_198 = arith.constant 0 : index
    %c0_199 = arith.constant 0 : index
    %209 = vector.load %arg7[%c0_198, %c0_199] : memref<792x256xf32, #tpu.memory_space<vmem>>, vector<16x256xf32>
    tpu.vector_store %arg7[%c0_198, %c0_199], %208 {strides = array<i32>} : memref<792x256xf32, #tpu.memory_space<vmem>>, vector<16x256xf32>,
    %c0_200 = arith.constant 0 : index
    %c93 = arith.constant 93 : index
    %210 = vector.load %arg6[%c0_200, %c93] : memref<32x640xf32, #tpu.memory_space<vmem>>, vector<16x256xf32>
    %211 = vector.broadcast %205 : vector<1x256xf32> to vector<16x256xf32>
    %212 = arith.mulf %210, %211 : vector<16x256xf32>
    %c112_201 = arith.constant 112 : index
    %c0_202 = arith.constant 0 : index
    %213 = vector.load %arg7[%c112_201, %c0_202] : memref<792x256xf32, #tpu.memory_space<vmem>>, vector<16x256xf32>
    tpu.vector_store %arg7[%c112_201, %c0_202], %212 {strides = array<i32>} : memref<792x256xf32, #tpu.memory_space<vmem>>, vector<16x256xf32>,
    %c0_203 = arith.constant 0 : index
    %c109 = arith.constant 109 : index
    %214 = vector.load %arg6[%c0_203, %c109] : memref<32x640xf32, #tpu.memory_space<vmem>>, vector<16x256xf32>
    %215 = vector.broadcast %205 : vector<1x256xf32> to vector<16x256xf32>
    %216 = arith.mulf %214, %215 : vector<16x256xf32>
    %c224_204 = arith.constant 224 : index
    %c0_205 = arith.constant 0 : index
    %217 = vector.load %arg7[%c224_204, %c0_205] : memref<792x256xf32, #tpu.memory_space<vmem>>, vector<16x256xf32>
    tpu.vector_store %arg7[%c224_204, %c0_205], %216 {strides = array<i32>} : memref<792x256xf32, #tpu.memory_space<vmem>>, vector<16x256xf32>,
    %c0_206 = arith.constant 0 : index
    %c125 = arith.constant 125 : index
    %218 = vector.load %arg6[%c0_206, %c125] : memref<32x640xf32, #tpu.memory_space<vmem>>, vector<16x256xf32>
    %219 = vector.broadcast %205 : vector<1x256xf32> to vector<16x256xf32>
    %220 = arith.mulf %218, %219 : vector<16x256xf32>
    %c336_207 = arith.constant 336 : index
    %c0_208 = arith.constant 0 : index
    %221 = vector.load %arg7[%c336_207, %c0_208] : memref<792x256xf32, #tpu.memory_space<vmem>>, vector<16x256xf32>
    tpu.vector_store %arg7[%c336_207, %c0_208], %220 {strides = array<i32>} : memref<792x256xf32, #tpu.memory_space<vmem>>, vector<16x256xf32>,
    %c0_209 = arith.constant 0 : index
    %c141 = arith.constant 141 : index
    %222 = vector.load %arg6[%c0_209, %c141] : memref<32x640xf32, #tpu.memory_space<vmem>>, vector<16x256xf32>
    %223 = vector.broadcast %205 : vector<1x256xf32> to vector<16x256xf32>
    %224 = arith.mulf %222, %223 : vector<16x256xf32>
    %c448 = arith.constant 448 : index
    %c0_210 = arith.constant 0 : index
    %225 = vector.load %arg7[%c448, %c0_210] : memref<792x256xf32, #tpu.memory_space<vmem>>, vector<16x256xf32>
    tpu.vector_store %arg7[%c448, %c0_210], %224 {strides = array<i32>} : memref<792x256xf32, #tpu.memory_space<vmem>>, vector<16x256xf32>,
    %c0_211 = arith.constant 0 : index
    %c157 = arith.constant 157 : index
    %226 = vector.load %arg6[%c0_211, %c157] : memref<32x640xf32, #tpu.memory_space<vmem>>, vector<16x256xf32>
    %227 = vector.broadcast %205 : vector<1x256xf32> to vector<16x256xf32>
    %228 = arith.mulf %226, %227 : vector<16x256xf32>
    %c560 = arith.constant 560 : index
    %c0_212 = arith.constant 0 : index
    %229 = vector.load %arg7[%c560, %c0_212] : memref<792x256xf32, #tpu.memory_space<vmem>>, vector<16x256xf32>
    tpu.vector_store %arg7[%c560, %c0_212], %228 {strides = array<i32>} : memref<792x256xf32, #tpu.memory_space<vmem>>, vector<16x256xf32>,
    %c0_213 = arith.constant 0 : index
    %c173 = arith.constant 173 : index
    %230 = vector.load %arg6[%c0_213, %c173] : memref<32x640xf32, #tpu.memory_space<vmem>>, vector<16x256xf32>
    %231 = vector.broadcast %205 : vector<1x256xf32> to vector<16x256xf32>
    %232 = arith.mulf %230, %231 : vector<16x256xf32>
    %c672 = arith.constant 672 : index
    %c0_214 = arith.constant 0 : index
    %233 = vector.load %arg7[%c672, %c0_214] : memref<792x256xf32, #tpu.memory_space<vmem>>, vector<16x256xf32>
    tpu.vector_store %arg7[%c672, %c0_214], %232 {strides = array<i32>} : memref<792x256xf32, #tpu.memory_space<vmem>>, vector<16x256xf32>,
    %c415 = arith.constant 415 : index
    %c0_215 = arith.constant 0 : index
    %234 = vector.load %arg2[%c415, %c0_215] : memref<424x256xf32, #tpu.memory_space<vmem>>, vector<1x256xf32>
    %c0_216 = arith.constant 0 : index
    %c78 = arith.constant 78 : index
    %235 = vector.load %arg6[%c0_216, %c78] : memref<32x640xf32, #tpu.memory_space<vmem>>, vector<16x256xf32>
    %236 = vector.broadcast %234 : vector<1x256xf32> to vector<16x256xf32>
    %237 = arith.mulf %235, %236 : vector<16x256xf32>
    %c16_217 = arith.constant 16 : index
    %c0_218 = arith.constant 0 : index
    %238 = vector.load %arg7[%c16_217, %c0_218] : memref<792x256xf32, #tpu.memory_space<vmem>>, vector<16x256xf32>
    tpu.vector_store %arg7[%c16_217, %c0_218], %237 {strides = array<i32>} : memref<792x256xf32, #tpu.memory_space<vmem>>, vector<16x256xf32>,
    %c0_219 = arith.constant 0 : index
    %c94 = arith.constant 94 : index
    %239 = vector.load %arg6[%c0_219, %c94] : memref<32x640xf32, #tpu.memory_space<vmem>>, vector<16x256xf32>
    %240 = vector.broadcast %234 : vector<1x256xf32> to vector<16x256xf32>
    %241 = arith.mulf %239, %240 : vector<16x256xf32>
    %c128_220 = arith.constant 128 : index
    %c0_221 = arith.constant 0 : index
    %242 = vector.load %arg7[%c128_220, %c0_221] : memref<792x256xf32, #tpu.memory_space<vmem>>, vector<16x256xf32>
    tpu.vector_store %arg7[%c128_220, %c0_221], %241 {strides = array<i32>} : memref<792x256xf32, #tpu.memory_space<vmem>>, vector<16x256xf32>,
    %c0_222 = arith.constant 0 : index
    %c110 = arith.constant 110 : index
    %243 = vector.load %arg6[%c0_222, %c110] : memref<32x640xf32, #tpu.memory_space<vmem>>, vector<16x256xf32>
    %244 = vector.broadcast %234 : vector<1x256xf32> to vector<16x256xf32>
    %245 = arith.mulf %243, %244 : vector<16x256xf32>
    %c240 = arith.constant 240 : index
    %c0_223 = arith.constant 0 : index
    %246 = vector.load %arg7[%c240, %c0_223] : memref<792x256xf32, #tpu.memory_space<vmem>>, vector<16x256xf32>
    tpu.vector_store %arg7[%c240, %c0_223], %245 {strides = array<i32>} : memref<792x256xf32, #tpu.memory_space<vmem>>, vector<16x256xf32>,
    %c0_224 = arith.constant 0 : index
    %c126 = arith.constant 126 : index
    %247 = vector.load %arg6[%c0_224, %c126] : memref<32x640xf32, #tpu.memory_space<vmem>>, vector<16x256xf32>
    %248 = vector.broadcast %234 : vector<1x256xf32> to vector<16x256xf32>
    %249 = arith.mulf %247, %248 : vector<16x256xf32>
    %c352 = arith.constant 352 : index
    %c0_225 = arith.constant 0 : index
    %250 = vector.load %arg7[%c352, %c0_225] : memref<792x256xf32, #tpu.memory_space<vmem>>, vector<16x256xf32>
    tpu.vector_store %arg7[%c352, %c0_225], %249 {strides = array<i32>} : memref<792x256xf32, #tpu.memory_space<vmem>>, vector<16x256xf32>,
    %c0_226 = arith.constant 0 : index
    %c142 = arith.constant 142 : index
    %251 = vector.load %arg6[%c0_226, %c142] : memref<32x640xf32, #tpu.memory_space<vmem>>, vector<16x256xf32>
    %252 = vector.broadcast %234 : vector<1x256xf32> to vector<16x256xf32>
    %253 = arith.mulf %251, %252 : vector<16x256xf32>
    %c464 = arith.constant 464 : index
    %c0_227 = arith.constant 0 : index
    %254 = vector.load %arg7[%c464, %c0_227] : memref<792x256xf32, #tpu.memory_space<vmem>>, vector<16x256xf32>
    tpu.vector_store %arg7[%c464, %c0_227], %253 {strides = array<i32>} : memref<792x256xf32, #tpu.memory_space<vmem>>, vector<16x256xf32>,
    %c0_228 = arith.constant 0 : index
    %c158 = arith.constant 158 : index
    %255 = vector.load %arg6[%c0_228, %c158] : memref<32x640xf32, #tpu.memory_space<vmem>>, vector<16x256xf32>
    %256 = vector.broadcast %234 : vector<1x256xf32> to vector<16x256xf32>
    %257 = arith.mulf %255, %256 : vector<16x256xf32>
    %c576 = arith.constant 576 : index
    %c0_229 = arith.constant 0 : index
    %258 = vector.load %arg7[%c576, %c0_229] : memref<792x256xf32, #tpu.memory_space<vmem>>, vector<16x256xf32>
    tpu.vector_store %arg7[%c576, %c0_229], %257 {strides = array<i32>} : memref<792x256xf32, #tpu.memory_space<vmem>>, vector<16x256xf32>,
    %c0_230 = arith.constant 0 : index
    %c174 = arith.constant 174 : index
    %259 = vector.load %arg6[%c0_230, %c174] : memref<32x640xf32, #tpu.memory_space<vmem>>, vector<16x256xf32>
    %260 = vector.broadcast %234 : vector<1x256xf32> to vector<16x256xf32>
    %261 = arith.mulf %259, %260 : vector<16x256xf32>
    %c688 = arith.constant 688 : index
    %c0_231 = arith.constant 0 : index
    %262 = vector.load %arg7[%c688, %c0_231] : memref<792x256xf32, #tpu.memory_space<vmem>>, vector<16x256xf32>
    tpu.vector_store %arg7[%c688, %c0_231], %261 {strides = array<i32>} : memref<792x256xf32, #tpu.memory_space<vmem>>, vector<16x256xf32>,
    %c416 = arith.constant 416 : index
    %c0_232 = arith.constant 0 : index
    %263 = vector.load %arg2[%c416, %c0_232] : memref<424x256xf32, #tpu.memory_space<vmem>>, vector<1x256xf32>
    %c0_233 = arith.constant 0 : index
    %c79 = arith.constant 79 : index
    %264 = vector.load %arg6[%c0_233, %c79] : memref<32x640xf32, #tpu.memory_space<vmem>>, vector<16x256xf32>
    %265 = vector.broadcast %263 : vector<1x256xf32> to vector<16x256xf32>
    %266 = arith.mulf %264, %265 : vector<16x256xf32>
    %c32_234 = arith.constant 32 : index
    %c0_235 = arith.constant 0 : index
    %267 = vector.load %arg7[%c32_234, %c0_235] : memref<792x256xf32, #tpu.memory_space<vmem>>, vector<16x256xf32>
    tpu.vector_store %arg7[%c32_234, %c0_235], %266 {strides = array<i32>} : memref<792x256xf32, #tpu.memory_space<vmem>>, vector<16x256xf32>,
    %c0_236 = arith.constant 0 : index
    %c95 = arith.constant 95 : index
    %268 = vector.load %arg6[%c0_236, %c95] : memref<32x640xf32, #tpu.memory_space<vmem>>, vector<16x256xf32>
    %269 = vector.broadcast %263 : vector<1x256xf32> to vector<16x256xf32>
    %270 = arith.mulf %268, %269 : vector<16x256xf32>
    %c144_237 = arith.constant 144 : index
    %c0_238 = arith.constant 0 : index
    %271 = vector.load %arg7[%c144_237, %c0_238] : memref<792x256xf32, #tpu.memory_space<vmem>>, vector<16x256xf32>
    tpu.vector_store %arg7[%c144_237, %c0_238], %270 {strides = array<i32>} : memref<792x256xf32, #tpu.memory_space<vmem>>, vector<16x256xf32>,
    %c0_239 = arith.constant 0 : index
    %c111_240 = arith.constant 111 : index
    %272 = vector.load %arg6[%c0_239, %c111_240] : memref<32x640xf32, #tpu.memory_space<vmem>>, vector<16x256xf32>
    %273 = vector.broadcast %263 : vector<1x256xf32> to vector<16x256xf32>
    %274 = arith.mulf %272, %273 : vector<16x256xf32>
    %c256_241 = arith.constant 256 : index
    %c0_242 = arith.constant 0 : index
    %275 = vector.load %arg7[%c256_241, %c0_242] : memref<792x256xf32, #tpu.memory_space<vmem>>, vector<16x256xf32>
    tpu.vector_store %arg7[%c256_241, %c0_242], %274 {strides = array<i32>} : memref<792x256xf32, #tpu.memory_space<vmem>>, vector<16x256xf32>,
    %c0_243 = arith.constant 0 : index
    %c127_244 = arith.constant 127 : index
    %276 = vector.load %arg6[%c0_243, %c127_244] : memref<32x640xf32, #tpu.memory_space<vmem>>, vector<16x256xf32>
    %277 = vector.broadcast %263 : vector<1x256xf32> to vector<16x256xf32>
    %278 = arith.mulf %276, %277 : vector<16x256xf32>
    %c368 = arith.constant 368 : index
    %c0_245 = arith.constant 0 : index
    %279 = vector.load %arg7[%c368, %c0_245] : memref<792x256xf32, #tpu.memory_space<vmem>>, vector<16x256xf32>
    tpu.vector_store %arg7[%c368, %c0_245], %278 {strides = array<i32>} : memref<792x256xf32, #tpu.memory_space<vmem>>, vector<16x256xf32>,
    %c0_246 = arith.constant 0 : index
    %c143_247 = arith.constant 143 : index
    %280 = vector.load %arg6[%c0_246, %c143_247] : memref<32x640xf32, #tpu.memory_space<vmem>>, vector<16x256xf32>
    %281 = vector.broadcast %263 : vector<1x256xf32> to vector<16x256xf32>
    %282 = arith.mulf %280, %281 : vector<16x256xf32>
    %c480 = arith.constant 480 : index
    %c0_248 = arith.constant 0 : index
    %283 = vector.load %arg7[%c480, %c0_248] : memref<792x256xf32, #tpu.memory_space<vmem>>, vector<16x256xf32>
    tpu.vector_store %arg7[%c480, %c0_248], %282 {strides = array<i32>} : memref<792x256xf32, #tpu.memory_space<vmem>>, vector<16x256xf32>,
    %c0_249 = arith.constant 0 : index
    %c159 = arith.constant 159 : index
    %284 = vector.load %arg6[%c0_249, %c159] : memref<32x640xf32, #tpu.memory_space<vmem>>, vector<16x256xf32>
    %285 = vector.broadcast %263 : vector<1x256xf32> to vector<16x256xf32>
    %286 = arith.mulf %284, %285 : vector<16x256xf32>
    %c592 = arith.constant 592 : index
    %c0_250 = arith.constant 0 : index
    %287 = vector.load %arg7[%c592, %c0_250] : memref<792x256xf32, #tpu.memory_space<vmem>>, vector<16x256xf32>
    tpu.vector_store %arg7[%c592, %c0_250], %286 {strides = array<i32>} : memref<792x256xf32, #tpu.memory_space<vmem>>, vector<16x256xf32>,
    %c0_251 = arith.constant 0 : index
    %c175 = arith.constant 175 : index
    %288 = vector.load %arg6[%c0_251, %c175] : memref<32x640xf32, #tpu.memory_space<vmem>>, vector<16x256xf32>
    %289 = vector.broadcast %263 : vector<1x256xf32> to vector<16x256xf32>
    %290 = arith.mulf %288, %289 : vector<16x256xf32>
    %c704 = arith.constant 704 : index
    %c0_252 = arith.constant 0 : index
    %291 = vector.load %arg7[%c704, %c0_252] : memref<792x256xf32, #tpu.memory_space<vmem>>, vector<16x256xf32>
    tpu.vector_store %arg7[%c704, %c0_252], %290 {strides = array<i32>} : memref<792x256xf32, #tpu.memory_space<vmem>>, vector<16x256xf32>,
    %c417 = arith.constant 417 : index
    %c0_253 = arith.constant 0 : index
    %292 = vector.load %arg2[%c417, %c0_253] : memref<424x256xf32, #tpu.memory_space<vmem>>, vector<1x256xf32>
    %c0_254 = arith.constant 0 : index
    %c80_255 = arith.constant 80 : index
    %293 = vector.load %arg6[%c0_254, %c80_255] : memref<32x640xf32, #tpu.memory_space<vmem>>, vector<16x256xf32>
    %294 = vector.broadcast %292 : vector<1x256xf32> to vector<16x256xf32>
    %295 = arith.mulf %293, %294 : vector<16x256xf32>
    %c48_256 = arith.constant 48 : index
    %c0_257 = arith.constant 0 : index
    %296 = vector.load %arg7[%c48_256, %c0_257] : memref<792x256xf32, #tpu.memory_space<vmem>>, vector<16x256xf32>
    tpu.vector_store %arg7[%c48_256, %c0_257], %295 {strides = array<i32>} : memref<792x256xf32, #tpu.memory_space<vmem>>, vector<16x256xf32>,
    %c0_258 = arith.constant 0 : index
    %c96_259 = arith.constant 96 : index
    %297 = vector.load %arg6[%c0_258, %c96_259] : memref<32x640xf32, #tpu.memory_space<vmem>>, vector<16x256xf32>
    %298 = vector.broadcast %292 : vector<1x256xf32> to vector<16x256xf32>
    %299 = arith.mulf %297, %298 : vector<16x256xf32>
    %c160_260 = arith.constant 160 : index
    %c0_261 = arith.constant 0 : index
    %300 = vector.load %arg7[%c160_260, %c0_261] : memref<792x256xf32, #tpu.memory_space<vmem>>, vector<16x256xf32>
    tpu.vector_store %arg7[%c160_260, %c0_261], %299 {strides = array<i32>} : memref<792x256xf32, #tpu.memory_space<vmem>>, vector<16x256xf32>,
    %c0_262 = arith.constant 0 : index
    %c112_263 = arith.constant 112 : index
    %301 = vector.load %arg6[%c0_262, %c112_263] : memref<32x640xf32, #tpu.memory_space<vmem>>, vector<16x256xf32>
    %302 = vector.broadcast %292 : vector<1x256xf32> to vector<16x256xf32>
    %303 = arith.mulf %301, %302 : vector<16x256xf32>
    %c272 = arith.constant 272 : index
    %c0_264 = arith.constant 0 : index
    %304 = vector.load %arg7[%c272, %c0_264] : memref<792x256xf32, #tpu.memory_space<vmem>>, vector<16x256xf32>
    tpu.vector_store %arg7[%c272, %c0_264], %303 {strides = array<i32>} : memref<792x256xf32, #tpu.memory_space<vmem>>, vector<16x256xf32>,
    %c0_265 = arith.constant 0 : index
    %c128_266 = arith.constant 128 : index
    %305 = vector.load %arg6[%c0_265, %c128_266] : memref<32x640xf32, #tpu.memory_space<vmem>>, vector<16x256xf32>
    %306 = vector.broadcast %292 : vector<1x256xf32> to vector<16x256xf32>
    %307 = arith.mulf %305, %306 : vector<16x256xf32>
    %c384 = arith.constant 384 : index
    %c0_267 = arith.constant 0 : index
    %308 = vector.load %arg7[%c384, %c0_267] : memref<792x256xf32, #tpu.memory_space<vmem>>, vector<16x256xf32>
    tpu.vector_store %arg7[%c384, %c0_267], %307 {strides = array<i32>} : memref<792x256xf32, #tpu.memory_space<vmem>>, vector<16x256xf32>,
    %c0_268 = arith.constant 0 : index
    %c144_269 = arith.constant 144 : index
    %309 = vector.load %arg6[%c0_268, %c144_269] : memref<32x640xf32, #tpu.memory_space<vmem>>, vector<16x256xf32>
    %310 = vector.broadcast %292 : vector<1x256xf32> to vector<16x256xf32>
    %311 = arith.mulf %309, %310 : vector<16x256xf32>
    %c496 = arith.constant 496 : index
    %c0_270 = arith.constant 0 : index
    %312 = vector.load %arg7[%c496, %c0_270] : memref<792x256xf32, #tpu.memory_space<vmem>>, vector<16x256xf32>
    tpu.vector_store %arg7[%c496, %c0_270], %311 {strides = array<i32>} : memref<792x256xf32, #tpu.memory_space<vmem>>, vector<16x256xf32>,
    %c0_271 = arith.constant 0 : index
    %c160_272 = arith.constant 160 : index
    %313 = vector.load %arg6[%c0_271, %c160_272] : memref<32x640xf32, #tpu.memory_space<vmem>>, vector<16x256xf32>
    %314 = vector.broadcast %292 : vector<1x256xf32> to vector<16x256xf32>
    %315 = arith.mulf %313, %314 : vector<16x256xf32>
    %c608 = arith.constant 608 : index
    %c0_273 = arith.constant 0 : index
    %316 = vector.load %arg7[%c608, %c0_273] : memref<792x256xf32, #tpu.memory_space<vmem>>, vector<16x256xf32>
    tpu.vector_store %arg7[%c608, %c0_273], %315 {strides = array<i32>} : memref<792x256xf32, #tpu.memory_space<vmem>>, vector<16x256xf32>,
    %c0_274 = arith.constant 0 : index
    %c176 = arith.constant 176 : index
    %317 = vector.load %arg6[%c0_274, %c176] : memref<32x640xf32, #tpu.memory_space<vmem>>, vector<16x256xf32>
    %318 = vector.broadcast %292 : vector<1x256xf32> to vector<16x256xf32>
    %319 = arith.mulf %317, %318 : vector<16x256xf32>
    %c720 = arith.constant 720 : index
    %c0_275 = arith.constant 0 : index
    %320 = vector.load %arg7[%c720, %c0_275] : memref<792x256xf32, #tpu.memory_space<vmem>>, vector<16x256xf32>
    tpu.vector_store %arg7[%c720, %c0_275], %319 {strides = array<i32>} : memref<792x256xf32, #tpu.memory_space<vmem>>, vector<16x256xf32>,
    %c418 = arith.constant 418 : index
    %c0_276 = arith.constant 0 : index
    %321 = vector.load %arg2[%c418, %c0_276] : memref<424x256xf32, #tpu.memory_space<vmem>>, vector<1x256xf32>
    %c0_277 = arith.constant 0 : index
    %c81 = arith.constant 81 : index
    %322 = vector.load %arg6[%c0_277, %c81] : memref<32x640xf32, #tpu.memory_space<vmem>>, vector<16x256xf32>
    %323 = vector.broadcast %321 : vector<1x256xf32> to vector<16x256xf32>
    %324 = arith.mulf %322, %323 : vector<16x256xf32>
    %c64_278 = arith.constant 64 : index
    %c0_279 = arith.constant 0 : index
    %325 = vector.load %arg7[%c64_278, %c0_279] : memref<792x256xf32, #tpu.memory_space<vmem>>, vector<16x256xf32>
    tpu.vector_store %arg7[%c64_278, %c0_279], %324 {strides = array<i32>} : memref<792x256xf32, #tpu.memory_space<vmem>>, vector<16x256xf32>,
    %c0_280 = arith.constant 0 : index
    %c97 = arith.constant 97 : index
    %326 = vector.load %arg6[%c0_280, %c97] : memref<32x640xf32, #tpu.memory_space<vmem>>, vector<16x256xf32>
    %327 = vector.broadcast %321 : vector<1x256xf32> to vector<16x256xf32>
    %328 = arith.mulf %326, %327 : vector<16x256xf32>
    %c176_281 = arith.constant 176 : index
    %c0_282 = arith.constant 0 : index
    %329 = vector.load %arg7[%c176_281, %c0_282] : memref<792x256xf32, #tpu.memory_space<vmem>>, vector<16x256xf32>
    tpu.vector_store %arg7[%c176_281, %c0_282], %328 {strides = array<i32>} : memref<792x256xf32, #tpu.memory_space<vmem>>, vector<16x256xf32>,
    %c0_283 = arith.constant 0 : index
    %c113_284 = arith.constant 113 : index
    %330 = vector.load %arg6[%c0_283, %c113_284] : memref<32x640xf32, #tpu.memory_space<vmem>>, vector<16x256xf32>
    %331 = vector.broadcast %321 : vector<1x256xf32> to vector<16x256xf32>
    %332 = arith.mulf %330, %331 : vector<16x256xf32>
    %c288_285 = arith.constant 288 : index
    %c0_286 = arith.constant 0 : index
    %333 = vector.load %arg7[%c288_285, %c0_286] : memref<792x256xf32, #tpu.memory_space<vmem>>, vector<16x256xf32>
    tpu.vector_store %arg7[%c288_285, %c0_286], %332 {strides = array<i32>} : memref<792x256xf32, #tpu.memory_space<vmem>>, vector<16x256xf32>,
    %c0_287 = arith.constant 0 : index
    %c129_288 = arith.constant 129 : index
    %334 = vector.load %arg6[%c0_287, %c129_288] : memref<32x640xf32, #tpu.memory_space<vmem>>, vector<16x256xf32>
    %335 = vector.broadcast %321 : vector<1x256xf32> to vector<16x256xf32>
    %336 = arith.mulf %334, %335 : vector<16x256xf32>
    %c400_289 = arith.constant 400 : index
    %c0_290 = arith.constant 0 : index
    %337 = vector.load %arg7[%c400_289, %c0_290] : memref<792x256xf32, #tpu.memory_space<vmem>>, vector<16x256xf32>
    tpu.vector_store %arg7[%c400_289, %c0_290], %336 {strides = array<i32>} : memref<792x256xf32, #tpu.memory_space<vmem>>, vector<16x256xf32>,
    %c0_291 = arith.constant 0 : index
    %c145_292 = arith.constant 145 : index
    %338 = vector.load %arg6[%c0_291, %c145_292] : memref<32x640xf32, #tpu.memory_space<vmem>>, vector<16x256xf32>
    %339 = vector.broadcast %321 : vector<1x256xf32> to vector<16x256xf32>
    %340 = arith.mulf %338, %339 : vector<16x256xf32>
    %c512_293 = arith.constant 512 : index
    %c0_294 = arith.constant 0 : index
    %341 = vector.load %arg7[%c512_293, %c0_294] : memref<792x256xf32, #tpu.memory_space<vmem>>, vector<16x256xf32>
    tpu.vector_store %arg7[%c512_293, %c0_294], %340 {strides = array<i32>} : memref<792x256xf32, #tpu.memory_space<vmem>>, vector<16x256xf32>,
    %c0_295 = arith.constant 0 : index
    %c161 = arith.constant 161 : index
    %342 = vector.load %arg6[%c0_295, %c161] : memref<32x640xf32, #tpu.memory_space<vmem>>, vector<16x256xf32>
    %343 = vector.broadcast %321 : vector<1x256xf32> to vector<16x256xf32>
    %344 = arith.mulf %342, %343 : vector<16x256xf32>
    %c624 = arith.constant 624 : index
    %c0_296 = arith.constant 0 : index
    %345 = vector.load %arg7[%c624, %c0_296] : memref<792x256xf32, #tpu.memory_space<vmem>>, vector<16x256xf32>
    tpu.vector_store %arg7[%c624, %c0_296], %344 {strides = array<i32>} : memref<792x256xf32, #tpu.memory_space<vmem>>, vector<16x256xf32>,
    %c0_297 = arith.constant 0 : index
    %c177 = arith.constant 177 : index
    %346 = vector.load %arg6[%c0_297, %c177] : memref<32x640xf32, #tpu.memory_space<vmem>>, vector<16x256xf32>
    %347 = vector.broadcast %321 : vector<1x256xf32> to vector<16x256xf32>
    %348 = arith.mulf %346, %347 : vector<16x256xf32>
    %c736 = arith.constant 736 : index
    %c0_298 = arith.constant 0 : index
    %349 = vector.load %arg7[%c736, %c0_298] : memref<792x256xf32, #tpu.memory_space<vmem>>, vector<16x256xf32>
    tpu.vector_store %arg7[%c736, %c0_298], %348 {strides = array<i32>} : memref<792x256xf32, #tpu.memory_space<vmem>>, vector<16x256xf32>,
    %c419 = arith.constant 419 : index
    %c0_299 = arith.constant 0 : index
    %350 = vector.load %arg2[%c419, %c0_299] : memref<424x256xf32, #tpu.memory_space<vmem>>, vector<1x256xf32>
    %c0_300 = arith.constant 0 : index
    %c82 = arith.constant 82 : index
    %351 = vector.load %arg6[%c0_300, %c82] : memref<32x640xf32, #tpu.memory_space<vmem>>, vector<16x256xf32>
    %352 = vector.broadcast %350 : vector<1x256xf32> to vector<16x256xf32>
    %353 = arith.mulf %351, %352 : vector<16x256xf32>
    %c80_301 = arith.constant 80 : index
    %c0_302 = arith.constant 0 : index
    %354 = vector.load %arg7[%c80_301, %c0_302] : memref<792x256xf32, #tpu.memory_space<vmem>>, vector<16x256xf32>
    tpu.vector_store %arg7[%c80_301, %c0_302], %353 {strides = array<i32>} : memref<792x256xf32, #tpu.memory_space<vmem>>, vector<16x256xf32>,
    %c0_303 = arith.constant 0 : index
    %c98 = arith.constant 98 : index
    %355 = vector.load %arg6[%c0_303, %c98] : memref<32x640xf32, #tpu.memory_space<vmem>>, vector<16x256xf32>
    %356 = vector.broadcast %350 : vector<1x256xf32> to vector<16x256xf32>
    %357 = arith.mulf %355, %356 : vector<16x256xf32>
    %c192_304 = arith.constant 192 : index
    %c0_305 = arith.constant 0 : index
    %358 = vector.load %arg7[%c192_304, %c0_305] : memref<792x256xf32, #tpu.memory_space<vmem>>, vector<16x256xf32>
    tpu.vector_store %arg7[%c192_304, %c0_305], %357 {strides = array<i32>} : memref<792x256xf32, #tpu.memory_space<vmem>>, vector<16x256xf32>,
    %c0_306 = arith.constant 0 : index
    %c114 = arith.constant 114 : index
    %359 = vector.load %arg6[%c0_306, %c114] : memref<32x640xf32, #tpu.memory_space<vmem>>, vector<16x256xf32>
    %360 = vector.broadcast %350 : vector<1x256xf32> to vector<16x256xf32>
    %361 = arith.mulf %359, %360 : vector<16x256xf32>
    %c304 = arith.constant 304 : index
    %c0_307 = arith.constant 0 : index
    %362 = vector.load %arg7[%c304, %c0_307] : memref<792x256xf32, #tpu.memory_space<vmem>>, vector<16x256xf32>
    tpu.vector_store %arg7[%c304, %c0_307], %361 {strides = array<i32>} : memref<792x256xf32, #tpu.memory_space<vmem>>, vector<16x256xf32>,
    %c0_308 = arith.constant 0 : index
    %c130 = arith.constant 130 : index
    %363 = vector.load %arg6[%c0_308, %c130] : memref<32x640xf32, #tpu.memory_space<vmem>>, vector<16x256xf32>
    %364 = vector.broadcast %350 : vector<1x256xf32> to vector<16x256xf32>
    %365 = arith.mulf %363, %364 : vector<16x256xf32>
    %c416_309 = arith.constant 416 : index
    %c0_310 = arith.constant 0 : index
    %366 = vector.load %arg7[%c416_309, %c0_310] : memref<792x256xf32, #tpu.memory_space<vmem>>, vector<16x256xf32>
    tpu.vector_store %arg7[%c416_309, %c0_310], %365 {strides = array<i32>} : memref<792x256xf32, #tpu.memory_space<vmem>>, vector<16x256xf32>,
    %c0_311 = arith.constant 0 : index
    %c146 = arith.constant 146 : index
    %367 = vector.load %arg6[%c0_311, %c146] : memref<32x640xf32, #tpu.memory_space<vmem>>, vector<16x256xf32>
    %368 = vector.broadcast %350 : vector<1x256xf32> to vector<16x256xf32>
    %369 = arith.mulf %367, %368 : vector<16x256xf32>
    %c528 = arith.constant 528 : index
    %c0_312 = arith.constant 0 : index
    %370 = vector.load %arg7[%c528, %c0_312] : memref<792x256xf32, #tpu.memory_space<vmem>>, vector<16x256xf32>
    tpu.vector_store %arg7[%c528, %c0_312], %369 {strides = array<i32>} : memref<792x256xf32, #tpu.memory_space<vmem>>, vector<16x256xf32>,
    %c0_313 = arith.constant 0 : index
    %c162 = arith.constant 162 : index
    %371 = vector.load %arg6[%c0_313, %c162] : memref<32x640xf32, #tpu.memory_space<vmem>>, vector<16x256xf32>
    %372 = vector.broadcast %350 : vector<1x256xf32> to vector<16x256xf32>
    %373 = arith.mulf %371, %372 : vector<16x256xf32>
    %c640 = arith.constant 640 : index
    %c0_314 = arith.constant 0 : index
    %374 = vector.load %arg7[%c640, %c0_314] : memref<792x256xf32, #tpu.memory_space<vmem>>, vector<16x256xf32>
    tpu.vector_store %arg7[%c640, %c0_314], %373 {strides = array<i32>} : memref<792x256xf32, #tpu.memory_space<vmem>>, vector<16x256xf32>,
    %c0_315 = arith.constant 0 : index
    %c178 = arith.constant 178 : index
    %375 = vector.load %arg6[%c0_315, %c178] : memref<32x640xf32, #tpu.memory_space<vmem>>, vector<16x256xf32>
    %376 = vector.broadcast %350 : vector<1x256xf32> to vector<16x256xf32>
    %377 = arith.mulf %375, %376 : vector<16x256xf32>
    %c752 = arith.constant 752 : index
    %c0_316 = arith.constant 0 : index
    %378 = vector.load %arg7[%c752, %c0_316] : memref<792x256xf32, #tpu.memory_space<vmem>>, vector<16x256xf32>
    tpu.vector_store %arg7[%c752, %c0_316], %377 {strides = array<i32>} : memref<792x256xf32, #tpu.memory_space<vmem>>, vector<16x256xf32>,
    %c420 = arith.constant 420 : index
    %c0_317 = arith.constant 0 : index
    %379 = vector.load %arg2[%c420, %c0_317] : memref<424x256xf32, #tpu.memory_space<vmem>>, vector<1x256xf32>
    %c0_318 = arith.constant 0 : index
    %c83 = arith.constant 83 : index
    %380 = vector.load %arg6[%c0_318, %c83] : memref<32x640xf32, #tpu.memory_space<vmem>>, vector<16x256xf32>
    %381 = vector.broadcast %379 : vector<1x256xf32> to vector<16x256xf32>
    %382 = arith.mulf %380, %381 : vector<16x256xf32>
    %c96_319 = arith.constant 96 : index
    %c0_320 = arith.constant 0 : index
    %383 = vector.load %arg7[%c96_319, %c0_320] : memref<792x256xf32, #tpu.memory_space<vmem>>, vector<16x256xf32>
    tpu.vector_store %arg7[%c96_319, %c0_320], %382 {strides = array<i32>} : memref<792x256xf32, #tpu.memory_space<vmem>>, vector<16x256xf32>,
    %c0_321 = arith.constant 0 : index
    %c99 = arith.constant 99 : index
    %384 = vector.load %arg6[%c0_321, %c99] : memref<32x640xf32, #tpu.memory_space<vmem>>, vector<16x256xf32>
    %385 = vector.broadcast %379 : vector<1x256xf32> to vector<16x256xf32>
    %386 = arith.mulf %384, %385 : vector<16x256xf32>
    %c208 = arith.constant 208 : index
    %c0_322 = arith.constant 0 : index
    %387 = vector.load %arg7[%c208, %c0_322] : memref<792x256xf32, #tpu.memory_space<vmem>>, vector<16x256xf32>
    tpu.vector_store %arg7[%c208, %c0_322], %386 {strides = array<i32>} : memref<792x256xf32, #tpu.memory_space<vmem>>, vector<16x256xf32>,
    %c0_323 = arith.constant 0 : index
    %c115 = arith.constant 115 : index
    %388 = vector.load %arg6[%c0_323, %c115] : memref<32x640xf32, #tpu.memory_space<vmem>>, vector<16x256xf32>
    %389 = vector.broadcast %379 : vector<1x256xf32> to vector<16x256xf32>
    %390 = arith.mulf %388, %389 : vector<16x256xf32>
    %c320_324 = arith.constant 320 : index
    %c0_325 = arith.constant 0 : index
    %391 = vector.load %arg7[%c320_324, %c0_325] : memref<792x256xf32, #tpu.memory_space<vmem>>, vector<16x256xf32>
    tpu.vector_store %arg7[%c320_324, %c0_325], %390 {strides = array<i32>} : memref<792x256xf32, #tpu.memory_space<vmem>>, vector<16x256xf32>,
    %c0_326 = arith.constant 0 : index
    %c131 = arith.constant 131 : index
    %392 = vector.load %arg6[%c0_326, %c131] : memref<32x640xf32, #tpu.memory_space<vmem>>, vector<16x256xf32>
    %393 = vector.broadcast %379 : vector<1x256xf32> to vector<16x256xf32>
    %394 = arith.mulf %392, %393 : vector<16x256xf32>
    %c432 = arith.constant 432 : index
    %c0_327 = arith.constant 0 : index
    %395 = vector.load %arg7[%c432, %c0_327] : memref<792x256xf32, #tpu.memory_space<vmem>>, vector<16x256xf32>
    tpu.vector_store %arg7[%c432, %c0_327], %394 {strides = array<i32>} : memref<792x256xf32, #tpu.memory_space<vmem>>, vector<16x256xf32>,
    %c0_328 = arith.constant 0 : index
    %c147 = arith.constant 147 : index
    %396 = vector.load %arg6[%c0_328, %c147] : memref<32x640xf32, #tpu.memory_space<vmem>>, vector<16x256xf32>
    %397 = vector.broadcast %379 : vector<1x256xf32> to vector<16x256xf32>
    %398 = arith.mulf %396, %397 : vector<16x256xf32>
    %c544 = arith.constant 544 : index
    %c0_329 = arith.constant 0 : index
    %399 = vector.load %arg7[%c544, %c0_329] : memref<792x256xf32, #tpu.memory_space<vmem>>, vector<16x256xf32>
    tpu.vector_store %arg7[%c544, %c0_329], %398 {strides = array<i32>} : memref<792x256xf32, #tpu.memory_space<vmem>>, vector<16x256xf32>,
    %c0_330 = arith.constant 0 : index
    %c163 = arith.constant 163 : index
    %400 = vector.load %arg6[%c0_330, %c163] : memref<32x640xf32, #tpu.memory_space<vmem>>, vector<16x256xf32>
    %401 = vector.broadcast %379 : vector<1x256xf32> to vector<16x256xf32>
    %402 = arith.mulf %400, %401 : vector<16x256xf32>
    %c656 = arith.constant 656 : index
    %c0_331 = arith.constant 0 : index
    %403 = vector.load %arg7[%c656, %c0_331] : memref<792x256xf32, #tpu.memory_space<vmem>>, vector<16x256xf32>
    tpu.vector_store %arg7[%c656, %c0_331], %402 {strides = array<i32>} : memref<792x256xf32, #tpu.memory_space<vmem>>, vector<16x256xf32>,
    %c0_332 = arith.constant 0 : index
    %c179 = arith.constant 179 : index
    %404 = vector.load %arg6[%c0_332, %c179] : memref<32x640xf32, #tpu.memory_space<vmem>>, vector<16x256xf32>
    %405 = vector.broadcast %379 : vector<1x256xf32> to vector<16x256xf32>
    %406 = arith.mulf %404, %405 : vector<16x256xf32>
    %c768 = arith.constant 768 : index
    %c0_333 = arith.constant 0 : index
    %407 = vector.load %arg7[%c768, %c0_333] : memref<792x256xf32, #tpu.memory_space<vmem>>, vector<16x256xf32>
    tpu.vector_store %arg7[%c768, %c0_333], %406 {strides = array<i32>} : memref<792x256xf32, #tpu.memory_space<vmem>>, vector<16x256xf32>,
    %c72_334 = arith.constant 72 : index
    %c0_335 = arith.constant 0 : index
    %408 = vector.load %arg1[%c72_334, %c0_335] : memref<96x896xf32, #tpu.memory_space<vmem>>, vector<24x792xf32>
    %c0_336 = arith.constant 0 : index
    %c0_337 = arith.constant 0 : index
    %409 = vector.load %arg7[%c0_336, %c0_337] : memref<792x256xf32, #tpu.memory_space<vmem>>, vector<792x256xf32>
    %cst_338 = arith.constant dense<0.000000e+00> : vector<24x256xf32>
    %410 = tpu.matmul %408, %409, %cst_338 {dimension_numbers = #tpu.dot_dimension_numbers<[1], [0], [0], [1], [0, 0, 1, 1], [], []>} : vector<24x792xf32>, vector<792x256xf32>, vector<24x256xf32> -> vector<24x256xf32>
    %411 = vector.extract_strided_slice %410 {offsets = [20, 0], sizes = [4, 256], strides = [1, 1]} : vector<24x256xf32> to vector<4x256xf32>
    %cst_339 = arith.constant 1.000000e+01 : f32
    %412 = vector.broadcast %cst_339 : f32 to vector<4x256xf32>
    %413 = arith.mulf %411, %412 : vector<4x256xf32>
    %cst_340 = arith.constant dense<0xFF800000> : vector<256xf32>
    %414 = vector.multi_reduction <maximumf>, %413, %cst_340 [0] : vector<4x256xf32> to vector<256xf32>
    %415 = vector.shape_cast %414 : vector<256xf32> to vector<1x256xf32>
    %416 = vector.broadcast %415 : vector<1x256xf32> to vector<4x256xf32>
    %417 = arith.subf %413, %416 : vector<4x256xf32>
    %418 = math.exp %417 : vector<4x256xf32>
    %cst_341 = arith.constant dense<0.000000e+00> : vector<256xf32>
    %419 = vector.multi_reduction <add>, %418, %cst_341 [0] : vector<4x256xf32> to vector<256xf32>
    %420 = vector.shape_cast %419 : vector<256xf32> to vector<1x256xf32>
    %421 = tpu.reciprocal %420 {approx = true} : vector<1x256xf32> -> vector<1x256xf32>
    %422 = arith.mulf %420, %421 : vector<1x256xf32>
    %cst_342 = arith.constant 2.000000e+00 : f32
    %423 = vector.broadcast %cst_342 : f32 to vector<1x256xf32>
    %424 = arith.subf %423, %422 : vector<1x256xf32>
    %425 = arith.mulf %421, %424 : vector<1x256xf32>
    %426 = vector.broadcast %425 : vector<1x256xf32> to vector<4x256xf32>
    %427 = arith.mulf %418, %426 : vector<4x256xf32>
    %428 = vector.extract_strided_slice %427 {offsets = [0, 0], sizes = [1, 256], strides = [1, 1]} : vector<4x256xf32> to vector<1x256xf32>
    %429 = vector.extract_strided_slice %410 {offsets = [0, 0], sizes = [5, 256], strides = [1, 1]} : vector<24x256xf32> to vector<5x256xf32>
    %cst_343 = arith.constant dense<0xFF800000> : vector<256xf32>
    %430 = vector.multi_reduction <maximumf>, %429, %cst_343 [0] : vector<5x256xf32> to vector<256xf32>
    %431 = vector.shape_cast %430 : vector<256xf32> to vector<1x256xf32>
    %432 = vector.broadcast %431 : vector<1x256xf32> to vector<5x256xf32>
    %433 = arith.subf %429, %432 : vector<5x256xf32>
    %434 = math.exp %433 : vector<5x256xf32>
    %cst_344 = arith.constant dense<0.000000e+00> : vector<256xf32>
    %435 = vector.multi_reduction <add>, %434, %cst_344 [0] : vector<5x256xf32> to vector<256xf32>
    %436 = vector.shape_cast %435 : vector<256xf32> to vector<1x256xf32>
    %437 = tpu.reciprocal %436 {approx = true} : vector<1x256xf32> -> vector<1x256xf32>
    %438 = arith.mulf %436, %437 : vector<1x256xf32>
    %cst_345 = arith.constant 2.000000e+00 : f32
    %439 = vector.broadcast %cst_345 : f32 to vector<1x256xf32>
    %440 = arith.subf %439, %438 : vector<1x256xf32>
    %441 = arith.mulf %437, %440 : vector<1x256xf32>
    %442 = vector.broadcast %441 : vector<1x256xf32> to vector<5x256xf32>
    %443 = arith.mulf %434, %442 : vector<5x256xf32>
    %444 = vector.extract_strided_slice %427 {offsets = [1, 0], sizes = [1, 256], strides = [1, 1]} : vector<4x256xf32> to vector<1x256xf32>
    %445 = vector.broadcast %444 : vector<1x256xf32> to vector<5x256xf32>
    %446 = arith.mulf %443, %445 : vector<5x256xf32>
    %447 = vector.extract_strided_slice %410 {offsets = [5, 0], sizes = [5, 256], strides = [1, 1]} : vector<24x256xf32> to vector<5x256xf32>
    %cst_346 = arith.constant dense<0xFF800000> : vector<256xf32>
    %448 = vector.multi_reduction <maximumf>, %447, %cst_346 [0] : vector<5x256xf32> to vector<256xf32>
    %449 = vector.shape_cast %448 : vector<256xf32> to vector<1x256xf32>
    %450 = vector.broadcast %449 : vector<1x256xf32> to vector<5x256xf32>
    %451 = arith.subf %447, %450 : vector<5x256xf32>
    %452 = math.exp %451 : vector<5x256xf32>
    %cst_347 = arith.constant dense<0.000000e+00> : vector<256xf32>
    %453 = vector.multi_reduction <add>, %452, %cst_347 [0] : vector<5x256xf32> to vector<256xf32>
    %454 = vector.shape_cast %453 : vector<256xf32> to vector<1x256xf32>
    %455 = tpu.reciprocal %454 {approx = true} : vector<1x256xf32> -> vector<1x256xf32>
    %456 = arith.mulf %454, %455 : vector<1x256xf32>
    %cst_348 = arith.constant 2.000000e+00 : f32
    %457 = vector.broadcast %cst_348 : f32 to vector<1x256xf32>
    %458 = arith.subf %457, %456 : vector<1x256xf32>
    %459 = arith.mulf %455, %458 : vector<1x256xf32>
    %460 = vector.broadcast %459 : vector<1x256xf32> to vector<5x256xf32>
    %461 = arith.mulf %452, %460 : vector<5x256xf32>
    %462 = vector.extract_strided_slice %427 {offsets = [2, 0], sizes = [1, 256], strides = [1, 1]} : vector<4x256xf32> to vector<1x256xf32>
    %463 = vector.broadcast %462 : vector<1x256xf32> to vector<5x256xf32>
    %464 = arith.mulf %461, %463 : vector<5x256xf32>
    %465 = vector.extract_strided_slice %410 {offsets = [10, 0], sizes = [10, 256], strides = [1, 1]} : vector<24x256xf32> to vector<10x256xf32>
    %cst_349 = arith.constant dense<0xFF800000> : vector<256xf32>
    %466 = vector.multi_reduction <maximumf>, %465, %cst_349 [0] : vector<10x256xf32> to vector<256xf32>
    %467 = vector.shape_cast %466 : vector<256xf32> to vector<1x256xf32>
    %468 = vector.broadcast %467 : vector<1x256xf32> to vector<10x256xf32>
    %469 = arith.subf %465, %468 : vector<10x256xf32>
    %470 = math.exp %469 : vector<10x256xf32>
    %cst_350 = arith.constant dense<0.000000e+00> : vector<256xf32>
    %471 = vector.multi_reduction <add>, %470, %cst_350 [0] : vector<10x256xf32> to vector<256xf32>
    %472 = vector.shape_cast %471 : vector<256xf32> to vector<1x256xf32>
    %473 = tpu.reciprocal %472 {approx = true} : vector<1x256xf32> -> vector<1x256xf32>
    %474 = arith.mulf %472, %473 : vector<1x256xf32>
    %cst_351 = arith.constant 2.000000e+00 : f32
    %475 = vector.broadcast %cst_351 : f32 to vector<1x256xf32>
    %476 = arith.subf %475, %474 : vector<1x256xf32>
    %477 = arith.mulf %473, %476 : vector<1x256xf32>
    %478 = vector.broadcast %477 : vector<1x256xf32> to vector<10x256xf32>
    %479 = arith.mulf %470, %478 : vector<10x256xf32>
    %480 = vector.extract_strided_slice %427 {offsets = [3, 0], sizes = [1, 256], strides = [1, 1]} : vector<4x256xf32> to vector<1x256xf32>
    %481 = vector.broadcast %480 : vector<1x256xf32> to vector<10x256xf32>
    %482 = arith.mulf %479, %481 : vector<10x256xf32>
    %cst_352 = arith.constant 0.000000e+00 : f32
    %483 = vector.broadcast %cst_352 : f32 to vector<3x256xf32>
    %484 = tpu.concatenate %428, %446, %464, %482, %483 in 0 : vector<1x256xf32>, vector<5x256xf32>, vector<5x256xf32>, vector<10x256xf32>, vector<3x256xf32> -> vector<24x256xf32>
    %c0_353 = arith.constant 0 : index
    %c0_354 = arith.constant 0 : index
    %c0_355 = arith.constant 0 : index
    %485 = vector.load %arg4[%c0_353, %c0_354, %c0_355] : memref<1x24x256xf32, #tpu.memory_space<vmem>>, vector<1x24x256xf32>
    %486 = vector.shape_cast %485 : vector<1x24x256xf32> to vector<24x256xf32>
    %487 = vector.shape_cast %484 : vector<24x256xf32> to vector<1x24x256xf32>
    tpu.vector_store %arg4[%c0_353, %c0_354, %c0_355], %487 {strides = array<i32>} : memref<1x24x256xf32, #tpu.memory_space<vmem>>, vector<1x24x256xf32>,
    %c0_356 = arith.constant 0 : index
    %c1 = arith.constant 1 : index
    %c0_357 = arith.constant 0 : index
    %488 = vector.load %arg3[%c0_356, %c1, %c0_357] : memref<1x8x256xf32, #tpu.memory_space<vmem>>, vector<1x2x256xf32>
    %489 = vector.shape_cast %488 : vector<1x2x256xf32> to vector<2x256xf32>
    %cst_358 = arith.constant dense<0.000000e+00> : vector<256xf32>
    %490 = vector.multi_reduction <add>, %484, %cst_358 [0] : vector<24x256xf32> to vector<256xf32>
    %491 = vector.shape_cast %490 : vector<256xf32> to vector<1x256xf32>
    %c0_359 = arith.constant 0 : index
    %c3 = arith.constant 3 : index
    %c0_360 = arith.constant 0 : index
    %492 = vector.load %arg3[%c0_359, %c3, %c0_360] : memref<1x8x256xf32, #tpu.memory_space<vmem>>, vector<1x2x24xf32>
    %493 = vector.shape_cast %492 : vector<1x2x24xf32> to vector<2x24xf32>
    %cst_361 = arith.constant dense<0.000000e+00> : vector<2x256xf32>
    %494 = tpu.matmul %493, %484, %cst_361 {dimension_numbers = #tpu.dot_dimension_numbers<[1], [0], [0], [1], [0, 0, 1, 1], [], []>} : vector<2x24xf32>, vector<24x256xf32>, vector<2x256xf32> -> vector<2x256xf32>
    %495 = vector.broadcast %491 : vector<1x256xf32> to vector<2x256xf32>
    %496 = arith.mulf %489, %495 : vector<2x256xf32>
    %497 = arith.subf %496, %494 : vector<2x256xf32>
    %c0_362 = arith.constant 0 : index
    %c0_363 = arith.constant 0 : index
    %c0_364 = arith.constant 0 : index
    %498 = vector.load %arg5[%c0_362, %c0_363, %c0_364] : memref<1x2x256xf32, #tpu.memory_space<vmem>>, vector<1x2x256xf32>
    %499 = vector.shape_cast %498 : vector<1x2x256xf32> to vector<2x256xf32>
    %500 = vector.shape_cast %497 : vector<2x256xf32> to vector<1x2x256xf32>
    tpu.vector_store %arg5[%c0_362, %c0_363, %c0_364], %500 {strides = array<i32>} : memref<1x2x256xf32, #tpu.memory_space<vmem>>, vector<1x2x256xf32>,
    return
  }
  func.func @transform_0(%arg0: i32) -> (i32, i32) {
    %c0_i32 = arith.constant 0 : i32
    %c0_i32_0 = arith.constant 0 : i32
    %c0_i32_1 = arith.constant 0 : i32
    return %c0_i32, %c0_i32_0 : i32, i32
  }
  func.func @transform_1(%arg0: i32) -> (i32, i32) {
    %c0_i32 = arith.constant 0 : i32
    %c0_i32_0 = arith.constant 0 : i32
    %c0_i32_1 = arith.constant 0 : i32
    return %c0_i32, %c0_i32_0 : i32, i32
  }
  func.func @transform_2(%arg0: i32) -> (i32, i32, i32) {
    %c0_i32 = arith.constant 0 : i32
    %c0_i32_0 = arith.constant 0 : i32
    %c0_i32_1 = arith.constant 0 : i32
    return %arg0, %c0_i32, %c0_i32_0 : i32, i32, i32
  }
  func.func @transform_3(%arg0: i32) -> (i32, i32, i32) {
    %c0_i32 = arith.constant 0 : i32
    %c0_i32_0 = arith.constant 0 : i32
    %c0_i32_1 = arith.constant 0 : i32
    return %arg0, %c0_i32, %c0_i32_0 : i32, i32, i32
  }
  func.func @transform_4(%arg0: i32) -> (i32, i32, i32) {
    %c0_i32 = arith.constant 0 : i32
    %c0_i32_0 = arith.constant 0 : i32
    %c0_i32_1 = arith.constant 0 : i32
    return %arg0, %c0_i32, %c0_i32_0 : i32, i32, i32
  }
}

</mosaic_0001>

<bundles_post_ra>
// kernel: custom-call.11
= control target key start
LH: loop header
LB: loop body
LE: loop exit
PB: predicated region body
PF: predicated region fallthrough
CT: control target
= control target key end

     0   :  { %5 = vsyncpa [#allocation6], 0  ;;  %s896_s0 = inlined_call_operand.vmem [shape: f32[2,3,3], index: 0, kind: input, shape index: {}]   ;;  %s897_s1 = inlined_call_operand.vmem [shape: f32[2,3,3], index: 1, kind: output, shape index: {0}]   ;;  %s898_s2 = inlined_call_operand.hbm [shape: s32[2,3], index: 2, kind: output, shape index: {1}]   ;;  %s899_s3 = inlined_call_operand.vmem [shape: s32[2,3], index: 3, kind: output, shape index: {2}]  }
   0x1   :  { %7 = vsyncpa [#allocation6 + $0x1], 0  ;;  %s715_s12 = smov 0   ;;  %s717_s13 = smov 0  }
   0x2   :  { %s719_s14 = smov 0   ;;  %s721_s15 = smov 0  }
   0x3 LB: > { %s736_s16 = sadd.s32 4294967295, %s687_s15   ;;  %s550_s17 = sadd.s32 4294967294, %s687_s15   ;;  %s687_s15 = sphi %s721_s15, %s907_s15   ;;  %s683_s14 = sphi %s719_s14, %s906_s14   ;;  %s679_s13 = sphi %s717_s13, %s905_s13   ;;  %s675_s12 = sphi %s715_s12, %s904_s12  }
   0x4   : > { %s740_s18 = sadd.s32 1, %s687_s15   ;;  %s17_s19 = sshrl.u32 %s687_s15, 3 }
   0x5   : > { %s18_s20 = sshrl.u32 %s740_s18, 3  ;;  %s22_s21 = sadd.s32 1, %s683_s14 }
   0x6   : > { %s19_s22 = ssub.s32 %s17_s19, %s18_s20  ;;  %p32_p0 = scmp.ne.s32.totalorder %s683_s14, %s679_s13 }
   0x7   : > { %p20_p1 = scmp.eq.s32.totalorder %s19_s22, 0  ;;  %p33_p2 = scmp.eq.s32.totalorder %s736_s16, 1 }
   0x8   : > { %p38_p3 = scmp.ne.s32.totalorder %s679_s13, %s675_s12  ;;  %p39_p4 = scmp.eq.s32.totalorder %s550_s17, 1 }
   0x9   : > { %s751_s23 = scalar_select %p20_p1, %s683_s14, %s22_s21  }
   0xa   : > { %p753_p5 = por %p33_p2, %p32_p0  ;;  %p757_p6 = por %p39_p4, %p38_p3 }
   0xb   : > { %p552_p7 = scmp.ge.s32.totalorder %s687_s15, 2 }
   0xc   : > { %s85_s26 = sand.u32 (!%p552_p7), 1, %s687_s15   ;;  %s554_s27 = sshll.u32 (!%p552_p7), %s687_s15, 2 }
   0xd   : > { %83 = sbr.rel (%p552_p7) target bundleno = 20 (0x14), region = 16  ;;  %s553_s28 = sshll.u32 (!%p552_p7), %s85_s26, 2 }
   0xe   : > { %s89_s4 = scalar_lea.vmem (!%p552_p7), %s896_s0, %s554_s27  ;;  %s87_s5 = scalar_lea.vmem (!%p552_p7), [#allocation1], %s553_s28 }
   0xf   : > { %v105_v0 = vld [vmem:[%s89_s4] sm:$0xf] (!%p552_p7) }
  0x10   : > { %106 = vst [vmem:[%s87_s5] sm:$0xf] (!%p552_p7), %v105_v0 }
  0x14 PF: > { %p555_p8 = scmp.ge.s32.totalorder %s687_s15, 1  ;;  %p122_p9 = scmp.lt.s32.totalorder %s687_s15, 3 }
  0x16   : > { %p123_p10 = pnand %p555_p8, %p122_p9 }
  0x18   : > { %126 = sbr.rel (%p123_p10) target bundleno = 451 (0x1c3), region = 50 }
  0x1f   : > { %s133_s6 = sand.u32 1, %s736_s16   ;;  %s144_s7 = sand.u32 1, %s679_s13   ;;  %v166_v1 = vlaneseq  ;;  %v693_v4 = vmov 0  }
  0x20   : > { %s773_s8 = sshll.u32 %s133_s6, 2  ;;  %s777_s9 = sshll.u32 %s144_s7, 1 }
  0x21   : > { %v780_v2 = vshrl.u32 %v166_v1, 7  ;;  %s135_s10 = scalar_lea.vmem [#allocation1], %s773_s8  ;;  %s161_s11 = sand.u32 7, %s736_s16  }
  0x22   : > { %v155_v3 = vld [vmem:[%s135_s10] sm:$0xf]  ;;  %s785_s17 = scalar_lea.vmem [#allocation4], %s161_s11  ;;  %s139_s19 = scalar_lea.vmem [#allocation3], %s773_s8 }
  0x23   : > { %156 = vst [vmem:[#allocation0] sm:$0xf] %v155_v3  ;;  %170 = vst [vmem:[#allocation9] sm:$0xff] %v780_v2  ;;  %s146_s20 = scalar_lea.vmem [#allocation5], %s777_s9  ;;  %s152_s21 = scalar_lea.vmem [#allocation8], %s777_s9 }
  0x24   : > { %165 = vst [vmem:[%s785_s17] sm:$0x1] %v693_v4  ;;  %s791_s22 = scalar_lea.vmem [#allocation7], %s161_s11  ;;  %s793_s26 = smov 0  }
  0x2a   : > { %v159_v5 = vld [vmem:[#allocation0] sm:$0xff] }
  0x2b   : > { %160 = vst [vmem:[#allocation2] sm:$0xff] %v159_v5 }
  0x2c LB: >> { %vm186_vm0 = vcmp.lt.s32.totalorder %v780_v2, 3  ;;  %v800_v8 = vstv %s691_s26  ;;  %s227_s27 = ssub.s32 128, %s691_s26  ;;  %v233_v38 = vand.u32 127, %v166_v1  ;;  %v236_v40 = vld [vmem:[%s785_s17] ss:$0 sm:$0xff]  ;;  %s239_s28 = scalar_lea.vmem [#allocation2], %s691_s26  ;;  %s691_s26 = sphi %s793_s26, %s176_s26  }
  0x2d   : >> { %vm185_vm1 = vcmp.ge.s32.totalorder %v780_v2, %v800_v8  ;;  %s245_s30 = scalar_lea.vmem [#allocation9], %s691_s26  ;;  %vm265_vm15 = vcmp.gt.s32.totalorder %v780_v2, %v800_v8  ;;  %s176_s26 = sadd.s32 1, %s691_s26  }
  0x2e   : >> { %vm187_vm3 = vmand %vm185_vm1, %vm186_vm0  ;;  %vm257_vm12 = vcmp.gt.s32.totalorder %v233_v38, %v800_v8  ;;  %vm234_vm13 = vcmp.eq.s32.totalorder %v233_v38, %v800_v8  ;;  %v247_v42 = vld [vmem:[%s245_s30] ss:$0 sm:$0xff]  ;;  %p173_p11 = scmp.ge.s32.totalorder %s176_s26, 3  }
  0x2f   : >> { %vm269_vm1 = vmand %vm265_vm15, %vm234_vm13  ;;  %s900_s6 = sshrl.u32 (%p173_p11), %s736_s16, 3  ;;  %s564_s10 = sshll.u32 (%p173_p11), %s736_s16, 2 }
  0x30   : > { %s565_s11 = sshll.u32 (%p173_p11), %s900_s6, 5 }
  0x32   : >> { %v181_v6 = vld [vmem:[#allocation2] sm:$0xff]  ;;  %v241_v41 = vld [vmem:[%s239_s28] ss:$0 sm:$0xff] }
  0x33   : >> { %v182_v7 = vand.u32 2147483647, %v181_v6 }
  0x35   : >> { %vm560_vm2 = vcmp.gt.f32.partialorder %v182_v7, -inf }
  0x36   : >> { %vm189_vm4 = vmand %vm187_vm3, %vm560_vm2 }
  0x37   : >> { %v190_v9 = vsel %vm189_vm4, %v780_v2, %v800_v8  ;;  %v191_v10 = vsel %vm189_vm4, %v182_v7, -inf }
  0x38   : >> { %v192_v11 = vrot.slane %v191_v10, 1  ;;  %v193_v12 = vrot.slane %v190_v9, 1 }
  0x3a   : >> { %vm194_vm5 = vcmp.ge.f32.partialorder %v192_v11, %v191_v10  ;;  %v197_v13 = vrot.slane %v192_v11, 1  ;;  %v198_v14 = vrot.slane %v193_v12, 1 }
  0x3b   : >> { %v195_v15 = vsel %vm194_vm5, %v192_v11, %v191_v10  ;;  %v196_v16 = vsel %vm194_vm5, %v193_v12, %v190_v9 }
  0x3c   : >> { %vm199_vm6 = vcmp.ge.f32.partialorder %v197_v13, %v195_v15  ;;  %v202_v17 = vrot.slane %v197_v13, 1  ;;  %v203_v18 = vrot.slane %v198_v14, 1 }
  0x3d   : >> { %v200_v19 = vsel %vm199_vm6, %v197_v13, %v195_v15  ;;  %v201_v20 = vsel %vm199_vm6, %v198_v14, %v196_v16 }
  0x3e   : >> { %vm204_vm7 = vcmp.ge.f32.partialorder %v202_v17, %v200_v19  ;;  %v207_v21 = vrot.slane %v202_v17, 1  ;;  %v208_v22 = vrot.slane %v203_v18, 1 }
  0x3f   : >> { %v205_v23 = vsel %vm204_vm7, %v202_v17, %v200_v19  ;;  %v206_v24 = vsel %vm204_vm7, %v203_v18, %v201_v20 }
  0x40   : >> { %vm209_vm8 = vcmp.ge.f32.partialorder %v207_v21, %v205_v23  ;;  %v212_v25 = vrot.slane %v207_v21, 1  ;;  %v213_v26 = vrot.slane %v208_v22, 1 }
  0x41   : >> { %v210_v27 = vsel %vm209_vm8, %v207_v21, %v205_v23  ;;  %v211_v28 = vsel %vm209_vm8, %v208_v22, %v206_v24 }
  0x42   : >> { %vm214_vm9 = vcmp.ge.f32.partialorder %v212_v25, %v210_v27  ;;  %v217_v29 = vrot.slane %v212_v25, 1  ;;  %v218_v30 = vrot.slane %v213_v26, 1 }
  0x43   : >> { %v215_v31 = vsel %vm214_vm9, %v212_v25, %v210_v27  ;;  %v216_v32 = vsel %vm214_vm9, %v213_v26, %v211_v28 }
  0x44   : >> { %vm219_vm10 = vcmp.ge.f32.partialorder %v217_v29, %v215_v31  ;;  %v222_v33 = vrot.slane %v217_v29, 1  ;;  %v223_v34 = vrot.slane %v218_v30, 1 }
  0x45   : >> { %v220_v35 = vsel %vm219_vm10, %v217_v29, %v215_v31  ;;  %v221_v36 = vsel %vm219_vm10, %v218_v30, %v216_v32 }
  0x46   : >> { %vm224_vm11 = vcmp.ge.f32.partialorder %v222_v33, %v220_v35 }
  0x47   : >> { %v226_v37 = vsel %vm224_vm11, %v223_v34, %v221_v36 }
  0x48   : >> { %228 = vrot.lane.b32.xlu0 %v226_v37, %s227_s27  ;;  %s357_s27 = scalar_lea.vmem (%p173_p11), %s897_s1, %s564_s10 }
  0xba   : >> { %v229_v39 = vpop.permute.xlu0 %228 }
  0xbb   : >> { %569 = vpush %v229_v39 }
  0xec   : >> { %s570_s29 = spop %569 }
  0xed   : >> { %v235_v43 = vstv %s570_s29  ;;  %s240_s4 = scalar_lea.vmem [#allocation2], %s570_s29  ;;  %s246_s5 = scalar_lea.vmem [#allocation9], %s570_s29 }
  0xee   : >> { %v242_v44 = vld [vmem:[%s240_s4] ss:$0 sm:$0xff]  ;;  %v237_v46 = vsel %vm234_vm13, %v235_v43, %v236_v40 }
  0xef   : >> { %v248_v45 = vld [vmem:[%s246_s5] ss:$0 sm:$0xff]  ;;  %243 = vst [vmem:[%s240_s4] sm:$0x1] %v241_v41  ;;  %vm251_vm14 = vcmp.ne.f32.partialorder %v242_v44, 0.0  ;;  %238 = vst [vmem:[%s785_s17] sm:$0x1] %v237_v46  ;;  %v258_v53 = vsel %vm257_vm12, %v242_v44, 0.0 }
  0xf0   : >> { %249 = vst [vmem:[%s246_s5] sm:$0x1] %v247_v42  ;;  %244 = vst [vmem:[%s239_s28] sm:$0x1] %v242_v44  ;;  %s399_s4 = sshll.u32 (%p173_p11), %s146_s20, 4  ;;  %s348_s5 = scalar_lea.sflag (%p173_p11), [#allocation6], %s144_s7  ;;  %s400_s4 = int_to_ptr.vmem [resolvable:$true] %s399_s4 }
  0xf1   : >> { %250 = vst [vmem:[%s245_s30] sm:$0x1] %v248_v45  ;;  %vm252_vm0 = vmand %vm234_vm13, %vm251_vm14  ;;  %s843_s30 = scalar_lea.hbm (%p173_p11), %s898_s2, %s565_s11  ;;  %s621_s6 = scalar_lea.vmem (%p173_p11), %s400_s4, 32 }
  0xf2   : >> { %v253_v47 = vsel %vm252_vm0, %v242_v44, 1.0  ;;  %p622_p12 = scmp.ne.s32.totalorder (%p173_p11), %s400_s4, %s621_s6  ;;  %s694_s17 = smov (%p173_p11), [#allocation5]  }
  0xf3   : >> { %v266_v48 = vsel %vm265_vm15, %v253_v47, 1.0  ;;  %s625_s10 = sshll.u32 (%p173_p11), %s694_s17, 4  ;;  %s626_s10 = int_to_ptr.vmem [resolvable:$false] %s625_s10 }
  0xf4   : >> { %619 = vrcp.f32 %v266_v48  ;;  %p623_p13 = pnand (%p173_p11), %p622_p12, %p753_p5  ;;  %s627_s8 = scalar_lea.vmem (%p173_p11), %s626_s10, 64 }
  0xf5   : > { %p628_p1 = scmp.lt.s32.totalorder (%p173_p11), %s400_s4, %s626_s10  ;;  %p629_p2 = scmp.lt.s32.totalorder (%p173_p11), %s627_s8, %s621_s6 }
  0xf6   : > { %v334_v59 = vld [vmem:[#allocation4] sm:$0x3] (%p173_p11)  ;;  %p624_p0 = pneg (%p173_p11), %p623_p13 }
  0xf7   : >> { %v262_v50 = vld [vmem:[#allocation2] sm:$0xff]  ;;  %336 = vst [vmem:[%s146_s20] sm:$0x3] (%p173_p11), %v334_v59  ;;  %p630_p3 = por (%p173_p11), %p629_p2, %p628_p1 }
  0xf8   : > { %v276_v57 = vld [vmem:[#allocation9] sm:$0xff] (%p173_p11) }
  0xf9   : > { %p631_p4 = pnand (%p173_p11), %p630_p3, %p624_p0 }
  0xfe   : >> { %v620_v49 = vpop.eup %619 }
  0xff   : >> { %v268_v51 = vmul.f32 %v620_v49, %v262_v50 }
 0x101   : >> { %v270_v52 = vsel %vm269_vm1, %v268_v51, 0.0 }
 0x102   : >> { %271 = vadd.xlane.f32.xlu0 %v270_v52 }
 0x12f   : > { %292 = vxpose.xlu0.b32.start.end [1/1] (short) (narrow) (%p173_p11), %v276_v57, 8 }
 0x18e   : > { %175 = sbr.rel (!%p173_p11) target bundleno = 44 (0x2c), region = 202 }
 0x18f   : >> { %v272_v54 = vpop.xlane.xlu0 %271 }
 0x190   : >> { %v273_v55 = vmul.f32 %v272_v54, %v258_v53 }
 0x192   : >> { %v274_v56 = vsub.f32 %v268_v51, %v273_v55 }
 0x194   : >> { %275 = vst [vmem:[#allocation2] sm:$0xff] %v274_v56 }
 0x19b   : > { %v328_v58 = vld [vmem:[#allocation2] sm:$0xf] }
 0x19c   : > { %330 = vst [vmem:[%s139_s19] sm:$0xf] %v328_v58 }
 0x1a3   : > { %v373_v60 = vld [vmem:[%s139_s19] sm:$0xf] }
 0x1a4   : > { %374 = vst [vmem:[%s357_s27] sm:$0xf] %v373_v60 }
 0x1a5   : > { %634 = shalt.err (!%p631_p4)
}
 0x1a6   : > { %s635_s7 = scalar_lea.hbm %s843_s30, 32  ;;  %s639_s11 = scalar_lea.hbm %s898_s2, 32 }
 0x1a7   : > { %p636_p8 = scmp.ne.s32.totalorder %s843_s30, %s635_s7  ;;  %p640_p11 = scmp.lt.u32.totalorder %s843_s30, %s898_s2 }
 0x1a8   : > { %p641_p12 = scmp.lt.u32.totalorder %s639_s11, %s635_s7  ;;  %p643_p0 = scmp.lt.u32.totalorder %s635_s7, %s843_s30 }
 0x1a9   : > { %p637_p9 = pnand %p636_p8, %p753_p5 }
 0x1aa   : > { %p642_p13 = por %p641_p12, %p640_p11 }
 0x1ab   : > { %p638_p10 = pneg %p637_p9 }
 0x1ac   : > { %p644_p1 = por %p643_p0, %p642_p13 }
 0x1ae   : > { %p645_p2 = pnand %p644_p1, %p638_p10 }
 0x1b0   : > { %648 = shalt.err (!%p645_p2)
}
 0x1b1   : > { %571 = dma.vmem_to_hbm [thread:$0]  (%p753_p5), %s400_s4, 32, %s843_s30, %s348_s5   ;;  %v308_v61 = vpop.trf.xlu0 }
 0x1b2   : > { %324 = vst [vmem:[%s791_s22] sm:$0x1] %v308_v61  ;;  %s903_s6 = sshrl.u32 (%p753_p5), %s736_s16, 3 }
 0x1b3   : > { %s566_s28 = sshll.u32 (%p753_p5), %s903_s6, 1 }
 0x1b4   : > { %405 = sbr.rel (!%p753_p5) target bundleno = 451 (0x1c3), region = 96  ;;  %s408_s10 = scalar_lea.vmem (%p753_p5), %s899_s3, %s566_s28 }
 0x1b9   : > { %v340_v62 = vld [vmem:[#allocation7] sm:$0x3] }
 0x1ba   : > { %342 = vst [vmem:[%s152_s21] sm:$0x3] %v340_v62 }
 0x1c1   : > { %v424_v63 = vld [vmem:[%s152_s21] sm:$0x3] }
 0x1c2   : > { %425 = vst [vmem:[%s408_s10] sm:$0x3] %v424_v63 }
 0x1c3 PF: > { %s452_s22 = sand.u32 1, %s675_s12   ;;  %p574_p5 = pnand %p552_p7, %p757_p6 }
 0x1c4   : > { %s453_s24 = scalar_lea.sflag [#allocation6], %s452_s22 }
 0x1c5   : > { %670 = dma.done.wait (!%p574_p5), %s453_s24, 32  }
 0x1c6   : > { %672 = vsyncadd (!%p574_p5), %s453_s24, 4294967264  ;;  %p10_p3 = scmp.ge.s32.totalorder %s740_s18, 4   ;;  %s904_s12 = smov %s679_s13 }
 0x1c7   : > { %s905_s13 = smov %s683_s14  ;;  %s906_s14 = smov %s751_s23 }
 0x1c8   : > { %s907_s15 = smov %s740_s18  ;;  %12 = sbr.rel (!%p10_p3) target bundleno = 3 (0x3), region = 213 }
 0x1cf   :  { %465 = vsyncpa [#allocation6], 1 }
 0x1d0   :  { %467 = vsyncpa [#allocation6 + $0x1], 1 }

// kernel: custom-call.13
= control target key start
LH: loop header
LB: loop body
LE: loop exit
PB: predicated region body
PF: predicated region fallthrough
CT: control target
= control target key end

     0   :  { %s343_s6 = smov 0   ;;  %s345_s7 = smov 0   ;;  %s390_s0 = inlined_call_operand.vmem [shape: f32[2,1,3,3], index: 0, kind: input, shape index: {}]   ;;  %s391_s1 = inlined_call_operand.vmem [shape: f32[2,1,3,3], index: 1, kind: output, shape index: {}]  }
   0x1   :  { %s347_s8 = smov 0  }
   0x2 LB: > { %s269_s9 = sadd.s32 4294967295, %s330_s8   ;;  %s33_s10 = sadd.s32 1, %s326_s7  ;;  %s330_s8 = sphi %s347_s8, %s7_s8   ;;  %s326_s7 = sphi %s345_s7, %s393_s7   ;;  %s322_s6 = sphi %s343_s6, %s392_s6  }
   0x3   : > { %p35_p0 = scmp.ge.s32.totalorder %s33_s10, 2  ;;  %p271_p1 = scmp.ge.s32.totalorder %s330_s8, 2 }
   0x4   : > { %s49_s11 = sand.u32 (!%p271_p1), 1, %s330_s8   ;;  %s273_s12 = sshll.u32 (!%p271_p1), %s326_s7, 2 }
   0x5   : > { %s395_s10 = smov (%p35_p0, %s33_s10), 0  ;;  %47 = sbr.rel (%p271_p1) target bundleno = 12 (0xc), region = 16 }
   0x6   : > { %s272_s13 = sshll.u32 (!%p271_p1), %s49_s11, 2  ;;  %s56_s16 = scalar_lea.vmem (!%p271_p1), %s390_s0, %s273_s12 }
   0x7   : > { %v72_v0 = vld [vmem:[%s56_s16] sm:$0xf] (!%p271_p1)  ;;  %s51_s17 = scalar_lea.vmem (!%p271_p1), [#allocation1], %s272_s13 }
   0x8   : > { %73 = vst [vmem:[%s51_s17] sm:$0xf] (!%p271_p1), %v72_v0 }
   0xc PF: > { %p274_p2 = scmp.ge.s32.totalorder %s330_s8, 1  ;;  %p89_p3 = scmp.lt.s32.totalorder %s330_s8, 3 }
   0xe   : > { %p90_p4 = pnand %p274_p2, %p89_p3 }
  0x10   : > { %93 = sbr.rel (%p90_p4) target bundleno = 511 (0x1ff), region = 50 }
  0x17   : > { %s370_s18 = sand.u32 1, %s269_s9   ;;  %v111_v1 = vlaneseq  ;;  %v332_v11 = vmov -1.0   ;;  %s278_s22 = sshll.u32 %s322_s6, 2 }
  0x18   : > { %s275_s19 = sshll.u32 %s370_s18, 2  ;;  %s178_s25 = scalar_lea.vmem %s391_s1, %s278_s22 }
  0x19   : > { %s102_s20 = scalar_lea.vmem [#allocation1], %s275_s19  ;;  %v112_v3 = vand.u32 127, %v111_v1  ;;  %v115_v4 = vshrl.u32 %v111_v1, 7  ;;  %s106_s21 = scalar_lea.vmem [#allocation3], %s275_s19 }
  0x1a   : > { %v109_v2 = vld [vmem:[%s102_s20] sm:$0xf] }
  0x1b   : > { %110 = vst [vmem:[#allocation0] sm:$0xf] %v109_v2  ;;  %vm113_vm0 = vcmp.lt.s32.totalorder %v112_v3, 3  ;;  %vm122_vm1 = vcmp.ge.s32.totalorder %v115_v4, %v112_v3  ;;  %vm117_vm2 = vcmp.eq.s32.totalorder %v115_v4, %v112_v3  ;;  %vm136_vm4 = vcmp.eq.s32.totalorder %v112_v3, 0 }
  0x1c   : > { %vm123_vm3 = vmand %vm122_vm1, %vm113_vm0  ;;  %vm133_vm5 = vcmp.eq.s32.totalorder %v112_v3, %v115_v4  ;;  %v137_v12 = vsel %vm136_vm4, 1.0, %v332_v11  ;;  %vm144_vm6 = vcmp.eq.s32.totalorder %v112_v3, 1  ;;  %vm154_vm7 = vcmp.eq.s32.totalorder %v112_v3, 2 }
  0x1d   : > { %v138_v13 = vsel %vm133_vm5, %v137_v12, 0.0 }
  0x22   : > { %v118_v5 = vld [vmem:[#allocation0] sm:$0xff] }
  0x23   : > { %v119_v6 = vsel %vm117_vm2, %v118_v5, 0.0  ;;  %v124_v7 = vsel %vm123_vm3, %v118_v5, 0.0 }
  0x24   : > { %120 = vadd.xlane.f32.xlu0 %v119_v6 }
  0xb1   : > { %v121_v8 = vpop.xlane.xlu0 %120 }
  0xb2   : > { %306 = vrcp.f32 %v121_v8  ;;  %vm161_vm8 = vweird.f32 %v121_v8 }
  0xbc   : > { %v307_v9 = vpop.eup %306 }
  0xbd   : > { %v126_v10 = vmul.f32 %v307_v9, %v124_v7 }
  0xbf   : > { %127 = vst [vmem:[#allocation4] sm:$0xff] %v126_v10 }
  0xc6   : > { %v140_v14 = vld [vmem:[#allocation4 + $0x1] ss:$0 sm:$0xff]  ;;  %v150_v17 = vld [vmem:[#allocation4 + $0x2] ss:$0 sm:$0xff] }
  0xc7   : > { %v141_v15 = vxor.u32 2147483648, %v140_v14  ;;  %v151_v19 = vxor.u32 2147483648, %v150_v17 }
  0xc9   : > { %v145_v16 = vmul.f32 %v141_v15, %v138_v13 }
  0xcb   : > { %146 = vadd.xlane.f32.xlu0 %v145_v16 }
 0x158   : > { %v147_v18 = vpop.xlane.xlu0 %146 }
 0x159   : > { %v148_v20 = vsel %vm144_vm6, %v147_v18, %v138_v13 }
 0x15a   : > { %v155_v21 = vmul.f32 %v151_v19, %v148_v20 }
 0x15c   : > { %156 = vadd.xlane.f32.xlu1 %v155_v21 }
 0x1e9   : > { %v157_v22 = vpop.xlane.xlu1 %156 }
 0x1ea   : > { %v158_v23 = vsel %vm154_vm7, %v157_v22, %v148_v20 }
 0x1eb   : > { %v160_v24 = vmul.f32 %v307_v9, %v158_v23 }
 0x1ed   : > { %v162_v25 = vsel %vm161_vm8, %v158_v23, %v160_v24 }
 0x1ee   : > { %163 = vst [vmem:[#allocation2] sm:$0xff] %v162_v25 }
 0x1f5   : > { %v167_v26 = vld [vmem:[#allocation2] sm:$0xf] }
 0x1f6   : > { %169 = vst [vmem:[%s106_s21] sm:$0xf] %v167_v26 }
 0x1fd   : > { %v194_v27 = vld [vmem:[%s106_s21] sm:$0xf] }
 0x1fe   : > { %195 = vst [vmem:[%s178_s25] sm:$0xf] %v194_v27 }
 0x1ff PF: > { %s7_s8 = sadd.s32 1, %s330_s8   ;;  %s392_s6 = smov %s326_s7 }
 0x200   : > { %p4_p5 = scmp.ge.s32.totalorder %s7_s8, 4   ;;  %s393_s7 = smov %s395_s10 }
 0x202   :  { %6 = sbr.rel (!%p4_p5) target bundleno = 2 (0x2), region = 112 }

// kernel: custom-call.12
= control target key start
LH: loop header
LB: loop body
LE: loop exit
PB: predicated region body
PF: predicated region fallthrough
CT: control target
= control target key end

     0   :  { %s342_s6 = smov 0   ;;  %s344_s7 = smov 0   ;;  %s389_s0 = inlined_call_operand.vmem [shape: f32[2,1,3,3], index: 0, kind: input, shape index: {}]   ;;  %s390_s1 = inlined_call_operand.vmem [shape: f32[2,1,3,3], index: 1, kind: output, shape index: {}]  }
   0x1   :  { %s346_s8 = smov 0  }
   0x2 LB: > { %s268_s9 = sadd.s32 4294967295, %s329_s8   ;;  %s33_s10 = sadd.s32 1, %s325_s7  ;;  %s329_s8 = sphi %s346_s8, %s7_s8   ;;  %s325_s7 = sphi %s344_s7, %s392_s7   ;;  %s321_s6 = sphi %s342_s6, %s391_s6  }
   0x3   : > { %p35_p0 = scmp.ge.s32.totalorder %s33_s10, 2  ;;  %p270_p1 = scmp.ge.s32.totalorder %s329_s8, 2 }
   0x4   : > { %s49_s11 = sand.u32 (!%p270_p1), 1, %s329_s8   ;;  %s272_s12 = sshll.u32 (!%p270_p1), %s325_s7, 2 }
   0x5   : > { %s394_s10 = smov (%p35_p0, %s33_s10), 0  ;;  %47 = sbr.rel (%p270_p1) target bundleno = 12 (0xc), region = 16 }
   0x6   : > { %s271_s13 = sshll.u32 (!%p270_p1), %s49_s11, 2  ;;  %s56_s16 = scalar_lea.vmem (!%p270_p1), %s389_s0, %s272_s12 }
   0x7   : > { %v72_v0 = vld [vmem:[%s56_s16] sm:$0xf] (!%p270_p1)  ;;  %s51_s17 = scalar_lea.vmem (!%p270_p1), [#allocation1], %s271_s13 }
   0x8   : > { %73 = vst [vmem:[%s51_s17] sm:$0xf] (!%p270_p1), %v72_v0 }
   0xc PF: > { %p273_p2 = scmp.ge.s32.totalorder %s329_s8, 1  ;;  %p89_p3 = scmp.lt.s32.totalorder %s329_s8, 3 }
   0xe   : > { %p90_p4 = pnand %p273_p2, %p89_p3 }
  0x10   : > { %93 = sbr.rel (%p90_p4) target bundleno = 511 (0x1ff), region = 50 }
  0x17   : > { %s369_s18 = sand.u32 1, %s268_s9   ;;  %v111_v1 = vlaneseq  ;;  %v331_v11 = vmov -1.0   ;;  %s277_s22 = sshll.u32 %s321_s6, 2 }
  0x18   : > { %s274_s19 = sshll.u32 %s369_s18, 2  ;;  %s177_s25 = scalar_lea.vmem %s390_s1, %s277_s22 }
  0x19   : > { %s102_s20 = scalar_lea.vmem [#allocation1], %s274_s19  ;;  %v112_v3 = vand.u32 127, %v111_v1  ;;  %v115_v4 = vshrl.u32 %v111_v1, 7  ;;  %s106_s21 = scalar_lea.vmem [#allocation3], %s274_s19 }
  0x1a   : > { %v109_v2 = vld [vmem:[%s102_s20] sm:$0xf] }
  0x1b   : > { %110 = vst [vmem:[#allocation0] sm:$0xf] %v109_v2  ;;  %vm113_vm0 = vcmp.lt.s32.totalorder %v112_v3, 3  ;;  %vm122_vm1 = vcmp.le.s32.totalorder %v115_v4, %v112_v3  ;;  %vm117_vm2 = vcmp.eq.s32.totalorder %v115_v4, %v112_v3  ;;  %vm136_vm4 = vcmp.eq.s32.totalorder %v112_v3, 2 }
  0x1c   : > { %vm123_vm3 = vmand %vm122_vm1, %vm113_vm0  ;;  %vm133_vm5 = vcmp.eq.s32.totalorder %v112_v3, %v115_v4  ;;  %v137_v12 = vsel %vm136_vm4, 1.0, %v331_v11  ;;  %vm144_vm6 = vcmp.eq.s32.totalorder %v112_v3, 1  ;;  %vm153_vm7 = vcmp.eq.s32.totalorder %v112_v3, 0 }
  0x1d   : > { %v138_v13 = vsel %vm133_vm5, %v137_v12, 0.0 }
  0x22   : > { %v118_v5 = vld [vmem:[#allocation0] sm:$0xff] }
  0x23   : > { %v119_v6 = vsel %vm117_vm2, %v118_v5, 0.0  ;;  %v124_v7 = vsel %vm123_vm3, %v118_v5, 0.0 }
  0x24   : > { %120 = vadd.xlane.f32.xlu0 %v119_v6 }
  0xb1   : > { %v121_v8 = vpop.xlane.xlu0 %120 }
  0xb2   : > { %305 = vrcp.f32 %v121_v8  ;;  %vm160_vm8 = vweird.f32 %v121_v8 }
  0xbc   : > { %v306_v9 = vpop.eup %305 }
  0xbd   : > { %v126_v10 = vmul.f32 %v306_v9, %v124_v7 }
  0xbf   : > { %127 = vst [vmem:[#allocation4] sm:$0xff] %v126_v10 }
  0xc6   : > { %v140_v14 = vld [vmem:[#allocation4 + $0x1] ss:$0 sm:$0xff]  ;;  %v149_v17 = vld [vmem:[#allocation4] ss:$0 sm:$0xff] }
  0xc7   : > { %v141_v15 = vxor.u32 2147483648, %v140_v14  ;;  %v150_v19 = vxor.u32 2147483648, %v149_v17 }
  0xc9   : > { %v145_v16 = vmul.f32 %v141_v15, %v138_v13 }
  0xcb   : > { %146 = vadd.xlane.f32.xlu0 %v145_v16 }
 0x158   : > { %v147_v18 = vpop.xlane.xlu0 %146 }
 0x159   : > { %v148_v20 = vsel %vm144_vm6, %v147_v18, %v138_v13 }
 0x15a   : > { %v154_v21 = vmul.f32 %v150_v19, %v148_v20 }
 0x15c   : > { %155 = vadd.xlane.f32.xlu1 %v154_v21 }
 0x1e9   : > { %v156_v22 = vpop.xlane.xlu1 %155 }
 0x1ea   : > { %v157_v23 = vsel %vm153_vm7, %v156_v22, %v148_v20 }
 0x1eb   : > { %v159_v24 = vmul.f32 %v306_v9, %v157_v23 }
 0x1ed   : > { %v161_v25 = vsel %vm160_vm8, %v157_v23, %v159_v24 }
 0x1ee   : > { %162 = vst [vmem:[#allocation2] sm:$0xff] %v161_v25 }
 0x1f5   : > { %v166_v26 = vld [vmem:[#allocation2] sm:$0xf] }
 0x1f6   : > { %168 = vst [vmem:[%s106_s21] sm:$0xf] %v166_v26 }
 0x1fd   : > { %v193_v27 = vld [vmem:[%s106_s21] sm:$0xf] }
 0x1fe   : > { %194 = vst [vmem:[%s177_s25] sm:$0xf] %v193_v27 }
 0x1ff PF: > { %s7_s8 = sadd.s32 1, %s329_s8   ;;  %s391_s6 = smov %s325_s7 }
 0x200   : > { %p4_p5 = scmp.ge.s32.totalorder %s7_s8, 4   ;;  %s392_s7 = smov %s394_s10 }
 0x202   :  { %6 = sbr.rel (!%p4_p5) target bundleno = 2 (0x2), region = 111 }

// kernel: mesh_dense_motion_forward.1
= control target key start
LH: loop header
LB: loop body
LE: loop exit
PB: predicated region body
PF: predicated region fallthrough
CT: control target
= control target key end

     0   :  { %s7496_s15 = smov 0   ;;  %s11548_s0 = inlined_call_operand.vmem [shape: f32[96,896], index: 0, kind: input, shape index: {}]   ;;  %s11549_s1 = inlined_call_operand.vmem [shape: f32[424,256], index: 1, kind: input, shape index: {}]   ;;  %s11550_s2 = inlined_call_operand.vmem [shape: f32[2,8,256], index: 2, kind: input, shape index: {}]   ;;  %s11551_s3 = inlined_call_operand.vmem [shape: f32[2,24,256], index: 3, kind: output, shape index: {0}]   ;;  %s11552_s4 = inlined_call_operand.vmem [shape: f32[2,2,256], index: 4, kind: output, shape index: {1}]  }
   0x1   :  { %11887 = sst [smem:[#allocation198_spill]] %s11548_s0 }
   0x2   :  { %11888 = sst [smem:[#allocation199_spill]] %s11549_s1 }
   0x3   :  { %11889 = sst [smem:[#allocation200_spill]] %s11550_s2 }
   0x4   :  { %11890 = sst [smem:[#allocation201_spill]] %s11551_s3 }
   0x5   :  { %11891 = sst [smem:[#allocation202_spill]] %s11552_s4 }
   0x6 LB: > { %11892 = sst [smem:[#allocation4_spill]] %s7412_s15  ;;  %s6640_s16 = sadd.s32 4294967295, %s7412_s15   ;;  %s7412_s15 = sphi %s7496_s15, %s15_s15  }
   0x7   : > { %p6644_p0 = scmp.ge.s32.totalorder %s7412_s15, 1  ;;  %p165_p1 = scmp.lt.s32.totalorder %s7412_s15, 3 }
   0x9   : > { %p166_p2 = pnand %p6644_p0, %p165_p1 }
   0xb   : > { %169 = sbr.rel (%p166_p2) target bundleno = 3784 (0xec8), region = 32 }
  0x12   : > { %v232_v0 = vlaneseq  ;;  %p196_p3 = scmp.lt.s32.totalorder %s6640_s16, 1  ;;  %v7414_v1 = vmov 0.0   ;;  %s11895_s1 = sld [smem:[#allocation199_spill]]  ;;  %vm11884_vm1 = vcmask 908288   ;;  %vm367_vm2 = vcmask 916480  }
  0x13   : > { %212 = vst [vmem:[#allocation2 + $0x8] sm:$0xff] %v7414_v1  ;;  %213 = vst [vmem:[#allocation2 + $0x10] sm:$0xff] %v7414_v1  ;;  %617 = vmatprep.mubr.f32.mxu0 %v7414_v1  ;;  %s11898_s2 = sld [smem:[#allocation200_spill]]  ;;  %s11753_s25 = smov 112   ;;  %vm11880_vm3 = vcmask 1039360   ;;  %vm11876_vm4 = vcmask 121856  }
  0x14   : > { %211 = vst [vmem:[#allocation2] sm:$0xff] %v7414_v1  ;;  %215 = vst [vmem:[#allocation2 + $0x20] sm:$0xff] %v7414_v1  ;;  %v7512_v2 = vshrl.u32 %v232_v0, 7  ;;  %s12669_s16 = smov (!%p196_p3, %s6640_s16), 1  ;;  %vm7529_vm0 = vcmp.lt.s32.totalorder %v232_v0, 256  ;;  %s11555_s26 = smov 111  }
  0x15   : > { %220 = vst [vmem:[#allocation2 + $0x48] sm:$0xff] %v7414_v1  ;;  %225 = vst [vmem:[#allocation2 + $0x70] sm:$0xff] %v7414_v1  ;;  %11894 = sst [smem:[#allocation6_spill]] %s12669_s16  ;;  %s6693_s21 = sshll.u32 %s12669_s16, 4  ;;  %vm340_vm5 = vcmask 924672   ;;  %vm384_vm6 = vcmask 130048  }
  0x16   : > { %230 = vst [vmem:[#allocation2 + $0x98] sm:$0xff] %v7414_v1  ;;  %11893 = vst [vmem:[#allocation5_spill] sm:$0xff] %v7512_v2  ;;  %v7523_v5 = vsub.s32 0, %v7512_v2  ;;  %v7526_v6 = vsub.s32 1, %v7512_v2  ;;  %s11748_s29 = smov 127   ;;  %s11756_s30 = smov 113  }
  0x17   : > { %s11589_s5 = smov 1   ;;  %s11601_s6 = smov 15   ;;  %vm278_vm7 = vcmask 138240   ;;  %vm11779_vm8 = vcmask 7168   ;;  %vm11807_vm9 = vcmask 654336   ;;  %vm741_vm10 = vcmask 523264  }
  0x18   : > { %v6651_v3 = vld [vmem:[%s11895_s1 + $0x331] ss:$8 sm:$0x3]  ;;  %v6650_v4 = vld [vmem:[%s11895_s1 + $0x330] ss:$8 sm:$0x3] }
  0x19   : > { %s7536_s24 = scalar_lea.vmem %s11898_s2, %s6693_s21  ;;  %v356_v8 = vrot.slane %v6651_v3, %v7523_v5  ;;  %v252_v10 = vrot.slane %v6650_v4, %v7523_v5  ;;  %v7549_v11 = vrot.slane %v6651_v3, %v7526_v6  ;;  %v256_v12 = vrot.slane %v6650_v4, %v7526_v6  ;;  %v6652_v13 = vld [vmem:[%s11895_s1 + $0x332] ss:$8 sm:$0x3]  ;;  %s11559_s7 = smov 16   ;;  %v7615_v58 = vld [vmem:[%s11895_s1 + $0x320] sm:$0xff] }
  0x1a   : > { %11899 = sst [smem:[#allocation7_spill]] %s7536_s24  ;;  %v7540_v9 = vld [vmem:[%s7536_s24] ss:$8 sm:$0x3]  ;;  %v439_v16 = vrot.slane %v6652_v13, %v7526_v6  ;;  %v435_v17 = vrot.slane %v6652_v13, %v7523_v5  ;;  %s11553_s8 = smov 17   ;;  %241 = vst [vmem:[#allocation3 + $0x90] sm:$0xff] %v7615_v58 }
  0x1b   : > { %237 = vst.msk [vmem:[#allocation2 + $0x8] ss:$8 sm:$0x3] %vm7529_vm0, %v7540_v9  ;;  %363 = vrot.lane.b32.xlu1 %v356_v8, %s11753_s25  ;;  %257 = vrot.lane.b32.xlu0 %v252_v10, %s11555_s26  ;;  %v634_v13 = vld [vmem:[%s11895_s1] sm:$0xff]  ;;  %s11900_s0 = sld [smem:[#allocation198_spill]]  ;;  %s7423_s10 = smov 119  }
  0x1c   : > { %s7424_s11 = smov 120   ;;  %s7425_s14 = smov 121   ;;  %745 = vst.msk [vmem:[#allocation3 + $0x120] sm:$0xff] %vm741_vm10, %v7615_v58  ;;  %vm11747_vm11 = vcmask 195584   ;;  %vm771_vm12 = vcmask 72704   ;;  %vm849_vm13 = vcmask 64512  }
  0x1d   : > { %s7426_s17 = smov 7   ;;  %s7427_s18 = smov 9   ;;  %vm904_vm14 = vcmask 56320   ;;  %vm1689_vm15 = vcmask 326656  }
  0x1e   : > { %s7428_s19 = smov 8   ;;  %s11652_s27 = smov 126  }
  0x1f   : > { %365 = vrot.lane.b32.xlu1 %v7549_v11, %s11753_s25  ;;  %259 = vrot.lane.b32.xlu0 %v256_v12, %s11555_s26  ;;  %s11577_s22 = smov 3   ;;  %s11571_s23 = smov 13  }
  0x20   : > { %s11565_s28 = smov 14   ;;  %s11563_s12 = smov 19  }
  0x21   : > { %s11567_s13 = smov 77   ;;  %s11569_s20 = smov 29  }
  0x22   : > { %v7558_v14 = vld [vmem:[#allocation2 + $0x8] sm:$0xff]  ;;  %v7579_v21 = vld [vmem:[#allocation2 + $0x10] sm:$0xff]  ;;  %s11573_s21 = smov 78   ;;  %s11581_s9 = smov 31  }
  0x23   : > { %v7561_v15 = vmul.f32 %v7558_v14, %v356_v8  ;;  %290 = vrot.lane.b32.xlu1 %v256_v12, %s11748_s29  ;;  %288 = vrot.lane.b32.xlu0 %v252_v10, %s11748_s29  ;;  %s12181_s2 = smov 114   ;;  %s12186_s15 = smov 78  }
  0x24   : > { %s12189_s4 = smov 113   ;;  %s12196_s24 = smov 112  }
  0x25   : > { %395 = vst [vmem:[#allocation3 + $0x40] sm:$0xff] %v7561_v15  ;;  %s12205_s3 = smov 110   ;;  %s12210_s16 = smov 109  }
  0x27   : > { %442 = vrot.lane.b32.xlu1 %v439_v16, %s11756_s30  ;;  %440 = vrot.lane.b32.xlu0 %v435_v17, %s11756_s30 }
  0x2b   : > { %471 = vrot.lane.b32.xlu1 %v439_v16, %s11589_s5  ;;  %469 = vrot.lane.b32.xlu0 %v435_v17, %s11589_s5 }
  0x2f   : > { %321 = vrot.lane.b32.xlu1 %v256_v12, %s11601_s6  ;;  %319 = vrot.lane.b32.xlu0 %v252_v10, %s11601_s6  ;;  %v650_v10 = vld [vmem:[%s11895_s1 + $0x100] sm:$0xff]  ;;  %v651_v12 = vld [vmem:[%s11895_s1 + $0x110] sm:$0xff] }
  0x33   : > { %402 = vrot.lane.b32.xlu1 %v7549_v11, %s11559_s7  ;;  %400 = vrot.lane.b32.xlu0 %v356_v8, %s11559_s7 }
  0x37   : > { %500 = vrot.lane.b32.xlu1 %v439_v16, %s11553_s8  ;;  %498 = vrot.lane.b32.xlu0 %v435_v17, %s11553_s8  ;;  %v6861_v16 = vpack.c.bf16 %v651_v12, %v650_v10  ;;  %v652_v17 = vld [vmem:[%s11895_s1 + $0x120] sm:$0xff] }
  0x39   : > { %6862 = vmatprep.subr.bf16.mxu1 %v6861_v16 }
  0x8d   : > { %v364_v18 = vpop.permute.xlu1 %363  ;;  %v258_v19 = vpop.permute.xlu0 %257 }
  0x8e   : > { %v266_v20 = vmul.f32 0.0, %v258_v19  ;;  %v372_v31 = vmul.f32 0.0, %v364_v18 }
  0x90   : > { %272 = vrot.lane.b32.xlu0 %v266_v20, %s11553_s8 }
  0x91   : > { %v366_v22 = vpop.permute.xlu1 %365  ;;  %v260_v23 = vpop.permute.xlu0 %259 }
  0x92   : > { %v268_v24 = vmul.f32 %v7579_v21, %v260_v23  ;;  %v374_v27 = vmul.f32 %v7579_v21, %v366_v22  ;;  %v262_v42 = vsel %vm11884_vm1, %v258_v19, %v260_v23  ;;  %v368_v46 = vsel %vm367_vm2, %v364_v18, %v366_v22  ;;  %v653_v18 = vld [vmem:[%s11895_s1 + $0x130] sm:$0xff]  ;;  %v636_v22 = vld [vmem:[%s11895_s1 + $0x20] sm:$0xff] }
  0x93   : > { %v267_v45 = vmul.f32 %v7558_v14, %v262_v42  ;;  %v373_v49 = vmul.f32 %v7558_v14, %v368_v46  ;;  %v6865_v20 = vpack.c.bf16 %v653_v18, %v652_v17  ;;  %v637_v23 = vld [vmem:[%s11895_s1 + $0x30] sm:$0xff]  ;;  %v660_v42 = vld [vmem:[%s11895_s1 + $0x1a0] sm:$0xff] }
  0x94   : > { %276 = vrot.lane.b32.xlu1 %v268_v24, %s11553_s8  ;;  %v654_v24 = vld [vmem:[%s11895_s1 + $0x140] sm:$0xff] }
  0x95   : > { %v291_v25 = vpop.permute.xlu1 %290  ;;  %v289_v26 = vpop.permute.xlu0 %288  ;;  %v644_v46 = vld [vmem:[%s11895_s1 + $0xa0] sm:$0xff] }
  0x96   : > { %v297_v28 = vmul.f32 0.0, %v289_v26  ;;  %v299_v34 = vmul.f32 %v7579_v21, %v291_v25  ;;  %v293_v50 = vsel %vm11880_vm3, %v289_v26, %v291_v25  ;;  %v655_v25 = vld [vmem:[%s11895_s1 + $0x150] sm:$0xff]  ;;  %v6867_v26 = vpack.c.bf16 %v637_v23, %v636_v22 }
  0x97   : > { %v298_v53 = vmul.f32 %v7558_v14, %v293_v50 }
  0x98   : > { %303 = vrot.lane.b32.xlu0 %v297_v28, %s11589_s5  ;;  %382 = vrot.lane.b32.xlu1 %v374_v27, %s11559_s7  ;;  %v6869_v27 = vpack.c.bf16 %v655_v25, %v654_v24  ;;  %v638_v28 = vld [vmem:[%s11895_s1 + $0x40] sm:$0xff] }
  0x99   : > { %v443_v29 = vpop.permute.xlu1 %442  ;;  %v441_v30 = vpop.permute.xlu0 %440 }
  0x9a   : > { %v450_v37 = vmul.f32 %v443_v29, %v7579_v21  ;;  %v448_v40 = vmul.f32 0.0, %v441_v30  ;;  %v444_v56 = vsel %vm340_vm5, %v441_v30, %v443_v29  ;;  %v639_v29 = vld [vmem:[%s11895_s1 + $0x50] sm:$0xff]  ;;  %v656_v30 = vld [vmem:[%s11895_s1 + $0x160] sm:$0xff] }
  0x9b   : > { %v449_v61 = vmul.f32 %v444_v56, %v7558_v14 }
  0x9c   : > { %378 = vrot.lane.b32.xlu1 %v372_v31, %s11559_s7  ;;  %v657_v31 = vld [vmem:[%s11895_s1 + $0x170] sm:$0xff] }
  0x9d   : > { %v472_v32 = vpop.permute.xlu1 %471  ;;  %v470_v33 = vpop.permute.xlu0 %469 }
  0x9e   : > { %v477_v35 = vmul.f32 %v470_v33, %v7558_v14  ;;  %v479_v44 = vmul.f32 0.0, %v472_v32  ;;  %v473_v62 = vsel %vm11779_vm8, %v470_v33, %v472_v32  ;;  %v6871_v32 = vpack.c.bf16 %v639_v29, %v638_v28 }
  0x9f   : > { %v478_v0 = vmul.f32 %v473_v62, %v7579_v21  ;;  %v6873_v33 = vpack.c.bf16 %v657_v31, %v656_v30  ;;  %v394_v31 = vmul.f32 %v7579_v21, %v7549_v11 }
  0xa0   : > { %483 = vrot.lane.b32.xlu0 %v477_v35, %s11748_s29  ;;  %307 = vrot.lane.b32.xlu1 %v299_v34, %s11589_s5  ;;  %v640_v34 = vld [vmem:[%s11895_s1 + $0x60] sm:$0xff]  ;;  %v641_v35 = vld [vmem:[%s11895_s1 + $0x70] sm:$0xff] }
  0xa1   : > { %v322_v36 = vpop.permute.xlu1 %321  ;;  %v320_v43 = vpop.permute.xlu0 %319 }
  0xa2   : > { %v330_v38 = vmul.f32 0.0, %v322_v36  ;;  %v328_v47 = vmul.f32 %v7558_v14, %v320_v43  ;;  %v324_v51 = vsel %vm11876_vm4, %v320_v43, %v322_v36  ;;  %v658_v36 = vld [vmem:[%s11895_s1 + $0x180] sm:$0xff]  ;;  %v661_v43 = vld [vmem:[%s11895_s1 + $0x1b0] sm:$0xff] }
  0xa3   : > { %v329_v52 = vmul.f32 %v7579_v21, %v324_v51 }
  0xa4   : > { %338 = vrot.lane.b32.xlu0 %v330_v38, %s11756_s30  ;;  %458 = vrot.lane.b32.xlu1 %v450_v37, %s11601_s6  ;;  %v659_v37 = vld [vmem:[%s11895_s1 + $0x190] sm:$0xff]  ;;  %v6875_v38 = vpack.c.bf16 %v641_v35, %v640_v34 }
  0xa5   : > { %v403_v39 = vpop.permute.xlu1 %402  ;;  %v401_v48 = vpop.permute.xlu0 %400 }
  0xa6   : > { %v410_v41 = vmul.f32 0.0, %v403_v39  ;;  %v404_v57 = vsel %vm384_vm6, %v401_v48, %v403_v39  ;;  %v408_v4 = vmul.f32 %v401_v48, %v7558_v14  ;;  %v6877_v39 = vpack.c.bf16 %v659_v37, %v658_v36  ;;  %v662_v48 = vld [vmem:[%s11895_s1 + $0x1c0] sm:$0xff] }
  0xa7   : > { %v409_v60 = vmul.f32 %v404_v57, %v7579_v21 }
  0xa8   : > { %418 = vrot.lane.b32.xlu0 %v410_v41, %s11753_s25  ;;  %454 = vrot.lane.b32.xlu1 %v448_v40, %s11601_s6  ;;  %v642_v40 = vld [vmem:[%s11895_s1 + $0x80] sm:$0xff]  ;;  %v643_v41 = vld [vmem:[%s11895_s1 + $0x90] sm:$0xff] }
  0xa9   : > { %v501_v54 = vpop.permute.xlu1 %500  ;;  %v499_v55 = vpop.permute.xlu0 %498 }
  0xaa   : > { %v502_v59 = vsel %vm278_vm7, %v499_v55, %v501_v54  ;;  %v506_v3 = vmul.f32 %v499_v55, %v7558_v14  ;;  %v508_v8 = vmul.f32 0.0, %v501_v54  ;;  %v635_v14 = vld [vmem:[%s11895_s1 + $0x10] sm:$0xff] }
  0xab   : > { %v507_v63 = vmul.f32 %v502_v59, %v7579_v21  ;;  %v6863_v19 = vpack.c.bf16 %v635_v14, %v634_v13 }
  0xac   : > { %487 = vrot.lane.b32.xlu1 %v479_v44, %s11748_s29  ;;  %274 = vrot.lane.b32.xlu0 %v267_v45, %s11553_s8  ;;  %v6879_v44 = vpack.c.bf16 %v643_v41, %v642_v40  ;;  %v6881_v45 = vpack.c.bf16 %v661_v43, %v660_v42  ;;  %s11646_s8 = smov 125  }
  0xad   : > { %6864 = vmatpush3.bf16.msra.mxu1 %v6863_v19 }
  0xae   : > { %6866 = vmatprep.subr.bf16.mxu1 %v6865_v20 }
  0xb0   : > { %334 = vrot.lane.b32.xlu1 %v328_v47, %s11756_s30  ;;  %380 = vrot.lane.b32.xlu0 %v373_v49, %s11559_s7  ;;  %v645_v47 = vld [vmem:[%s11895_s1 + $0xb0] sm:$0xff] }
  0xb1   : > { %6868 = vmatpush3.bf16.msra.mxu1 %v6867_v26  ;;  %v663_v49 = vld [vmem:[%s11895_s1 + $0x1d0] sm:$0xff]  ;;  %v6883_v50 = vpack.c.bf16 %v645_v47, %v644_v46  ;;  %v240_v46 = vld [vmem:[%s11895_s1 + $0x328] sm:$0xff] }
  0xb2   : > { %6870 = vmatprep.subr.bf16.mxu1 %v6869_v27  ;;  %v6885_v51 = vpack.c.bf16 %v663_v49, %v662_v48 }
  0xb4   : > { %336 = vrot.lane.b32.xlu1 %v329_v52, %s11756_s30  ;;  %305 = vrot.lane.b32.xlu0 %v298_v53, %s11589_s5  ;;  %v646_v52 = vld [vmem:[%s11895_s1 + $0xc0] sm:$0xff]  ;;  %v647_v53 = vld [vmem:[%s11895_s1 + $0xd0] sm:$0xff] }
  0xb5   : > { %6872 = vmatpush3.bf16.msra.mxu1 %v6871_v32  ;;  %v6887_v54 = vpack.c.bf16 %v647_v53, %v646_v52  ;;  %v664_v52 = vld [vmem:[%s11895_s1 + $0x1e0] sm:$0xff]  ;;  %v665_v53 = vld [vmem:[%s11895_s1 + $0x1f0] sm:$0xff] }
  0xb6   : > { %6874 = vmatprep.subr.bf16.mxu1 %v6873_v33 }
  0xb8   : > { %416 = vrot.lane.b32.xlu1 %v409_v60, %s11753_s25  ;;  %456 = vrot.lane.b32.xlu0 %v449_v61, %s11601_s6 }
  0xb9   : > { %6876 = vmatpush3.bf16.msra.mxu1 %v6875_v38 }
  0xba   : > { %6878 = vmatprep.subr.bf16.mxu1 %v6877_v39 }
  0xbc   : > { %514 = vrot.lane.b32.xlu1 %v507_v63, %s11555_s26  ;;  %485 = vrot.lane.b32.xlu0 %v478_v0, %s11748_s29 }
  0xbd   : > { %6880 = vmatpush3.bf16.msra.mxu1 %v6879_v44 }
  0xbe   : > { %6882 = vmatprep.subr.bf16.mxu1 %v6881_v45 }
  0xc0   : > { %512 = vrot.lane.b32.xlu1 %v506_v3, %s11555_s26  ;;  %414 = vrot.lane.b32.xlu0 %v408_v4, %s11753_s25 }
  0xc1   : > { %6884 = vmatpush3.bf16.msra.mxu1 %v6883_v50  ;;  %v524_v50 = vld [vmem:[%s11900_s0] sm:$0xff] }
  0xc2   : > { %6886 = vmatprep.subr.bf16.mxu1 %v6885_v51  ;;  %v525_v51 = vld [vmem:[%s11900_s0 + $0x38] sm:$0xff] }
  0xc4   : > { %516 = vrot.lane.b32.xlu0 %v508_v8, %s11555_s26 }
  0xc5   : > { %6888 = vmatpush3.bf16.msra.mxu1 %v6887_v54  ;;  %v6889_v54 = vpack.c.bf16 %v665_v53, %v664_v52  ;;  %v1075_v52 = vld [vmem:[%s11895_s1 + $0x210] sm:$0xff]  ;;  %v1076_v53 = vld [vmem:[%s11895_s1 + $0x220] sm:$0xff] }
  0xc7   : > { %6890 = vmatprep.subr.bf16.mxu1 %v6889_v54 }
 0x102   : > { %v273_v56 = vpop.permute.xlu0 %272 }
 0x106   : > { %v277_v55 = vpop.permute.xlu1 %276 }
 0x10a   : > { %v383_v57 = vpop.permute.xlu1 %382  ;;  %v304_v59 = vpop.permute.xlu0 %303 }
 0x10e   : > { %v379_v60 = vpop.permute.xlu1 %378 }
 0x112   : > { %v484_v61 = vpop.permute.xlu0 %483  ;;  %v308_v62 = vpop.permute.xlu1 %307 }
 0x116   : > { %v339_v63 = vpop.permute.xlu0 %338  ;;  %v459_v0 = vpop.permute.xlu1 %458 }
 0x11a   : > { %v419_v3 = vpop.permute.xlu0 %418  ;;  %v455_v4 = vpop.permute.xlu1 %454 }
 0x11e   : > { %v488_v8 = vpop.permute.xlu1 %487  ;;  %v275_v10 = vpop.permute.xlu0 %274 }
 0x11f   : > { %v279_v12 = vsel %vm278_vm7, %v273_v56, %v275_v10  ;;  %v280_v14 = vsel %vm278_vm7, %v275_v10, %v277_v55  ;;  %v648_v55 = vld [vmem:[%s11895_s1 + $0xe0] sm:$0xff]  ;;  %v649_v56 = vld [vmem:[%s11895_s1 + $0xf0] sm:$0xff] }
 0x120   : > { %283 = vst [vmem:[#allocation3] sm:$0xff] %v279_v12 }
 0x122   : > { %v335_v13 = vpop.permute.xlu1 %334  ;;  %v381_v16 = vpop.permute.xlu0 %380 }
 0x123   : > { %v385_v17 = vsel %vm384_vm6, %v379_v60, %v381_v16  ;;  %v386_v18 = vsel %vm384_vm6, %v381_v16, %v383_v57  ;;  %v6891_v57 = vpack.c.bf16 %v649_v56, %v648_v55  ;;  %v7771_v60 = vld [vmem:[%s11895_s1 + $0x334] ss:$0 sm:$0xff] }
 0x124   : > { %389 = vst [vmem:[#allocation3 + $0x10] sm:$0xff] %v385_v17  ;;  %v6841_v19 = vpack.c.bf16 %v386_v18, %v280_v14  ;;  %v6843_v20 = vpack.c.bf16 %v385_v17, %v279_v12  ;;  %830 = vrot.lane.b32.xlu1 %v7771_v60, %s7424_s11  ;;  %v1077_v55 = vld [vmem:[%s11895_s1 + $0x230] sm:$0xff] }
 0x125   : > { %6892 = vmatpush3.bf16.msra.mxu1 %v6891_v57  ;;  %v6924_v57 = vpack.c.bf16 %v1077_v55, %v1076_v53 }
 0x126   : > { %v337_v22 = vpop.permute.xlu1 %336  ;;  %v306_v23 = vpop.permute.xlu0 %305  ;;  %6842 = vmatprep.subr.bf16.mxu0 %v6841_v19 }
 0x127   : > { %v341_v24 = vsel %vm340_vm5, %v335_v13, %v337_v22  ;;  %v310_v25 = vsel %vm11779_vm8, %v304_v59, %v306_v23  ;;  %6844 = vmatpush1.bf16.msra.mxu0 %v6843_v20  ;;  %v311_v28 = vsel %vm11779_vm8, %v306_v23, %v308_v62  ;;  %v342_v41 = vsel %vm340_vm5, %v337_v22, %v339_v63  ;;  %v7766_v59 = vld [vmem:[%s11895_s1 + $0x333] ss:$0 sm:$0xff] }
 0x128   : > { %345 = vst [vmem:[#allocation3 + $0x60] sm:$0xff] %v341_v24  ;;  %314 = vst [vmem:[#allocation3 + $0x30] sm:$0xff] %v310_v25  ;;  %752 = vrot.lane.b32.xlu0 %v7766_v59, %s7423_s10  ;;  %782 = vrot.lane.b32.xlu1 %v7766_v59, %s11748_s29 }
 0x12a   : > { %v417_v26 = vpop.permute.xlu1 %416  ;;  %v457_v27 = vpop.permute.xlu0 %456 }
 0x12b   : > { %v460_v29 = vsel %vm11876_vm4, %v455_v4, %v457_v27  ;;  %v461_v30 = vsel %vm11876_vm4, %v457_v27, %v459_v0  ;;  %v421_v36 = vsel %vm367_vm2, %v417_v26, %v419_v3 }
 0x12c   : > { %464 = vst [vmem:[#allocation3 + $0x20] sm:$0xff] %v460_v29  ;;  %v6845_v32 = vpack.c.bf16 %v311_v28, %v461_v30  ;;  %v6847_v33 = vpack.c.bf16 %v310_v25, %v460_v29  ;;  %v6853_v42 = vpack.c.bf16 %v421_v36, %v342_v41  ;;  %809 = vrot.lane.b32.xlu1 %v7766_v59, %s7426_s17 }
 0x12e   : > { %v515_v34 = vpop.permute.xlu1 %514  ;;  %v486_v35 = vpop.permute.xlu0 %485  ;;  %6846 = vmatprep.subr.bf16.mxu0 %v6845_v32 }
 0x12f   : > { %v489_v37 = vsel %vm11880_vm3, %v484_v61, %v486_v35  ;;  %v490_v38 = vsel %vm11880_vm3, %v486_v35, %v488_v8  ;;  %6848 = vmatpush1.bf16.msra.mxu0 %v6847_v33  ;;  %v7780_v61 = vld [vmem:[%s11895_s1 + $0x335] ss:$0 sm:$0xff] }
 0x130   : > { %493 = vst [vmem:[#allocation3 + $0x50] sm:$0xff] %v489_v37  ;;  %v6849_v39 = vpack.c.bf16 %v490_v38, %v394_v31  ;;  %v6851_v40 = vpack.c.bf16 %v489_v37, %v7561_v15  ;;  %885 = vrot.lane.b32.xlu0 %v7780_v61, %s7425_s14  ;;  %930 = vrot.lane.b32.xlu1 %v7780_v61, %s7427_s18 }
 0x132   : > { %v513_v11 = vpop.permute.xlu1 %512  ;;  %v415_v21 = vpop.permute.xlu0 %414  ;;  %6850 = vmatprep.subr.bf16.mxu0 %v6849_v39 }
 0x133   : > { %v518_v43 = vsel %vm11884_vm1, %v513_v11, %v515_v34  ;;  %v420_v44 = vsel %vm367_vm2, %v415_v21, %v417_v26  ;;  %6852 = vmatpush1.bf16.msra.mxu0 %v6851_v40 }
 0x134   : > { %522 = vst [vmem:[#allocation3 + $0x80] sm:$0xff] %v518_v43  ;;  %424 = vst [vmem:[#allocation3 + $0x70] sm:$0xff] %v420_v44  ;;  %6854 = vmatprep.subr.bf16.mxu0 %v6853_v42  ;;  %v6855_v45 = vpack.c.bf16 %v420_v44, %v341_v24  ;;  %v6859_v49 = vpack.c.bf16 %v7615_v58, %v518_v43  ;;  %913 = vrot.lane.b32.xlu0 %v7780_v61, %s11589_s5  ;;  %v7429_v42 = vmov 0.0|0.0  }
 0x136   : > { %v517_v15 = vpop.permute.xlu0 %516 }
 0x137   : > { %v519_v47 = vsel %vm11884_vm1, %v515_v34, %v517_v15  ;;  %6856 = vmatpush1.bf16.msra.mxu0 %v6855_v45 }
 0x138   : > { %v6857_v48 = vpack.c.bf16 %v240_v46, %v519_v47  ;;  %864 = vrot.lane.b32.xlu0 %v7771_v60, %s7428_s19 }
 0x13a   : > { %6858 = vmatprep.subr.bf16.mxu0 %v6857_v48 }
 0x13b   : > { %6860 = vmatpush1.bf16.msra.mxu0 %v6859_v49 }
 0x13c   : > { %6893 = vmatprep.subr.bf16.mxu0 %v7429_v42 }
 0x13e   : > { %6653 = vmatmul.mubr.msk.f32.vlgmr.msra.gmra.mrb[0].mxu0 %vm11807_vm9, %v524_v50  ;;  %v946_v50 = vld [vmem:[%s11900_s0 + $0x78] sm:$0xff] }
 0x13f   : > { %623 = vmatprep.mubr.f32.mxu0 %v7414_v1 }
 0x142   : > { %6654 = vmatmul.mubr.msk.f32.gmra.mrb[2].mxu0 %vm11807_vm9, %v525_v51  ;;  %v1074_v51 = vld [vmem:[%s11895_s1 + $0x200] sm:$0xff] }
 0x143   : > { %6655 = vmatprep.mubr.msk.f32.mxu0 %vm11747_vm11, %v946_v50  ;;  %v6920_v54 = vpack.c.bf16 %v1075_v52, %v1074_v51 }
 0x145   : > { %6921 = vmatprep.subr.bf16.mxu1 %v6920_v54 }
 0x196   : > { %v7798_v3 = vpop.permute.xlu1 %830 }
 0x197   : > { %v833_v12 = vmul.f32 0.0, %v7798_v3 }
 0x19a   : > { %v7794_v62 = vpop.permute.xlu0 %752  ;;  %v783_v20 = vpop.permute.xlu1 %782 }
 0x19b   : > { %v755_v63 = vmul.f32 0.0, %v7794_v62  ;;  %v785_v22 = vmul.f32 0.0, %v783_v20 }
 0x19d   : > { %763 = vrot.lane.b32.xlu0 %v755_v63, %s7427_s18 }
 0x19e   : > { %v810_v34 = vpop.permute.xlu1 %809 }
 0x1a1   : > { %767 = vrot.lane.b32.xlu0 %v755_v63, %s7427_s18 }
 0x1a2   : > { %v886_v18 = vpop.permute.xlu0 %885  ;;  %v931_v40 = vpop.permute.xlu1 %930 }
 0x1a3   : > { %v888_v19 = vmul.f32 0.0, %v886_v18 }
 0x1a5   : > { %841 = vrot.lane.b32.xlu0 %v833_v12, %s7428_s19 }
 0x1a6   : > { %v914_v29 = vpop.permute.xlu0 %913 }
 0x1a9   : > { %845 = vrot.lane.b32.xlu0 %v833_v12, %s7428_s19 }
 0x1aa   : > { %v865_v37 = vpop.permute.xlu0 %864 }
 0x1ad   : > { %896 = vrot.lane.b32.xlu0 %v888_v19, %s7426_s17 }
 0x1b1   : > { %900 = vrot.lane.b32.xlu0 %v888_v19, %s7426_s17 }
 0x1b5   : > { %793 = vrot.lane.b32.xlu0 %v785_v22, %s11589_s5 }
 0x1b9   : > { %797 = vrot.lane.b32.xlu0 %v785_v22, %s11589_s5 }
 0x20f   : > { %v764_v56 = vpop.permute.xlu0 %763 }
 0x211   : > { %v619_v0 = vpop.f32.mrb[0].mxu0 }
 0x212   : > { %v621_v4 = vpop.f32.mrb[1].mxu0  ;;  %v630_v10 = vmax.f32 %v619_v0, 0.0 }
 0x213   : > { %v631_v8 = vmax.f32 %v621_v4, 0.0  ;;  %v768_v63 = vpop.permute.xlu0 %767 }
 0x215   : > { %v625_v13 = vpop.f32.mrb[2].mxu0  ;;  %730 = vmatprep.mubr.f32.mxu1 %v631_v8 }
 0x216   : > { %v632_v16 = vmax.f32 %v625_v13, 0.0  ;;  %v627_v14 = vpop.f32.mrb[3].mxu0  ;;  %731 = vmatmul.mubr.f32.vlgmr.msra.gmra.mrb[0].mxu1 %v630_v10 }
 0x217   : > { %v633_v17 = vmax.f32 %v627_v14, 0.0  ;;  %6923 = vmatpush3.bf16.msra.mxu1 %v6920_v54  ;;  %v842_v0 = vpop.permute.xlu0 %841 }
 0x218   : > { %6925 = vmatprep.subr.bf16.mxu1 %v6924_v57 }
 0x219   : > { %735 = vmatprep.mubr.f32.mxu1 %v633_v17 }
 0x21a   : > { %736 = vmatmul.mubr.f32.gmra.mrb[2].mxu1 %v632_v16 }
 0x21b   : > { %6927 = vmatpush3.bf16.msra.mxu1 %v6924_v57 }
 0x2e9   : > { %v6727_v23 = vpop.f32.mrb[0].mxu1 }
 0x2ea   : > { %v6728_v24 = vpop.f32.mrb[1].mxu1 }
 0x2eb   : > { %v7810_v25 = vadd.f32 %v6728_v24, %v6727_v23 }
 0x2ed   : > { %742 = vst.msk [vmem:[#allocation2 + $0x20] sm:$0xff] %vm741_vm10, %v7810_v25  ;;  %v6730_v26 = vpop.f32.mrb[2].mxu1 }
 0x2ee   : > { %v6731_v27 = vpop.f32.mrb[3].mxu1 }
 0x2ef   : > { %v7814_v28 = vadd.f32 %v6731_v27, %v6730_v26 }
 0x2f1   : > { %743 = vst.msk [vmem:[#allocation2 + $0x48] sm:$0xff] %vm741_vm10, %v7814_v28 }
 0x2f4   : > { %v856_v58 = vld [vmem:[#allocation2 + $0x20] sm:$0xff] }
 0x2f5   : > { %v858_v30 = vmul.f32 %v856_v58, %v7771_v60  ;;  %v916_v31 = vmul.f32 %v914_v29, %v856_v58  ;;  %v756_v32 = vmul.f32 %v856_v58, %v7794_v62  ;;  %v812_v36 = vmul.f32 %v856_v58, %v810_v34 }
 0x2f6   : > { %v834_v38 = vmul.f32 %v856_v58, %v7798_v3  ;;  %v867_v39 = vmul.f32 %v865_v37, %v856_v58  ;;  %v889_v41 = vmul.f32 %v886_v18, %v856_v58  ;;  %v933_v11 = vmul.f32 %v931_v40, %v856_v58 }
 0x2f7   : > { %860 = vst.msk [vmem:[#allocation3 + $0x80] sm:$0xff] %vm741_vm10, %v858_v30  ;;  %920 = vrot.lane.b32.xlu0 %v916_v31, %s11748_s29  ;;  %765 = vrot.lane.b32.xlu1 %v756_v32, %s7427_s18  ;;  %v786_v21 = vmul.f32 %v856_v58, %v783_v20 }
 0x2f8   : > { %v857_v33 = vld [vmem:[#allocation2 + $0x48] sm:$0xff] }
 0x2f9   : > { %v859_v35 = vmul.f32 %v857_v33, %v7771_v60  ;;  %v758_v43 = vmul.f32 %v857_v33, %v7794_v62  ;;  %v836_v44 = vmul.f32 %v857_v33, %v7798_v3  ;;  %v891_v45 = vmul.f32 %v886_v18, %v857_v33  ;;  %v846_v3 = vpop.permute.xlu0 %845 }
 0x2fa   : > { %v788_v46 = vmul.f32 %v857_v33, %v783_v20  ;;  %v917_v15 = vmul.f32 %v914_v29, %v857_v33  ;;  %v813_v47 = vmul.f32 %v857_v33, %v810_v34  ;;  %v868_v48 = vmul.f32 %v865_v37, %v857_v33 }
 0x2fb   : > { %861 = vst.msk [vmem:[#allocation3 + $0x90] sm:$0xff] %vm741_vm10, %v859_v35  ;;  %816 = vrot.lane.b32.xlu0 %v812_v36, %s7425_s14  ;;  %843 = vrot.lane.b32.xlu1 %v834_v38, %s7428_s19  ;;  %v934_v49 = vmul.f32 %v931_v40, %v857_v33 }
 0x2fd   : > { %v897_v4 = vpop.permute.xlu0 %896 }
 0x2fe   : > { %v961_v50 = vld [vmem:[#allocation3 + $0x80] sm:$0xff] }
 0x2ff   : > { %871 = vrot.lane.b32.xlu0 %v867_v39, %s7424_s11  ;;  %898 = vrot.lane.b32.xlu1 %v889_v41, %s7426_s17 }
 0x301   : > { %v901_v8 = vpop.permute.xlu0 %900 }
 0x303   : > { %937 = vrot.lane.b32.xlu0 %v933_v11, %s7423_s10  ;;  %795 = vrot.lane.b32.xlu1 %v786_v21, %s11589_s5 }
 0x305   : > { %v794_v10 = vpop.permute.xlu0 %793 }
 0x307   : > { %1294 = vrot.lane.b32.xlu0 %v7766_v59, %s7423_s10  ;;  %769 = vrot.lane.b32.xlu1 %v758_v43, %s7427_s18 }
 0x309   : > { %v798_v12 = vpop.permute.xlu0 %797 }
 0x30b   : > { %1588 = vrot.lane.b32.xlu0 %v7780_v61, %s11589_s5  ;;  %847 = vrot.lane.b32.xlu1 %v836_v44, %s7428_s19 }
 0x30f   : > { %1537 = vrot.lane.b32.xlu0 %v7780_v61, %s7425_s14  ;;  %902 = vrot.lane.b32.xlu1 %v891_v45, %s7426_s17 }
 0x313   : > { %1500 = vrot.lane.b32.xlu0 %v7771_v60, %s7428_s19  ;;  %799 = vrot.lane.b32.xlu1 %v788_v46, %s11589_s5 }
 0x317   : > { %922 = vrot.lane.b32.xlu1 %v917_v15, %s11748_s29 }
 0x31b   : > { %818 = vrot.lane.b32.xlu1 %v813_v47, %s7425_s14 }
 0x31f   : > { %873 = vrot.lane.b32.xlu1 %v868_v48, %s7424_s11  ;;  %v962_v48 = vld [vmem:[#allocation3 + $0x90] sm:$0xff] }
 0x320   : > { %v6906_v51 = vpack.c.bf16 %v962_v48, %v961_v50 }
 0x323   : > { %939 = vrot.lane.b32.xlu1 %v934_v49, %s7423_s10 }
 0x327   : > { %1437 = vrot.lane.b32.xlu1 %v7771_v60, %s7424_s11 }
 0x32b   : > { %1400 = vrot.lane.b32.xlu1 %v7766_v59, %s7426_s17 }
 0x32f   : > { %1349 = vrot.lane.b32.xlu1 %v7766_v59, %s11748_s29  ;;  %v1078_v59 = vld [vmem:[%s11895_s1 + $0x240] sm:$0xff] }
 0x333   : > { %1619 = vrot.lane.b32.xlu1 %v7780_v61, %s7427_s18  ;;  %v1079_v61 = vld [vmem:[%s11895_s1 + $0x250] sm:$0xff] }
 0x334   : > { %v6928_v62 = vpack.c.bf16 %v1079_v61, %v1078_v59 }
 0x336   : > { %6929 = vmatprep.subr.bf16.mxu1 %v6928_v62 }
 0x337   : > { %6931 = vmatpush3.bf16.msra.mxu1 %v6928_v62 }
 0x369   : > { %v921_v13 = vpop.permute.xlu0 %920  ;;  %v766_v16 = vpop.permute.xlu1 %765 }
 0x36a   : > { %926 = vst.msk [vmem:[#allocation3 + $0xa0] sm:$0xff] %vm741_vm10, %v921_v13  ;;  %v772_v14 = vsel %vm771_vm12, %v764_v56, %v766_v16  ;;  %v949_v13 = vld [vmem:[%s11900_s0 + $0xe0] sm:$0xff] }
 0x36b   : > { %776 = vst.msk [vmem:[#allocation3] sm:$0xff] %vm741_vm10, %v772_v14  ;;  %v952_v16 = vld [vmem:[%s11900_s0 + $0x120] sm:$0xff]  ;;  %v951_v14 = vld [vmem:[%s11900_s0 + $0x118] sm:$0xff] }
 0x36d   : > { %v817_v17 = vpop.permute.xlu0 %816  ;;  %v844_v18 = vpop.permute.xlu1 %843 }
 0x36e   : > { %822 = vst.msk [vmem:[#allocation3 + $0xc0] sm:$0xff] %vm741_vm10, %v817_v17  ;;  %v850_v19 = vsel %vm849_vm13, %v842_v0, %v844_v18  ;;  %v1080_v17 = vld [vmem:[%s11895_s1 + $0x260] sm:$0xff]  ;;  %v1081_v18 = vld [vmem:[%s11895_s1 + $0x270] sm:$0xff] }
 0x36f   : > { %854 = vst.msk [vmem:[#allocation3 + $0x20] sm:$0xff] %vm741_vm10, %v850_v19  ;;  %v6932_v19 = vpack.c.bf16 %v1081_v18, %v1080_v17 }
 0x371   : > { %v872_v20 = vpop.permute.xlu0 %871  ;;  %v899_v22 = vpop.permute.xlu1 %898  ;;  %v963_v54 = vld [vmem:[#allocation3 + $0xa0] sm:$0xff]  ;;  %6933 = vmatprep.subr.bf16.mxu1 %v6932_v19 }
 0x372   : > { %877 = vst.msk [vmem:[#allocation3 + $0xe0] sm:$0xff] %vm741_vm10, %v872_v20  ;;  %v905_v23 = vsel %vm904_vm14, %v897_v4, %v899_v22  ;;  %v953_v34 = vld [vmem:[#allocation3] sm:$0xff]  ;;  %6935 = vmatpush3.bf16.msra.mxu1 %v6932_v19  ;;  %v1180_v22 = vld [vmem:[%s11895_s1 + $0x290] sm:$0xff] }
 0x373   : > { %909 = vst.msk [vmem:[#allocation3 + $0x40] sm:$0xff] %vm741_vm10, %v905_v23  ;;  %v1179_v20 = vld [vmem:[%s11895_s1 + $0x280] sm:$0xff] }
 0x374   : > { %v6936_v23 = vpack.c.bf16 %v1180_v22, %v1179_v20 }
 0x375   : > { %v938_v24 = vpop.permute.xlu0 %937  ;;  %v796_v26 = vpop.permute.xlu1 %795  ;;  %v965_v57 = vld [vmem:[#allocation3 + $0xc0] sm:$0xff] }
 0x376   : > { %943 = vst.msk [vmem:[#allocation3 + $0x100] sm:$0xff] %vm741_vm10, %v938_v24  ;;  %v801_v27 = vsel %vm11779_vm8, %v794_v10, %v796_v26  ;;  %v955_v39 = vld [vmem:[#allocation3 + $0x20] sm:$0xff]  ;;  %v945_v10 = vld [vmem:[%s11900_s0 + $0x70] sm:$0xff]  ;;  %6937 = vmatprep.subr.bf16.mxu1 %v6936_v23 }
 0x377   : > { %805 = vst.msk [vmem:[#allocation3 + $0x60] sm:$0xff] %vm741_vm10, %v801_v27 }
 0x379   : > { %v770_v58 = vpop.permute.xlu1 %769  ;;  %v967_v62 = vld [vmem:[#allocation3 + $0xe0] sm:$0xff] }
 0x37a   : > { %v773_v29 = vsel %vm771_vm12, %v768_v63, %v770_v58  ;;  %v957_v21 = vld [vmem:[#allocation3 + $0x40] sm:$0xff] }
 0x37b   : > { %777 = vst.msk [vmem:[#allocation3 + $0x10] sm:$0xff] %vm741_vm10, %v773_v29 }
 0x37d   : > { %v848_v30 = vpop.permute.xlu1 %847 }
 0x37e   : > { %v851_v31 = vsel %vm849_vm13, %v846_v3, %v848_v30  ;;  %v959_v46 = vld [vmem:[#allocation3 + $0x60] sm:$0xff] }
 0x37f   : > { %855 = vst.msk [vmem:[#allocation3 + $0x30] sm:$0xff] %vm741_vm10, %v851_v31  ;;  %v969_v3 = vld [vmem:[#allocation3 + $0x100] sm:$0xff] }
 0x381   : > { %v903_v32 = vpop.permute.xlu1 %902 }
 0x382   : > { %v906_v33 = vsel %vm904_vm14, %v901_v8, %v903_v32  ;;  %v954_v35 = vld [vmem:[#allocation3 + $0x10] sm:$0xff]  ;;  %v971_v8 = vld [vmem:[#allocation3 + $0x120] sm:$0xff] }
 0x383   : > { %910 = vst.msk [vmem:[#allocation3 + $0x50] sm:$0xff] %vm741_vm10, %v906_v33  ;;  %v6894_v36 = vpack.c.bf16 %v954_v35, %v953_v34 }
 0x385   : > { %v800_v37 = vpop.permute.xlu1 %799  ;;  %6895 = vmatpush1.bf16.msra.mxu0 %v6894_v36 }
 0x386   : > { %v802_v38 = vsel %vm11779_vm8, %v798_v12, %v800_v37  ;;  %6896 = vmatprep.subr.bf16.mxu0 %v7429_v42  ;;  %v956_v40 = vld [vmem:[#allocation3 + $0x30] sm:$0xff]  ;;  %v7954_v37 = vpop.permute.xlu0 %1294 }
 0x387   : > { %806 = vst.msk [vmem:[#allocation3 + $0x70] sm:$0xff] %vm741_vm10, %v802_v38  ;;  %v6897_v41 = vpack.c.bf16 %v956_v40, %v955_v39  ;;  %v948_v12 = vld [vmem:[%s11900_s0 + $0xb0] sm:$0xff]  ;;  %v7956_v38 = vld [vmem:[#allocation2] sm:$0xff] }
 0x388   : > { %v1297_v39 = vmul.f32 %v7956_v38, %v7954_v37 }
 0x389   : > { %v923_v11 = vpop.permute.xlu1 %922  ;;  %6898 = vmatpush1.bf16.msra.mxu0 %v6897_v41 }
 0x38a   : > { %927 = vst.msk [vmem:[#allocation3 + $0xb0] sm:$0xff] %vm741_vm10, %v923_v11  ;;  %6899 = vmatprep.subr.bf16.mxu0 %v7429_v42  ;;  %v958_v43 = vld [vmem:[#allocation3 + $0x50] sm:$0xff]  ;;  %1313 = vrot.lane.b32.xlu0 %v1297_v39, %s7427_s18  ;;  %v7969_v11 = vpop.permute.xlu0 %1588 }
 0x38b   : > { %v6900_v44 = vpack.c.bf16 %v958_v43, %v957_v21 }
 0x38d   : > { %v819_v45 = vpop.permute.xlu1 %818  ;;  %6901 = vmatpush1.bf16.msra.mxu0 %v6900_v44 }
 0x38e   : > { %823 = vst.msk [vmem:[#allocation3 + $0xd0] sm:$0xff] %vm741_vm10, %v819_v45  ;;  %6902 = vmatprep.subr.bf16.mxu0 %v7429_v42  ;;  %v960_v15 = vld [vmem:[#allocation3 + $0x70] sm:$0xff]  ;;  %1317 = vrot.lane.b32.xlu0 %v1297_v39, %s7427_s18  ;;  %v7973_v21 = vpop.permute.xlu0 %1537 }
 0x38f   : > { %v6903_v47 = vpack.c.bf16 %v960_v15, %v959_v46  ;;  %v1540_v43 = vmul.f32 %v7956_v38, %v7973_v21 }
 0x391   : > { %v874_v49 = vpop.permute.xlu1 %873  ;;  %6904 = vmatpush1.bf16.msra.mxu0 %v6903_v47  ;;  %v964_v52 = vld [vmem:[#allocation3 + $0xb0] sm:$0xff] }
 0x392   : > { %878 = vst.msk [vmem:[#allocation3 + $0xf0] sm:$0xff] %vm741_vm10, %v874_v49  ;;  %6905 = vmatprep.subr.bf16.mxu0 %v7429_v42  ;;  %v6909_v55 = vpack.c.bf16 %v964_v52, %v963_v54  ;;  %1321 = vrot.lane.b32.xlu0 %v1297_v39, %s7427_s18 }
 0x395   : > { %v940_v53 = vpop.permute.xlu1 %939  ;;  %6907 = vmatpush1.bf16.msra.mxu0 %v6906_v51  ;;  %v966_v56 = vld [vmem:[#allocation3 + $0xd0] sm:$0xff] }
 0x396   : > { %944 = vst.msk [vmem:[#allocation3 + $0x110] sm:$0xff] %vm741_vm10, %v940_v53  ;;  %6908 = vmatprep.subr.bf16.mxu0 %v7429_v42  ;;  %v6912_v59 = vpack.c.bf16 %v966_v56, %v965_v57  ;;  %1325 = vrot.lane.b32.xlu0 %v1297_v39, %s7427_s18 }
 0x399   : > { %6910 = vmatpush1.bf16.msra.mxu0 %v6909_v55  ;;  %v968_v61 = vld [vmem:[#allocation3 + $0xf0] sm:$0xff]  ;;  %v7963_v40 = vpop.permute.xlu1 %1437 }
 0x39a   : > { %6911 = vmatprep.subr.bf16.mxu0 %v7429_v42  ;;  %v6915_v63 = vpack.c.bf16 %v968_v61, %v967_v62  ;;  %v1440_v41 = vmul.f32 %v7956_v38, %v7963_v40 }
 0x39c   : > { %1456 = vrot.lane.b32.xlu0 %v1440_v41, %s7428_s19 }
 0x39d   : > { %6913 = vmatpush1.bf16.msra.mxu0 %v6912_v59  ;;  %v970_v0 = vld [vmem:[#allocation3 + $0x110] sm:$0xff]  ;;  %v7986_v47 = vpop.permute.xlu1 %1400 }
 0x39e   : > { %6914 = vmatprep.subr.bf16.mxu0 %v7429_v42  ;;  %v6918_v4 = vpack.c.bf16 %v970_v0, %v969_v3  ;;  %v8014_v0 = vpop.permute.xlu0 %1500 }
 0x3a0   : > { %1460 = vrot.lane.b32.xlu0 %v1440_v41, %s7428_s19 }
 0x3a1   : > { %6916 = vmatpush1.bf16.msra.mxu0 %v6915_v63  ;;  %v7988_v48 = vpop.permute.xlu1 %1349 }
 0x3a2   : > { %6917 = vmatprep.subr.bf16.mxu0 %v7429_v42  ;;  %v947_v42 = vld [vmem:[%s11900_s0 + $0xa8] sm:$0xff]  ;;  %v1352_v49 = vmul.f32 %v7956_v38, %v7988_v48 }
 0x3a4   : > { %1464 = vrot.lane.b32.xlu0 %v1440_v41, %s7428_s19 }
 0x3a5   : > { %6919 = vmatpush1.bf16.msra.mxu0 %v6918_v4 }
 0x3a6   : > { %1021 = vmatprep.subr.mxu0 %v7414_v1  ;;  %v950_v1 = vld [vmem:[%s11900_s0 + $0xe8] sm:$0xff] }
 0x3a8   : > { %1468 = vrot.lane.b32.xlu0 %v1440_v41, %s7428_s19  ;;  %v6675_v41 = vld [vmem:[%s11895_s1 + $0x332] ss:$8 sm:$0x3] }
 0x3a9   : > { %1022 = vmatpush1.msra.mxu0 %v971_v8 }
 0x3aa   : > { %1050 = vmatmul.mubr.f32.vlgmr.msra.gmra.mrb[4].mxu0 %v945_v10 }
 0x3ab   : > { %6656 = vmatprep.mubr.msk.f32.mxu0 %vm11747_vm11, %v948_v12 }
 0x3ac   : > { %1556 = vrot.lane.b32.xlu0 %v1540_v43, %s7426_s17 }
 0x3ae   : > { %1055 = vmatmul.mubr.f32.gmra.mrb[6].mxu0 %v947_v42 }
 0x3af   : > { %6657 = vmatprep.mubr.msk.f32.mxu0 %vm11747_vm11, %v950_v1 }
 0x3b0   : > { %1560 = vrot.lane.b32.xlu0 %v1540_v43, %s7426_s17 }
 0x3b2   : > { %1060 = vmatmul.mubr.f32.gmra.mrb[8].mxu0 %v949_v13  ;;  %v8029_v13 = vpop.permute.xlu1 %1619 }
 0x3b3   : > { %6658 = vmatprep.mubr.msk.f32.mxu0 %vm11747_vm11, %v952_v16  ;;  %vm11879_vm11 = vcmask 23552  }
 0x3b4   : > { %1564 = vrot.lane.b32.xlu0 %v1540_v43, %s7426_s17 }
 0x3b6   : > { %1065 = vmatmul.mubr.f32.gmra.mrb[10].mxu0 %v951_v14 }
 0x3b8   : > { %1568 = vrot.lane.b32.xlu0 %v1540_v43, %s7426_s17  ;;  %v8093_v43 = vrot.slane %v6675_v41, %v7523_v5 }
 0x3bc   : > { %1368 = vrot.lane.b32.xlu0 %v1352_v49, %s11589_s5 }
 0x3c0   : > { %1372 = vrot.lane.b32.xlu0 %v1352_v49, %s11589_s5 }
 0x3c4   : > { %1376 = vrot.lane.b32.xlu0 %v1352_v49, %s11589_s5 }
 0x47d   : > { %v1051_v24 = vpop.f32.mrb[4].mxu0 }
 0x47e   : > { %v1070_v26 = vmax.f32 %v1051_v24, 0.0  ;;  %v1053_v27 = vpop.f32.mrb[5].mxu0  ;;  %v8053_v24 = vpop.permute.xlu0 %1313 }
 0x480   : > { %6812 = vmatprep.mubr.msk.f32.mxu1 %vm741_vm10, %v1070_v26 }
 0x481   : > { %v1056_v58 = vpop.f32.mrb[6].mxu0 }
 0x482   : > { %v1071_v29 = vmax.f32 %v1056_v58, 0.0  ;;  %v1058_v30 = vpop.f32.mrb[7].mxu0 }
 0x484   : > { %6813 = vmatmul.mubr.msk.f32.vlgmr.msra.gmra.mrb[4].mxu1 %vm741_vm10, %v1071_v29  ;;  %v6673_v29 = vld [vmem:[%s11895_s1 + $0x330] ss:$8 sm:$0x3] }
 0x485   : > { %v1061_v31 = vpop.f32.mrb[8].mxu0  ;;  %6939 = vmatpush3.bf16.msra.mxu1 %v6936_v23 }
 0x486   : > { %v1072_v32 = vmax.f32 %v1061_v31, 0.0  ;;  %v1063_v33 = vpop.f32.mrb[9].mxu0  ;;  %v8067_v31 = vpop.permute.xlu0 %1317 }
 0x487   : > { %v6674_v33 = vld [vmem:[%s11895_s1 + $0x331] ss:$8 sm:$0x3] }
 0x488   : > { %6815 = vmatprep.mubr.msk.f32.mxu1 %vm741_vm10, %v1072_v32  ;;  %v1994_v32 = vrot.slane %v6673_v29, %v7523_v5 }
 0x489   : > { %v1066_v34 = vpop.f32.mrb[10].mxu0 }
 0x48a   : > { %v1073_v35 = vmax.f32 %v1066_v34, 0.0  ;;  %v1068_v36 = vpop.f32.mrb[11].mxu0 }
 0x48b   : > { %v8082_v36 = vpop.permute.xlu0 %1321 }
 0x48c   : > { %6816 = vmatmul.mubr.msk.f32.gmra.mrb[6].mxu1 %vm741_vm10, %v1073_v35  ;;  %v8079_v35 = vrot.slane %v6674_v33, %v7523_v5 }
 0x48e   : > { %11901 = vst [vmem:[#allocation8_spill] sm:$0xff] %v8079_v35 }
 0x557   : > { %v6814_v44 = vpop.f32.mrb[4].mxu1 }
 0x558   : > { %v1160_v45 = vpop.f32.mrb[5].mxu1 }
 0x559   : > { %6822 = vmatprep.mubr.msk.f32.mxu1 %vm384_vm6, %v1160_v45  ;;  %v8097_v45 = vpop.permute.xlu0 %1325 }
 0x55a   : > { %6823 = vmatmul.mubr.msk.f32.vlgmr.msra.gmra.mrb[8].mxu1 %vm384_vm6, %v6814_v44 }
 0x55f   : > { %v6817_v46 = vpop.f32.mrb[6].mxu1 }
 0x560   : > { %v1170_v15 = vpop.f32.mrb[7].mxu1 }
 0x561   : > { %6825 = vmatprep.mubr.msk.f32.mxu1 %vm384_vm6, %v1170_v15  ;;  %v8105_v15 = vpop.permute.xlu0 %1456 }
 0x562   : > { %6826 = vmatmul.mubr.msk.f32.gmra.mrb[10].mxu1 %vm384_vm6, %v6817_v46 }
 0x62d   : > { %v6824_v50 = vpop.f32.mrb[8].mxu1 }
 0x62e   : > { %1279 = vst.msk [vmem:[#allocation2 + $0x48] sm:$0xff] %vm741_vm10, %v6824_v50  ;;  %v1259_v51 = vpop.f32.mrb[9].mxu1 }
 0x62f   : > { %1278 = vst.msk [vmem:[#allocation2 + $0x20] sm:$0xff] %vm741_vm10, %v1259_v51  ;;  %v1461_v51 = vpop.permute.xlu0 %1460 }
 0x635   : > { %v6827_v52 = vpop.f32.mrb[10].mxu1  ;;  %v1288_v53 = vld [vmem:[#allocation2 + $0x48] sm:$0xff] }
 0x636   : > { %1281 = vst.msk [vmem:[#allocation2 + $0x98] sm:$0xff] %vm741_vm10, %v6827_v52  ;;  %v1269_v54 = vpop.f32.mrb[11].mxu1  ;;  %v1300_v55 = vmul.f32 %v7954_v37, %v1288_v53  ;;  %v7999_v56 = vld [vmem:[#allocation2 + $0x20] sm:$0xff]  ;;  %v1489_v57 = vmul.f32 %v1288_v53, %v7771_v60  ;;  %v1443_v62 = vmul.f32 %v7963_v40, %v1288_v53  ;;  %v1592_v10 = vmul.f32 %v7969_v11, %v1288_v53 }
 0x637   : > { %1280 = vst.msk [vmem:[#allocation2 + $0x70] sm:$0xff] %vm741_vm10, %v1269_v54  ;;  %v1591_v59 = vmul.f32 %v7969_v11, %v7999_v56  ;;  %v1488_v61 = vmul.f32 %v7999_v56, %v7771_v60  ;;  %v1403_v63 = vmul.f32 %v7999_v56, %v7986_v47  ;;  %v1503_v42 = vmul.f32 %v7999_v56, %v8014_v0 }
 0x638   : > { %1319 = vrot.lane.b32.xlu1 %v1300_v55, %s7427_s18  ;;  %1493 = vst.msk [vmem:[#allocation3 + $0x110] sm:$0xff] %vm741_vm10, %v1489_v57  ;;  %v1404_v17 = vmul.f32 %v7986_v47, %v1288_v53  ;;  %v1543_v18 = vmul.f32 %v7973_v21, %v1288_v53  ;;  %v1355_v20 = vmul.f32 %v7988_v48, %v1288_v53 }
 0x639   : > { %1599 = vrot.lane.b32.xlu0 %v1591_v59, %s11748_s29  ;;  %1492 = vst.msk [vmem:[#allocation3 + $0x100] sm:$0xff] %vm741_vm10, %v1488_v61  ;;  %v1504_v22 = vmul.f32 %v8014_v0, %v1288_v53  ;;  %v1623_v26 = vmul.f32 %v8029_v13, %v1288_v53  ;;  %v1298_v58 = vmul.f32 %v7999_v56, %v7954_v37  ;;  %v8120_v53 = vpop.permute.xlu0 %1464 }
 0x63a   : > { %v1441_v34 = vmul.f32 %v7999_v56, %v7963_v40  ;;  %v1541_v39 = vmul.f32 %v7999_v56, %v7973_v21  ;;  %v1353_v44 = vmul.f32 %v7999_v56, %v7988_v48 }
 0x63c   : > { %1462 = vrot.lane.b32.xlu1 %v1443_v62, %s7428_s19 }
 0x63d   : > { %v8017_v3 = vld [vmem:[#allocation2 + $0x98] sm:$0xff]  ;;  %1411 = vrot.lane.b32.xlu0 %v1403_v63, %s7425_s14  ;;  %v8129_v55 = vpop.permute.xlu0 %1468  ;;  %v1282_v63 = vld [vmem:[%s11895_s1 + $0x320] sm:$0xff] }
 0x63e   : > { %v1491_v4 = vmul.f32 %v8017_v3, %v7771_v60  ;;  %v8022_v8 = vld [vmem:[#allocation2 + $0x70] sm:$0xff]  ;;  %v1304_v46 = vmul.f32 %v8017_v3, %v7954_v37  ;;  %v1594_v50 = vmul.f32 %v7969_v11, %v8017_v3  ;;  %v1406_v52 = vmul.f32 %v8017_v3, %v7986_v47  ;;  %1283 = vst.msk [vmem:[#allocation3 + $0x240] sm:$0xff] %vm741_vm10, %v1282_v63 }
 0x63f   : > { %v1490_v12 = vmul.f32 %v8022_v8, %v7771_v60  ;;  %v1669_v1 = vld [vmem:[#allocation3 + $0x110] sm:$0xff]  ;;  %v1622_v60 = vmul.f32 %v8029_v13, %v7999_v56  ;;  %v1593_v19 = vmul.f32 %v7969_v11, %v8022_v8  ;;  %v1405_v23 = vmul.f32 %v8022_v8, %v7986_v47 }
 0x640   : > { %1495 = vst.msk [vmem:[#allocation3 + $0x130] sm:$0xff] %vm741_vm10, %v1491_v4  ;;  %1601 = vrot.lane.b32.xlu1 %v1592_v10, %s11748_s29  ;;  %v1668_v16 = vld [vmem:[#allocation3 + $0x100] sm:$0xff]  ;;  %v1505_v27 = vmul.f32 %v8014_v0, %v8022_v8  ;;  %v1624_v30 = vmul.f32 %v8029_v13, %v8022_v8  ;;  %v1547_v54 = vmul.f32 %v7973_v21, %v8017_v3 }
 0x641   : > { %1494 = vst.msk [vmem:[#allocation3 + $0x120] sm:$0xff] %vm741_vm10, %v1490_v12  ;;  %1511 = vrot.lane.b32.xlu0 %v1503_v42, %s7424_s11  ;;  %v6940_v14 = vpack.c.bf16 %v1669_v1, %v1668_v16  ;;  %v1302_v11 = vmul.f32 %v8022_v8, %v7954_v37  ;;  %v1445_v47 = vmul.f32 %v8022_v8, %v7963_v40  ;;  %v8135_v56 = vpop.permute.xlu0 %1556 }
 0x642   : > { %v1359_v57 = vmul.f32 %v8017_v3, %v7988_v48  ;;  %v1506_v59 = vmul.f32 %v8014_v0, %v8017_v3  ;;  %v1545_v61 = vmul.f32 %v7973_v21, %v8022_v8  ;;  %v1357_v62 = vmul.f32 %v8022_v8, %v7988_v48  ;;  %v1647_v21 = vld [vmem:[%s11900_s0 + $0x158] sm:$0xff]  ;;  %v1648_v8 = vld [vmem:[%s11900_s0 + $0x160] sm:$0xff] }
 0x643   : > { %6941 = vmatprep.subr.bf16.mxu1 %v6940_v14  ;;  %v1625_v0 = vmul.f32 %v8029_v13, %v8017_v3  ;;  %1760 = vmatprep.mubr.f32.mxu1 %v1647_v21  ;;  %v1998_v48 = vrot.slane %v6673_v29, %v7526_v6  ;;  %v8179_v42 = vrot.slane %v6675_v41, %v7526_v6 }
 0x644   : > { %1413 = vrot.lane.b32.xlu1 %v1404_v17, %s7425_s14  ;;  %6838 = vmatprep.mubr.msk.f32.mxu0 %vm1689_vm15, %v1648_v8 }
 0x645   : > { %1630 = vrot.lane.b32.xlu0 %v1622_v60, %s7423_s10  ;;  %v1561_v37 = vpop.permute.xlu0 %1560  ;;  %v8168_v10 = vld [vmem:[#allocation3 + $0x240] sm:$0xff] }
 0x646   : > { %1975 = vst [vmem:[#allocation3 + $0x240] sm:$0xff] %v1282_v63 }
 0x648   : > { %1562 = vrot.lane.b32.xlu1 %v1543_v18, %s7426_s17 }
 0x649   : > { %1603 = vrot.lane.b32.xlu0 %v1593_v19, %s11748_s29 }
 0x64c   : > { %1374 = vrot.lane.b32.xlu1 %v1355_v20, %s11589_s5 }
 0x64d   : > { %1380 = vrot.lane.b32.xlu0 %v1352_v49, %s11589_s5  ;;  %v1447_v49 = vmul.f32 %v8017_v3, %v7963_v40  ;;  %v8146_v40 = vpop.permute.xlu0 %1564  ;;  %v8172_v3 = vrot.slane %v6674_v33, %v7526_v6 }
 0x64f   : > { %11902 = vst [vmem:[#allocation9_spill] sm:$0xff] %v8172_v3 }
 0x650   : > { %1513 = vrot.lane.b32.xlu1 %v1504_v22, %s7424_s11 }
 0x651   : > { %1415 = vrot.lane.b32.xlu0 %v1405_v23, %s7425_s14  ;;  %v8160_v4 = vpop.permute.xlu0 %1568 }
 0x654   : > { %1632 = vrot.lane.b32.xlu1 %v1623_v26, %s7423_s10 }
 0x655   : > { %1515 = vrot.lane.b32.xlu0 %v1505_v27, %s7424_s11  ;;  %v8174_v12 = vpop.permute.xlu0 %1368 }
 0x658   : > { %1315 = vrot.lane.b32.xlu1 %v1298_v58, %s7427_s18 }
 0x659   : > { %1634 = vrot.lane.b32.xlu0 %v1624_v30, %s7423_s10  ;;  %v1373_v1 = vpop.permute.xlu0 %1372 }
 0x65c   : > { %1458 = vrot.lane.b32.xlu1 %v1441_v34, %s7428_s19 }
 0x65d   : > { %1999 = vrot.lane.b32.xlu0 %v1994_v32, %s11555_s26  ;;  %v8184_v13 = vpop.permute.xlu0 %1376 }
 0x660   : > { %1558 = vrot.lane.b32.xlu1 %v1541_v39, %s7426_s17 }
 0x661   : > { %2287 = vrot.lane.b32.xlu0 %v8079_v35, %s11753_s25 }
 0x664   : > { %1370 = vrot.lane.b32.xlu1 %v1353_v44, %s11589_s5 }
 0x665   : > { %2505 = vrot.lane.b32.xlu0 %v8093_v43, %s11756_s30 }
 0x668   : > { %1327 = vrot.lane.b32.xlu1 %v1304_v46, %s7427_s18 }
 0x669   : > { %2091 = vrot.lane.b32.xlu0 %v1994_v32, %s11748_s29 }
 0x66c   : > { %1470 = vrot.lane.b32.xlu1 %v1447_v49, %s7428_s19 }
 0x66d   : > { %2597 = vrot.lane.b32.xlu0 %v8093_v43, %s11589_s5 }
 0x670   : > { %1605 = vrot.lane.b32.xlu1 %v1594_v50, %s11748_s29 }
 0x671   : > { %2183 = vrot.lane.b32.xlu0 %v1994_v32, %s11601_s6 }
 0x674   : > { %1417 = vrot.lane.b32.xlu1 %v1406_v52, %s7425_s14  ;;  %s11575_s14 = smov 30  }
 0x675   : > { %2403 = vrot.lane.b32.xlu0 %v8079_v35, %s11559_s7 }
 0x678   : > { %1570 = vrot.lane.b32.xlu1 %v1547_v54, %s7426_s17 }
 0x67c   : > { %1323 = vrot.lane.b32.xlu1 %v1302_v11, %s7427_s18  ;;  %s11616_s18 = smov 114  }
 0x680   : > { %1466 = vrot.lane.b32.xlu1 %v1445_v47, %s7428_s19  ;;  %s11583_s19 = smov 2  }
 0x684   : > { %1382 = vrot.lane.b32.xlu1 %v1359_v57, %s11589_s5 }
 0x688   : > { %1517 = vrot.lane.b32.xlu1 %v1506_v59, %s7424_s11  ;;  %v1670_v59 = vld [vmem:[#allocation3 + $0x120] sm:$0xff]  ;;  %s11579_s11 = smov 79  }
 0x68c   : > { %1566 = vrot.lane.b32.xlu1 %v1545_v61, %s7426_s17  ;;  %s11642_s17 = smov 115  }
 0x690   : > { %1378 = vrot.lane.b32.xlu1 %v1357_v62, %s11589_s5 }
 0x694   : > { %1636 = vrot.lane.b32.xlu1 %v1625_v0, %s7423_s10  ;;  %s11903_s10 = smov 17  }
 0x698   : > { %2001 = vrot.lane.b32.xlu1 %v1998_v48, %s11555_s26 }
 0x69c   : > { %2289 = vrot.lane.b32.xlu1 %v8172_v3, %s11753_s25 }
 0x6a0   : > { %2507 = vrot.lane.b32.xlu1 %v8179_v42, %s11756_s30 }
 0x6a4   : > { %2093 = vrot.lane.b32.xlu1 %v1998_v48, %s11748_s29 }
 0x6a8   : > { %2599 = vrot.lane.b32.xlu1 %v8179_v42, %s11589_s5 }
 0x6aa   : > { %v1320_v16 = vpop.permute.xlu1 %1319 }
 0x6ab   : > { %v1330_v14 = vsel %vm771_vm12, %v8067_v31, %v1320_v16  ;;  %v1600_v17 = vpop.permute.xlu0 %1599 }
 0x6ac   : > { %1338 = vst.msk [vmem:[#allocation3 + $0x10] sm:$0xff] %vm741_vm10, %v1330_v14  ;;  %1611 = vst.msk [vmem:[#allocation3 + $0x140] sm:$0xff] %vm741_vm10, %v1600_v17  ;;  %2185 = vrot.lane.b32.xlu1 %v1998_v48, %s11601_s6 }
 0x6ae   : > { %v1463_v60 = vpop.permute.xlu1 %1462 }
 0x6af   : > { %v1473_v18 = vsel %vm849_vm13, %v1461_v51, %v1463_v60  ;;  %v1412_v19 = vpop.permute.xlu0 %1411 }
 0x6b0   : > { %1481 = vst.msk [vmem:[#allocation3 + $0x50] sm:$0xff] %vm741_vm10, %v1473_v18  ;;  %1423 = vst.msk [vmem:[#allocation3 + $0x180] sm:$0xff] %vm741_vm10, %v1412_v19  ;;  %2405 = vrot.lane.b32.xlu1 %v8172_v3, %s11559_s7 }
 0x6b2   : > { %v1602_v20 = vpop.permute.xlu1 %1601 }
 0x6b3   : > { %1612 = vst.msk [vmem:[#allocation3 + $0x150] sm:$0xff] %vm741_vm10, %v1602_v20  ;;  %v1512_v22 = vpop.permute.xlu0 %1511 }
 0x6b4   : > { %1523 = vst.msk [vmem:[#allocation3 + $0x1c0] sm:$0xff] %vm741_vm10, %v1512_v22 }
 0x6b6   : > { %v1414_v23 = vpop.permute.xlu1 %1413 }
 0x6b7   : > { %1424 = vst.msk [vmem:[#allocation3 + $0x190] sm:$0xff] %vm741_vm10, %v1414_v23  ;;  %v1631_v26 = vpop.permute.xlu0 %1630  ;;  %v8277_v23 = vld [vmem:[%s11895_s1 + $0x340] ss:$8 sm:$0x3] }
 0x6b8   : > { %1642 = vst.msk [vmem:[#allocation3 + $0x200] sm:$0xff] %vm741_vm10, %v1631_v26 }
 0x6ba   : > { %v1563_v27 = vpop.permute.xlu1 %1562 }
 0x6bb   : > { %v1573_v58 = vsel %vm904_vm14, %v1561_v37, %v1563_v27  ;;  %v1604_v29 = vpop.permute.xlu0 %1603  ;;  %v1671_v37 = vld [vmem:[#allocation3 + $0x130] sm:$0xff]  ;;  %v8291_v27 = vld [vmem:[%s11895_s1 + $0x341] ss:$8 sm:$0x3] }
 0x6bc   : > { %1581 = vst.msk [vmem:[#allocation3 + $0x90] sm:$0xff] %vm741_vm10, %v1573_v58  ;;  %1613 = vst.msk [vmem:[#allocation3 + $0x160] sm:$0xff] %vm741_vm10, %v1604_v29  ;;  %v6944_v0 = vpack.c.bf16 %v1671_v37, %v1670_v59  ;;  %v1673_v29 = vld [vmem:[#allocation3 + $0x150] sm:$0xff] }
 0x6be   : > { %v1375_v30 = vpop.permute.xlu1 %1374  ;;  %v1677_v37 = vld [vmem:[#allocation3 + $0x190] sm:$0xff] }
 0x6bf   : > { %v1385_v31 = vsel %vm11779_vm8, %v1373_v1, %v1375_v30  ;;  %v8206_v32 = vpop.permute.xlu0 %1380  ;;  %v1684_v51 = vld [vmem:[#allocation3 + $0x200] sm:$0xff] }
 0x6c0   : > { %1393 = vst.msk [vmem:[#allocation3 + $0xd0] sm:$0xff] %vm741_vm10, %v1385_v31 }
 0x6c2   : > { %v1514_v33 = vpop.permute.xlu1 %1513 }
 0x6c3   : > { %1524 = vst.msk [vmem:[#allocation3 + $0x1d0] sm:$0xff] %vm741_vm10, %v1514_v33  ;;  %v1416_v34 = vpop.permute.xlu0 %1415  ;;  %v8299_v33 = vrot.slane %v8291_v27, %v7523_v5 }
 0x6c4   : > { %1425 = vst.msk [vmem:[#allocation3 + $0x1a0] sm:$0xff] %vm741_vm10, %v1416_v34 }
 0x6c5   : > { %11904 = vst [vmem:[#allocation10_spill] sm:$0xff] %v8299_v33 }
 0x6c6   : > { %v1633_v39 = vpop.permute.xlu1 %1632 }
 0x6c7   : > { %1643 = vst.msk [vmem:[#allocation3 + $0x210] sm:$0xff] %vm741_vm10, %v1633_v39  ;;  %v1516_v41 = vpop.permute.xlu0 %1515  ;;  %v1672_v39 = vld [vmem:[#allocation3 + $0x140] sm:$0xff] }
 0x6c8   : > { %1525 = vst.msk [vmem:[#allocation3 + $0x1e0] sm:$0xff] %vm741_vm10, %v1516_v41  ;;  %v8305_v41 = vld [vmem:[%s11895_s1 + $0x342] ss:$8 sm:$0x3] }
 0x6ca   : > { %v1316_v44 = vpop.permute.xlu1 %1315 }
 0x6cb   : > { %v1329_v46 = vsel %vm771_vm12, %v8053_v24, %v1316_v44  ;;  %v1635_v49 = vpop.permute.xlu0 %1634  ;;  %v6948_v44 = vpack.c.bf16 %v1673_v29, %v1672_v39 }
 0x6cc   : > { %1337 = vst.msk [vmem:[#allocation3] sm:$0xff] %vm741_vm10, %v1329_v46  ;;  %1644 = vst.msk [vmem:[#allocation3 + $0x220] sm:$0xff] %vm741_vm10, %v1635_v49 }
 0x6ce   : > { %v1459_v50 = vpop.permute.xlu1 %1458  ;;  %v1685_v52 = vld [vmem:[#allocation3 + $0x210] sm:$0xff] }
 0x6cf   : > { %v1472_v54 = vsel %vm849_vm13, %v8105_v15, %v1459_v50  ;;  %v6972_v11 = vpack.c.bf16 %v1685_v52, %v1684_v51  ;;  %v8219_v47 = vpop.permute.xlu0 %1999  ;;  %v1653_v15 = vld [vmem:[#allocation3 + $0x10] sm:$0xff]  ;;  %v8312_v51 = vrot.slane %v8305_v41, %v7523_v5 }
 0x6d0   : > { %1480 = vst.msk [vmem:[#allocation3 + $0x40] sm:$0xff] %vm741_vm10, %v1472_v54  ;;  %v2010_v57 = vmul.f32 %v7956_v38, %v8219_v47  ;;  %v1657_v50 = vld [vmem:[#allocation3 + $0x50] sm:$0xff]  ;;  %v1674_v54 = vld [vmem:[#allocation3 + $0x160] sm:$0xff] }
 0x6d1   : > { %6973 = vmatprep.subr.bf16.mxu0 %v6972_v11 }
 0x6d2   : > { %v1559_v24 = vpop.permute.xlu1 %1558  ;;  %6975 = vmatpush3.bf16.msra.mxu0 %v6972_v11  ;;  %2037 = vrot.lane.b32.xlu1 %v2010_v57, %s11903_s10  ;;  %v8317_v11 = vld [vmem:[%s11895_s1 + $0x343] ss:$8 sm:$0x3] }
 0x6d3   : > { %v1572_v61 = vsel %vm904_vm14, %v8135_v56, %v1559_v24  ;;  %v1652_v62 = vld [vmem:[#allocation3] sm:$0xff]  ;;  %2031 = vrot.lane.b32.xlu0 %v2010_v57, %s11903_s10  ;;  %v8233_v8 = vpop.permute.xlu0 %2287 }
 0x6d4   : > { %1580 = vst.msk [vmem:[#allocation3 + $0x80] sm:$0xff] %vm741_vm10, %v1572_v61  ;;  %v6942_v63 = vpack.c.bf16 %v1653_v15, %v1652_v62  ;;  %v2298_v1 = vmul.f32 %v7956_v38, %v8233_v8  ;;  %v8325_v15 = vrot.slane %v8317_v11, %v7523_v5 }
 0x6d6   : > { %v1371_v21 = vpop.permute.xlu1 %1370  ;;  %6943 = vmatpush3.bf16.msra.mxu1 %v6942_v63  ;;  %2691 = vrot.lane.b32.xlu1 %v8179_v42, %s11903_s10 }
 0x6d7   : > { %v1384_v48 = vsel %vm11779_vm8, %v8174_v12, %v1371_v21  ;;  %6945 = vmatprep.subr.bf16.mxu1 %v6944_v0  ;;  %2689 = vrot.lane.b32.xlu0 %v8093_v43, %s11903_s10  ;;  %v8248_v16 = vpop.permute.xlu0 %2505  ;;  %v1676_v0 = vld [vmem:[#allocation3 + $0x180] sm:$0xff] }
 0x6d8   : > { %1392 = vst.msk [vmem:[#allocation3 + $0xc0] sm:$0xff] %vm741_vm10, %v1384_v48  ;;  %v8331_v21 = vld [vmem:[%s11895_s1 + $0x344] ss:$8 sm:$0x3]  ;;  %v6956_v48 = vpack.c.bf16 %v1677_v37, %v1676_v0  ;;  %v1646_v37 = vld [vmem:[%s11900_s0 + $0x150] sm:$0xff] }
 0x6d9   : > { %v1649_v0 = vld [vmem:[%s11900_s0 + $0x188] sm:$0xff] }
 0x6da   : > { %v1328_v56 = vpop.permute.xlu1 %1327  ;;  %2049 = vrot.lane.b32.xlu1 %v2010_v57, %s11903_s10 }
 0x6db   : > { %v1332_v42 = vsel %vm771_vm12, %v8097_v45, %v1328_v56  ;;  %2043 = vrot.lane.b32.xlu0 %v2010_v57, %s11903_s10  ;;  %v2516_v45 = vmul.f32 %v7956_v38, %v8248_v16 }
 0x6dc   : > { %1340 = vst.msk [vmem:[#allocation3 + $0x30] sm:$0xff] %vm741_vm10, %v1332_v42 }
 0x6de   : > { %v1471_v12 = vpop.permute.xlu1 %1470  ;;  %2325 = vrot.lane.b32.xlu1 %v2298_v1, %s11559_s7 }
 0x6df   : > { %v1475_v43 = vsel %vm849_vm13, %v8129_v55, %v1471_v12  ;;  %2319 = vrot.lane.b32.xlu0 %v2298_v1, %s11559_s7  ;;  %v8259_v55 = vpop.permute.xlu0 %2091  ;;  %v1661_v12 = vld [vmem:[#allocation3 + $0x90] sm:$0xff] }
 0x6e0   : > { %1483 = vst.msk [vmem:[#allocation3 + $0x70] sm:$0xff] %vm741_vm10, %v1475_v43  ;;  %v2102_v18 = vmul.f32 %v7956_v38, %v8259_v55  ;;  %v8339_v43 = vrot.slane %v8331_v21, %v7523_v5 }
 0x6e2   : > { %v1606_v14 = vpop.permute.xlu1 %1605  ;;  %2337 = vrot.lane.b32.xlu1 %v2298_v1, %s11559_s7 }
 0x6e3   : > { %1614 = vst.msk [vmem:[#allocation3 + $0x170] sm:$0xff] %vm741_vm10, %v1606_v14  ;;  %2331 = vrot.lane.b32.xlu0 %v2298_v1, %s11559_s7 }
 0x6e6   : > { %v1418_v17 = vpop.permute.xlu1 %1417  ;;  %2543 = vrot.lane.b32.xlu1 %v2516_v45, %s11601_s6 }
 0x6e7   : > { %1426 = vst.msk [vmem:[#allocation3 + $0x1b0] sm:$0xff] %vm741_vm10, %v1418_v17  ;;  %2537 = vrot.lane.b32.xlu0 %v2516_v45, %s11601_s6  ;;  %v1659_v62 = vld [vmem:[#allocation3 + $0x70] sm:$0xff] }
 0x6e8   : > { %v8345_v17 = vld [vmem:[%s11895_s1 + $0x336] ss:$8 sm:$0x3] }
 0x6ea   : > { %v1571_v60 = vpop.permute.xlu1 %1570  ;;  %2555 = vrot.lane.b32.xlu1 %v2516_v45, %s11601_s6  ;;  %v1675_v49 = vld [vmem:[#allocation3 + $0x170] sm:$0xff] }
 0x6eb   : > { %v1575_v19 = vsel %vm904_vm14, %v8160_v4, %v1571_v60  ;;  %2549 = vrot.lane.b32.xlu0 %v2516_v45, %s11601_s6  ;;  %v6952_v57 = vpack.c.bf16 %v1675_v49, %v1674_v54  ;;  %v1678_v45 = vld [vmem:[#allocation3 + $0x1a0] sm:$0xff] }
 0x6ec   : > { %1583 = vst.msk [vmem:[#allocation3 + $0xb0] sm:$0xff] %vm741_vm10, %v1575_v19 }
 0x6ee   : > { %v1324_v20 = vpop.permute.xlu1 %1323  ;;  %2129 = vrot.lane.b32.xlu1 %v2102_v18, %s11589_s5  ;;  %v1679_v1 = vld [vmem:[#allocation3 + $0x1b0] sm:$0xff] }
 0x6ef   : > { %v1331_v22 = vsel %vm771_vm12, %v8082_v36, %v1324_v20  ;;  %2123 = vrot.lane.b32.xlu0 %v2102_v18, %s11589_s5  ;;  %v8285_v36 = vrot.slane %v8277_v23, %v7523_v5  ;;  %vm11765_vm12 = vcmask 1022976  }
 0x6f0   : > { %1339 = vst.msk [vmem:[#allocation3 + $0x20] sm:$0xff] %vm741_vm10, %v1331_v22  ;;  %v8352_v22 = vrot.slane %v8345_v17, %v7523_v5 }
 0x6f2   : > { %v1467_v4 = vpop.permute.xlu1 %1466  ;;  %2141 = vrot.lane.b32.xlu1 %v2102_v18, %s11589_s5 }
 0x6f3   : > { %v1474_v26 = vsel %vm849_vm13, %v8120_v53, %v1467_v4  ;;  %2135 = vrot.lane.b32.xlu0 %v2102_v18, %s11589_s5  ;;  %v1655_v53 = vld [vmem:[#allocation3 + $0x30] sm:$0xff]  ;;  %vm11766_vm13 = vcmask 1031168  }
 0x6f4   : > { %1482 = vst.msk [vmem:[#allocation3 + $0x60] sm:$0xff] %vm741_vm10, %v1474_v26  ;;  %v1681_v18 = vld [vmem:[#allocation3 + $0x1d0] sm:$0xff]  ;;  %v1680_v26 = vld [vmem:[#allocation3 + $0x1c0] sm:$0xff] }
 0x6f5   : > { %v1663_v20 = vld [vmem:[#allocation3 + $0xb0] sm:$0xff]  ;;  %v6964_v29 = vpack.c.bf16 %v1681_v18, %v1680_v26 }
 0x6f6   : > { %v1383_v58 = vpop.permute.xlu1 %1382 }
 0x6f7   : > { %v1387_v30 = vsel %vm11779_vm8, %v8206_v32, %v1383_v58  ;;  %v1654_v31 = vld [vmem:[#allocation3 + $0x20] sm:$0xff]  ;;  %3873 = vrot.lane.b32.xlu0 %v8285_v36, %s11555_s26  ;;  %v8357_v58 = vld [vmem:[%s11895_s1 + $0x337] ss:$8 sm:$0x3] }
 0x6f8   : > { %1395 = vst.msk [vmem:[#allocation3 + $0xf0] sm:$0xff] %vm741_vm10, %v1387_v30  ;;  %v6946_v34 = vpack.c.bf16 %v1655_v53, %v1654_v31  ;;  %v1656_v32 = vld [vmem:[#allocation3 + $0x40] sm:$0xff]  ;;  %v8365_v39 = vrot.slane %v8357_v58, %v7523_v5 }
 0x6f9   : > { %v6950_v52 = vpack.c.bf16 %v1657_v50, %v1656_v32  ;;  %v1664_v30 = vld [vmem:[#allocation3 + $0xc0] sm:$0xff] }
 0x6fa   : > { %v1518_v46 = vpop.permute.xlu1 %1517  ;;  %6947 = vmatpush3.bf16.msra.mxu1 %v6946_v34  ;;  %v1665_v34 = vld [vmem:[#allocation3 + $0xd0] sm:$0xff]  ;;  %v1682_v32 = vld [vmem:[#allocation3 + $0x1e0] sm:$0xff] }
 0x6fb   : > { %1526 = vst.msk [vmem:[#allocation3 + $0x1f0] sm:$0xff] %vm741_vm10, %v1518_v46  ;;  %6949 = vmatprep.subr.bf16.mxu1 %v6948_v44  ;;  %4243 = vrot.lane.b32.xlu0 %v8299_v33, %s11753_s25  ;;  %v1658_v24 = vld [vmem:[#allocation3 + $0x60] sm:$0xff]  ;;  %v6966_v44 = vpack.c.bf16 %v1665_v34, %v1664_v30  ;;  %v8459_v30 = vrot.slane %v8277_v23, %v7526_v6  ;;  %v1851_v23 = vld [vmem:[%s11895_s1 + $0x2b8] sm:$0xff] }
 0x6fc   : > { %v6954_v63 = vpack.c.bf16 %v1659_v62, %v1658_v24  ;;  %v1651_v62 = vld [vmem:[%s11900_s0 + $0x198] sm:$0xff]  ;;  %v8467_v34 = vrot.slane %v8291_v27, %v7526_v6  ;;  %v8484_v27 = vrot.slane %v8305_v41, %v7526_v6  ;;  %v1852_v41 = vld [vmem:[%s11895_s1 + $0x2c0] sm:$0xff] }
 0x6fe   : > { %v1567_v59 = vpop.permute.xlu1 %1566  ;;  %6951 = vmatpush3.bf16.msra.mxu1 %v6950_v52  ;;  %v1686_v52 = vld [vmem:[#allocation3 + $0x220] sm:$0xff]  ;;  %11910 = vst [vmem:[#allocation16_spill] sm:$0xff] %v8467_v34 }
 0x6ff   : > { %v1574_v61 = vsel %vm904_vm14, %v8146_v40, %v1567_v59  ;;  %6953 = vmatprep.subr.bf16.mxu1 %v6952_v57  ;;  %4566 = vrot.lane.b32.xlu0 %v8312_v51, %s11756_s30  ;;  %v1660_v40 = vld [vmem:[#allocation3 + $0x80] sm:$0xff]  ;;  %v1667_v24 = vld [vmem:[#allocation3 + $0xf0] sm:$0xff]  ;;  %vm11881_vm14 = vcmask 15360  }
 0x700   : > { %1582 = vst.msk [vmem:[#allocation3 + $0xa0] sm:$0xff] %vm741_vm10, %v1574_v61  ;;  %v6958_v14 = vpack.c.bf16 %v1661_v12, %v1660_v40  ;;  %v1650_v61 = vld [vmem:[%s11900_s0 + $0x190] sm:$0xff] }
 0x702   : > { %v1379_v56 = vpop.permute.xlu1 %1378  ;;  %6955 = vmatpush3.bf16.msra.mxu1 %v6954_v63  ;;  %v1683_v53 = vld [vmem:[#allocation3 + $0x1f0] sm:$0xff] }
 0x703   : > { %v1386_v42 = vsel %vm11779_vm8, %v8184_v13, %v1379_v56  ;;  %6957 = vmatprep.subr.bf16.mxu1 %v6956_v48  ;;  %4927 = vrot.lane.b32.xlu0 %v8325_v15, %s11616_s18  ;;  %v6960_v13 = vpack.c.bf16 %v1679_v1, %v1678_v45  ;;  %v6968_v46 = vpack.c.bf16 %v1683_v53, %v1682_v32  ;;  %v8421_v1 = vpop.permute.xlu0 %2597  ;;  %v1849_v32 = vld [vmem:[%s11895_s1 + $0x2a8] sm:$0xff] }
 0x704   : > { %1394 = vst.msk [vmem:[#allocation3 + $0xe0] sm:$0xff] %vm741_vm10, %v1386_v42 }
 0x706   : > { %v1637_v60 = vpop.permute.xlu1 %1636  ;;  %6959 = vmatpush3.bf16.msra.mxu1 %v6958_v14 }
 0x707   : > { %1645 = vst.msk [vmem:[#allocation3 + $0x230] sm:$0xff] %vm741_vm10, %v1637_v60  ;;  %6961 = vmatprep.subr.bf16.mxu1 %v6960_v13  ;;  %v1662_v19 = vld [vmem:[#allocation3 + $0xa0] sm:$0xff]  ;;  %5288 = vrot.lane.b32.xlu0 %v8339_v43, %s11642_s17  ;;  %v8429_v14 = vpop.permute.xlu0 %2183 }
 0x708   : > { %v6962_v4 = vpack.c.bf16 %v1663_v20, %v1662_v19 }
 0x70a   : > { %v8359_v31 = vpop.permute.xlu1 %2001  ;;  %6963 = vmatpush3.bf16.msra.mxu1 %v6962_v4 }
 0x70b   : > { %6965 = vmatprep.subr.bf16.mxu1 %v6964_v29  ;;  %3175 = vrot.lane.b32.xlu0 %v8352_v22, %s11646_s8  ;;  %v1666_v49 = vld [vmem:[#allocation3 + $0xe0] sm:$0xff]  ;;  %v8432_v45 = vpop.permute.xlu0 %2403 }
 0x70c   : > { %v6970_v59 = vpack.c.bf16 %v1667_v24, %v1666_v49  ;;  %v1853_v24 = vld [vmem:[%s11895_s1 + $0x2c8] sm:$0xff] }
 0x70e   : > { %v8367_v50 = vpop.permute.xlu1 %2289  ;;  %6967 = vmatpush3.bf16.msra.mxu1 %v6966_v44  ;;  %v1687_v54 = vld [vmem:[#allocation3 + $0x230] sm:$0xff] }
 0x70f   : > { %6969 = vmatprep.subr.bf16.mxu1 %v6968_v46  ;;  %v6976_v57 = vpack.c.bf16 %v1687_v54, %v1686_v52  ;;  %3550 = vrot.lane.b32.xlu0 %v8365_v39, %s11652_s27  ;;  %v1848_v46 = vld [vmem:[%s11895_s1 + $0x2a0] sm:$0xff]  ;;  %v6980_v52 = vpack.c.bf16 %v1851_v23, %v1849_v32  ;;  %v1850_v54 = vld [vmem:[%s11895_s1 + $0x2b0] sm:$0xff] }
 0x711   : > { %6977 = vmatprep.subr.bf16.mxu0 %v6976_v57 }
 0x712   : > { %v8371_v5 = vpop.permute.xlu1 %2507  ;;  %6971 = vmatpush3.bf16.msra.mxu1 %v6970_v59  ;;  %6979 = vmatpush3.bf16.msra.mxu0 %v6976_v57  ;;  %v6982_v57 = vpack.c.bf16 %v1850_v54, %v1848_v46  ;;  %v1855_v59 = vld [vmem:[%s11895_s1 + $0x2d8] sm:$0xff]  ;;  %v1856_v46 = vld [vmem:[%s11895_s1 + $0x2e0] sm:$0xff] }
 0x713   : > { %6836 = vmatprep.subr.mxu0 %v8168_v10  ;;  %3923 = vrot.lane.b32.xlu0 %v8285_v36, %s11748_s29 }
 0x715   : > { %1761 = vmatmul.mubr.f32.vlgmr.msra.gmra.mrb[12].mxu1 %v1646_v37  ;;  %v8504_v37 = vrot.slane %v8317_v11, %v7526_v6  ;;  %v1859_v11 = vld [vmem:[%s11895_s1 + $0x2f8] sm:$0xff] }
 0x716   : > { %v8385_v63 = vpop.permute.xlu1 %2093  ;;  %6837 = vmatpush3.msra.mxu0 %v8168_v10  ;;  %1765 = vmatprep.mubr.f32.mxu1 %v1650_v61 }
 0x717   : > { %6839 = vmatmul.mubr.msk.f32.vlgmr.msra.gmra.mrb[12].mxu0 %vm1689_vm15, %v1651_v62  ;;  %4616 = vrot.lane.b32.xlu0 %v8312_v51, %s11589_s5 }
 0x718   : > { %1940 = vmatprep.mubr.f32.mxu0 %v7956_v38  ;;  %6981 = vmatprep.subr.bf16.mxu0 %v6980_v52  ;;  %v1858_v52 = vld [vmem:[%s11895_s1 + $0x2f0] sm:$0xff] }
 0x719   : > { %1766 = vmatmul.mubr.f32.gmra.mrb[14].mxu1 %v1649_v0  ;;  %6983 = vmatpush1.bf16.msra.mxu0 %v6982_v57  ;;  %v6984_v0 = vpack.c.bf16 %v1855_v59, %v1853_v24  ;;  %v6990_v57 = vpack.c.bf16 %v1858_v52, %v1856_v46  ;;  %v1863_v59 = vld [vmem:[%s11895_s1 + $0x318] sm:$0xff] }
 0x71a   : > { %v8395_v48 = vpop.permute.xlu1 %2599 }
 0x71b   : > { %v2607_v40 = vmul.f32 %v7956_v38, %v8395_v48  ;;  %4977 = vrot.lane.b32.xlu0 %v8325_v15, %s11583_s19  ;;  %6985 = vmatprep.subr.bf16.mxu0 %v6984_v0 }
 0x71d   : > { %2633 = vrot.lane.b32.xlu1 %v2607_v40, %s11748_s29 }
 0x71e   : > { %v8408_v10 = vpop.permute.xlu1 %2185 }
 0x71f   : > { %5338 = vrot.lane.b32.xlu0 %v8339_v43, %s11577_s22  ;;  %v2193_v56 = vmul.f32 %v7956_v38, %v8408_v10 }
 0x721   : > { %2639 = vrot.lane.b32.xlu1 %v2607_v40, %s11748_s29 }
 0x722   : > { %v8424_v42 = vpop.permute.xlu1 %2405 }
 0x723   : > { %3227 = vrot.lane.b32.xlu0 %v8352_v22, %s11571_s23  ;;  %v2413_v12 = vmul.f32 %v7956_v38, %v8424_v42 }
 0x725   : > { %2645 = vrot.lane.b32.xlu1 %v2607_v40, %s11748_s29 }
 0x727   : > { %3602 = vrot.lane.b32.xlu0 %v8365_v39, %s11565_s28 }
 0x729   : > { %2651 = vrot.lane.b32.xlu1 %v2607_v40, %s11748_s29  ;;  %v1854_v40 = vld [vmem:[%s11895_s1 + $0x2d0] sm:$0xff] }
 0x72b   : > { %3973 = vrot.lane.b32.xlu0 %v8285_v36, %s11601_s6 }
 0x72d   : > { %2219 = vrot.lane.b32.xlu1 %v2193_v56, %s11756_s30 }
 0x72f   : > { %4305 = vrot.lane.b32.xlu0 %v8299_v33, %s11559_s7 }
 0x731   : > { %2225 = vrot.lane.b32.xlu1 %v2193_v56, %s11756_s30 }
 0x735   : > { %2231 = vrot.lane.b32.xlu1 %v2193_v56, %s11756_s30 }
 0x739   : > { %2237 = vrot.lane.b32.xlu1 %v2193_v56, %s11756_s30  ;;  %v6986_v56 = vpack.c.bf16 %v1854_v40, %v1852_v41  ;;  %v8548_v41 = vrot.slane %v8345_v17, %v7526_v6  ;;  %v1860_v40 = vld [vmem:[%s11895_s1 + $0x300] sm:$0xff]  ;;  %v8564_v17 = vrot.slane %v8357_v58, %v7526_v6 }
 0x73b   : > { %6987 = vmatpush1.bf16.msra.mxu0 %v6986_v56  ;;  %v1862_v56 = vld [vmem:[%s11895_s1 + $0x310] sm:$0xff] }
 0x73d   : > { %2439 = vrot.lane.b32.xlu1 %v2413_v12, %s11753_s25 }
 0x741   : > { %2445 = vrot.lane.b32.xlu1 %v2413_v12, %s11753_s25 }
 0x744   : > { %v8435_v13 = vpop.permute.xlu1 %2037 }
 0x745   : > { %11905 = vst [vmem:[#allocation11_spill] sm:$0xff] %v8435_v13  ;;  %2451 = vrot.lane.b32.xlu1 %v2413_v12, %s11753_s25  ;;  %v8438_v60 = vpop.permute.xlu0 %2031 }
 0x748   : > { %v8440_v18 = vpop.permute.xlu1 %2691 }
 0x749   : > { %2457 = vrot.lane.b32.xlu1 %v2413_v12, %s11753_s25  ;;  %v2699_v19 = vmul.f32 %v7956_v38, %v8440_v18  ;;  %v8445_v20 = vpop.permute.xlu0 %2689  ;;  %v1857_v12 = vld [vmem:[%s11895_s1 + $0x2e8] sm:$0xff] }
 0x74a   : > { %v6988_v23 = vpack.c.bf16 %v1859_v11, %v1857_v12  ;;  %v6994_v12 = vpack.c.bf16 %v1862_v56, %v1860_v40 }
 0x74c   : > { %v8506_v61 = vpop.permute.xlu1 %2049  ;;  %6989 = vmatprep.subr.bf16.mxu0 %v6988_v23 }
 0x74d   : > { %2725 = vrot.lane.b32.xlu1 %v2699_v19, %s11555_s26  ;;  %v8448_v4 = vpop.permute.xlu0 %2043  ;;  %11913 = vst [vmem:[#allocation19_spill] sm:$0xff] %v8506_v61  ;;  %6991 = vmatpush1.bf16.msra.mxu0 %v6990_v57 }
 0x74e   : > { %11906 = vst [vmem:[#allocation12_spill] sm:$0xff] %v8448_v4 }
 0x750   : > { %v8535_v24 = vpop.permute.xlu1 %2325 }
 0x751   : > { %2731 = vrot.lane.b32.xlu1 %v2699_v19, %s11555_s26  ;;  %v8451_v26 = vpop.permute.xlu0 %2319  ;;  %11916 = vst [vmem:[#allocation22_spill] sm:$0xff] %v8535_v24 }
 0x752   : > { %11907 = vst [vmem:[#allocation13_spill] sm:$0xff] %v8451_v26 }
 0x754   : > { %v8566_v23 = vpop.permute.xlu1 %2337 }
 0x755   : > { %2737 = vrot.lane.b32.xlu1 %v2699_v19, %s11555_s26  ;;  %v8454_v29 = vpop.permute.xlu0 %2331  ;;  %11918 = vst [vmem:[#allocation24_spill] sm:$0xff] %v8566_v23 }
 0x756   : > { %11908 = vst [vmem:[#allocation14_spill] sm:$0xff] %v8454_v29 }
 0x758   : > { %v8573_v52 = vpop.permute.xlu1 %2543 }
 0x759   : > { %2743 = vrot.lane.b32.xlu1 %v2699_v19, %s11555_s26  ;;  %v8461_v53 = vpop.permute.xlu0 %2537  ;;  %v8523_v19 = vrot.slane %v8331_v21, %v7526_v6  ;;  %v1861_v21 = vld [vmem:[%s11895_s1 + $0x308] sm:$0xff]  ;;  %11919 = vst [vmem:[#allocation25_spill] sm:$0xff] %v8573_v52 }
 0x75a   : > { %11909 = vst [vmem:[#allocation15_spill] sm:$0xff] %v8461_v53  ;;  %v6992_v0 = vpack.c.bf16 %v1863_v59, %v1861_v21 }
 0x75c   : > { %6993 = vmatprep.subr.bf16.mxu0 %v6992_v0  ;;  %v8586_v58 = vpop.permute.xlu1 %2555 }
 0x75d   : > { %3875 = vrot.lane.b32.xlu1 %v8459_v30, %s11555_s26  ;;  %v8469_v44 = vpop.permute.xlu0 %2549  ;;  %6995 = vmatpush1.bf16.msra.mxu0 %v6994_v12  ;;  %s11561_s26 = smov 18   ;;  %11921 = vst [vmem:[#allocation27_spill] sm:$0xff] %v8586_v58 }
 0x75e   : > { %11911 = vst [vmem:[#allocation17_spill] sm:$0xff] %v8469_v44 }
 0x760   : > { %v8596_v0 = vpop.permute.xlu1 %2129 }
 0x761   : > { %4245 = vrot.lane.b32.xlu1 %v8467_v34, %s11753_s25  ;;  %v8486_v49 = vpop.permute.xlu0 %2123  ;;  %11923 = vst [vmem:[#allocation29_spill] sm:$0xff] %v8596_v0 }
 0x762   : > { %11912 = vst [vmem:[#allocation18_spill] sm:$0xff] %v8486_v49 }
 0x764   : > { %v8605_v40 = vpop.permute.xlu1 %2141 }
 0x765   : > { %4568 = vrot.lane.b32.xlu1 %v8484_v27, %s11756_s30  ;;  %v8508_v62 = vpop.permute.xlu0 %2135  ;;  %11924 = vst [vmem:[#allocation30_spill] sm:$0xff] %v8605_v40 }
 0x766   : > { %11914 = vst [vmem:[#allocation20_spill] sm:$0xff] %v8508_v62 }
 0x769   : > { %4929 = vrot.lane.b32.xlu1 %v8504_v37, %s11616_s18  ;;  %v8525_v32 = vpop.permute.xlu0 %3873 }
 0x76a   : > { %11915 = vst [vmem:[#allocation21_spill] sm:$0xff] %v8525_v32  ;;  %v3881_v54 = vmul.f32 %v7956_v38, %v8525_v32 }
 0x76c   : > { %3893 = vrot.lane.b32.xlu0 %v3881_v54, %s11903_s10 }
 0x76d   : > { %5290 = vrot.lane.b32.xlu1 %v8523_v19, %s11642_s17  ;;  %v8556_v11 = vpop.permute.xlu0 %4243 }
 0x76e   : > { %11917 = vst [vmem:[#allocation23_spill] sm:$0xff] %v8556_v11  ;;  %v4251_v46 = vmul.f32 %v7956_v38, %v8556_v11 }
 0x770   : > { %4666 = vrot.lane.b32.xlu0 %v8312_v51, %s11903_s10 }
 0x771   : > { %3177 = vrot.lane.b32.xlu1 %v8548_v41, %s11646_s8  ;;  %v8575_v57 = vpop.permute.xlu0 %4566 }
 0x772   : > { %11920 = vst [vmem:[#allocation26_spill] sm:$0xff] %v8575_v57  ;;  %v4574_v6 = vmul.f32 %v7956_v38, %v8575_v57 }
 0x774   : > { %4263 = vrot.lane.b32.xlu0 %v4251_v46, %s11559_s7 }
 0x775   : > { %3552 = vrot.lane.b32.xlu1 %v8564_v17, %s11652_s27  ;;  %v8588_v21 = vpop.permute.xlu0 %4927 }
 0x776   : > { %11922 = vst [vmem:[#allocation28_spill] sm:$0xff] %v8588_v21  ;;  %v4935_v59 = vmul.f32 %v7956_v38, %v8588_v21  ;;  %v8613_v38 = vld [vmem:[#allocation2] sm:$0xff] }
 0x778   : > { %5027 = vrot.lane.b32.xlu0 %v8325_v15, %s11561_s26 }
 0x779   : > { %3925 = vrot.lane.b32.xlu1 %v8459_v30, %s11748_s29  ;;  %v8607_v56 = vpop.permute.xlu0 %5288 }
 0x77a   : > { %11925 = vst [vmem:[#allocation31_spill] sm:$0xff] %v8607_v56  ;;  %v5296_v12 = vmul.f32 %v8613_v38, %v8607_v56 }
 0x77c   : > { %4586 = vrot.lane.b32.xlu0 %v4574_v6, %s11601_s6 }
 0x77d   : > { %4618 = vrot.lane.b32.xlu1 %v8484_v27, %s11589_s5  ;;  %v8630_v49 = vpop.permute.xlu0 %3175 }
 0x77e   : > { %11929 = vst [vmem:[#allocation35_spill] sm:$0xff] %v8630_v49 }
 0x780   : > { %5388 = vrot.lane.b32.xlu0 %v8339_v43, %s11563_s12 }
 0x781   : > { %4979 = vrot.lane.b32.xlu1 %v8504_v37, %s11583_s19 }
 0x784   : > { %4947 = vrot.lane.b32.xlu0 %v4935_v59, %s11565_s28 }
 0x785   : > { %5340 = vrot.lane.b32.xlu1 %v8523_v19, %s11577_s22 }
 0x788   : > { %3019 = vrot.lane.b32.xlu0 %v8352_v22, %s11567_s13 }
 0x789   : > { %3229 = vrot.lane.b32.xlu1 %v8548_v41, %s11571_s23 }
 0x78c   : > { %3279 = vrot.lane.b32.xlu0 %v8352_v22, %s11569_s20 }
 0x78d   : > { %3604 = vrot.lane.b32.xlu1 %v8564_v17, %s11565_s28 }
 0x78f   : > { %v8617_v2 = vpop.permute.xlu1 %2633 }
 0x790   : > { %11926 = vst [vmem:[#allocation32_spill] sm:$0xff] %v8617_v2  ;;  %5308 = vrot.lane.b32.xlu0 %v5296_v12, %s11571_s23  ;;  %v3184_v2 = vmul.f32 %v8613_v38, %v8630_v49 }
 0x791   : > { %3975 = vrot.lane.b32.xlu1 %v8459_v30, %s11601_s6 }
 0x793   : > { %v8622_v62 = vpop.permute.xlu1 %2639 }
 0x794   : > { %11927 = vst [vmem:[#allocation33_spill] sm:$0xff] %v8622_v62  ;;  %3394 = vrot.lane.b32.xlu0 %v8365_v39, %s11573_s21 }
 0x795   : > { %4307 = vrot.lane.b32.xlu1 %v8467_v34, %s11559_s7 }
 0x797   : > { %v8628_v40 = vpop.permute.xlu1 %2645 }
 0x798   : > { %11928 = vst [vmem:[#allocation34_spill] sm:$0xff] %v8628_v40  ;;  %3654 = vrot.lane.b32.xlu0 %v8365_v39, %s11575_s14 }
 0x799   : > { %3899 = vrot.lane.b32.xlu1 %v3881_v54, %s11903_s10  ;;  %v8649_v54 = vpop.permute.xlu0 %3550 }
 0x79a   : > { %11933 = vst [vmem:[#allocation39_spill] sm:$0xff] %v8649_v54 }
 0x79b   : > { %v8637_v62 = vpop.permute.xlu1 %2651 }
 0x79c   : > { %11930 = vst [vmem:[#allocation36_spill] sm:$0xff] %v8637_v62  ;;  %3196 = vrot.lane.b32.xlu0 %v3184_v2, %s11577_s22 }
 0x79d   : > { %4668 = vrot.lane.b32.xlu1 %v8484_v27, %s11903_s10  ;;  %v8669_v44 = vpop.permute.xlu0 %3923 }
 0x79e   : > { %11937 = vst [vmem:[#allocation43_spill] sm:$0xff] %v8669_v44 }
 0x79f   : > { %v8642_v0 = vpop.permute.xlu1 %2219 }
 0x7a0   : > { %11931 = vst [vmem:[#allocation37_spill] sm:$0xff] %v8642_v0  ;;  %3769 = vrot.lane.b32.xlu0 %v8285_v36, %s11579_s11  ;;  %v3559_v0 = vmul.f32 %v8613_v38, %v8649_v54 }
 0x7a1   : > { %4269 = vrot.lane.b32.xlu1 %v4251_v46, %s11559_s7  ;;  %s11585_s7 = smov 80  }
 0x7a3   : > { %v8647_v40 = vpop.permute.xlu1 %2225 }
 0x7a4   : > { %11932 = vst [vmem:[#allocation38_spill] sm:$0xff] %v8647_v40  ;;  %4023 = vrot.lane.b32.xlu0 %v8285_v36, %s11581_s9 }
 0x7a5   : > { %5029 = vrot.lane.b32.xlu1 %v8504_v37, %s11561_s26  ;;  %s11587_s26 = smov 32  }
 0x7a7   : > { %v8657_v62 = vpop.permute.xlu1 %2231 }
 0x7a8   : > { %11934 = vst [vmem:[#allocation40_spill] sm:$0xff] %v8657_v62  ;;  %3571 = vrot.lane.b32.xlu0 %v3559_v0, %s11583_s19 }
 0x7a9   : > { %4592 = vrot.lane.b32.xlu1 %v4574_v6, %s11601_s6  ;;  %v3931_v6 = vmul.f32 %v8613_v38, %v8669_v44  ;;  %s11732_s6 = smov 99  }
 0x7ab   : > { %v8661_v46 = vpop.permute.xlu1 %2237 }
 0x7ac   : > { %11935 = vst [vmem:[#allocation41_spill] sm:$0xff] %v8661_v46  ;;  %4140 = vrot.lane.b32.xlu0 %v8299_v33, %s11585_s7 }
 0x7ad   : > { %5390 = vrot.lane.b32.xlu1 %v8523_v19, %s11563_s12  ;;  %s11593_s12 = smov 81  }
 0x7af   : > { %v8667_v40 = vpop.permute.xlu1 %2439 }
 0x7b0   : > { %11936 = vst [vmem:[#allocation42_spill] sm:$0xff] %v8667_v40  ;;  %4355 = vrot.lane.b32.xlu0 %v8299_v33, %s11587_s26 }
 0x7b1   : > { %4953 = vrot.lane.b32.xlu1 %v4935_v59, %s11565_s28  ;;  %s11597_s28 = smov 33  }
 0x7b3   : > { %v8676_v62 = vpop.permute.xlu1 %2445 }
 0x7b4   : > { %11938 = vst [vmem:[#allocation44_spill] sm:$0xff] %v8676_v62  ;;  %3943 = vrot.lane.b32.xlu0 %v3931_v6, %s11589_s5 }
 0x7b5   : > { %3021 = vrot.lane.b32.xlu1 %v8548_v41, %s11567_s13  ;;  %s11595_s13 = smov 82  }
 0x7b7   : > { %v8681_v46 = vpop.permute.xlu1 %2451 }
 0x7b8   : > { %11939 = vst [vmem:[#allocation45_spill] sm:$0xff] %v8681_v46  ;;  %4466 = vrot.lane.b32.xlu0 %v8312_v51, %s11593_s12 }
 0x7b9   : > { %3281 = vrot.lane.b32.xlu1 %v8548_v41, %s11569_s20  ;;  %s11599_s20 = smov 34  }
 0x7bb   : > { %v8687_v59 = vpop.permute.xlu1 %2457 }
 0x7bc   : > { %11940 = vst [vmem:[#allocation46_spill] sm:$0xff] %v8687_v59  ;;  %4716 = vrot.lane.b32.xlu0 %v8312_v51, %s11597_s28 }
 0x7bd   : > { %5314 = vrot.lane.b32.xlu1 %v5296_v12, %s11571_s23  ;;  %s11673_s23 = smov 83  }
 0x7bf   : > { %v8692_v40 = vpop.permute.xlu1 %2725 }
 0x7c0   : > { %11941 = vst [vmem:[#allocation47_spill] sm:$0xff] %v8692_v40  ;;  %4827 = vrot.lane.b32.xlu0 %v8325_v15, %s11595_s13 }
 0x7c1   : > { %3396 = vrot.lane.b32.xlu1 %v8564_v17, %s11573_s21  ;;  %s11718_s21 = smov 35  }
 0x7c3   : > { %v8698_v46 = vpop.permute.xlu1 %2731 }
 0x7c4   : > { %11942 = vst [vmem:[#allocation48_spill] sm:$0xff] %v8698_v46  ;;  %5077 = vrot.lane.b32.xlu0 %v8325_v15, %s11599_s20 }
 0x7c5   : > { %3656 = vrot.lane.b32.xlu1 %v8564_v17, %s11575_s14  ;;  %s11675_s14 = smov 93  }
 0x7c7   : > { %v8704_v59 = vpop.permute.xlu1 %2737 }
 0x7c8   : > { %11943 = vst [vmem:[#allocation49_spill] sm:$0xff] %v8704_v59  ;;  %5188 = vrot.lane.b32.xlu0 %v8339_v43, %s11673_s23 }
 0x7c9   : > { %3202 = vrot.lane.b32.xlu1 %v3184_v2, %s11577_s22  ;;  %s11716_s22 = smov 45  }
 0x7cb   : > { %v8709_v12 = vpop.permute.xlu1 %2743 }
 0x7cc   : > { %11944 = vst [vmem:[#allocation50_spill] sm:$0xff] %v8709_v12  ;;  %5438 = vrot.lane.b32.xlu0 %v8339_v43, %s11718_s21 }
 0x7cd   : > { %3771 = vrot.lane.b32.xlu1 %v8459_v30, %s11579_s11  ;;  %s11677_s11 = smov 94  }
 0x7cf   : > { %v8715_v40 = vpop.permute.xlu1 %3875 }
 0x7d0   : > { %11945 = vst [vmem:[#allocation51_spill] sm:$0xff] %v8715_v40  ;;  %3071 = vrot.lane.b32.xlu0 %v8352_v22, %s11675_s14 }
 0x7d1   : > { %4025 = vrot.lane.b32.xlu1 %v8459_v30, %s11581_s9  ;;  %s11707_s9 = smov 46  }
 0x7d3   : > { %v8721_v59 = vpop.permute.xlu1 %4245 }
 0x7d4   : > { %11946 = vst [vmem:[#allocation52_spill] sm:$0xff] %v8721_v59  ;;  %3331 = vrot.lane.b32.xlu0 %v8352_v22, %s11716_s22 }
 0x7d5   : > { %3577 = vrot.lane.b32.xlu1 %v3559_v0, %s11583_s19  ;;  %s11689_s19 = smov 95  }
 0x7d7   : > { %v8726_v2 = vpop.permute.xlu1 %4568 }
 0x7d8   : > { %11947 = vst [vmem:[#allocation53_spill] sm:$0xff] %v8726_v2  ;;  %3446 = vrot.lane.b32.xlu0 %v8365_v39, %s11677_s11 }
 0x7d9   : > { %4142 = vrot.lane.b32.xlu1 %v8467_v34, %s11585_s7  ;;  %s11693_s7 = smov 47  }
 0x7db   : > { %v8732_v12 = vpop.permute.xlu1 %4929 }
 0x7dc   : > { %11948 = vst [vmem:[#allocation54_spill] sm:$0xff] %v8732_v12  ;;  %3706 = vrot.lane.b32.xlu0 %v8365_v39, %s11707_s9 }
 0x7dd   : > { %4357 = vrot.lane.b32.xlu1 %v8467_v34, %s11587_s26  ;;  %s11697_s26 = smov 96  }
 0x7df   : > { %v8738_v46 = vpop.permute.xlu1 %5290 }
 0x7e0   : > { %11949 = vst [vmem:[#allocation55_spill] sm:$0xff] %v8738_v46  ;;  %3821 = vrot.lane.b32.xlu0 %v8285_v36, %s11689_s19 }
 0x7e1   : > { %3949 = vrot.lane.b32.xlu1 %v3931_v6, %s11589_s5  ;;  %s11702_s5 = smov 48  }
 0x7e3   : > { %v8743_v0 = vpop.permute.xlu1 %3177 }
 0x7e4   : > { %11950 = vst [vmem:[#allocation56_spill] sm:$0xff] %v8743_v0  ;;  %4075 = vrot.lane.b32.xlu0 %v8285_v36, %s11693_s7 }
 0x7e5   : > { %4468 = vrot.lane.b32.xlu1 %v8484_v27, %s11593_s12  ;;  %s11704_s12 = smov 97  }
 0x7e7   : > { %v8749_v62 = vpop.permute.xlu1 %3552 }
 0x7e8   : > { %11951 = vst [vmem:[#allocation57_spill] sm:$0xff] %v8749_v62  ;;  %v6783_v58 = vpop.f32.mrb[12].mxu1  ;;  %4191 = vrot.lane.b32.xlu0 %v8299_v33, %s11697_s26 }
 0x7e9   : > { %v6784_v53 = vpop.f32.mrb[13].mxu1  ;;  %4718 = vrot.lane.b32.xlu1 %v8484_v27, %s11597_s28  ;;  %s11720_s28 = smov 98  }
 0x7ea   : > { %v6785_v6 = vadd.f32 %v6784_v53, %v6783_v58  ;;  %v6840_v52 = vpop.f32.mrb[12].mxu0 }
 0x7eb   : > { %v1837_v29 = vpop.f32.mrb[13].mxu0  ;;  %v8755_v23 = vpop.permute.xlu1 %3925 }
 0x7ec   : > { %11952 = vst [vmem:[#allocation58_spill] sm:$0xff] %v8755_v23  ;;  %v1838_v36 = vadd.f32 %v6785_v6, %v1837_v29  ;;  %v6786_v26 = vpop.f32.mrb[14].mxu1  ;;  %4405 = vrot.lane.b32.xlu0 %v8299_v33, %s11702_s5 }
 0x7ed   : > { %v6787_v24 = vpop.f32.mrb[15].mxu1  ;;  %4829 = vrot.lane.b32.xlu1 %v8504_v37, %s11595_s13  ;;  %s11711_s13 = smov 49  }
 0x7ee   : > { %v1846_v44 = vmax.f32 %v1838_v36, 0.0  ;;  %v6788_v61 = vadd.f32 %v6787_v24, %v6786_v26 }
 0x7ef   : > { %v8761_v4 = vpop.permute.xlu1 %4618 }
 0x7f0   : > { %11953 = vst [vmem:[#allocation59_spill] sm:$0xff] %v8761_v4  ;;  %v1843_v54 = vadd.f32 %v6840_v52, %v6788_v61  ;;  %6669 = vmatmul.mubr.msk.f32.vlgmr.msra.gmra.mrb[14].mxu0 %vm741_vm10, %v1846_v44  ;;  %4516 = vrot.lane.b32.xlu0 %v8312_v51, %s11704_s12  ;;  %v4626_v29 = vmul.f32 %v8613_v38, %v8761_v4 }
 0x7f1   : > { %5079 = vrot.lane.b32.xlu1 %v8504_v37, %s11599_s20  ;;  %1946 = vmatprep.mubr.f32.mxu0 %v8613_v38  ;;  %s11728_s20 = smov 50  }
 0x7f2   : > { %v1847_v53 = vmax.f32 %v1843_v54, 0.0 }
 0x7f3   : > { %v8771_v58 = vpop.permute.xlu1 %4979 }
 0x7f4   : > { %11954 = vst [vmem:[#allocation60_spill] sm:$0xff] %v8771_v58  ;;  %6670 = vmatmul.mubr.msk.f32.gmra.mrb[16].mxu0 %vm741_vm10, %v1847_v53  ;;  %4766 = vrot.lane.b32.xlu0 %v8312_v51, %s11711_s13  ;;  %v4987_v51 = vmul.f32 %v8613_v38, %v8771_v58 }
 0x7f5   : > { %4640 = vrot.lane.b32.xlu1 %v4626_v29, %s11748_s29  ;;  %1952 = vmatprep.mubr.f32.mxu0 %v8613_v38 }
 0x7f7   : > { %v8778_v26 = vpop.permute.xlu1 %5340 }
 0x7f8   : > { %11955 = vst [vmem:[#allocation61_spill] sm:$0xff] %v8778_v26  ;;  %6671 = vmatmul.mubr.msk.f32.gmra.mrb[18].mxu0 %vm741_vm10, %v7810_v25  ;;  %4877 = vrot.lane.b32.xlu0 %v8325_v15, %s11720_s28  ;;  %v5348_v52 = vmul.f32 %v8613_v38, %v8778_v26 }
 0x7f9   : > { %4646 = vrot.lane.b32.xlu1 %v4626_v29, %s11748_s29  ;;  %1958 = vmatprep.mubr.f32.mxu0 %v8613_v38 }
 0x7fb   : > { %v8786_v44 = vpop.permute.xlu1 %3229 }
 0x7fc   : > { %11956 = vst [vmem:[#allocation62_spill] sm:$0xff] %v8786_v44  ;;  %6672 = vmatmul.mubr.msk.f32.gmra.mrb[20].mxu0 %vm741_vm10, %v7814_v28  ;;  %5127 = vrot.lane.b32.xlu0 %v8325_v15, %s11728_s20  ;;  %v3238_v53 = vmul.f32 %v8613_v38, %v8786_v44  ;;  %vm11755_vm10 = vcmask 941056  }
 0x7fd   : > { %5190 = vrot.lane.b32.xlu1 %v8523_v19, %s11673_s23  ;;  %s11750_s23 = smov 110  }
 0x7ff   : > { %v8794_v25 = vpop.permute.xlu1 %3604 }
 0x800   : > { %11957 = vst [vmem:[#allocation63_spill] sm:$0xff] %v8794_v25  ;;  %5238 = vrot.lane.b32.xlu0 %v8339_v43, %s11732_s6  ;;  %v3613_v44 = vmul.f32 %v8613_v38, %v8794_v25 }
 0x801   : > { %5440 = vrot.lane.b32.xlu1 %v8523_v19, %s11718_s21 }
 0x803   : > { %v8802_v28 = vpop.permute.xlu1 %3975 }
 0x804   : > { %11958 = vst [vmem:[#allocation64_spill] sm:$0xff] %v8802_v28 }
 0x805   : > { %5001 = vrot.lane.b32.xlu1 %v4987_v51, %s11652_s27 }
 0x807   : > { %v8805_v15 = vpop.permute.xlu1 %4307 }
 0x808   : > { %11959 = vst [vmem:[#allocation65_spill] sm:$0xff] %v8805_v15 }
 0x809   : > { %5007 = vrot.lane.b32.xlu1 %v4987_v51, %s11652_s27  ;;  %s12020_s27 = smov 1  }
 0x80b   : > { %v8808_v61 = vpop.permute.xlu1 %3899 }
 0x80c   : > { %11960 = vst [vmem:[#allocation66_spill] sm:$0xff] %v8808_v61 }
 0x80d   : > { %3073 = vrot.lane.b32.xlu1 %v8548_v41, %s11675_s14  ;;  %s11745_s14 = smov 109  }
 0x80f   : > { %v8812_v24 = vpop.permute.xlu1 %4668 }
 0x810   : > { %11961 = vst [vmem:[#allocation67_spill] sm:$0xff] %v8812_v24 }
 0x811   : > { %3333 = vrot.lane.b32.xlu1 %v8548_v41, %s11716_s22 }
 0x813   : > { %v8818_v54 = vpop.permute.xlu1 %4269 }
 0x814   : > { %11962 = vst [vmem:[#allocation68_spill] sm:$0xff] %v8818_v54 }
 0x815   : > { %5362 = vrot.lane.b32.xlu1 %v5348_v52, %s11646_s8 }
 0x817   : > { %v8821_v6 = vpop.permute.xlu1 %5029 }
 0x819   : > { %5368 = vrot.lane.b32.xlu1 %v5348_v52, %s11646_s8  ;;  %s12017_s8 = smov 15  }
 0x81b   : > { %v8824_v36 = vpop.permute.xlu1 %4592 }
 0x81c   : > { %11963 = vst [vmem:[#allocation69_spill] sm:$0xff] %v8824_v36  ;;  %v8844_v36 = vpop.permute.xlu0 %4616 }
 0x81d   : > { %3448 = vrot.lane.b32.xlu1 %v8564_v17, %s11677_s11  ;;  %11966 = vst [vmem:[#allocation72_spill] sm:$0xff] %v8844_v36  ;;  %s11741_s11 = smov 51  }
 0x81f   : > { %v8828_v29 = vpop.permute.xlu1 %5390 }
 0x821   : > { %3708 = vrot.lane.b32.xlu1 %v8564_v17, %s11707_s9 }
 0x823   : > { %v8834_v51 = vpop.permute.xlu1 %4953 }
 0x824   : > { %11964 = vst [vmem:[#allocation70_spill] sm:$0xff] %v8834_v51 }
 0x825   : > { %3252 = vrot.lane.b32.xlu1 %v3238_v53, %s11642_s17 }
 0x827   : > { %v8837_v54 = vpop.permute.xlu1 %3021 }
 0x828   : > { %11965 = vst [vmem:[#allocation71_spill] sm:$0xff] %v8837_v54  ;;  %v8854_v54 = vpop.permute.xlu0 %4977 }
 0x829   : > { %3258 = vrot.lane.b32.xlu1 %v3238_v53, %s11642_s17  ;;  %11969 = vst [vmem:[#allocation75_spill] sm:$0xff] %v8854_v54  ;;  %s12016_s17 = smov 16  }
 0x82b   : > { %v8840_v52 = vpop.permute.xlu1 %3281 }
 0x82c   : > { %v8860_v26 = vpop.permute.xlu0 %5338 }
 0x82d   : > { %3823 = vrot.lane.b32.xlu1 %v8459_v30, %s11689_s19  ;;  %11970 = vst [vmem:[#allocation76_spill] sm:$0xff] %v8860_v26 }
 0x82f   : > { %v8846_v61 = vpop.permute.xlu1 %5314 }
 0x830   : > { %11967 = vst [vmem:[#allocation73_spill] sm:$0xff] %v8846_v61  ;;  %v8866_v25 = vpop.permute.xlu0 %3227 }
 0x831   : > { %4077 = vrot.lane.b32.xlu1 %v8459_v30, %s11693_s7  ;;  %11972 = vst [vmem:[#allocation78_spill] sm:$0xff] %v8866_v25  ;;  %v3983_v30 = vmul.f32 %v8613_v38, %v8802_v28 }
 0x833   : > { %v8852_v51 = vpop.permute.xlu1 %3396 }
 0x834   : > { %11968 = vst [vmem:[#allocation74_spill] sm:$0xff] %v8852_v51 }
 0x835   : > { %3627 = vrot.lane.b32.xlu1 %v3613_v44, %s11616_s18 }
 0x837   : > { %v8857_v53 = vpop.permute.xlu1 %3656 }
 0x839   : > { %3633 = vrot.lane.b32.xlu1 %v3613_v44, %s11616_s18  ;;  %v8875_v44 = vpop.permute.xlu0 %3602  ;;  %s11984_s18 = smov 111  }
 0x83a   : > { %11974 = vst [vmem:[#allocation80_spill] sm:$0xff] %v8875_v44 }
 0x83b   : > { %v8864_v61 = vpop.permute.xlu1 %3202 }
 0x83c   : > { %11971 = vst [vmem:[#allocation77_spill] sm:$0xff] %v8864_v61  ;;  %v4315_v61 = vmul.f32 %v8613_v38, %v8805_v15 }
 0x83d   : > { %4193 = vrot.lane.b32.xlu1 %v8467_v34, %s11697_s26  ;;  %v8880_v54 = vpop.permute.xlu0 %3973 }
 0x83e   : > { %11975 = vst [vmem:[#allocation81_spill] sm:$0xff] %v8880_v54 }
 0x83f   : > { %v8872_v51 = vpop.permute.xlu1 %3771 }
 0x840   : > { %11973 = vst [vmem:[#allocation79_spill] sm:$0xff] %v8872_v51 }
 0x841   : > { %4407 = vrot.lane.b32.xlu1 %v8467_v34, %s11702_s5  ;;  %v8890_v51 = vpop.permute.xlu0 %4305 }
 0x842   : > { %11977 = vst [vmem:[#allocation83_spill] sm:$0xff] %v8890_v51 }
 0x843   : > { %v8878_v26 = vpop.permute.xlu1 %4025 }
 0x845   : > { %3997 = vrot.lane.b32.xlu1 %v3983_v30, %s11756_s30  ;;  %v8895_v44 = vpop.permute.xlu0 %3893 }
 0x846   : > { %11979 = vst [vmem:[#allocation85_spill] sm:$0xff] %v8895_v44 }
 0x847   : > { %v8886_v28 = vpop.permute.xlu1 %3577 }
 0x848   : > { %11976 = vst [vmem:[#allocation82_spill] sm:$0xff] %v8886_v28 }
 0x849   : > { %4003 = vrot.lane.b32.xlu1 %v3983_v30, %s11756_s30  ;;  %v8902_v15 = vpop.permute.xlu0 %4666 }
 0x84a   : > { %11981 = vst [vmem:[#allocation87_spill] sm:$0xff] %v8902_v15 }
 0x84b   : > { %v8893_v30 = vpop.permute.xlu1 %4142 }
 0x84c   : > { %11978 = vst [vmem:[#allocation84_spill] sm:$0xff] %v8893_v30 }
 0x84d   : > { %4518 = vrot.lane.b32.xlu1 %v8484_v27, %s11704_s12  ;;  %v8910_v30 = vpop.permute.xlu0 %4263 }
 0x84e   : > { %11983 = vst [vmem:[#allocation89_spill] sm:$0xff] %v8910_v30 }
 0x84f   : > { %v8898_v54 = vpop.permute.xlu1 %4357 }
 0x850   : > { %11980 = vst [vmem:[#allocation86_spill] sm:$0xff] %v8898_v54 }
 0x851   : > { %4768 = vrot.lane.b32.xlu1 %v8484_v27, %s11711_s13  ;;  %v4676_v27 = vmul.f32 %v8613_v38, %v8812_v24  ;;  %v8916_v44 = vpop.permute.xlu0 %5027 }
 0x852   : > { %11986 = vst [vmem:[#allocation91_spill] sm:$0xff] %v8916_v44 }
 0x853   : > { %v8908_v28 = vpop.permute.xlu1 %3949 }
 0x854   : > { %11982 = vst [vmem:[#allocation88_spill] sm:$0xff] %v8908_v28 }
 0x855   : > { %4329 = vrot.lane.b32.xlu1 %v4315_v61, %s11753_s25  ;;  %v8922_v24 = vpop.permute.xlu0 %4586 }
 0x856   : > { %11988 = vst [vmem:[#allocation93_spill] sm:$0xff] %v8922_v24 }
 0x859   : > { %4335 = vrot.lane.b32.xlu1 %v4315_v61, %s11753_s25  ;;  %v8913_v61 = vpop.permute.xlu1 %4468  ;;  %v8926_v28 = vpop.permute.xlu0 %5388 }
 0x85a   : > { %11985 = vst [vmem:[#allocation90_spill] sm:$0xff] %v8913_v61  ;;  %11990 = vst [vmem:[#allocation95_spill] sm:$0xff] %v8926_v28 }
 0x85d   : > { %4879 = vrot.lane.b32.xlu1 %v8504_v37, %s11720_s28  ;;  %v8920_v15 = vpop.permute.xlu1 %4718  ;;  %v8930_v51 = vpop.permute.xlu0 %4947 }
 0x85e   : > { %11987 = vst [vmem:[#allocation92_spill] sm:$0xff] %v8920_v15  ;;  %11992 = vst [vmem:[#allocation97_spill] sm:$0xff] %v8930_v51 }
 0x861   : > { %5129 = vrot.lane.b32.xlu1 %v8504_v37, %s11728_s20  ;;  %v8924_v37 = vpop.permute.xlu1 %4829 }
 0x862   : > { %11989 = vst [vmem:[#allocation94_spill] sm:$0xff] %v8924_v37 }
 0x865   : > { %4690 = vrot.lane.b32.xlu1 %v4676_v27, %s11984_s18  ;;  %v8928_v30 = vpop.permute.xlu1 %5079 }
 0x866   : > { %11991 = vst [vmem:[#allocation96_spill] sm:$0xff] %v8928_v30 }
 0x869   : > { %4696 = vrot.lane.b32.xlu1 %v4676_v27, %s11984_s18  ;;  %v8932_v61 = vpop.permute.xlu1 %4640  ;;  %v8934_v27 = vpop.permute.xlu0 %3019 }
 0x86a   : > { %11993 = vst [vmem:[#allocation98_spill] sm:$0xff] %v8932_v61 }
 0x86d   : > { %5240 = vrot.lane.b32.xlu1 %v8523_v19, %s11732_s6  ;;  %v8936_v44 = vpop.permute.xlu1 %4646  ;;  %v8938_v25 = vpop.permute.xlu0 %3279 }
 0x86e   : > { %11994 = vst [vmem:[#allocation99_spill] sm:$0xff] %v8936_v44  ;;  %11995 = vst [vmem:[#allocation100_spill] sm:$0xff] %v8938_v25 }
 0x871   : > { %v8940_v58 = vpop.permute.xlu1 %5190  ;;  %v8942_v36 = vpop.permute.xlu0 %5308 }
 0x872   : > { %11996 = vst [vmem:[#allocation101_spill] sm:$0xff] %v8940_v58  ;;  %11997 = vst [vmem:[#allocation102_spill] sm:$0xff] %v8942_v36 }
 0x875   : > { %v8944_v24 = vpop.permute.xlu1 %5440  ;;  %v8946_v37 = vpop.permute.xlu0 %3394 }
 0x876   : > { %11998 = vst [vmem:[#allocation103_spill] sm:$0xff] %v8944_v24 }
 0x879   : > { %v8948_v28 = vpop.permute.xlu1 %5001  ;;  %v8950_v4 = vpop.permute.xlu0 %3654 }
 0x87a   : > { %11999 = vst [vmem:[#allocation104_spill] sm:$0xff] %v8948_v28  ;;  %12000 = vst [vmem:[#allocation105_spill] sm:$0xff] %v8950_v4 }
 0x87d   : > { %v8952_v51 = vpop.permute.xlu1 %5007  ;;  %v8954_v61 = vpop.permute.xlu0 %3196 }
 0x87e   : > { %12001 = vst [vmem:[#allocation106_spill] sm:$0xff] %v8952_v51  ;;  %12002 = vst [vmem:[#allocation107_spill] sm:$0xff] %v8954_v61 }
 0x881   : > { %v8956_v23 = vpop.permute.xlu1 %3073  ;;  %v8958_v44 = vpop.permute.xlu0 %3769 }
 0x882   : > { %12003 = vst [vmem:[#allocation108_spill] sm:$0xff] %v8956_v23 }
 0x885   : > { %v8960_v25 = vpop.permute.xlu1 %3333  ;;  %v8962_v58 = vpop.permute.xlu0 %4023 }
 0x886   : > { %12004 = vst [vmem:[#allocation109_spill] sm:$0xff] %v8960_v25  ;;  %12005 = vst [vmem:[#allocation110_spill] sm:$0xff] %v8962_v58  ;;  %v8983_v58 = vsel %vm11884_vm1, %v8219_v47, %v8359_v31  ;;  %v9002_v47 = vsel %vm367_vm2, %v8233_v8, %v8367_v50 }
 0x889   : > { %v8964_v36 = vpop.permute.xlu1 %5362  ;;  %v8966_v62 = vpop.permute.xlu0 %3571 }
 0x88a   : > { %12006 = vst [vmem:[#allocation111_spill] sm:$0xff] %v8964_v36  ;;  %12007 = vst [vmem:[#allocation112_spill] sm:$0xff] %v8966_v62 }
 0x88d   : > { %v8968_v49 = vpop.permute.xlu1 %5368  ;;  %v8970_v28 = vpop.permute.xlu0 %4140 }
 0x88e   : > { %12008 = vst [vmem:[#allocation113_spill] sm:$0xff] %v8968_v49  ;;  %12009 = vst [vmem:[#allocation114_spill] sm:$0xff] %v8970_v28 }
 0x891   : > { %v8972_v4 = vpop.permute.xlu1 %3448  ;;  %v8974_v51 = vpop.permute.xlu0 %4355 }
 0x892   : > { %12010 = vst [vmem:[#allocation115_spill] sm:$0xff] %v8972_v4  ;;  %12011 = vst [vmem:[#allocation116_spill] sm:$0xff] %v8974_v51 }
 0x895   : > { %v8976_v61 = vpop.permute.xlu1 %3708  ;;  %v8985_v36 = vpop.permute.xlu0 %3943 }
 0x896   : > { %12012 = vst [vmem:[#allocation117_spill] sm:$0xff] %v8976_v61  ;;  %12013 = vst [vmem:[#allocation118_spill] sm:$0xff] %v8985_v36 }
 0x899   : > { %v9018_v46 = vpop.permute.xlu0 %4466 }
 0x89a   : > { %12015 = vst [vmem:[#allocation120_spill] sm:$0xff] %v9018_v46 }
 0x8c3   : > { %v8978_v23 = vpop.f32.mrb[14].mxu0 }
 0x8c4   : > { %1965 = vst [vmem:[#allocation2 + $0x8] sm:$0xff] %v8978_v23  ;;  %v8988_v62 = vpop.f32.mrb[15].mxu0  ;;  %v2008_v49 = vmul.f32 %v8983_v58, %v8978_v23  ;;  %v2296_v56 = vmul.f32 %v9002_v47, %v8978_v23 }
 0x8c5   : > { %1966 = vst [vmem:[#allocation2 + $0x10] sm:$0xff] %v8988_v62  ;;  %v2009_v4 = vmul.f32 %v8359_v31, %v8988_v62  ;;  %v2297_v8 = vmul.f32 %v8367_v50, %v8988_v62 }
 0x8c6   : > { %2033 = vrot.lane.b32.xlu0 %v2008_v49, %s11903_s10  ;;  %v9011_v49 = vpop.permute.xlu1 %3252 }
 0x8c7   : > { %v8996_v51 = vpop.f32.mrb[16].mxu0  ;;  %2035 = vrot.lane.b32.xlu1 %v2009_v4, %s11903_s10  ;;  %12014 = vst [vmem:[#allocation119_spill] sm:$0xff] %v9011_v49  ;;  %v9030_v49 = vsel %vm340_vm5, %v8248_v16, %v8371_v5  ;;  %v9046_v16 = vsel %vm11880_vm3, %v8259_v55, %v8385_v63 }
 0x8c8   : > { %1967 = vst [vmem:[#allocation2 + $0x30] sm:$0xff] %v8996_v51  ;;  %v2377_v36 = vmul.f32 %v8079_v35, %v8996_v51  ;;  %v9007_v0 = vpop.f32.mrb[17].mxu0  ;;  %v2514_v7 = vmul.f32 %v9030_v49, %v8978_v23  ;;  %v2608_v61 = vmul.f32 %v8421_v1, %v8996_v51 }
 0x8c9   : > { %1968 = vst [vmem:[#allocation2 + $0x38] sm:$0xff] %v9007_v0  ;;  %v2378_v4 = vmul.f32 %v8172_v3, %v9007_v0  ;;  %v2518_v15 = vmul.f32 %v8371_v5, %v9007_v0 }
 0x8ca   : > { %2385 = vst [vmem:[#allocation3 + $0x110] sm:$0xff] %v2377_v36  ;;  %2996 = vst.msk [vmem:[#allocation2 + $0x30] ss:$8 sm:$0x3] %vm7529_vm0, %v7540_v9  ;;  %2321 = vrot.lane.b32.xlu0 %v2296_v56, %s12016_s17  ;;  %v2515_v56 = vmul.f32 %v8371_v5, %v8988_v62  ;;  %v9056_v57 = vpop.permute.xlu1 %3258  ;;  %vm11752_vm0 = vcmask 932864  }
 0x8cb   : > { %v9024_v21 = vpop.f32.mrb[18].mxu0  ;;  %2386 = vst [vmem:[#allocation3 + $0x118] sm:$0xff] %v2378_v4  ;;  %2323 = vrot.lane.b32.xlu1 %v2297_v8, %s12016_s17  ;;  %12018 = vst [vmem:[#allocation121_spill] sm:$0xff] %v9056_v57  ;;  %v2101_v57 = vmul.f32 %v8385_v63, %v8988_v62 }
 0x8cc   : > { %v2379_v12 = vmul.f32 %v8079_v35, %v9024_v21  ;;  %v9034_v36 = vpop.f32.mrb[19].mxu0  ;;  %v9050_v4 = vmul.f32 %v8983_v58, %v9024_v21  ;;  %v9054_v8 = vmul.f32 %v9002_v47, %v9024_v21  ;;  %v9067_v55 = vmul.f32 %v9046_v16, %v9024_v21 }
 0x8cd   : > { %v2380_v9 = vmul.f32 %v8172_v3, %v9034_v36 }
 0x8ce   : > { %2387 = vst [vmem:[#allocation3 + $0x120] sm:$0xff] %v2379_v12  ;;  %2539 = vrot.lane.b32.xlu0 %v2514_v7, %s12017_s8  ;;  %v9063_v12 = vmul.f32 %v9030_v49, %v9024_v21  ;;  %v9069_v7 = vpop.permute.xlu0 %4716 }
 0x8cf   : > { %2388 = vst [vmem:[#allocation3 + $0x128] sm:$0xff] %v2380_v9  ;;  %v9058_v2 = vpop.f32.mrb[20].mxu0  ;;  %2541 = vrot.lane.b32.xlu1 %v2515_v56, %s12017_s8  ;;  %12019 = vst [vmem:[#allocation122_spill] sm:$0xff] %v9069_v7  ;;  %v2100_v9 = vmul.f32 %v9046_v16, %v8978_v23  ;;  %v2605_v7 = vmul.f32 %v8421_v1, %v8978_v23 }
 0x8d0   : > { %v2381_v11 = vmul.f32 %v8079_v35, %v9058_v2  ;;  %v9073_v59 = vpop.f32.mrb[21].mxu0  ;;  %v9085_v35 = vpop.permute.xlu1 %3823  ;;  %v9187_v24 = vmul.f32 %v9046_v16, %v9058_v2 }
 0x8d1   : > { %v2382_v56 = vmul.f32 %v8172_v3, %v9073_v59  ;;  %12021 = vst [vmem:[#allocation123_spill] sm:$0xff] %v9085_v35  ;;  %v2411_v35 = vmul.f32 %v8432_v45, %v8978_v23  ;;  %v4290_v40 = vld [vmem:[#allocation2 + $0x38] sm:$0xff]  ;;  %v4289_v25 = vld [vmem:[#allocation2 + $0x30] sm:$0xff] }
 0x8d2   : > { %2389 = vst [vmem:[#allocation3 + $0x130] sm:$0xff] %v2381_v11  ;;  %2125 = vrot.lane.b32.xlu0 %v2100_v9, %s12020_s27  ;;  %v9089_v32 = vpop.permute.xlu0 %4827  ;;  %v2191_v11 = vmul.f32 %v8429_v14, %v8978_v23 }
 0x8d3   : > { %2390 = vst [vmem:[#allocation3 + $0x138] sm:$0xff] %v2382_v56  ;;  %2127 = vrot.lane.b32.xlu1 %v2101_v57, %s12020_s27  ;;  %12022 = vst [vmem:[#allocation124_spill] sm:$0xff] %v9089_v32  ;;  %v2194_v57 = vmul.f32 %v8429_v14, %v8996_v51 }
 0x8d4   : > { %v9098_v9 = vpop.permute.xlu1 %4077 }
 0x8d5   : > { %12023 = vst [vmem:[#allocation125_spill] sm:$0xff] %v9098_v9  ;;  %v9179_v9 = vmul.f32 %v9002_v47, %v9058_v2 }
 0x8d6   : > { %2629 = vrot.lane.b32.xlu0 %v2605_v7, %s11748_s29  ;;  %v9101_v56 = vpop.permute.xlu0 %5077  ;;  %v2697_v7 = vmul.f32 %v8445_v20, %v8978_v23  ;;  %v2012_v23 = vmul.f32 %v8359_v31, %v9007_v0 }
 0x8d7   : > { %2635 = vrot.lane.b32.xlu1 %v2608_v61, %s11748_s29  ;;  %12024 = vst [vmem:[#allocation126_spill] sm:$0xff] %v9101_v56  ;;  %v2414_v61 = vmul.f32 %v8432_v45, %v8996_v51  ;;  %v2300_v56 = vmul.f32 %v8367_v50, %v9007_v0 }
 0x8da   : > { %2215 = vrot.lane.b32.xlu0 %v2191_v11, %s11756_s30  ;;  %v9111_v11 = vpop.permute.xlu1 %3627  ;;  %v9115_v3 = vpop.permute.xlu0 %5188 }
 0x8db   : > { %2221 = vrot.lane.b32.xlu1 %v2194_v57, %s11756_s30  ;;  %12025 = vst [vmem:[#allocation127_spill] sm:$0xff] %v9111_v11  ;;  %v2700_v57 = vmul.f32 %v8445_v20, %v8996_v51  ;;  %12026 = vst [vmem:[#allocation128_spill] sm:$0xff] %v9115_v3 }
 0x8de   : > { %2435 = vrot.lane.b32.xlu0 %v2411_v35, %s11753_s25  ;;  %v9122_v35 = vsel %vm11779_vm8, %v8421_v1, %v8395_v48  ;;  %v9129_v11 = vpop.permute.xlu1 %3633 }
 0x8df   : > { %2441 = vrot.lane.b32.xlu1 %v2414_v61, %s11753_s25  ;;  %v2606_v61 = vmul.f32 %v9122_v35, %v8988_v62  ;;  %12027 = vst [vmem:[#allocation129_spill] sm:$0xff] %v9129_v11  ;;  %v9158_v11 = vmul.f32 %v9122_v35, %v9034_v36  ;;  %v9191_v30 = vmul.f32 %v9122_v35, %v9073_v59 }
 0x8e1   : > { %12029 = vst [vmem:[#allocation131_spill] sm:$0xff] %v9191_v30  ;;  %v4294_v30 = vmul.f32 %v4290_v40, %v8467_v34  ;;  %v2011_v40 = vmul.f32 %v8983_v58, %v8996_v51 }
 0x8e2   : > { %2721 = vrot.lane.b32.xlu0 %v2697_v7, %s11984_s18  ;;  %v9135_v7 = vsel %vm11876_vm4, %v8429_v14, %v8408_v10  ;;  %v9154_v10 = vsel %vm278_vm7, %v8445_v20, %v8440_v18  ;;  %v9175_v18 = vmul.f32 %v8983_v58, %v9058_v2  ;;  %v9197_v32 = vpop.permute.xlu1 %4193  ;;  %v2517_v58 = vmul.f32 %v9030_v49, %v8996_v51 }
 0x8e3   : > { %2727 = vrot.lane.b32.xlu1 %v2700_v57, %s11984_s18  ;;  %v9137_v57 = vpop.permute.xlu0 %5438  ;;  %v2192_v48 = vmul.f32 %v9135_v7, %v8988_v62  ;;  %v9195_v3 = vmul.f32 %v9135_v7, %v9073_v59  ;;  %12031 = vst [vmem:[#allocation133_spill] sm:$0xff] %v9197_v32  ;;  %v9207_v28 = vmul.f32 %v9154_v10, %v9073_v59  ;;  %4298 = vst [vmem:[#allocation3 + $0x318] sm:$0xff] %v4294_v30 }
 0x8e4   : > { %12028 = vst [vmem:[#allocation130_spill] sm:$0xff] %v9137_v57  ;;  %v9162_v57 = vmul.f32 %v9135_v7, %v9034_v36  ;;  %v2698_v32 = vmul.f32 %v9154_v10, %v8988_v62 }
 0x8e5   : > { %12030 = vst [vmem:[#allocation132_spill] sm:$0xff] %v9195_v3  ;;  %12033 = vst [vmem:[#allocation135_spill] sm:$0xff] %v9207_v28  ;;  %v4293_v3 = vmul.f32 %v4289_v25, %v8299_v33  ;;  %v2015_v25 = vmul.f32 %v8359_v31, %v9034_v36 }
 0x8e6   : > { %2631 = vrot.lane.b32.xlu0 %v2606_v61, %s11748_s29  ;;  %v9146_v61 = vsel %vm384_vm6, %v8432_v45, %v8424_v42  ;;  %v9220_v28 = vpop.permute.xlu1 %4407 }
 0x8e7   : > { %2041 = vrot.lane.b32.xlu1 %v2012_v23, %s11903_s10  ;;  %v2412_v23 = vmul.f32 %v9146_v61, %v8988_v62  ;;  %v9167_v42 = vmul.f32 %v9146_v61, %v9034_v36  ;;  %v9203_v46 = vmul.f32 %v9146_v61, %v9073_v59  ;;  %v9209_v13 = vpop.permute.xlu0 %3071  ;;  %4297 = vst [vmem:[#allocation3 + $0x310] sm:$0xff] %v4293_v3  ;;  %12035 = vst [vmem:[#allocation137_spill] sm:$0xff] %v9220_v28 }
 0x8e8   : > { %12034 = vst [vmem:[#allocation136_spill] sm:$0xff] %v9209_v13  ;;  %v2299_v3 = vmul.f32 %v9002_v47, %v8996_v51 }
 0x8e9   : > { %12032 = vst [vmem:[#allocation134_spill] sm:$0xff] %v9203_v46  ;;  %v2104_v46 = vmul.f32 %v8385_v63, %v9007_v0 }
 0x8ea   : > { %2217 = vrot.lane.b32.xlu0 %v2192_v48, %s11756_s30  ;;  %v9171_v48 = vmul.f32 %v9154_v10, %v9034_v36  ;;  %v9233_v62 = vpop.permute.xlu1 %3997 }
 0x8eb   : > { %2329 = vrot.lane.b32.xlu1 %v2300_v56, %s12016_s17  ;;  %v9183_v56 = vmul.f32 %v9030_v49, %v9058_v2  ;;  %12037 = vst [vmem:[#allocation139_spill] sm:$0xff] %v9233_v62  ;;  %v2609_v49 = vmul.f32 %v9122_v35, %v9007_v0  ;;  %v4365_v62 = vmul.f32 %v8613_v38, %v8898_v54  ;;  %v12141_v54 = vld [vmem:[#allocation43_spill] sm:$0xff] }
 0x8ee   : > { %2437 = vrot.lane.b32.xlu0 %v2412_v23, %s11753_s25  ;;  %v9223_v23 = vpop.permute.xlu0 %3331  ;;  %v9246_v30 = vpop.permute.xlu1 %4003 }
 0x8ef   : > { %2547 = vrot.lane.b32.xlu1 %v2518_v15, %s12017_s8  ;;  %12036 = vst [vmem:[#allocation138_spill] sm:$0xff] %v9223_v23  ;;  %v2521_v15 = vmul.f32 %v8371_v5, %v9034_v36  ;;  %12039 = vst [vmem:[#allocation141_spill] sm:$0xff] %v9246_v30 }
 0x8f2   : > { %2723 = vrot.lane.b32.xlu0 %v2698_v32, %s11984_s18  ;;  %v2303_v32 = vmul.f32 %v8367_v50, %v9034_v36 }
 0x8f3   : > { %2133 = vrot.lane.b32.xlu1 %v2104_v46, %s12020_s27  ;;  %v9237_v46 = vpop.permute.xlu0 %3446 }
 0x8f4   : > { %12038 = vst [vmem:[#allocation140_spill] sm:$0xff] %v9237_v46 }
 0x8f6   : > { %2039 = vrot.lane.b32.xlu0 %v2011_v40, %s11903_s10  ;;  %v2103_v40 = vmul.f32 %v9046_v16, %v8996_v51  ;;  %v2195_v51 = vmul.f32 %v9135_v7, %v9007_v0  ;;  %v2701_v7 = vmul.f32 %v9154_v10, %v9007_v0 }
 0x8f7   : > { %2047 = vrot.lane.b32.xlu1 %v2015_v25, %s11903_s10  ;;  %v9249_v47 = vpop.permute.xlu0 %3706  ;;  %v2107_v25 = vmul.f32 %v8385_v63, %v9034_v36  ;;  %v2200_v36 = vmul.f32 %v8429_v14, %v9058_v2 }
 0x8f8   : > { %12040 = vst [vmem:[#allocation142_spill] sm:$0xff] %v9249_v47 }
 0x8fa   : > { %2327 = vrot.lane.b32.xlu0 %v2299_v3, %s12016_s17  ;;  %v9259_v3 = vpop.permute.xlu1 %4518 }
 0x8fb   : > { %2335 = vrot.lane.b32.xlu1 %v2303_v32, %s12016_s17  ;;  %12041 = vst [vmem:[#allocation143_spill] sm:$0xff] %v9259_v3  ;;  %v2614_v32 = vmul.f32 %v8421_v1, %v9058_v2  ;;  %v12074_v3 = vld [vmem:[#allocation96_spill] sm:$0xff] }
 0x8fe   : > { %2545 = vrot.lane.b32.xlu0 %v2517_v58, %s12017_s8  ;;  %v9263_v58 = vpop.permute.xlu0 %3821  ;;  %v9272_v16 = vpop.permute.xlu1 %4768 }
 0x8ff   : > { %2553 = vrot.lane.b32.xlu1 %v2521_v15, %s12017_s8  ;;  %12042 = vst [vmem:[#allocation144_spill] sm:$0xff] %v9263_v58  ;;  %v2415_v15 = vmul.f32 %v9146_v61, %v9007_v0  ;;  %v2018_v61 = vmul.f32 %v8359_v31, %v9073_v59  ;;  %v2306_v31 = vmul.f32 %v8367_v50, %v9073_v59 }
 0x900   : > { %v2524_v50 = vmul.f32 %v8371_v5, %v9073_v59  ;;  %v2417_v5 = vmul.f32 %v8432_v45, %v9024_v21 }
 0x902   : > { %2131 = vrot.lane.b32.xlu0 %v2103_v40, %s12020_s27  ;;  %v9275_v35 = vpop.permute.xlu0 %4075  ;;  %v2420_v40 = vmul.f32 %v8432_v45, %v9058_v2 }
 0x903   : > { %2139 = vrot.lane.b32.xlu1 %v2107_v25, %s12020_s27  ;;  %12043 = vst [vmem:[#allocation145_spill] sm:$0xff] %v9275_v35  ;;  %v9285_v25 = vpop.permute.xlu1 %4329 }
 0x904   : > { %12044 = vst [vmem:[#allocation146_spill] sm:$0xff] %v9285_v25 }
 0x906   : > { %2637 = vrot.lane.b32.xlu0 %v2609_v49, %s11748_s29  ;;  %v2706_v49 = vmul.f32 %v8445_v20, %v9058_v2  ;;  %v5037_v2 = vmul.f32 %v8613_v38, %v8821_v6 }
 0x907   : > { %2647 = vrot.lane.b32.xlu1 %v2614_v32, %s11748_s29  ;;  %v9289_v32 = vpop.permute.xlu0 %4191 }
 0x908   : > { %12045 = vst [vmem:[#allocation147_spill] sm:$0xff] %v9289_v32 }
 0x90a   : > { %2223 = vrot.lane.b32.xlu0 %v2195_v51, %s11756_s30  ;;  %v9297_v51 = vpop.permute.xlu1 %4335 }
 0x90b   : > { %2233 = vrot.lane.b32.xlu1 %v2200_v36, %s11756_s30  ;;  %12046 = vst [vmem:[#allocation148_spill] sm:$0xff] %v9297_v51  ;;  %v9300_v0 = vpop.permute.xlu0 %4405 }
 0x90c   : > { %12047 = vst [vmem:[#allocation149_spill] sm:$0xff] %v9300_v0 }
 0x90e   : > { %2443 = vrot.lane.b32.xlu0 %v2415_v15, %s11753_s25  ;;  %v9307_v10 = vpop.permute.xlu1 %4879  ;;  %v2611_v15 = vmul.f32 %v8421_v1, %v9024_v21  ;;  %v2110_v1 = vmul.f32 %v8385_v63, %v9073_v59 }
 0x90f   : > { %2453 = vrot.lane.b32.xlu1 %v2420_v40, %s11753_s25  ;;  %12048 = vst [vmem:[#allocation150_spill] sm:$0xff] %v9307_v10 }
 0x912   : > { %2729 = vrot.lane.b32.xlu0 %v2701_v7, %s11984_s18  ;;  %v9318_v36 = vpop.permute.xlu1 %5129 }
 0x913   : > { %2739 = vrot.lane.b32.xlu1 %v2706_v49, %s11984_s18  ;;  %v2703_v49 = vmul.f32 %v8445_v20, %v9024_v21 }
 0x916   : > { %2045 = vrot.lane.b32.xlu0 %v9050_v4, %s11903_s10  ;;  %v9311_v4 = vpop.permute.xlu0 %4516 }
 0x917   : > { %2053 = vrot.lane.b32.xlu1 %v2018_v61, %s11903_s10  ;;  %12049 = vst [vmem:[#allocation151_spill] sm:$0xff] %v9311_v4 }
 0x91a   : > { %2333 = vrot.lane.b32.xlu0 %v9054_v8, %s12016_s17  ;;  %v9321_v8 = vpop.permute.xlu0 %4766 }
 0x91b   : > { %5051 = vrot.lane.b32.xlu1 %v5037_v2, %s11750_s23  ;;  %12050 = vst [vmem:[#allocation152_spill] sm:$0xff] %v9321_v8 }
 0x91e   : > { %2551 = vrot.lane.b32.xlu0 %v9063_v12, %s12017_s8  ;;  %v2197_v12 = vmul.f32 %v8429_v14, %v9024_v21  ;;  %v9333_v40 = vpop.permute.xlu0 %4877 }
 0x91f   : > { %2341 = vrot.lane.b32.xlu1 %v2306_v31, %s12016_s17  ;;  %12052 = vst [vmem:[#allocation154_spill] sm:$0xff] %v9333_v40 }
 0x922   : > { %2137 = vrot.lane.b32.xlu0 %v9067_v55, %s12020_s27  ;;  %v9331_v55 = vpop.permute.xlu1 %4690  ;;  %v9346_v14 = vpop.permute.xlu0 %5127 }
 0x923   : > { %5057 = vrot.lane.b32.xlu1 %v5037_v2, %s11750_s23  ;;  %12051 = vst [vmem:[#allocation153_spill] sm:$0xff] %v9331_v55  ;;  %12054 = vst [vmem:[#allocation156_spill] sm:$0xff] %v9346_v14  ;;  %v3290_v2 = vmul.f32 %v8613_v38, %v8840_v52  ;;  %v3778_v55 = vmul.f32 %v8613_v38, %v8958_v44 }
 0x926   : > { %2641 = vrot.lane.b32.xlu0 %v2611_v15, %s11748_s29  ;;  %v9343_v7 = vpop.permute.xlu1 %4696  ;;  %v9354_v45 = vpop.permute.xlu0 %5238 }
 0x927   : > { %2559 = vrot.lane.b32.xlu1 %v2524_v50, %s12017_s8  ;;  %12053 = vst [vmem:[#allocation155_spill] sm:$0xff] %v9343_v7  ;;  %12055 = vst [vmem:[#allocation157_spill] sm:$0xff] %v9354_v45  ;;  %v3665_v50 = vmul.f32 %v8613_v38, %v8857_v53 }
 0x92a   : > { %2227 = vrot.lane.b32.xlu0 %v2197_v12, %s11756_s30  ;;  %v9356_v63 = vpop.permute.xlu1 %5240 }
 0x92b   : > { %3125 = vrot.lane.b32.xlu1 %v8548_v41, %s11745_s14  ;;  %v5398_v41 = vmul.f32 %v8613_v38, %v8828_v29  ;;  %12056 = vst [vmem:[#allocation158_spill] sm:$0xff] %v9356_v63 }
 0x92e   : > { %2447 = vrot.lane.b32.xlu0 %v2417_v5, %s11753_s25 }
 0x92f   : > { %2145 = vrot.lane.b32.xlu1 %v2110_v1, %s12020_s27  ;;  %v3403_v1 = vmul.f32 %v8613_v38, %v8946_v37 }
 0x932   : > { %2733 = vrot.lane.b32.xlu0 %v2703_v49, %s11984_s18 }
 0x933   : > { %5412 = vrot.lane.b32.xlu1 %v5398_v41, %s11745_s14 }
 0x936   : > { %2643 = vrot.lane.b32.xlu0 %v9158_v11, %s11748_s29 }
 0x937   : > { %5418 = vrot.lane.b32.xlu1 %v5398_v41, %s11745_s14  ;;  %v4034_v41 = vmul.f32 %v8613_v38, %v8878_v26 }
 0x938   : > { %v2034_v59 = vpop.permute.xlu0 %2033 }
 0x939   : > { %v2036_v61 = vpop.permute.xlu1 %2035 }
 0x93a   : > { %2229 = vrot.lane.b32.xlu0 %v9162_v57, %s11756_s30  ;;  %v2056_v63 = vsel %vm278_vm7, %v2034_v59, %v2036_v61 }
 0x93b   : > { %5490 = vrot.lane.b32.xlu1 %v8523_v19, %s11741_s11 }
 0x93c   : > { %v9365_v20 = vpop.permute.xlu0 %2321 }
 0x93d   : > { %v9367_v21 = vpop.permute.xlu1 %2323 }
 0x93e   : > { %2449 = vrot.lane.b32.xlu0 %v9167_v42, %s11753_s25  ;;  %v3028_v42 = vmul.f32 %v8613_v38, %v8934_v27 }
 0x93f   : > { %3500 = vrot.lane.b32.xlu1 %v8564_v17, %s11750_s23 }
 0x940   : > { %v9373_v11 = vpop.permute.xlu0 %2539 }
 0x941   : > { %v9377_v57 = vpop.permute.xlu1 %2541 }
 0x942   : > { %2735 = vrot.lane.b32.xlu0 %v9171_v48, %s11984_s18 }
 0x943   : > { %3304 = vrot.lane.b32.xlu1 %v3290_v2, %s11732_s6 }
 0x944   : > { %v9382_v19 = vpop.permute.xlu0 %2125 }
 0x945   : > { %v9384_v31 = vpop.permute.xlu1 %2127 }
 0x946   : > { %2051 = vrot.lane.b32.xlu0 %v9175_v18, %s11903_s10 }
 0x947   : > { %3310 = vrot.lane.b32.xlu1 %v3290_v2, %s11732_s6  ;;  %s12133_s6 = smov 3  }
 0x948   : > { %v9389_v17 = vpop.permute.xlu0 %2629 }
 0x949   : > { %v9393_v15 = vpop.permute.xlu1 %2635 }
 0x94a   : > { %2339 = vrot.lane.b32.xlu0 %v9179_v9, %s12016_s17 }
 0x94b   : > { %3046 = vrot.lane.b32.xlu1 %v3028_v42, %s11741_s11 }
 0x94c   : > { %v9398_v48 = vpop.permute.xlu0 %2215 }
 0x94d   : > { %12057 = vst [vmem:[#allocation159_spill] sm:$0xff] %v9398_v48  ;;  %v9402_v18 = vpop.permute.xlu1 %2221 }
 0x94e   : > { %12058 = vst [vmem:[#allocation160_spill] sm:$0xff] %v9402_v18  ;;  %2557 = vrot.lane.b32.xlu0 %v9183_v56, %s12017_s8 }
 0x94f   : > { %3679 = vrot.lane.b32.xlu1 %v3665_v50, %s11720_s28 }
 0x950   : > { %v9407_v12 = vpop.permute.xlu0 %2435 }
 0x951   : > { %12059 = vst [vmem:[#allocation161_spill] sm:$0xff] %v9407_v12  ;;  %v9409_v5 = vpop.permute.xlu1 %2441 }
 0x952   : > { %12060 = vst [vmem:[#allocation162_spill] sm:$0xff] %v9409_v5  ;;  %2143 = vrot.lane.b32.xlu0 %v9187_v24, %s12020_s27 }
 0x953   : > { %3685 = vrot.lane.b32.xlu1 %v3665_v50, %s11720_s28  ;;  %s12120_s28 = smov 14  }
 0x954   : > { %v9414_v9 = vpop.permute.xlu0 %2721 }
 0x955   : > { %12061 = vst [vmem:[#allocation163_spill] sm:$0xff] %v9414_v9  ;;  %v9418_v49 = vpop.permute.xlu1 %2727 }
 0x956   : > { %12062 = vst [vmem:[#allocation164_spill] sm:$0xff] %v9418_v49  ;;  %3123 = vrot.lane.b32.xlu0 %v8352_v22, %s11745_s14  ;;  %s12143_s14 = smov 80  }
 0x957   : > { %3421 = vrot.lane.b32.xlu1 %v3403_v1, %s11728_s20 }
 0x958   : > { %v9423_v56 = vpop.permute.xlu0 %2631 }
 0x959   : > { %v2042_v24 = vpop.permute.xlu1 %2041 }
 0x95a   : > { %5488 = vrot.lane.b32.xlu0 %v8339_v43, %s11741_s11 }
 0x95b   : > { %4048 = vrot.lane.b32.xlu1 %v4034_v41, %s11704_s12 }
 0x95c   : > { %v9430_v2 = vpop.permute.xlu0 %2217 }
 0x95d   : > { %12063 = vst [vmem:[#allocation165_spill] sm:$0xff] %v9430_v2  ;;  %v9432_v50 = vpop.permute.xlu1 %2329 }
 0x95e   : > { %3498 = vrot.lane.b32.xlu0 %v8365_v39, %s11750_s23  ;;  %s12161_s23 = smov 79  }
 0x95f   : > { %4054 = vrot.lane.b32.xlu1 %v4034_v41, %s11704_s12  ;;  %v2055_v41 = vsel %vm278_vm7, %v8438_v60, %v2034_v59  ;;  %v9471_v59 = vld [vmem:[#allocation2] sm:$0xff]  ;;  %s12085_s12 = smov 93  }
 0x960   : > { %v9437_v22 = vpop.permute.xlu0 %2437  ;;  %v3080_v10 = vmul.f32 %v9471_v59, %v9209_v13  ;;  %v5087_v0 = vmul.f32 %v9471_v59, %v12074_v3  ;;  %v3455_v35 = vmul.f32 %v9471_v59, %v9237_v46  ;;  %v9519_v23 = vmul.f32 %v9471_v59, %v9263_v58  ;;  %v12091_v3 = vld [vmem:[#allocation132_spill] sm:$0xff] }
 0x961   : > { %12064 = vst [vmem:[#allocation166_spill] sm:$0xff] %v9437_v22  ;;  %v9441_v25 = vpop.permute.xlu1 %2547  ;;  %v9530_v46 = vmul.f32 %v9471_v59, %v9289_v32  ;;  %v9577_v22 = vld [vmem:[#allocation2 + $0x30] sm:$0xff] }
 0x962   : > { %3040 = vrot.lane.b32.xlu0 %v3028_v42, %s11741_s11  ;;  %v12066_v42 = vld [vmem:[#allocation11_spill] sm:$0xff]  ;;  %s12139_s11 = smov 2  }
 0x963   : > { %3796 = vrot.lane.b32.xlu1 %v3778_v55, %s11711_s13 }
 0x964   : > { %v9445_v43 = vpop.permute.xlu0 %2723 }
 0x965   : > { %12065 = vst [vmem:[#allocation167_spill] sm:$0xff] %v9445_v43  ;;  %v9449_v45 = vpop.permute.xlu1 %2133 }
 0x966   : > { %3415 = vrot.lane.b32.xlu0 %v3403_v1, %s11728_s20  ;;  %v12067_v1 = vld [vmem:[#allocation114_spill] sm:$0xff]  ;;  %s12127_s20 = smov 13  }
 0x967   : > { %4379 = vrot.lane.b32.xlu1 %v4365_v62, %s11697_s26  ;;  %v4148_v14 = vmul.f32 %v8613_v38, %v12067_v1 }
 0x968   : > { %v2040_v39 = vpop.permute.xlu0 %2039 }
 0x969   : > { %v2057_v33 = vsel %vm278_vm7, %v12066_v42, %v2040_v39  ;;  %v2058_v34 = vsel %vm278_vm7, %v2040_v39, %v2042_v24  ;;  %v9459_v7 = vpop.permute.xlu1 %2047  ;;  %v12071_v24 = vld [vmem:[#allocation128_spill] sm:$0xff] }
 0x96a   : > { %3790 = vrot.lane.b32.xlu0 %v3778_v55, %s11711_s13  ;;  %v6996_v51 = vpack.c.bf16 %v2058_v34, %v2056_v63  ;;  %v6998_v30 = vpack.c.bf16 %v2057_v33, %v2055_v41  ;;  %v12068_v55 = vld [vmem:[#allocation120_spill] sm:$0xff]  ;;  %v5196_v39 = vmul.f32 %v9471_v59, %v12071_v24  ;;  %v12088_v24 = vld [vmem:[#allocation131_spill] sm:$0xff]  ;;  %s12092_s13 = smov 83  }
 0x96b   : > { %4385 = vrot.lane.b32.xlu1 %v4365_v62, %s11697_s26  ;;  %v4474_v33 = vmul.f32 %v9471_v59, %v12068_v55  ;;  %v12069_v62 = vld [vmem:[#allocation92_spill] sm:$0xff]  ;;  %s12082_s26 = smov 33   ;;  %v12140_v55 = vld [vmem:[#allocation58_spill] sm:$0xff] }
 0x96c   : > { %v9465_v40 = vpop.permute.xlu0 %2327  ;;  %6997 = vmatprep.subr.bf16.mxu1 %v6996_v51  ;;  %v4726_v38 = vmul.f32 %v9471_v59, %v12069_v62 }
 0x96d   : > { %v9467_v60 = vpop.permute.xlu1 %2335  ;;  %6999 = vmatpush1.bf16.msra.mxu1 %v6998_v30  ;;  %v12070_v30 = vld [vmem:[#allocation124_spill] sm:$0xff] }
 0x96e   : > { %4160 = vrot.lane.b32.xlu0 %v4148_v14, %s11702_s5  ;;  %v4835_v51 = vmul.f32 %v9471_v59, %v12070_v30 }
 0x96f   : > { %4166 = vrot.lane.b32.xlu1 %v4148_v14, %s11702_s5  ;;  %s12084_s5 = smov 32  }
 0x970   : > { %v9475_v34 = vpop.permute.xlu0 %2545 }
 0x971   : > { %v9479_v63 = vpop.permute.xlu1 %2553 }
 0x972   : > { %4486 = vrot.lane.b32.xlu0 %v4474_v33, %s11693_s7 }
 0x973   : > { %4740 = vrot.lane.b32.xlu1 %v4726_v38, %s11689_s19 }
 0x974   : > { %v9485_v14 = vpop.permute.xlu0 %2131 }
 0x975   : > { %v9487_v61 = vpop.permute.xlu1 %2139 }
 0x976   : > { %4847 = vrot.lane.b32.xlu0 %v4835_v51, %s11707_s9 }
 0x977   : > { %4746 = vrot.lane.b32.xlu1 %v4726_v38, %s11689_s19  ;;  %s12076_s19 = smov 94  }
 0x978   : > { %v9493_v41 = vpop.permute.xlu0 %2637 }
 0x979   : > { %v9495_v42 = vpop.permute.xlu1 %2647 }
 0x97a   : > { %12072 = vst [vmem:[#allocation11_spill] sm:$0xff] %v9495_v42  ;;  %5208 = vrot.lane.b32.xlu0 %v5196_v39, %s11716_s22 }
 0x97b   : > { %4492 = vrot.lane.b32.xlu1 %v4474_v33, %s11693_s7  ;;  %s12079_s7 = smov 34  }
 0x97c   : > { %v9501_v8 = vpop.permute.xlu0 %2223 }
 0x97d   : > { %12073 = vst [vmem:[#allocation114_spill] sm:$0xff] %v9501_v8  ;;  %v9505_v38 = vpop.permute.xlu1 %2233 }
 0x97e   : > { %12075 = vst [vmem:[#allocation168_spill] sm:$0xff] %v9505_v38  ;;  %3092 = vrot.lane.b32.xlu0 %v3080_v10, %s11718_s21 }
 0x97f   : > { %5101 = vrot.lane.b32.xlu1 %v5087_v0, %s12076_s19 }
 0x980   : > { %v9511_v47 = vpop.permute.xlu0 %2443 }
 0x981   : > { %12077 = vst [vmem:[#allocation169_spill] sm:$0xff] %v9511_v47  ;;  %v9513_v33 = vpop.permute.xlu1 %2453  ;;  %v12099_v47 = vld [vmem:[#allocation21_spill] sm:$0xff] }
 0x982   : > { %12078 = vst [vmem:[#allocation170_spill] sm:$0xff] %v9513_v33  ;;  %3467 = vrot.lane.b32.xlu0 %v3455_v35, %s12079_s7  ;;  %v12089_v33 = vld [vmem:[#allocation109_spill] sm:$0xff] }
 0x983   : > { %5107 = vrot.lane.b32.xlu1 %v5087_v0, %s12076_s19  ;;  %v12083_v0 = vld [vmem:[#allocation103_spill] sm:$0xff]  ;;  %v3342_v12 = vmul.f32 %v9471_v59, %v12089_v33 }
 0x984   : > { %v9521_v13 = vpop.permute.xlu0 %2729  ;;  %v5448_v43 = vmul.f32 %v9471_v59, %v12083_v0 }
 0x985   : > { %12080 = vst [vmem:[#allocation171_spill] sm:$0xff] %v9521_v13  ;;  %v9523_v9 = vpop.permute.xlu1 %2739 }
 0x986   : > { %12081 = vst [vmem:[#allocation172_spill] sm:$0xff] %v9523_v9  ;;  %3842 = vrot.lane.b32.xlu0 %v9519_v23, %s12082_s26  ;;  %v9543_v9 = vmul.f32 %v9471_v59, %v9311_v4 }
 0x987   : > { %4853 = vrot.lane.b32.xlu1 %v4835_v51, %s11707_s9  ;;  %s12087_s9 = smov 31  }
 0x988   : > { %v9532_v49 = vpop.permute.xlu0 %2045 }
 0x989   : > { %v9536_v58 = vpop.permute.xlu1 %2053 }
 0x98a   : > { %4212 = vrot.lane.b32.xlu0 %v9530_v46, %s12084_s5 }
 0x98b   : > { %5462 = vrot.lane.b32.xlu1 %v5448_v43, %s12085_s12 }
 0x98c   : > { %v9545_v51 = vpop.permute.xlu0 %2333 }
 0x98d   : > { %v9547_v32 = vpop.permute.xlu1 %5051 }
 0x98e   : > { %12086 = vst [vmem:[#allocation173_spill] sm:$0xff] %v9547_v32  ;;  %4536 = vrot.lane.b32.xlu0 %v9543_v9, %s12087_s9 }
 0x98f   : > { %5468 = vrot.lane.b32.xlu1 %v5448_v43, %s12085_s12 }
 0x990   : > { %v9552_v0 = vpop.permute.xlu0 %2551 }
 0x991   : > { %v9554_v13 = vpop.permute.xlu1 %2341 }
 0x992   : > { %2649 = vrot.lane.b32.xlu0 %v12088_v24, %s11748_s29  ;;  %v12094_v24 = vld [vmem:[#allocation134_spill] sm:$0xff] }
 0x993   : > { %5214 = vrot.lane.b32.xlu1 %v5196_v39, %s11716_s22  ;;  %s12106_s22 = smov 82  }
 0x994   : > { %v9559_v4 = vpop.permute.xlu0 %2137 }
 0x995   : > { %v9563_v32 = vpop.permute.xlu1 %5057 }
 0x996   : > { %12090 = vst [vmem:[#allocation131_spill] sm:$0xff] %v9563_v32  ;;  %2235 = vrot.lane.b32.xlu0 %v12091_v3, %s11756_s30  ;;  %v12097_v32 = vld [vmem:[#allocation135_spill] sm:$0xff]  ;;  %s12173_s30 = smov 115  }
 0x997   : > { %3356 = vrot.lane.b32.xlu1 %v3342_v12, %s12092_s13  ;;  %v12098_v3 = vld [vmem:[#allocation51_spill] sm:$0xff] }
 0x998   : > { %v9568_v43 = vpop.permute.xlu0 %2641  ;;  %v9586_v30 = vsel %vm11884_vm1, %v12099_v47, %v12098_v3  ;;  %v2770_v47 = vld [vmem:[%s11900_s0 + $0x1c8] sm:$0xff] }
 0x999   : > { %12093 = vst [vmem:[#allocation132_spill] sm:$0xff] %v9568_v43  ;;  %v9570_v5 = vpop.permute.xlu1 %2559  ;;  %12100 = vst [vmem:[#allocation135_spill] sm:$0xff] %v9586_v30  ;;  %2913 = vmatprep.mubr.f32.mxu1 %v2770_v47  ;;  %v12114_v47 = vld [vmem:[#allocation54_spill] sm:$0xff] }
 0x99a   : > { %2455 = vrot.lane.b32.xlu0 %v12094_v24, %s11753_s25  ;;  %v3885_v24 = vmul.f32 %v9577_v22, %v9586_v30  ;;  %s12165_s25 = smov 125  }
 0x99b   : > { %3362 = vrot.lane.b32.xlu1 %v3342_v12, %s12092_s13 }
 0x99c   : > { %v9575_v39 = vpop.permute.xlu0 %2227 }
 0x99d   : > { %12095 = vst [vmem:[#allocation134_spill] sm:$0xff] %v9575_v39  ;;  %v9579_v33 = vpop.permute.xlu1 %3125  ;;  %v12102_v39 = vld [vmem:[#allocation117_spill] sm:$0xff] }
 0x99e   : > { %12096 = vst [vmem:[#allocation174_spill] sm:$0xff] %v9579_v33  ;;  %2741 = vrot.lane.b32.xlu0 %v12097_v32, %s11984_s18  ;;  %v3717_v38 = vmul.f32 %v9471_v59, %v12102_v39  ;;  %v12103_v32 = vld [vmem:[#allocation52_spill] sm:$0xff]  ;;  %v12104_v33 = vld [vmem:[#allocation23_spill] sm:$0xff] }
 0x99f   : > { %3098 = vrot.lane.b32.xlu1 %v3080_v10, %s11718_s21  ;;  %v9601_v62 = vsel %vm367_vm2, %v12104_v33, %v12103_v32  ;;  %s12124_s21 = smov 81  }
 0x9a0   : > { %v9591_v12 = vpop.permute.xlu0 %2447  ;;  %12105 = vst [vmem:[#allocation23_spill] sm:$0xff] %v9601_v62  ;;  %v4255_v10 = vmul.f32 %v9577_v22, %v9601_v62 }
 0x9a1   : > { %12101 = vst [vmem:[#allocation21_spill] sm:$0xff] %v9591_v12  ;;  %v9595_v48 = vpop.permute.xlu1 %2145  ;;  %v12110_v12 = vld [vmem:[#allocation26_spill] sm:$0xff] }
 0x9a2   : > { %3901 = vrot.lane.b32.xlu0 %v3885_v24, %s11903_s10  ;;  %v12109_v24 = vld [vmem:[#allocation53_spill] sm:$0xff] }
 0x9a3   : > { %3731 = vrot.lane.b32.xlu1 %v3717_v38, %s12106_s22  ;;  %v9617_v33 = vsel %vm340_vm5, %v12110_v12, %v12109_v24 }
 0x9a4   : > { %v9609_v30 = vpop.permute.xlu0 %2733  ;;  %12111 = vst [vmem:[#allocation26_spill] sm:$0xff] %v9617_v33  ;;  %v4578_v18 = vmul.f32 %v9617_v33, %v9577_v22  ;;  %v12118_v33 = vld [vmem:[#allocation125_spill] sm:$0xff] }
 0x9a5   : > { %12107 = vst [vmem:[#allocation175_spill] sm:$0xff] %v9609_v30  ;;  %v9611_v39 = vpop.permute.xlu1 %5412  ;;  %v4086_v30 = vmul.f32 %v9471_v59, %v12118_v33  ;;  %v12129_v33 = vld [vmem:[#allocation35_spill] sm:$0xff] }
 0x9a6   : > { %12108 = vst [vmem:[#allocation176_spill] sm:$0xff] %v9611_v39  ;;  %4271 = vrot.lane.b32.xlu0 %v4255_v10, %s12016_s17  ;;  %v12115_v39 = vld [vmem:[#allocation28_spill] sm:$0xff] }
 0x9a7   : > { %3737 = vrot.lane.b32.xlu1 %v3717_v38, %s12106_s22  ;;  %v9630_v10 = vsel %vm11752_vm0, %v12115_v39, %v12114_v47  ;;  %vm11878_vm0 = vcmask 105472  }
 0x9a8   : > { %v9622_v2 = vpop.permute.xlu0 %2643  ;;  %12116 = vst [vmem:[#allocation28_spill] sm:$0xff] %v9630_v10  ;;  %v4939_v38 = vmul.f32 %v9630_v10, %v9577_v22 }
 0x9a9   : > { %12112 = vst [vmem:[#allocation177_spill] sm:$0xff] %v9622_v2  ;;  %v9624_v62 = vpop.permute.xlu1 %5418 }
 0x9aa   : > { %12113 = vst [vmem:[#allocation178_spill] sm:$0xff] %v9624_v62  ;;  %4594 = vrot.lane.b32.xlu0 %v4578_v18, %s12017_s8  ;;  %v12121_v18 = vld [vmem:[#allocation55_spill] sm:$0xff] }
 0x9ab   : > { %3473 = vrot.lane.b32.xlu1 %v3455_v35, %s12079_s7  ;;  %v12122_v62 = vld [vmem:[#allocation31_spill] sm:$0xff] }
 0x9ac   : > { %v9635_v12 = vpop.permute.xlu0 %2229  ;;  %v9645_v39 = vsel %vm11755_vm10, %v12122_v62, %v12121_v18  ;;  %vm11877_vm10 = vcmask 113664  }
 0x9ad   : > { %12117 = vst [vmem:[#allocation179_spill] sm:$0xff] %v9635_v12  ;;  %v9639_v42 = vpop.permute.xlu1 %5490  ;;  %12123 = vst [vmem:[#allocation31_spill] sm:$0xff] %v9645_v39  ;;  %v5300_v35 = vmul.f32 %v9645_v39, %v9577_v22 }
 0x9ae   : > { %12119 = vst [vmem:[#allocation180_spill] sm:$0xff] %v9639_v42  ;;  %4955 = vrot.lane.b32.xlu0 %v4939_v38, %s12120_s28  ;;  %v12128_v42 = vld [vmem:[#allocation56_spill] sm:$0xff] }
 0x9af   : > { %4100 = vrot.lane.b32.xlu1 %v4086_v30, %s12124_s21  ;;  %v9658_v38 = vsel %vm11765_vm12, %v12129_v33, %v12128_v42  ;;  %vm11767_vm12 = vcmask 146432  }
 0x9b0   : > { %v9650_v10 = vpop.permute.xlu0 %2449  ;;  %12130 = vst [vmem:[#allocation35_spill] sm:$0xff] %v9658_v38  ;;  %v3188_v62 = vmul.f32 %v9577_v22, %v9658_v38 }
 0x9b1   : > { %12125 = vst [vmem:[#allocation181_spill] sm:$0xff] %v9650_v10  ;;  %v9652_v12 = vpop.permute.xlu1 %3500  ;;  %v12135_v10 = vld [vmem:[#allocation39_spill] sm:$0xff] }
 0x9b2   : > { %12126 = vst [vmem:[#allocation182_spill] sm:$0xff] %v9652_v12  ;;  %5316 = vrot.lane.b32.xlu0 %v5300_v35, %s12127_s20  ;;  %v12134_v12 = vld [vmem:[#allocation57_spill] sm:$0xff] }
 0x9b3   : > { %4106 = vrot.lane.b32.xlu1 %v4086_v30, %s12124_s21  ;;  %v9671_v35 = vsel %vm11766_vm13, %v12135_v10, %v12134_v12  ;;  %v4415_v30 = vmul.f32 %v9471_v59, %v9220_v28  ;;  %v2060_v10 = vsel %vm278_vm7, %v9532_v49, %v9459_v7  ;;  %v2344_v7 = vsel %vm384_vm6, %v9365_v20, %v9367_v21  ;;  %v12145_v21 = vld [vmem:[#allocation13_spill] sm:$0xff] }
 0x9b4   : > { %v9663_v43 = vpop.permute.xlu0 %2735  ;;  %12136 = vst [vmem:[#allocation39_spill] sm:$0xff] %v9671_v35  ;;  %v3563_v33 = vmul.f32 %v9577_v22, %v9671_v35  ;;  %vm11770_vm13 = vcmask 154624  }
 0x9b5   : > { %12131 = vst [vmem:[#allocation183_spill] sm:$0xff] %v9663_v43  ;;  %v9665_v39 = vpop.permute.xlu1 %3304 }
 0x9b6   : > { %12132 = vst [vmem:[#allocation184_spill] sm:$0xff] %v9665_v39  ;;  %3204 = vrot.lane.b32.xlu0 %v3188_v62, %s12133_s6  ;;  %v2346_v39 = vsel %vm384_vm6, %v9465_v40, %v9432_v50  ;;  %v12137_v62 = vld [vmem:[#allocation12_spill] sm:$0xff] }
 0x9b7   : > { %3848 = vrot.lane.b32.xlu1 %v9519_v23, %s12082_s26  ;;  %v2059_v43 = vsel %vm278_vm7, %v12137_v62, %v9532_v49  ;;  %v12138_v23 = vld [vmem:[#allocation19_spill] sm:$0xff]  ;;  %v9698_v62 = vsel %vm11880_vm3, %v12141_v54, %v12140_v55  ;;  %v12144_v49 = vld [vmem:[#allocation22_spill] sm:$0xff] }
 0x9b8   : > { %v2052_v38 = vpop.permute.xlu0 %2051  ;;  %12142 = vst [vmem:[#allocation12_spill] sm:$0xff] %v9698_v62 }
 0x9b9   : > { %v2061_v2 = vsel %vm278_vm7, %v12138_v23, %v2052_v38  ;;  %v2062_v28 = vsel %vm278_vm7, %v2052_v38, %v9536_v58  ;;  %v9692_v35 = vpop.permute.xlu1 %3310  ;;  %v3935_v58 = vmul.f32 %v9577_v22, %v9698_v62  ;;  %v2345_v38 = vsel %vm384_vm6, %v12144_v49, %v9465_v40  ;;  %v12146_v23 = vld [vmem:[#allocation59_spill] sm:$0xff]  ;;  %v12147_v40 = vld [vmem:[#allocation72_spill] sm:$0xff]  ;;  %v12343_v62 = vld [vmem:[#allocation149_spill] sm:$0xff] }
 0x9ba   : > { %3579 = vrot.lane.b32.xlu0 %v3563_v33, %s12139_s11  ;;  %v7000_v50 = vpack.c.bf16 %v2062_v28, %v2060_v10  ;;  %v7002_v8 = vpack.c.bf16 %v2061_v2, %v2059_v43  ;;  %v7004_v2 = vpack.c.bf16 %v2346_v39, %v2344_v7  ;;  %v9709_v43 = vld [vmem:[#allocation2 + $0x38] sm:$0xff]  ;;  %v2343_v10 = vsel %vm384_vm6, %v12145_v21, %v9365_v20 }
 0x9bb   : > { %4429 = vrot.lane.b32.xlu1 %v4415_v30, %s12143_s14  ;;  %v2348_v39 = vsel %vm384_vm6, %v9545_v51, %v9467_v60  ;;  %v12149_v20 = vld [vmem:[#allocation24_spill] sm:$0xff]  ;;  %v12151_v60 = vld [vmem:[#allocation14_spill] sm:$0xff] }
 0x9bc   : > { %v2340_v28 = vpop.permute.xlu0 %2339  ;;  %7001 = vmatprep.subr.bf16.mxu1 %v7000_v50  ;;  %v9722_v50 = vsel %vm11779_vm8, %v12147_v40, %v12146_v23  ;;  %v12155_v23 = vld [vmem:[#allocation25_spill] sm:$0xff] }
 0x9bd   : > { %v2350_v54 = vsel %vm384_vm6, %v2340_v28, %v9554_v13  ;;  %v9713_v33 = vpop.permute.xlu1 %3046  ;;  %7003 = vmatpush1.bf16.msra.mxu1 %v7002_v8  ;;  %12148 = vst [vmem:[#allocation19_spill] sm:$0xff] %v9722_v50  ;;  %v7006_v13 = vpack.c.bf16 %v2345_v38, %v2343_v10  ;;  %v4628_v8 = vmul.f32 %v9722_v50, %v9709_v43  ;;  %v12152_v38 = vld [vmem:[#allocation60_spill] sm:$0xff]  ;;  %v12153_v10 = vld [vmem:[#allocation75_spill] sm:$0xff] }
 0x9be   : > { %3951 = vrot.lane.b32.xlu0 %v3935_v58, %s12020_s27  ;;  %7005 = vmatprep.subr.bf16.mxu1 %v7004_v2  ;;  %v2349_v7 = vsel %vm384_vm6, %v12149_v20, %v2340_v28  ;;  %v7008_v49 = vpack.c.bf16 %v2350_v54, %v2348_v39  ;;  %v2564_v2 = vsel %vm11876_vm4, %v9475_v34, %v9441_v25 }
 0x9bf   : > { %4435 = vrot.lane.b32.xlu1 %v4415_v30, %s12143_s14  ;;  %v2347_v30 = vsel %vm384_vm6, %v12151_v60, %v9545_v51  ;;  %v9744_v28 = vsel %vm11881_vm14, %v12153_v10, %v12152_v38  ;;  %v2562_v54 = vsel %vm11876_vm4, %v9373_v11, %v9377_v57  ;;  %v2563_v39 = vsel %vm11876_vm4, %v12155_v23, %v9475_v34  ;;  %v12158_v60 = vld [vmem:[#allocation61_spill] sm:$0xff]  ;;  %v12159_v34 = vld [vmem:[#allocation76_spill] sm:$0xff] }
 0x9c0   : > { %v2558_v58 = vpop.permute.xlu0 %2557  ;;  %12154 = vst [vmem:[#allocation22_spill] sm:$0xff] %v9744_v28  ;;  %v7010_v25 = vpack.c.bf16 %v2349_v7, %v2347_v30  ;;  %v4989_v51 = vmul.f32 %v9744_v28, %v9709_v43  ;;  %v4776_v20 = vmul.f32 %v9471_v59, %v9272_v16  ;;  %v2566_v30 = vsel %vm11876_vm4, %v9552_v0, %v9479_v63  ;;  %v12164_v63 = vld [vmem:[#allocation17_spill] sm:$0xff] }
 0x9c1   : > { %v9735_v21 = vpop.permute.xlu1 %3679  ;;  %7007 = vmatpush1.bf16.msra.mxu1 %v7006_v13  ;;  %v2568_v57 = vsel %vm11876_vm4, %v2558_v58, %v9570_v5  ;;  %v2150_v23 = vsel %vm11779_vm8, %v9485_v14, %v9449_v45 }
 0x9c2   : > { %12150 = vst [vmem:[#allocation43_spill] sm:$0xff] %v9735_v21  ;;  %4644 = vrot.lane.b32.xlu0 %v4628_v8, %s11748_s29  ;;  %7009 = vmatprep.subr.bf16.mxu1 %v7008_v49  ;;  %v7012_v8 = vpack.c.bf16 %v2564_v2, %v2562_v54  ;;  %s12157_s29 = smov 126   ;;  %v9769_v2 = vsel %vm11879_vm11, %v12159_v34, %v12158_v60 }
 0x9c3   : > { %4218 = vrot.lane.b32.xlu1 %v9530_v46, %s12084_s5  ;;  %v12156_v46 = vld [vmem:[#allocation15_spill] sm:$0xff]  ;;  %12160 = vst [vmem:[#allocation13_spill] sm:$0xff] %v9769_v2  ;;  %v5350_v38 = vmul.f32 %v9769_v2, %v9709_v43 }
 0x9c4   : > { %v2144_v13 = vpop.permute.xlu0 %2143  ;;  %v2561_v7 = vsel %vm11876_vm4, %v12156_v46, %v9373_v11  ;;  %v12162_v11 = vld [vmem:[#allocation27_spill] sm:$0xff]  ;;  %v12166_v46 = vld [vmem:[#allocation62_spill] sm:$0xff] }
 0x9c5   : > { %v9760_v49 = vpop.permute.xlu1 %3685  ;;  %7011 = vmatpush1.bf16.msra.mxu1 %v7010_v25  ;;  %v7014_v5 = vpack.c.bf16 %v2563_v39, %v2561_v7  ;;  %v2567_v54 = vsel %vm11876_vm4, %v12162_v11, %v2558_v58  ;;  %v2565_v39 = vsel %vm11876_vm4, %v12164_v63, %v9552_v0  ;;  %v12167_v7 = vld [vmem:[#allocation78_spill] sm:$0xff]  ;;  %v12169_v0 = vld [vmem:[#allocation29_spill] sm:$0xff]  ;;  %v2154_v11 = vsel %vm11779_vm8, %v2144_v13, %v9595_v48  ;;  %v12175_v63 = vld [vmem:[#allocation80_spill] sm:$0xff] }
 0x9c6   : > { %5005 = vrot.lane.b32.xlu0 %v4989_v51, %s12157_s29  ;;  %7013 = vmatprep.subr.bf16.mxu1 %v7012_v8  ;;  %v7016_v51 = vpack.c.bf16 %v2568_v57, %v2566_v30  ;;  %v9793_v58 = vsel %vm11878_vm0, %v12167_v7, %v12166_v46  ;;  %v2148_v57 = vsel %vm11779_vm8, %v9382_v19, %v9384_v31  ;;  %v12172_v31 = vld [vmem:[#allocation18_spill] sm:$0xff] }
 0x9c7   : > { %4790 = vrot.lane.b32.xlu1 %v4776_v20, %s12161_s23  ;;  %12168 = vst [vmem:[#allocation24_spill] sm:$0xff] %v9793_v58  ;;  %v7018_v45 = vpack.c.bf16 %v2567_v54, %v2565_v39  ;;  %v3240_v60 = vmul.f32 %v9793_v58, %v9709_v43  ;;  %v2149_v30 = vsel %vm11779_vm8, %v12169_v0, %v9485_v14  ;;  %v12174_v54 = vld [vmem:[#allocation63_spill] sm:$0xff]  ;;  %v12177_v46 = vld [vmem:[#allocation30_spill] sm:$0xff] }
 0x9c8   : > { %v9779_v25 = vpop.permute.xlu0 %3123  ;;  %v9817_v14 = vsel %vm11877_vm10, %v12175_v63, %v12174_v54  ;;  %v2368_v39 = vld [vmem:[#allocation2 + $0x10] sm:$0xff]  ;;  %v9832_v0 = vmul.f32 %v9471_v59, %v9318_v36  ;;  %v12183_v54 = vld [vmem:[#allocation64_spill] sm:$0xff] }
 0x9c9   : > { %12163 = vst [vmem:[#allocation59_spill] sm:$0xff] %v9779_v25  ;;  %v9784_v8 = vpop.permute.xlu1 %3421  ;;  %7015 = vmatpush1.bf16.msra.mxu1 %v7014_v5  ;;  %12176 = vst [vmem:[#allocation25_spill] sm:$0xff] %v9817_v14 }
 0x9ca   : > { %5366 = vrot.lane.b32.xlu0 %v5350_v38, %s12165_s25  ;;  %7017 = vmatprep.subr.bf16.mxu1 %v7016_v51  ;;  %v7020_v38 = vpack.c.bf16 %v2150_v23, %v2148_v57  ;;  %v2152_v23 = vsel %vm11779_vm8, %v9559_v4, %v9487_v61  ;;  %v2153_v57 = vsel %vm11779_vm8, %v12177_v46, %v2144_v13  ;;  %v2807_v61 = vld [vmem:[#allocation3 + $0x118] sm:$0xff] }
 0x9cb   : > { %4796 = vrot.lane.b32.xlu1 %v4776_v20, %s12161_s23  ;;  %v2147_v20 = vsel %vm11779_vm8, %v12172_v31, %v9382_v19  ;;  %v3615_v19 = vmul.f32 %v9817_v14, %v9709_v43  ;;  %12179 = vst [vmem:[#allocation61_spill] sm:$0xff] %v9832_v0  ;;  %v12182_v31 = vld [vmem:[#allocation9_spill] sm:$0xff] }
 0x9cc   : > { %v9804_v5 = vpop.permute.xlu0 %5488  ;;  %v7022_v48 = vpack.c.bf16 %v2149_v30, %v2147_v20  ;;  %v2376_v13 = vmul.f32 %v2368_v39, %v12182_v31  ;;  %v2367_v20 = vld [vmem:[#allocation2 + $0x8] sm:$0xff]  ;;  %v3886_v39 = vmul.f32 %v12098_v3, %v9709_v43  ;;  %v12360_v3 = vld [vmem:[#allocation129_spill] sm:$0xff] }
 0x9cd   : > { %12170 = vst [vmem:[#allocation14_spill] sm:$0xff] %v9804_v5  ;;  %v9808_v51 = vpop.permute.xlu1 %4048  ;;  %7019 = vmatpush1.bf16.msra.mxu1 %v7018_v45 }
 0x9ce   : > { %12171 = vst [vmem:[#allocation60_spill] sm:$0xff] %v9808_v51  ;;  %3256 = vrot.lane.b32.xlu0 %v3240_v60, %s12173_s30  ;;  %7021 = vmatprep.subr.bf16.mxu1 %v7020_v38  ;;  %v7024_v60 = vpack.c.bf16 %v2154_v11, %v2152_v23  ;;  %v12184_v11 = vld [vmem:[#allocation81_spill] sm:$0xff] }
 0x9cf   : > { %4542 = vrot.lane.b32.xlu1 %v9543_v9, %s12087_s9  ;;  %v12180_v9 = vld [vmem:[#allocation20_spill] sm:$0xff]  ;;  %v9844_v23 = vsel %vm11876_vm4, %v12184_v11, %v12183_v54 }
 0x9d0   : > { %v9828_v45 = vpop.permute.xlu0 %3498  ;;  %v2151_v30 = vsel %vm11779_vm8, %v12180_v9, %v9559_v4  ;;  %12185 = vst [vmem:[#allocation27_spill] sm:$0xff] %v9844_v23  ;;  %v3985_v46 = vmul.f32 %v9844_v23, %v9709_v43  ;;  %v7028_v4 = vpack.c.bf16 %v2807_v61, %v2376_v13  ;;  %v12188_v9 = vld [vmem:[#allocation8_spill] sm:$0xff]  ;;  %v2809_v13 = vld [vmem:[#allocation3 + $0x128] sm:$0xff]  ;;  %vm11790_vm8 = vcmask 646144  }
 0x9d1   : > { %12178 = vst [vmem:[#allocation15_spill] sm:$0xff] %v9828_v45  ;;  %v9834_v38 = vpop.permute.xlu1 %4054  ;;  %7023 = vmatpush1.bf16.msra.mxu1 %v7022_v48  ;;  %v7026_v48 = vpack.c.bf16 %v2153_v57, %v2151_v30  ;;  %v2375_v31 = vmul.f32 %v2367_v20, %v12188_v9  ;;  %v2811_v54 = vld [vmem:[#allocation3 + $0x138] sm:$0xff]  ;;  %v12190_v57 = vld [vmem:[#allocation65_spill] sm:$0xff]  ;;  %v12191_v30 = vld [vmem:[#allocation83_spill] sm:$0xff] }
 0x9d2   : > { %3631 = vrot.lane.b32.xlu0 %v3615_v19, %s12181_s2  ;;  %7025 = vmatprep.subr.bf16.mxu1 %v7024_v60  ;;  %v2806_v19 = vld [vmem:[#allocation3 + $0x110] sm:$0xff]  ;;  %v9861_v21 = vsel %vm384_vm6, %v12191_v30, %v12190_v57 }
 0x9d3   : > { %5151 = vrot.lane.b32.xlu1 %v9832_v0, %s12186_s15  ;;  %12192 = vst [vmem:[#allocation62_spill] sm:$0xff] %v9861_v21  ;;  %v7030_v61 = vpack.c.bf16 %v2806_v19, %v2375_v31  ;;  %v4317_v23 = vmul.f32 %v9861_v21, %v9709_v43  ;;  %v2810_v20 = vld [vmem:[#allocation3 + $0x130] sm:$0xff]  ;;  %v2808_v19 = vld [vmem:[#allocation3 + $0x120] sm:$0xff] }
 0x9d4   : > { %v9850_v51 = vpop.permute.xlu0 %3040  ;;  %v12198_v31 = vld [vmem:[#allocation87_spill] sm:$0xff]  ;;  %v7034_v58 = vpack.c.bf16 %v2810_v20, %v2808_v19  ;;  %v2653_v20 = vsel %vm11880_vm3, %v9389_v17, %v9423_v56  ;;  %v4940_v17 = vmul.f32 %v12114_v47, %v9709_v43  ;;  %v12256_v0 = vld [vmem:[#allocation37_spill] sm:$0xff] }
 0x9d5   : > { %12187 = vst [vmem:[#allocation17_spill] sm:$0xff] %v9850_v51  ;;  %v9854_v60 = vpop.permute.xlu1 %3796  ;;  %7027 = vmatpush1.bf16.msra.mxu1 %v7026_v48  ;;  %v7032_v48 = vpack.c.bf16 %v2811_v54, %v2809_v13  ;;  %v12200_v54 = vld [vmem:[#allocation32_spill] sm:$0xff]  ;;  %v12349_v47 = vld [vmem:[#allocation151_spill] sm:$0xff] }
 0x9d6   : > { %4001 = vrot.lane.b32.xlu0 %v3985_v46, %s12189_s4  ;;  %7029 = vmatprep.subr.bf16.mxu1 %v7028_v4  ;;  %v4256_v46 = vmul.f32 %v12103_v32, %v9709_v43  ;;  %v12194_v4 = vld [vmem:[#allocation33_spill] sm:$0xff]  ;;  %v2654_v13 = vsel %vm11880_vm3, %v9423_v56, %v12200_v54  ;;  %v12358_v32 = vld [vmem:[#allocation154_spill] sm:$0xff] }
 0x9d7   : > { %3903 = vrot.lane.b32.xlu1 %v3886_v39, %s11903_s10  ;;  %v2656_v9 = vsel %vm11880_vm3, %v9493_v41, %v12194_v4  ;;  %v12197_v39 = vld [vmem:[#allocation67_spill] sm:$0xff] }
 0x9d8   : > { %v9866_v14 = vpop.permute.xlu0 %3415  ;;  %v9879_v21 = vsel %vm278_vm7, %v12198_v31, %v12197_v39  ;;  %v7036_v4 = vpack.c.bf16 %v2656_v9, %v2654_v13  ;;  %v4579_v39 = vmul.f32 %v12109_v24, %v9709_v43  ;;  %v12355_v24 = vld [vmem:[#allocation121_spill] sm:$0xff] }
 0x9d9   : > { %12193 = vst [vmem:[#allocation29_spill] sm:$0xff] %v9866_v14  ;;  %v9873_v57 = vpop.permute.xlu1 %4379  ;;  %7031 = vmatpush1.bf16.msra.mxu1 %v7030_v61  ;;  %12199 = vst [vmem:[#allocation63_spill] sm:$0xff] %v9879_v21  ;;  %v4678_v61 = vmul.f32 %v9879_v21, %v9709_v43  ;;  %v12249_v14 = vld [vmem:[#allocation114_spill] sm:$0xff] }
 0x9da   : > { %12195 = vst [vmem:[#allocation18_spill] sm:$0xff] %v9873_v57  ;;  %4333 = vrot.lane.b32.xlu0 %v4317_v23, %s12196_s24  ;;  %7033 = vmatprep.subr.bf16.mxu1 %v7032_v48  ;;  %v2655_v23 = vsel %vm11880_vm3, %v9393_v15, %v9493_v41 }
 0x9db   : > { %4273 = vrot.lane.b32.xlu1 %v4256_v46, %s12016_s17  ;;  %v12202_v46 = vld [vmem:[#allocation91_spill] sm:$0xff]  ;;  %v7038_v41 = vpack.c.bf16 %v2655_v23, %v2653_v20 }
 0x9dc   : > { %v9890_v48 = vpop.permute.xlu0 %3790  ;;  %v9903_v15 = vsel %vm11767_vm12, %v12202_v46, %v8821_v6  ;;  %v12206_v6 = vld [vmem:[#allocation95_spill] sm:$0xff]  ;;  %vm11772_vm12 = vcmask 629760  }
 0x9dd   : > { %12201 = vst [vmem:[#allocation30_spill] sm:$0xff] %v9890_v48  ;;  %v9894_v57 = vpop.permute.xlu1 %4385  ;;  %7035 = vmatpush1.bf16.msra.mxu1 %v7034_v58  ;;  %12203 = vst [vmem:[#allocation20_spill] sm:$0xff] %v9903_v15  ;;  %v5039_v9 = vmul.f32 %v9903_v15, %v9709_v43  ;;  %v9918_v19 = vsel %vm11770_vm13, %v12206_v6, %v8828_v29  ;;  %vm11775_vm13 = vcmask 236544   ;;  %v3936_v15 = vmul.f32 %v12140_v55, %v9709_v43  ;;  %v12248_v48 = vld [vmem:[#allocation38_spill] sm:$0xff] }
 0x9de   : > { %4694 = vrot.lane.b32.xlu0 %v4678_v61, %s11984_s18  ;;  %7037 = vmatprep.subr.bf16.mxu1 %v7036_v4  ;;  %12207 = vst [vmem:[#allocation64_spill] sm:$0xff] %v9918_v19  ;;  %v5400_v54 = vmul.f32 %v9918_v19, %v9709_v43  ;;  %v5301_v61 = vmul.f32 %v12121_v18, %v9709_v43  ;;  %v12211_v4 = vld [vmem:[#allocation71_spill] sm:$0xff]  ;;  %v12345_v18 = vld [vmem:[#allocation106_spill] sm:$0xff] }
 0x9df   : > { %4596 = vrot.lane.b32.xlu1 %v4579_v39, %s12017_s8  ;;  %v9933_v29 = vsel %vm11772_vm12, %v8934_v27, %v12211_v4  ;;  %vm11781_vm12 = vcmask 637952   ;;  %s12230_s8 = smov 127   ;;  %v2242_v51 = vsel %vm340_vm5, %v12249_v14, %v12248_v48 }
 0x9e0   : > { %v9908_v58 = vpop.permute.xlu0 %4160  ;;  %12212 = vst [vmem:[#allocation33_spill] sm:$0xff] %v9933_v29  ;;  %v3032_v39 = vmul.f32 %v9577_v22, %v9933_v29  ;;  %v12254_v29 = vld [vmem:[#allocation36_spill] sm:$0xff] }
 0x9e1   : > { %12204 = vst [vmem:[#allocation9_spill] sm:$0xff] %v9908_v58  ;;  %v9912_v56 = vpop.permute.xlu1 %4166  ;;  %7039 = vmatpush1.bf16.msra.mxu1 %v7038_v41  ;;  %v3189_v41 = vmul.f32 %v12128_v42, %v9709_v43  ;;  %v3239_v58 = vmul.f32 %v9577_v22, %v12167_v7  ;;  %v12257_v7 = vld [vmem:[#allocation165_spill] sm:$0xff] }
 0x9e2   : > { %5055 = vrot.lane.b32.xlu0 %v5039_v9, %s12205_s3 }
 0x9e3   : > { %4957 = vrot.lane.b32.xlu1 %v4940_v17, %s12120_s28  ;;  %s12214_s28 = smov 51   ;;  %v12215_v17 = vld [vmem:[#allocation100_spill] sm:$0xff] }
 0x9e4   : > { %v9923_v13 = vpop.permute.xlu0 %4486  ;;  %v9948_v27 = vsel %vm11775_vm13, %v12215_v17, %v8840_v52  ;;  %vm11788_vm13 = vcmask 244736  }
 0x9e5   : > { %12208 = vst [vmem:[#allocation8_spill] sm:$0xff] %v9923_v13  ;;  %v9927_v23 = vpop.permute.xlu1 %4740  ;;  %12216 = vst [vmem:[#allocation32_spill] sm:$0xff] %v9948_v27 }
 0x9e6   : > { %12209 = vst [vmem:[#allocation65_spill] sm:$0xff] %v9927_v23  ;;  %5416 = vrot.lane.b32.xlu0 %v5400_v54, %s12210_s16  ;;  %v3292_v54 = vmul.f32 %v9948_v27, %v9709_v43  ;;  %v3564_v23 = vmul.f32 %v12134_v12, %v9709_v43 }
 0x9e7   : > { %5318 = vrot.lane.b32.xlu1 %v5301_v61, %s12127_s20  ;;  %s12218_s20 = smov 99  }
 0x9e8   : > { %v9938_v20 = vpop.permute.xlu0 %4847 }
 0x9e9   : > { %12213 = vst [vmem:[#allocation67_spill] sm:$0xff] %v9938_v20  ;;  %v9942_v9 = vpop.permute.xlu1 %4746 }
 0x9ea   : > { %3048 = vrot.lane.b32.xlu0 %v3032_v39, %s12214_s28  ;;  %v12219_v39 = vld [vmem:[#allocation74_spill] sm:$0xff] }
 0x9eb   : > { %3206 = vrot.lane.b32.xlu1 %v3189_v41, %s12133_s6  ;;  %v9963_v52 = vsel %vm11781_vm12, %v8946_v37, %v12219_v39  ;;  %s12223_s6 = smov 50   ;;  %vm11801_vm12 = vcmask 252928  }
 0x9ec   : > { %v9953_v61 = vpop.permute.xlu0 %5208  ;;  %12220 = vst [vmem:[#allocation186_spill] sm:$0xff] %v9963_v52  ;;  %v3407_v41 = vmul.f32 %v9577_v22, %v9963_v52  ;;  %v12253_v52 = vld [vmem:[#allocation11_spill] sm:$0xff] }
 0x9ed   : > { %12217 = vst [vmem:[#allocation185_spill] sm:$0xff] %v9953_v61  ;;  %v9957_v19 = vpop.permute.xlu1 %4492 }
 0x9ee   : > { %3308 = vrot.lane.b32.xlu0 %v3292_v54, %s12218_s20  ;;  %v12224_v54 = vld [vmem:[#allocation105_spill] sm:$0xff] }
 0x9ef   : > { %3581 = vrot.lane.b32.xlu1 %v3564_v23, %s12139_s11  ;;  %v9978_v37 = vsel %vm11788_vm13, %v12224_v54, %v8857_v53  ;;  %s12229_s11 = smov 98   ;;  %vm11811_vm13 = vcmask 261120  }
 0x9f0   : > { %v9968_v27 = vpop.permute.xlu0 %3092  ;;  %12225 = vst [vmem:[#allocation189_spill] sm:$0xff] %v9978_v37  ;;  %v3667_v23 = vmul.f32 %v9978_v37, %v9709_v43  ;;  %v12232_v37 = vld [vmem:[#allocation110_spill] sm:$0xff] }
 0x9f1   : > { %12221 = vst [vmem:[#allocation187_spill] sm:$0xff] %v9968_v27  ;;  %v9972_v21 = vpop.permute.xlu1 %5101  ;;  %v12227_v27 = vld [vmem:[#allocation79_spill] sm:$0xff] }
 0x9f2   : > { %12222 = vst [vmem:[#allocation188_spill] sm:$0xff] %v9972_v21  ;;  %3423 = vrot.lane.b32.xlu0 %v3407_v41, %s12223_s6  ;;  %v9988_v20 = vsel %vm11790_vm8, %v8958_v44, %v12227_v27  ;;  %v4627_v41 = vmul.f32 %v12147_v40, %v9577_v22  ;;  %v10003_v44 = vsel %vm11801_vm12, %v12232_v37, %v8878_v26  ;;  %vm11816_vm8 = vcmask 662528  }
 0x9f3   : > { %3953 = vrot.lane.b32.xlu1 %v3936_v15, %s12020_s27  ;;  %12228 = vst [vmem:[#allocation191_spill] sm:$0xff] %v9988_v20  ;;  %v3782_v53 = vmul.f32 %v9577_v22, %v9988_v20  ;;  %12233 = vst [vmem:[#allocation193_spill] sm:$0xff] %v10003_v44  ;;  %s12234_s27 = smov 49   ;;  %v5349_v26 = vmul.f32 %v12159_v34, %v9577_v22  ;;  %v12252_v20 = vld [vmem:[#allocation34_spill] sm:$0xff]  ;;  %vm11822_vm12 = vcmask 269312   ;;  %v12259_v34 = vld [vmem:[#allocation92_spill] sm:$0xff] }
 0x9f4   : > { %v9983_v61 = vpop.permute.xlu0 %3467 }
 0x9f5   : > { %12226 = vst [vmem:[#allocation190_spill] sm:$0xff] %v9983_v61  ;;  %v9992_v21 = vpop.permute.xlu1 %5107  ;;  %v4988_v61 = vmul.f32 %v12153_v10, %v9577_v22 }
 0x9f6   : > { %3683 = vrot.lane.b32.xlu0 %v3667_v23, %s12229_s11  ;;  %v4036_v23 = vmul.f32 %v10003_v44, %v9709_v43  ;;  %v12242_v44 = vld [vmem:[#allocation116_spill] sm:$0xff] }
 0x9f7   : > { %4642 = vrot.lane.b32.xlu1 %v4627_v41, %s12230_s8  ;;  %s12239_s8 = smov 97  }
 0x9f8   : > { %v9998_v15 = vpop.permute.xlu0 %3842 }
 0x9f9   : > { %12231 = vst [vmem:[#allocation192_spill] sm:$0xff] %v9998_v15  ;;  %v10007_v13 = vpop.permute.xlu1 %4853  ;;  %v12236_v15 = vld [vmem:[#allocation84_spill] sm:$0xff] }
 0x9fa   : > { %3798 = vrot.lane.b32.xlu0 %v3782_v53, %s12234_s27  ;;  %v10018_v2 = vsel %vm11807_vm9, %v12067_v1, %v12236_v15  ;;  %vm11828_vm9 = vcmask 670720  }
 0x9fb   : > { %5003 = vrot.lane.b32.xlu1 %v4988_v61, %s12157_s29  ;;  %12237 = vst [vmem:[#allocation195_spill] sm:$0xff] %v10018_v2  ;;  %v4152_v61 = vmul.f32 %v9577_v22, %v10018_v2  ;;  %s12244_s29 = smov 48   ;;  %v12250_v2 = vld [vmem:[#allocation177_spill] sm:$0xff] }
 0x9fc   : > { %v10013_v41 = vpop.permute.xlu0 %4212 }
 0x9fd   : > { %12235 = vst [vmem:[#allocation194_spill] sm:$0xff] %v10013_v41  ;;  %v10022_v28 = vpop.permute.xlu1 %5462  ;;  %v12241_v41 = vld [vmem:[#allocation86_spill] sm:$0xff] }
 0x9fe   : > { %12238 = vst [vmem:[#allocation196_spill] sm:$0xff] %v10022_v28  ;;  %4052 = vrot.lane.b32.xlu0 %v4036_v23, %s12239_s8  ;;  %v10033_v1 = vsel %vm11811_vm13, %v12242_v44, %v12241_v41  ;;  %v12245_v23 = vld [vmem:[#allocation90_spill] sm:$0xff]  ;;  %vm11833_vm13 = vcmask 277504  }
 0x9ff   : > { %5364 = vrot.lane.b32.xlu1 %v5349_v26, %s12165_s25  ;;  %12243 = vst [vmem:[#allocation86_spill] sm:$0xff] %v10033_v1  ;;  %v12246_v26 = vld [vmem:[#allocation120_spill] sm:$0xff]  ;;  %v4367_v41 = vmul.f32 %v10033_v1, %v9709_v43  ;;  %s12305_s25 = smov 45  }
 0xa00   : > { %v10028_v53 = vpop.permute.xlu0 %4536  ;;  %v10044_v50 = vsel %vm11816_vm8, %v12246_v26, %v12245_v23  ;;  %v2658_v26 = vsel %vm11880_vm3, %v12250_v2, %v12252_v20  ;;  %v12258_v20 = vld [vmem:[#allocation160_spill] sm:$0xff]  ;;  %vm11834_vm8 = vcmask 678912  }
 0xa01   : > { %12240 = vst [vmem:[#allocation197_spill] sm:$0xff] %v10028_v53  ;;  %v10037_v28 = vpop.permute.xlu1 %5468  ;;  %12247 = vst [vmem:[#allocation120_spill] sm:$0xff] %v10044_v50  ;;  %v3614_v53 = vmul.f32 %v9577_v22, %v12175_v63 }
 0xa02   : > { %4168 = vrot.lane.b32.xlu0 %v4152_v61, %s12244_s29  ;;  %v12251_v61 = vld [vmem:[#allocation132_spill] sm:$0xff] }
 0xa03   : > { %3254 = vrot.lane.b32.xlu1 %v3239_v58, %s12173_s30  ;;  %v2657_v58 = vsel %vm11880_vm3, %v12251_v61, %v12250_v2  ;;  %s12255_s30 = smov 96   ;;  %v2240_v61 = vsel %vm340_vm5, %v12257_v7, %v12256_v0  ;;  %v4478_v2 = vmul.f32 %v9577_v22, %v10044_v50  ;;  %v12262_v0 = vld [vmem:[#allocation41_spill] sm:$0xff] }
 0xa04   : > { %v2650_v45 = vpop.permute.xlu0 %2649 }
 0xa05   : > { %v2659_v5 = vsel %vm11880_vm3, %v12253_v52, %v2650_v45  ;;  %v2660_v25 = vsel %vm11880_vm3, %v2650_v45, %v12254_v29  ;;  %v10063_v1 = vpop.permute.xlu1 %5214  ;;  %v2241_v45 = vsel %vm340_vm5, %v12258_v20, %v12249_v14  ;;  %v7044_v52 = vpack.c.bf16 %v2242_v51, %v2240_v61  ;;  %v12264_v14 = vld [vmem:[#allocation159_spill] sm:$0xff]  ;;  %v12266_v51 = vld [vmem:[#allocation40_spill] sm:$0xff] }
 0xa06   : > { %4383 = vrot.lane.b32.xlu0 %v4367_v41, %s12255_s30  ;;  %v7040_v48 = vpack.c.bf16 %v2660_v25, %v2658_v26  ;;  %v7042_v63 = vpack.c.bf16 %v2659_v5, %v2657_v58  ;;  %v12260_v41 = vld [vmem:[#allocation122_spill] sm:$0xff]  ;;  %v3984_v5 = vmul.f32 %v9577_v22, %v12184_v11  ;;  %v2239_v26 = vsel %vm340_vm5, %v12264_v14, %v12257_v7  ;;  %v12270_v7 = vld [vmem:[#allocation124_spill] sm:$0xff] }
 0xa07   : > { %3629 = vrot.lane.b32.xlu1 %v3614_v53, %s12181_s2  ;;  %v10078_v25 = vsel %vm11822_vm12, %v12260_v41, %v12259_v34  ;;  %s12265_s2 = smov 47   ;;  %v12267_v34 = vld [vmem:[#allocation179_spill] sm:$0xff]  ;;  %v7046_v61 = vpack.c.bf16 %v2241_v45, %v2239_v26  ;;  %v12269_v11 = vld [vmem:[#allocation94_spill] sm:$0xff]  ;;  %v12272_v14 = vld [vmem:[#allocation44_spill] sm:$0xff]  ;;  %vm11836_vm12 = vcmask 285696  }
 0xa08   : > { %v2236_v29 = vpop.permute.xlu0 %2235  ;;  %7041 = vmatprep.subr.bf16.mxu1 %v7040_v48  ;;  %12261 = vst [vmem:[#allocation38_spill] sm:$0xff] %v10078_v25  ;;  %v2244_v48 = vsel %vm340_vm5, %v12267_v34, %v12266_v51  ;;  %v4728_v20 = vmul.f32 %v10078_v25, %v9709_v43  ;;  %v12273_v51 = vld [vmem:[#allocation169_spill] sm:$0xff]  ;;  %v12276_v26 = vld [vmem:[#allocation42_spill] sm:$0xff] }
 0xa09   : > { %v2246_v53 = vsel %vm340_vm5, %v2236_v29, %v12262_v0  ;;  %v10084_v58 = vpop.permute.xlu1 %3356  ;;  %7043 = vmatpush1.bf16.msra.mxu1 %v7042_v63  ;;  %v12268_v0 = vld [vmem:[#allocation168_spill] sm:$0xff]  ;;  %v2462_v45 = vsel %vm367_vm2, %v12273_v51, %v12272_v14 }
 0xa0a   : > { %12263 = vst [vmem:[#allocation114_spill] sm:$0xff] %v10084_v58  ;;  %4494 = vrot.lane.b32.xlu0 %v4478_v2, %s12265_s2  ;;  %7045 = vmatprep.subr.bf16.mxu1 %v7044_v52  ;;  %v2245_v63 = vsel %vm340_vm5, %v12268_v0, %v2236_v29  ;;  %v7048_v50 = vpack.c.bf16 %v2246_v53, %v2244_v48  ;;  %v12274_v29 = vld [vmem:[#allocation134_spill] sm:$0xff] }
 0xa0b   : > { %3999 = vrot.lane.b32.xlu1 %v3984_v5, %s12189_s4  ;;  %v10101_v2 = vsel %vm11828_vm9, %v12270_v7, %v12269_v11  ;;  %v4316_v52 = vmul.f32 %v9577_v22, %v12191_v30  ;;  %v2243_v53 = vsel %vm340_vm5, %v12274_v29, %v12267_v34  ;;  %s12275_s4 = smov 95   ;;  %v12277_v48 = vld [vmem:[#allocation166_spill] sm:$0xff]  ;;  %v12279_v34 = vld [vmem:[#allocation96_spill] sm:$0xff]  ;;  %vm11842_vm9 = vcmask 760832  }
 0xa0c   : > { %v2456_v58 = vpop.permute.xlu0 %2455  ;;  %12271 = vst [vmem:[#allocation177_spill] sm:$0xff] %v10101_v2  ;;  %v2460_v0 = vsel %vm367_vm2, %v12277_v48, %v12276_v26  ;;  %v7050_v7 = vpack.c.bf16 %v2245_v63, %v2243_v53  ;;  %v4839_v14 = vmul.f32 %v10101_v2, %v9577_v22  ;;  %v12280_v29 = vld [vmem:[#allocation126_spill] sm:$0xff]  ;;  %v12283_v53 = vld [vmem:[#allocation161_spill] sm:$0xff] }
 0xa0d   : > { %v10108_v5 = vpop.permute.xlu1 %3362  ;;  %7047 = vmatpush1.bf16.msra.mxu1 %v7046_v61  ;;  %v12278_v61 = vld [vmem:[#allocation162_spill] sm:$0xff]  ;;  %v7052_v55 = vpack.c.bf16 %v2462_v45, %v2460_v0  ;;  %v12285_v45 = vld [vmem:[#allocation45_spill] sm:$0xff] }
 0xa0e   : > { %4744 = vrot.lane.b32.xlu0 %v4728_v20, %s12275_s4  ;;  %7049 = vmatprep.subr.bf16.mxu1 %v7048_v50  ;;  %v2461_v25 = vsel %vm367_vm2, %v12278_v61, %v12273_v51  ;;  %v10126_v50 = vsel %vm11833_vm13, %v12280_v29, %v12279_v34  ;;  %v4677_v20 = vmul.f32 %v12198_v31, %v9577_v22  ;;  %v12282_v26 = vld [vmem:[#allocation46_spill] sm:$0xff]  ;;  %v12286_v0 = vld [vmem:[#allocation181_spill] sm:$0xff]  ;;  %vm11846_vm13 = vcmask 367616  }
 0xa0f   : > { %4331 = vrot.lane.b32.xlu1 %v4316_v52, %s12196_s24  ;;  %12281 = vst [vmem:[#allocation132_spill] sm:$0xff] %v10126_v50  ;;  %v2466_v63 = vsel %vm367_vm2, %v2456_v58, %v12282_v26  ;;  %v2459_v51 = vsel %vm367_vm2, %v12283_v53, %v12277_v48  ;;  %s12284_s24 = smov 46   ;;  %v2464_v61 = vsel %vm367_vm2, %v12286_v0, %v12285_v45  ;;  %v12287_v2 = vld [vmem:[#allocation170_spill] sm:$0xff]  ;;  %v12288_v48 = vld [vmem:[#allocation101_spill] sm:$0xff]  ;;  %v12289_v53 = vld [vmem:[#allocation128_spill] sm:$0xff] }
 0xa10   : > { %v2742_v30 = vpop.permute.xlu0 %2741  ;;  %v7054_v34 = vpack.c.bf16 %v2461_v25, %v2459_v51  ;;  %v5089_v26 = vmul.f32 %v10126_v50, %v9709_v43  ;;  %v7056_v10 = vpack.c.bf16 %v2466_v63, %v2464_v61  ;;  %v12291_v45 = vld [vmem:[#allocation48_spill] sm:$0xff]  ;;  %v12293_v51 = vld [vmem:[#allocation66_spill] sm:$0xff]  ;;  %v12296_v61 = vld [vmem:[#allocation47_spill] sm:$0xff] }
 0xa11   : > { %v10132_v52 = vpop.permute.xlu1 %3098  ;;  %7051 = vmatpush1.bf16.msra.mxu1 %v7050_v7  ;;  %v2465_v7 = vsel %vm367_vm2, %v12287_v2, %v2456_v58  ;;  %v12295_v2 = vld [vmem:[#allocation21_spill] sm:$0xff] }
 0xa12   : > { %4855 = vrot.lane.b32.xlu0 %v4839_v14, %s12284_s24  ;;  %7053 = vmatprep.subr.bf16.mxu1 %v7052_v55  ;;  %v10151_v55 = vsel %vm11834_vm8, %v12289_v53, %v12288_v48  ;;  %v5038_v14 = vmul.f32 %v12202_v46, %v9577_v22  ;;  %v2463_v63 = vsel %vm367_vm2, %v12295_v2, %v12286_v0  ;;  %v12297_v53 = vld [vmem:[#allocation167_spill] sm:$0xff]  ;;  %vm11847_vm8 = vcmask 769024  }
 0xa13   : > { %4692 = vrot.lane.b32.xlu1 %v4677_v20, %s11984_s18  ;;  %12290 = vst [vmem:[#allocation34_spill] sm:$0xff] %v10151_v55  ;;  %v12292_v20 = vld [vmem:[#allocation171_spill] sm:$0xff]  ;;  %v7058_v46 = vpack.c.bf16 %v2465_v7, %v2463_v63  ;;  %v5399_v2 = vmul.f32 %v12206_v6, %v9577_v22  ;;  %v12303_v63 = vld [vmem:[#allocation68_spill] sm:$0xff]  ;;  %s12416_s18 = smov 15  }
 0xa14   : > { %v10146_v31 = vpop.permute.xlu0 %3901  ;;  %v2748_v25 = vsel %vm11884_vm1, %v12292_v20, %v12291_v45  ;;  %v2746_v45 = vsel %vm11884_vm1, %v12297_v53, %v12296_v61  ;;  %v12299_v0 = vld [vmem:[#allocation103_spill] sm:$0xff]  ;;  %v12308_v6 = vld [vmem:[#allocation172_spill] sm:$0xff] }
 0xa15   : > { %v3907_v50 = vsel %vm278_vm7, %v12293_v51, %v10146_v31  ;;  %v10161_v58 = vpop.permute.xlu1 %3731  ;;  %7055 = vmatpush1.bf16.msra.mxu1 %v7054_v34  ;;  %v5200_v51 = vmul.f32 %v10151_v55, %v9577_v22  ;;  %v12298_v34 = vld [vmem:[#allocation164_spill] sm:$0xff]  ;;  %v2751_v40 = vsel %vm11884_vm1, %v12308_v6, %v2742_v30 }
 0xa16   : > { %12294 = vst [vmem:[#allocation11_spill] sm:$0xff] %v10161_v58  ;;  %3915 = vst [vmem:[#allocation3 + $0x210] sm:$0xff] %v3907_v50  ;;  %5105 = vrot.lane.b32.xlu0 %v5089_v26, %s12076_s19  ;;  %7057 = vmatprep.subr.bf16.mxu1 %v7056_v10  ;;  %v2747_v58 = vsel %vm11884_vm1, %v12298_v34, %v12292_v20  ;;  %v7060_v50 = vpack.c.bf16 %v2748_v25, %v2746_v45  ;;  %v12300_v26 = vld [vmem:[#allocation130_spill] sm:$0xff]  ;;  %v2769_v20 = vld [vmem:[%s11900_s0 + $0x1c0] sm:$0xff] }
 0xa17   : > { %5053 = vrot.lane.b32.xlu1 %v5038_v14, %s12205_s3  ;;  %v10181_v10 = vsel %vm11836_vm12, %v12300_v26, %v12299_v0  ;;  %v12302_v14 = vld [vmem:[#allocation50_spill] sm:$0xff]  ;;  %v12304_v25 = vld [vmem:[#allocation163_spill] sm:$0xff]  ;;  %v12306_v34 = vld [vmem:[#allocation49_spill] sm:$0xff]  ;;  %s12319_s3 = smov 35   ;;  %vm11856_vm12 = vcmask 375808  }
 0xa18   : > { %v10176_v12 = vpop.permute.xlu0 %4271  ;;  %12301 = vst [vmem:[#allocation36_spill] sm:$0xff] %v10181_v10  ;;  %v2752_v7 = vsel %vm11884_vm1, %v2742_v30, %v12302_v14  ;;  %v2745_v45 = vsel %vm11884_vm1, %v12304_v25, %v12297_v53  ;;  %v12307_v0 = vld [vmem:[#allocation183_spill] sm:$0xff]  ;;  %v3033_v25 = vmul.f32 %v12211_v4, %v9709_v43 }
 0xa19   : > { %v4277_v61 = vsel %vm384_vm6, %v12303_v63, %v10176_v12  ;;  %v10190_v55 = vpop.permute.xlu1 %3737  ;;  %7059 = vmatpush1.bf16.msra.mxu1 %v7058_v46  ;;  %v2750_v14 = vsel %vm11884_vm1, %v12307_v0, %v12306_v34  ;;  %v7062_v46 = vpack.c.bf16 %v2747_v58, %v2745_v45  ;;  %v5450_v63 = vmul.f32 %v10181_v10, %v9709_v43  ;;  %v12312_v58 = vld [vmem:[#allocation69_spill] sm:$0xff]  ;;  %v12313_v30 = vld [vmem:[#allocation175_spill] sm:$0xff] }
 0xa1a   : > { %4285 = vst [vmem:[#allocation3 + $0x230] sm:$0xff] %v4277_v61  ;;  %5216 = vrot.lane.b32.xlu0 %v5200_v51, %s12305_s25  ;;  %7061 = vmatprep.subr.bf16.mxu1 %v7060_v50  ;;  %v7064_v53 = vpack.c.bf16 %v2752_v7, %v2750_v14  ;;  %v12309_v61 = vld [vmem:[#allocation108_spill] sm:$0xff]  ;;  %v2749_v6 = vsel %vm11884_vm1, %v12313_v30, %v12307_v0  ;;  %v12314_v14 = vld [vmem:[#allocation109_spill] sm:$0xff]  ;;  %v12328_v10 = vld [vmem:[#allocation123_spill] sm:$0xff] }
 0xa1b   : > { %5414 = vrot.lane.b32.xlu1 %v5399_v2, %s12210_s16  ;;  %v12310_v51 = vld [vmem:[#allocation136_spill] sm:$0xff]  ;;  %v7066_v7 = vpack.c.bf16 %v2751_v40, %v2749_v6  ;;  %v12320_v6 = vld [vmem:[#allocation115_spill] sm:$0xff] }
 0xa1c   : > { %v10207_v42 = vpop.permute.xlu0 %4594  ;;  %2914 = vmatmul.mubr.f32.vlgmr.msra.gmra.mrb[16].mxu1 %v2769_v20  ;;  %v10212_v50 = vsel %vm11842_vm9, %v12310_v51, %v12309_v61  ;;  %v1974_v20 = vld [vmem:[%s11895_s1 + $0x328] sm:$0xff]  ;;  %vm11861_vm9 = vcmask 384000   ;;  %v12339_v4 = vld [vmem:[#allocation147_spill] sm:$0xff]  ;;  %s12366_s1 = smov 30  }
 0xa1d   : > { %12311 = vst [vmem:[#allocation37_spill] sm:$0xff] %v10212_v50  ;;  %v4600_v2 = vsel %vm11876_vm4, %v12312_v58, %v10207_v42  ;;  %v10219_v45 = vpop.permute.xlu1 %3473  ;;  %7063 = vmatpush1.bf16.msra.mxu1 %v7062_v46  ;;  %2984 = vmatprep.mubr.f32.mxu1 %v9471_v59  ;;  %v3084_v34 = vmul.f32 %v9577_v22, %v10212_v50  ;;  %v12315_v46 = vld [vmem:[#allocation138_spill] sm:$0xff]  ;;  %v2771_v58 = vld [vmem:[%s11900_s0 + $0x1d0] sm:$0xff]  ;;  %s12419_s0 = smov 14  }
 0xa1e   : > { %4608 = vst [vmem:[#allocation3 + $0x250] sm:$0xff] %v4600_v2  ;;  %5466 = vrot.lane.b32.xlu0 %v5450_v63, %s12085_s12  ;;  %7065 = vmatprep.subr.bf16.mxu1 %v7064_v53  ;;  %v10237_v0 = vsel %vm11846_vm13, %v12315_v46, %v12314_v14  ;;  %v3291_v63 = vmul.f32 %v9577_v22, %v12215_v17  ;;  %v12317_v53 = vld [vmem:[#allocation70_spill] sm:$0xff]  ;;  %v12321_v14 = vld [vmem:[#allocation140_spill] sm:$0xff]  ;;  %vm12337_vm13 = vcmask 7168   ;;  %v12341_v17 = vld [vmem:[#allocation99_spill] sm:$0xff] }
 0xa1f   : > { %3050 = vrot.lane.b32.xlu1 %v3033_v25, %s12214_s28  ;;  %12316 = vst [vmem:[#allocation165_spill] sm:$0xff] %v10237_v0  ;;  %v2844_v25 = vld [vmem:[#allocation3 + $0x240] sm:$0xff]  ;;  %v3344_v2 = vmul.f32 %v10237_v0, %v9709_v43  ;;  %v12325_v0 = vld [vmem:[#allocation142_spill] sm:$0xff] }
 0xa20   : > { %v10232_v59 = vpop.permute.xlu0 %4955 }
 0xa21   : > { %v4961_v40 = vsel %vm11877_vm10, %v12317_v53, %v10232_v59  ;;  %v10244_v51 = vpop.permute.xlu1 %4100  ;;  %7067 = vmatpush1.bf16.msra.mxu1 %v7066_v7  ;;  %v10258_v7 = vsel %vm11847_vm8, %v12321_v14, %v12320_v6  ;;  %vm11865_vm8 = vcmask 785408  }
 0xa22   : > { %12318 = vst [vmem:[#allocation160_spill] sm:$0xff] %v10244_v51  ;;  %4969 = vst [vmem:[#allocation3 + $0x270] sm:$0xff] %v4961_v40  ;;  %3100 = vrot.lane.b32.xlu0 %v3084_v34, %s12319_s3  ;;  %2928 = vmatprep.subr.mxu1 %v1974_v20  ;;  %v3408_v20 = vmul.f32 %v12219_v39, %v9709_v43  ;;  %v12323_v34 = vld [vmem:[#allocation73_spill] sm:$0xff]  ;;  %v3459_v40 = vmul.f32 %v9577_v22, %v10258_v7  ;;  %v12331_v39 = vld [vmem:[#allocation82_spill] sm:$0xff] }
 0xa23   : > { %3306 = vrot.lane.b32.xlu1 %v3291_v63, %s12218_s20  ;;  %12322 = vst [vmem:[#allocation92_spill] sm:$0xff] %v10258_v7  ;;  %v12324_v51 = vld [vmem:[#allocation117_spill] sm:$0xff]  ;;  %v12329_v7 = vld [vmem:[#allocation144_spill] sm:$0xff] }
 0xa24   : > { %v10253_v30 = vpop.permute.xlu0 %5316 }
 0xa25   : > { %v5322_v63 = vsel %vm11878_vm0, %v12323_v34, %v10253_v30  ;;  %v10265_v53 = vpop.permute.xlu1 %4106  ;;  %2929 = vmatpush1.msra.mxu1 %v2844_v25  ;;  %v10277_v34 = vsel %vm11856_vm12, %v12325_v0, %v12324_v51  ;;  %v3666_v25 = vmul.f32 %v9577_v22, %v12224_v54  ;;  %v12334_v54 = vld [vmem:[#allocation145_spill] sm:$0xff]  ;;  %vm12346_vm12 = vcmask 1031168  }
 0xa26   : > { %5330 = vst [vmem:[#allocation3 + $0x290] sm:$0xff] %v5322_v63  ;;  %3360 = vrot.lane.b32.xlu0 %v3344_v2, %s12092_s13  ;;  %6676 = vmatmul.mubr.msk.f32.vlgmr.msra.gmra.mrb[16].mxu1 %vm1689_vm15, %v2771_v58  ;;  %12326 = vst [vmem:[#allocation41_spill] sm:$0xff] %v10277_v34  ;;  %v12327_v63 = vld [vmem:[#allocation77_spill] sm:$0xff]  ;;  %vm11857_vm15 = vcmask 777216  }
 0xa27   : > { %3425 = vrot.lane.b32.xlu1 %v3408_v20, %s12223_s6  ;;  %v3719_v20 = vmul.f32 %v10277_v34, %v9709_v43  ;;  %v10295_v50 = vsel %vm11857_vm15, %v12329_v7, %v12328_v10  ;;  %v12333_v34 = vld [vmem:[#allocation125_spill] sm:$0xff]  ;;  %vm11883_vm15 = vcmask 793600  }
 0xa28   : > { %v10272_v14 = vpop.permute.xlu0 %3204  ;;  %12330 = vst [vmem:[#allocation159_spill] sm:$0xff] %v10295_v50 }
 0xa29   : > { %v3211_v2 = vsel %vm11879_vm11, %v12327_v63, %v10272_v14  ;;  %v10284_v58 = vpop.permute.xlu1 %3848  ;;  %v3783_v63 = vmul.f32 %v12227_v27, %v9709_v43  ;;  %v10313_v27 = vsel %vm11861_vm9, %v12334_v54, %v12333_v34  ;;  %vm3802_vm9 = vcmask 400384  }
 0xa2a   : > { %3219 = vst [vmem:[#allocation3 + $0x2b0] sm:$0xff] %v3211_v2  ;;  %3475 = vrot.lane.b32.xlu0 %v3459_v40, %s12079_s7  ;;  %12335 = vst [vmem:[#allocation179_spill] sm:$0xff] %v10313_v27 }
 0xa2b   : > { %3681 = vrot.lane.b32.xlu1 %v3666_v25, %s12229_s11  ;;  %v3834_v25 = vmul.f32 %v9577_v22, %v10295_v50  ;;  %v12338_v50 = vld [vmem:[#allocation133_spill] sm:$0xff] }
 0xa2c   : > { %v10290_v51 = vpop.permute.xlu0 %3579 }
 0xa2d   : > { %v3586_v2 = vsel %vm11881_vm14, %v12331_v39, %v10290_v51  ;;  %v10302_v40 = vpop.permute.xlu1 %4429  ;;  %v4035_v39 = vmul.f32 %v9577_v22, %v12232_v37  ;;  %v10331_v37 = vsel %vm11865_vm8, %v12339_v4, %v12338_v50  ;;  %vm11882_vm8 = vcmask 801792  }
 0xa2e   : > { %12332 = vst [vmem:[#allocation40_spill] sm:$0xff] %v10302_v40  ;;  %3594 = vst [vmem:[#allocation3 + $0x2d0] sm:$0xff] %v3586_v2  ;;  %3735 = vrot.lane.b32.xlu0 %v3719_v20, %s12106_s22  ;;  %v12336_v40 = vld [vmem:[#allocation88_spill] sm:$0xff] }
 0xa2f   : > { %3800 = vrot.lane.b32.xlu1 %v3783_v63, %s12234_s27  ;;  %v4088_v63 = vmul.f32 %v10313_v27, %v9709_v43  ;;  %12340 = vst [vmem:[#allocation168_spill] sm:$0xff] %v10331_v37  ;;  %v12342_v27 = vld [vmem:[#allocation137_spill] sm:$0xff] }
 0xa30   : > { %v10308_v7 = vpop.permute.xlu0 %3951 }
 0xa31   : > { %v3957_v2 = vsel %vm12337_vm13, %v12336_v40, %v10308_v7  ;;  %v10320_v20 = vpop.permute.xlu1 %4435  ;;  %v4153_v40 = vmul.f32 %v12236_v15, %v9709_v43  ;;  %vm11870_vm13 = vcmask 392192  }
 0xa32   : > { %3965 = vst [vmem:[#allocation3 + $0x2f0] sm:$0xff] %v3957_v2  ;;  %3850 = vrot.lane.b32.xlu0 %v3834_v25, %s12082_s26  ;;  %v10349_v15 = vsel %vm11870_vm13, %v12343_v62, %v12342_v27  ;;  %vm3427_vm13 = vcmask 408576  }
 0xa33   : > { %4050 = vrot.lane.b32.xlu1 %v4035_v39, %s12239_s8  ;;  %v4204_v39 = vmul.f32 %v9577_v22, %v10331_v37  ;;  %12344 = vst [vmem:[#allocation124_spill] sm:$0xff] %v10349_v15  ;;  %v12348_v37 = vld [vmem:[#allocation143_spill] sm:$0xff] }
 0xa34   : > { %v10326_v34 = vpop.permute.xlu0 %4644 }
 0xa35   : > { %v4651_v2 = vsel %vm11880_vm3, %v10326_v34, %v12341_v17  ;;  %v10338_v25 = vpop.permute.xlu1 %4218  ;;  %v4366_v17 = vmul.f32 %v9577_v22, %v12242_v44  ;;  %v10367_v44 = vsel %vm11883_vm15, %v12349_v47, %v12348_v37 }
 0xa36   : > { %4659 = vst [vmem:[#allocation3 + $0x338] sm:$0xff] %v4651_v2  ;;  %4104 = vrot.lane.b32.xlu0 %v4088_v63, %s12124_s21  ;;  %12350 = vst [vmem:[#allocation169_spill] sm:$0xff] %v10367_v44 }
 0xa37   : > { %4170 = vrot.lane.b32.xlu1 %v4153_v40, %s12244_s29  ;;  %v4417_v40 = vmul.f32 %v10349_v15, %v9709_v43  ;;  %v4727_v15 = vmul.f32 %v12260_v41, %v9577_v22  ;;  %v12357_v41 = vld [vmem:[#allocation150_spill] sm:$0xff] }
 0xa38   : > { %v10344_v4 = vpop.permute.xlu0 %5005 }
 0xa39   : > { %v5012_v2 = vsel %vm12346_vm12, %v10344_v4, %v12345_v18  ;;  %v10356_v63 = vpop.permute.xlu1 %4790  ;;  %v4479_v18 = vmul.f32 %v12245_v23, %v9709_v43  ;;  %vm12352_vm12 = vcmask 1022976   ;;  %v12353_v23 = vld [vmem:[#allocation152_spill] sm:$0xff] }
 0xa3a   : > { %12347 = vst [vmem:[#allocation44_spill] sm:$0xff] %v10356_v63  ;;  %5020 = vst [vmem:[#allocation3 + $0x358] sm:$0xff] %v5012_v2  ;;  %4220 = vrot.lane.b32.xlu0 %v4204_v39, %s12084_s5  ;;  %v12351_v63 = vld [vmem:[#allocation113_spill] sm:$0xff] }
 0xa3b   : > { %4381 = vrot.lane.b32.xlu1 %v4366_v17, %s12255_s30  ;;  %v4528_v17 = vmul.f32 %v10367_v44, %v9577_v22 }
 0xa3c   : > { %v10362_v27 = vpop.permute.xlu0 %5366 }
 0xa3d   : > { %v5373_v2 = vsel %vm12352_vm12, %v10362_v27, %v12351_v63  ;;  %v10374_v39 = vpop.permute.xlu1 %4796  ;;  %v10387_v63 = vsel %vm3802_vm9, %v12353_v23, %v9272_v16  ;;  %vm12356_vm12 = vcmask 941056   ;;  %v4840_v16 = vmul.f32 %v12269_v11, %v9709_v43 }
 0xa3e   : > { %5381 = vst [vmem:[#allocation3 + $0x378] sm:$0xff] %v5373_v2  ;;  %4433 = vrot.lane.b32.xlu0 %v4417_v40, %s12143_s14  ;;  %12354 = vst [vmem:[#allocation134_spill] sm:$0xff] %v10387_v63  ;;  %v5088_v11 = vmul.f32 %v12280_v29, %v9577_v22  ;;  %v12367_v29 = vld [vmem:[#allocation148_spill] sm:$0xff] }
 0xa3f   : > { %4496 = vrot.lane.b32.xlu1 %v4479_v18, %s12265_s2  ;;  %v4778_v18 = vmul.f32 %v10387_v63, %v9709_v43 }
 0xa40   : > { %v10380_v47 = vpop.permute.xlu0 %3256 }
 0xa41   : > { %v3264_v2 = vsel %vm12356_vm12, %v10380_v47, %v12355_v24  ;;  %v10392_v40 = vpop.permute.xlu1 %4542  ;;  %v10405_v24 = vsel %vm11882_vm8, %v12358_v32, %v12357_v41  ;;  %vm12361_vm12 = vcmask 932864   ;;  %v12363_v32 = vld [vmem:[#allocation156_spill] sm:$0xff] }
 0xa42   : > { %3272 = vst [vmem:[#allocation3 + $0x398] sm:$0xff] %v3264_v2  ;;  %4544 = vrot.lane.b32.xlu0 %v4528_v17, %s12087_s9  ;;  %12359 = vst [vmem:[#allocation42_spill] sm:$0xff] %v10405_v24 }
 0xa43   : > { %4742 = vrot.lane.b32.xlu1 %v4727_v15, %s12275_s4  ;;  %v4889_v15 = vmul.f32 %v10405_v24, %v9577_v22 }
 0xa44   : > { %v10398_v44 = vpop.permute.xlu0 %3631 }
 0xa45   : > { %v3639_v2 = vsel %vm12361_vm12, %v10398_v44, %v12360_v3  ;;  %v10410_v17 = vpop.permute.xlu1 %5151  ;;  %v10423_v3 = vsel %vm3427_vm13, %v12363_v32, %v9318_v36  ;;  %v5201_v36 = vmul.f32 %v12288_v48, %v9709_v43  ;;  %vm3502_vm12 = vcmask 900096  }
 0xa46   : > { %12362 = vst [vmem:[#allocation166_spill] sm:$0xff] %v10410_v17  ;;  %3647 = vst [vmem:[#allocation3 + $0x3b8] sm:$0xff] %v3639_v2  ;;  %4794 = vrot.lane.b32.xlu0 %v4778_v18, %s12161_s23  ;;  %v12365_v17 = vld [vmem:[#allocation141_spill] sm:$0xff]  ;;  %v5139_v22 = vmul.f32 %v10423_v3, %v9709_v43 }
 0xa47   : > { %4857 = vrot.lane.b32.xlu1 %v4840_v16, %s12284_s24  ;;  %12364 = vst [vmem:[#allocation162_spill] sm:$0xff] %v10423_v3 }
 0xa48   : > { %v10416_v63 = vpop.permute.xlu0 %4001 }
 0xa49   : > { %v4008_v2 = vsel %vm340_vm5, %v10416_v63, %v12365_v17  ;;  %v3904_v18 = vpop.permute.xlu1 %3903 }
 0xa4a   : > { %4016 = vst [vmem:[#allocation3 + $0x3d8] sm:$0xff] %v4008_v2  ;;  %v3908_v16 = vsel %vm278_vm7, %v10146_v31, %v3904_v18  ;;  %4905 = vrot.lane.b32.xlu0 %v4889_v15, %s12366_s1  ;;  %v10447_v15 = vld [vmem:[#allocation2 + $0x30] sm:$0xff] }
 0xa4b   : > { %3916 = vst [vmem:[#allocation3 + $0x218] sm:$0xff] %v3908_v16  ;;  %5103 = vrot.lane.b32.xlu1 %v5088_v11, %s12076_s19  ;;  %v5449_v18 = vmul.f32 %v10447_v15, %v12300_v26  ;;  %v12368_v16 = vld [vmem:[#allocation155_spill] sm:$0xff] }
 0xa4c   : > { %v10434_v24 = vpop.permute.xlu0 %4333 }
 0xa4d   : > { %v4340_v17 = vsel %vm367_vm2, %v10434_v24, %v12367_v29  ;;  %v4274_v2 = vpop.permute.xlu1 %4273 }
 0xa4e   : > { %4348 = vst [vmem:[#allocation3 + $0x3f8] sm:$0xff] %v4340_v17  ;;  %v4278_v31 = vsel %vm384_vm6, %v10176_v12, %v4274_v2  ;;  %5155 = vrot.lane.b32.xlu0 %v5139_v22, %s12186_s15  ;;  %v12369_v2 = vld [vmem:[#allocation131_spill] sm:$0xff] }
 0xa4f   : > { %4286 = vst [vmem:[#allocation3 + $0x238] sm:$0xff] %v4278_v31  ;;  %5218 = vrot.lane.b32.xlu1 %v5201_v36, %s12305_s25  ;;  %v3085_v36 = vmul.f32 %v12309_v61, %v9709_v43 }
 0xa50   : > { %v10445_v11 = vpop.permute.xlu0 %4694 }
 0xa51   : > { %v4701_v29 = vsel %vm11884_vm1, %v10445_v11, %v12368_v16  ;;  %v4597_v17 = vpop.permute.xlu1 %4596 }
 0xa52   : > { %4709 = vst [vmem:[#allocation3 + $0x418] sm:$0xff] %v4701_v29  ;;  %v4601_v12 = vsel %vm11876_vm4, %v10207_v42, %v4597_v17  ;;  %vm3127_vm4 = vcmask 891904   ;;  %v12370_v29 = vld [vmem:[#allocation178_spill] sm:$0xff] }
 0xa53   : > { %4609 = vst [vmem:[#allocation3 + $0x258] sm:$0xff] %v4601_v12  ;;  %5464 = vrot.lane.b32.xlu1 %v5449_v18, %s12085_s12  ;;  %v3343_v18 = vmul.f32 %v10447_v15, %v12315_v46 }
 0xa54   : > { %v10457_v22 = vpop.permute.xlu0 %5055 }
 0xa55   : > { %v5062_v31 = vsel %vm3502_vm12, %v10457_v22, %v12369_v2  ;;  %v4958_v3 = vpop.permute.xlu1 %4957 }
 0xa56   : > { %5070 = vst [vmem:[#allocation3 + $0x438] sm:$0xff] %v5062_v31  ;;  %v4962_v16 = vsel %vm11877_vm10, %v10232_v59, %v4958_v3  ;;  %vm3052_vm10 = vcmask 416768   ;;  %v3460_v3 = vmul.f32 %v12320_v6, %v9709_v43 }
 0xa57   : > { %4970 = vst [vmem:[#allocation3 + $0x278] sm:$0xff] %v4962_v16  ;;  %3102 = vrot.lane.b32.xlu1 %v3085_v36, %s12319_s3 }
 0xa58   : > { %v10467_v42 = vpop.permute.xlu0 %5416 }
 0xa59   : > { %v5423_v17 = vsel %vm3127_vm4, %v10467_v42, %v12370_v29  ;;  %v5319_v12 = vpop.permute.xlu1 %5318 }
 0xa5a   : > { %5431 = vst [vmem:[#allocation3 + $0x458] sm:$0xff] %v5423_v17  ;;  %v5323_v2 = vsel %vm11878_vm0, %v10253_v30, %v5319_v12  ;;  %vm3312_vm0 = vcmask 809984   ;;  %v3835_v12 = vmul.f32 %v12328_v10, %v9709_v43 }
 0xa5b   : > { %5331 = vst [vmem:[#allocation3 + $0x298] sm:$0xff] %v5323_v2  ;;  %3358 = vrot.lane.b32.xlu1 %v3343_v18, %s12092_s13  ;;  %v3718_v18 = vmul.f32 %v10447_v15, %v12325_v0 }
 0xa5c   : > { %v10477_v59 = vpop.permute.xlu0 %3048 }
 0xa5d   : > { %v3055_v36 = vsel %vm3052_vm10, %v9713_v33, %v10477_v59  ;;  %v3207_v31 = vpop.permute.xlu1 %3206 }
 0xa5e   : > { %3063 = vst [vmem:[#allocation3 + $0x10] sm:$0xff] %v3055_v36  ;;  %v3212_v16 = vsel %vm11879_vm11, %v10272_v14, %v3207_v31  ;;  %vm12371_vm11 = vcmask 7168   ;;  %v4087_v36 = vmul.f32 %v10447_v15, %v12334_v54 }
 0xa5f   : > { %3220 = vst [vmem:[#allocation3 + $0x2b8] sm:$0xff] %v3212_v16  ;;  %3477 = vrot.lane.b32.xlu1 %v3460_v3, %s12079_s7  ;;  %v10519_v16 = vld [vmem:[#allocation2 + $0x38] sm:$0xff] }
 0xa60   : > { %v10487_v30 = vpop.permute.xlu0 %3308 }
 0xa61   : > { %v3316_v29 = vsel %vm3312_vm0, %v10487_v30, %v9692_v35  ;;  %v3582_v17 = vpop.permute.xlu1 %3581 }
 0xa62   : > { %3324 = vst [vmem:[#allocation3 + $0x478] sm:$0xff] %v3316_v29  ;;  %v3587_v33 = vsel %vm11881_vm14, %v10290_v51, %v3582_v17  ;;  %vm12375_vm14 = vcmask 941056  }
 0xa63   : > { %3595 = vst [vmem:[#allocation3 + $0x2d8] sm:$0xff] %v3587_v33  ;;  %3733 = vrot.lane.b32.xlu1 %v3718_v18, %s12106_s22  ;;  %v4205_v18 = vmul.f32 %v10519_v16, %v12338_v50  ;;  %v4416_v33 = vmul.f32 %v10447_v15, %v12343_v62 }
 0xa64   : > { %v10497_v14 = vpop.permute.xlu0 %3423 }
 0xa65   : > { %v3430_v2 = vsel %vm3427_vm13, %v9784_v8, %v10497_v14  ;;  %v3954_v3 = vpop.permute.xlu1 %3953 }
 0xa66   : > { %3438 = vst [vmem:[#allocation3 + $0x30] sm:$0xff] %v3430_v2  ;;  %v3958_v35 = vsel %vm12371_vm11, %v10308_v7, %v3954_v3  ;;  %vm12372_vm11 = vcmask 1031168   ;;  %v4529_v3 = vmul.f32 %v10519_v16, %v12348_v37 }
 0xa67   : > { %3966 = vst [vmem:[#allocation3 + $0x2f8] sm:$0xff] %v3958_v35  ;;  %3852 = vrot.lane.b32.xlu1 %v3835_v12, %s12082_s26 }
 0xa68   : > { %v10507_v51 = vpop.permute.xlu0 %3683 }
 0xa69   : > { %v3691_v43 = vsel %vm11882_vm8, %v10507_v51, %v9760_v49  ;;  %v4643_v31 = vpop.permute.xlu1 %4642 }
 0xa6a   : > { %3699 = vst [vmem:[#allocation3 + $0x498] sm:$0xff] %v3691_v43  ;;  %v4650_v8 = vsel %vm11880_vm3, %v4643_v31, %v10326_v34  ;;  %vm12373_vm3 = vcmask 1022976   ;;  %v4777_v43 = vmul.f32 %v10447_v15, %v12353_v23 }
 0xa6b   : > { %4658 = vst [vmem:[#allocation3 + $0x330] sm:$0xff] %v4650_v8  ;;  %4102 = vrot.lane.b32.xlu1 %v4087_v36, %s12124_s21 }
 0xa6c   : > { %v10517_v7 = vpop.permute.xlu0 %3798 }
 0xa6d   : > { %v3805_v29 = vsel %vm3802_vm9, %v9854_v60, %v10517_v7  ;;  %v5004_v49 = vpop.permute.xlu1 %5003 }
 0xa6e   : > { %3813 = vst [vmem:[#allocation3 + $0x50] sm:$0xff] %v3805_v29  ;;  %v5011_v17 = vsel %vm12372_vm11, %v5004_v49, %v10344_v4  ;;  %vm12374_vm11 = vcmask 392192  }
 0xa6f   : > { %5019 = vst [vmem:[#allocation3 + $0x350] sm:$0xff] %v5011_v17  ;;  %4222 = vrot.lane.b32.xlu1 %v4205_v18, %s12084_s5  ;;  %v4890_v18 = vmul.f32 %v10519_v16, %v12357_v41 }
 0xa70   : > { %v10529_v34 = vpop.permute.xlu0 %4052 }
 0xa71   : > { %v4060_v12 = vsel %vm11883_vm15, %v10529_v34, %v9834_v38  ;;  %v5365_v2 = vpop.permute.xlu1 %5364 }
 0xa72   : > { %4068 = vst [vmem:[#allocation3 + $0x4b8] sm:$0xff] %v4060_v12  ;;  %v5372_v60 = vsel %vm12373_vm3, %v5365_v2, %v10362_v27  ;;  %vm12376_vm3 = vcmask 785408  }
 0xa73   : > { %5380 = vst [vmem:[#allocation3 + $0x370] sm:$0xff] %v5372_v60  ;;  %4431 = vrot.lane.b32.xlu1 %v4416_v33, %s12143_s14 }
 0xa74   : > { %v10539_v4 = vpop.permute.xlu0 %4168 }
 0xa75   : > { %v4175_v35 = vsel %vm12374_vm11, %v9912_v56, %v10539_v4  ;;  %v3255_v36 = vpop.permute.xlu1 %3254  ;;  %vm12377_vm11 = vcmask 932864  }
 0xa76   : > { %4183 = vst [vmem:[#allocation3 + $0x70] sm:$0xff] %v4175_v35  ;;  %v3263_v38 = vsel %vm12375_vm14, %v3255_v36, %v10380_v47  ;;  %vm12378_vm14 = vcmask 384000  }
 0xa77   : > { %3271 = vst [vmem:[#allocation3 + $0x390] sm:$0xff] %v3263_v38  ;;  %4546 = vrot.lane.b32.xlu1 %v4529_v3, %s12087_s9 }
 0xa78   : > { %v10549_v27 = vpop.permute.xlu0 %4383 }
 0xa79   : > { %v4390_v31 = vsel %vm12376_vm3, %v10549_v27, %v9894_v57  ;;  %v3630_v8 = vpop.permute.xlu1 %3629  ;;  %vm12379_vm3 = vcmask 777216  }
 0xa7a   : > { %4398 = vst [vmem:[#allocation3 + $0x4d8] sm:$0xff] %v4390_v31  ;;  %v3638_v56 = vsel %vm12377_vm11, %v3630_v8, %v10398_v44  ;;  %vm12380_vm11 = vcmask 375808  }
 0xa7b   : > { %3646 = vst [vmem:[#allocation3 + $0x3b0] sm:$0xff] %v3638_v56  ;;  %4792 = vrot.lane.b32.xlu1 %v4777_v43, %s12161_s23  ;;  %s12422_s23 = smov 13  }
 0xa7c   : > { %v10559_v47 = vpop.permute.xlu0 %4494 }
 0xa7d   : > { %v4500_v29 = vsel %vm12378_vm14, %v9957_v19, %v10559_v47  ;;  %v4000_v49 = vpop.permute.xlu1 %3999  ;;  %vm12381_vm14 = vcmask 769024  }
 0xa7e   : > { %4508 = vst [vmem:[#allocation3 + $0x90] sm:$0xff] %v4500_v29  ;;  %v4007_v57 = vsel %vm340_vm5, %v4000_v49, %v10416_v63 }
 0xa7f   : > { %4015 = vst [vmem:[#allocation3 + $0x3d0] sm:$0xff] %v4007_v57  ;;  %4907 = vrot.lane.b32.xlu1 %v4890_v18, %s12366_s1 }
 0xa80   : > { %v10569_v44 = vpop.permute.xlu0 %4744 }
 0xa81   : > { %v4751_v17 = vsel %vm12379_vm3, %v10569_v44, %v9942_v9  ;;  %v4332_v33 = vpop.permute.xlu1 %4331  ;;  %vm12382_vm3 = vcmask 367616  }
 0xa82   : > { %4759 = vst [vmem:[#allocation3 + $0x4f8] sm:$0xff] %v4751_v17  ;;  %v4339_v12 = vsel %vm367_vm2, %v4332_v33, %v10434_v24 }
 0xa83   : > { %4347 = vst [vmem:[#allocation3 + $0x3f0] sm:$0xff] %v4339_v12 }
 0xa84   : > { %v10576_v19 = vpop.permute.xlu0 %4855 }
 0xa85   : > { %v4861_v63 = vsel %vm12380_vm11, %v10007_v13, %v10576_v19  ;;  %v4693_v2 = vpop.permute.xlu1 %4692  ;;  %vm12383_vm11 = vcmask 760832  }
 0xa86   : > { %4869 = vst [vmem:[#allocation3 + $0xb0] sm:$0xff] %v4861_v63  ;;  %v4700_v60 = vsel %vm11884_vm1, %v4693_v2, %v10445_v11  ;;  %vm12409_vm1 = vcmask 654336  }
 0xa87   : > { %4708 = vst [vmem:[#allocation3 + $0x410] sm:$0xff] %v4700_v60 }
 0xa88   : > { %v10583_v3 = vpop.permute.xlu0 %5105 }
 0xa89   : > { %v5112_v9 = vsel %vm12381_vm14, %v10583_v3, %v9992_v21  ;;  %v5054_v24 = vpop.permute.xlu1 %5053  ;;  %vm12384_vm14 = vcmask 285696  }
 0xa8a   : > { %5120 = vst [vmem:[#allocation3 + $0x518] sm:$0xff] %v5112_v9  ;;  %v5061_v35 = vsel %vm3502_vm12, %v5054_v24, %v10457_v22 }
 0xa8b   : > { %5069 = vst [vmem:[#allocation3 + $0x430] sm:$0xff] %v5061_v35 }
 0xa8c   : > { %v10590_v36 = vpop.permute.xlu0 %5216 }
 0xa8d   : > { %v5222_v13 = vsel %vm12382_vm3, %v10063_v1, %v10590_v36  ;;  %v5415_v11 = vpop.permute.xlu1 %5414  ;;  %vm12385_vm3 = vcmask 678912  }
 0xa8e   : > { %5230 = vst [vmem:[#allocation3 + $0xd0] sm:$0xff] %v5222_v13  ;;  %v5422_v38 = vsel %vm3127_vm4, %v5415_v11, %v10467_v42 }
 0xa8f   : > { %5430 = vst [vmem:[#allocation3 + $0x450] sm:$0xff] %v5422_v38 }
 0xa90   : > { %v10597_v43 = vpop.permute.xlu0 %5466 }
 0xa91   : > { %v5473_v21 = vsel %vm12383_vm11, %v10597_v43, %v10037_v28  ;;  %v3051_v22 = vpop.permute.xlu1 %3050  ;;  %vm12386_vm11 = vcmask 277504  }
 0xa92   : > { %5481 = vst [vmem:[#allocation3 + $0x538] sm:$0xff] %v5473_v21  ;;  %v3056_v31 = vsel %vm3052_vm10, %v10477_v59, %v3051_v22 }
 0xa93   : > { %3064 = vst [vmem:[#allocation3 + $0x18] sm:$0xff] %v3056_v31 }
 0xa94   : > { %v10604_v8 = vpop.permute.xlu0 %3100 }
 0xa95   : > { %v3107_v1 = vsel %vm12384_vm14, %v10132_v52, %v10604_v8  ;;  %v3307_v42 = vpop.permute.xlu1 %3306  ;;  %vm12387_vm14 = vcmask 670720  }
 0xa96   : > { %3115 = vst [vmem:[#allocation3 + $0xf0] sm:$0xff] %v3107_v1  ;;  %v3315_v56 = vsel %vm3312_vm0, %v3307_v42, %v10487_v30 }
 0xa97   : > { %3323 = vst [vmem:[#allocation3 + $0x470] sm:$0xff] %v3315_v56 }
 0xa98   : > { %v10611_v18 = vpop.permute.xlu0 %3360 }
 0xa99   : > { %v3368_v28 = vsel %vm12385_vm3, %v10611_v18, %v10108_v5  ;;  %v3426_v59 = vpop.permute.xlu1 %3425  ;;  %vm12388_vm3 = vcmask 269312  }
 0xa9a   : > { %3376 = vst [vmem:[#allocation3 + $0x558] sm:$0xff] %v3368_v28  ;;  %v3431_v29 = vsel %vm3427_vm13, %v10497_v14, %v3426_v59 }
 0xa9b   : > { %3439 = vst [vmem:[#allocation3 + $0x38] sm:$0xff] %v3431_v29 }
 0xa9c   : > { %v10618_v49 = vpop.permute.xlu0 %3475 }
 0xa9d   : > { %v3482_v52 = vsel %vm12386_vm11, %v10219_v45, %v10618_v49  ;;  %v3682_v30 = vpop.permute.xlu1 %3681  ;;  %vm12389_vm11 = vcmask 662528  }
 0xa9e   : > { %3490 = vst [vmem:[#allocation3 + $0x110] sm:$0xff] %v3482_v52  ;;  %v3690_v57 = vsel %vm11882_vm8, %v3682_v30, %v10507_v51  ;;  %vm12391_vm8 = vcmask 261120  }
 0xa9f   : > { %3698 = vst [vmem:[#allocation3 + $0x490] sm:$0xff] %v3690_v57 }
 0xaa0   : > { %v3736_v17 = vpop.permute.xlu0 %3735 }
 0xaa1   : > { %v3743_v5 = vsel %vm12387_vm14, %v3736_v17, %v10190_v55  ;;  %v3801_v33 = vpop.permute.xlu1 %3800  ;;  %vm12390_vm14 = vcmask 392192  }
 0xaa2   : > { %3751 = vst [vmem:[#allocation3 + $0x578] sm:$0xff] %v3743_v5  ;;  %v3806_v14 = vsel %vm3802_vm9, %v10517_v7, %v3801_v33 }
 0xaa3   : > { %3814 = vst [vmem:[#allocation3 + $0x58] sm:$0xff] %v3806_v14 }
 0xaa4   : > { %v3851_v12 = vpop.permute.xlu0 %3850 }
 0xaa5   : > { %v3857_v45 = vsel %vm12388_vm3, %v10284_v58, %v3851_v12  ;;  %v4051_v63 = vpop.permute.xlu1 %4050  ;;  %vm12392_vm3 = vcmask 785408  }
 0xaa6   : > { %3865 = vst [vmem:[#allocation3 + $0x130] sm:$0xff] %v3857_v45  ;;  %v4059_v51 = vsel %vm11883_vm15, %v4051_v63, %v10529_v34  ;;  %vm12393_vm15 = vcmask 654336  }
 0xaa7   : > { %4067 = vst [vmem:[#allocation3 + $0x4b0] sm:$0xff] %v4059_v51 }
 0xaa8   : > { %v4105_v2 = vpop.permute.xlu0 %4104 }
 0xaa9   : > { %v4112_v55 = vsel %vm12389_vm11, %v4105_v2, %v10265_v53  ;;  %v4171_v60 = vpop.permute.xlu1 %4170  ;;  %vm12394_vm11 = vcmask 384000  }
 0xaaa   : > { %4120 = vst [vmem:[#allocation3 + $0x598] sm:$0xff] %v4112_v55  ;;  %v4176_v7 = vsel %vm12390_vm14, %v10539_v4, %v4171_v60  ;;  %vm12395_vm14 = vcmask 252928  }
 0xaab   : > { %4184 = vst [vmem:[#allocation3 + $0x78] sm:$0xff] %v4176_v7 }
 0xaac   : > { %v4221_v9 = vpop.permute.xlu0 %4220 }
 0xaad   : > { %v4227_v58 = vsel %vm12391_vm8, %v10338_v25, %v4221_v9  ;;  %v4382_v24 = vpop.permute.xlu1 %4381  ;;  %vm12396_vm8 = vcmask 777216  }
 0xaae   : > { %4235 = vst [vmem:[#allocation3 + $0x150] sm:$0xff] %v4227_v58  ;;  %v4389_v34 = vsel %vm12392_vm3, %v4382_v24, %v10549_v27  ;;  %vm12397_vm3 = vcmask 646144   ;;  %v12413_v58 = vld [vmem:[#allocation135_spill] sm:$0xff] }
 0xaaf   : > { %4397 = vst [vmem:[#allocation3 + $0x4d0] sm:$0xff] %v4389_v34  ;;  %v12414_v34 = vld [vmem:[#allocation23_spill] sm:$0xff] }
 0xab0   : > { %v4434_v35 = vpop.permute.xlu0 %4433 }
 0xab1   : > { %v4440_v53 = vsel %vm12393_vm15, %v4434_v35, %v10320_v20  ;;  %v4497_v13 = vpop.permute.xlu1 %4496  ;;  %vm12398_vm15 = vcmask 375808  }
 0xab2   : > { %4448 = vst [vmem:[#allocation3 + $0x5b8] sm:$0xff] %v4440_v53  ;;  %v4501_v4 = vsel %vm12394_vm11, %v10559_v47, %v4497_v13  ;;  %vm12399_vm11 = vcmask 769024   ;;  %v12415_v53 = vld [vmem:[#allocation26_spill] sm:$0xff] }
 0xab3   : > { %4509 = vst [vmem:[#allocation3 + $0x98] sm:$0xff] %v4501_v4  ;;  %v12417_v4 = vld [vmem:[#allocation51_spill] sm:$0xff] }
 0xab4   : > { %v4545_v11 = vpop.permute.xlu0 %4544 }
 0xab5   : > { %v4550_v25 = vsel %vm12395_vm14, %v10392_v40, %v4545_v11  ;;  %v4743_v38 = vpop.permute.xlu1 %4742  ;;  %vm12400_vm14 = vcmask 367616  }
 0xab6   : > { %4558 = vst [vmem:[#allocation3 + $0x170] sm:$0xff] %v4550_v25  ;;  %v4750_v27 = vsel %vm12396_vm8, %v4743_v38, %v10569_v44  ;;  %vm12401_vm8 = vcmask 760832   ;;  %v12418_v25 = vld [vmem:[#allocation28_spill] sm:$0xff] }
 0xab7   : > { %4758 = vst [vmem:[#allocation3 + $0x4f0] sm:$0xff] %v4750_v27  ;;  %v12420_v27 = vld [vmem:[#allocation52_spill] sm:$0xff] }
 0xab8   : > { %v4795_v21 = vpop.permute.xlu0 %4794 }
 0xab9   : > { %v4801_v20 = vsel %vm12397_vm3, %v4795_v21, %v10374_v39  ;;  %v4858_v22 = vpop.permute.xlu1 %4857  ;;  %vm12402_vm3 = vcmask 285696  }
 0xaba   : > { %4809 = vst [vmem:[#allocation3 + $0x5d8] sm:$0xff] %v4801_v20  ;;  %v4862_v47 = vsel %vm12398_vm15, %v10576_v19, %v4858_v22  ;;  %vm12403_vm15 = vcmask 678912   ;;  %v12421_v20 = vld [vmem:[#allocation31_spill] sm:$0xff] }
 0xabb   : > { %4870 = vst [vmem:[#allocation3 + $0xb8] sm:$0xff] %v4862_v47  ;;  %v12423_v47 = vld [vmem:[#allocation53_spill] sm:$0xff] }
 0xabc   : > { %v10672_v63 = vpop.permute.xlu0 %4905 }
 0xabd   : > { %v5104_v31 = vpop.permute.xlu1 %5103 }
 0xabe   : > { %v5111_v40 = vsel %vm12399_vm11, %v5104_v31, %v10583_v3  ;;  %vm12404_vm11 = vcmask 277504  }
 0xabf   : > { %5119 = vst [vmem:[#allocation3 + $0x510] sm:$0xff] %v5111_v40  ;;  %v12424_v40 = vld [vmem:[#allocation35_spill] sm:$0xff] }
 0xac1   : > { %v5219_v1 = vpop.permute.xlu1 %5218 }
 0xac2   : > { %v5223_v44 = vsel %vm12400_vm14, %v10590_v36, %v5219_v1  ;;  %vm12405_vm14 = vcmask 670720  }
 0xac3   : > { %5231 = vst [vmem:[#allocation3 + $0xd8] sm:$0xff] %v5223_v44  ;;  %v12426_v44 = vld [vmem:[#allocation16_spill] sm:$0xff] }
 0xac5   : > { %v5465_v42 = vpop.permute.xlu1 %5464 }
 0xac6   : > { %v5472_v39 = vsel %vm12401_vm8, %v5465_v42, %v10597_v43  ;;  %vm12406_vm8 = vcmask 269312  }
 0xac7   : > { %5480 = vst [vmem:[#allocation3 + $0x530] sm:$0xff] %v5472_v39  ;;  %v12427_v39 = vld [vmem:[#allocation10_spill] sm:$0xff] }
 0xac9   : > { %v3103_v56 = vpop.permute.xlu1 %3102 }
 0xaca   : > { %v3108_v19 = vsel %vm12402_vm3, %v10604_v8, %v3103_v56  ;;  %vm12407_vm3 = vcmask 662528  }
 0xacb   : > { %3116 = vst [vmem:[#allocation3 + $0xf8] sm:$0xff] %v3108_v19  ;;  %v12428_v19 = vld [vmem:[#allocation54_spill] sm:$0xff] }
 0xacd   : > { %v3359_v28 = vpop.permute.xlu1 %3358 }
 0xace   : > { %v3367_v3 = vsel %vm12403_vm15, %v3359_v28, %v10611_v18  ;;  %vm12408_vm15 = vcmask 261120  }
 0xacf   : > { %3375 = vst [vmem:[#allocation3 + $0x550] sm:$0xff] %v3367_v3  ;;  %v12429_v3 = vld [vmem:[#allocation39_spill] sm:$0xff] }
 0xad1   : > { %v3478_v59 = vpop.permute.xlu1 %3477 }
 0xad2   : > { %v3483_v36 = vsel %vm12404_vm11, %v10618_v49, %v3478_v59  ;;  %vm12410_vm11 = vcmask 252928  }
 0xad3   : > { %3491 = vst [vmem:[#allocation3 + $0x118] sm:$0xff] %v3483_v36  ;;  %v12431_v36 = vld [vmem:[#allocation55_spill] sm:$0xff] }
 0xad5   : > { %v3734_v29 = vpop.permute.xlu1 %3733 }
 0xad6   : > { %v3742_v52 = vsel %vm12405_vm14, %v3734_v29, %v3736_v17  ;;  %vm12411_vm14 = vcmask 646144  }
 0xad7   : > { %3750 = vst [vmem:[#allocation3 + $0x570] sm:$0xff] %v3742_v52  ;;  %v12432_v52 = vld [vmem:[#allocation12_spill] sm:$0xff] }
 0xad9   : > { %v3853_v43 = vpop.permute.xlu1 %3852 }
 0xada   : > { %v3858_v30 = vsel %vm12406_vm8, %v3851_v12, %v3853_v43  ;;  %vm12412_vm8 = vcmask 244736  }
 0xadb   : > { %3866 = vst [vmem:[#allocation3 + $0x138] sm:$0xff] %v3858_v30  ;;  %v12434_v30 = vld [vmem:[#allocation56_spill] sm:$0xff] }
 0xadd   : > { %v4103_v8 = vpop.permute.xlu1 %4102 }
 0xade   : > { %v4111_v57 = vsel %vm12407_vm3, %v4103_v8, %v4105_v2  ;;  %vm12492_vm3 = vcmask 113664  }
 0xadf   : > { %4119 = vst [vmem:[#allocation3 + $0x590] sm:$0xff] %v4111_v57  ;;  %v12435_v57 = vld [vmem:[#allocation72_spill] sm:$0xff] }
 0xae1   : > { %v4223_v5 = vpop.permute.xlu1 %4222 }
 0xae2   : > { %v4228_v18 = vsel %vm12408_vm15, %v4221_v9, %v4223_v5  ;;  %vm12500_vm15 = vcmask 23552  }
 0xae3   : > { %4236 = vst [vmem:[#allocation3 + $0x158] sm:$0xff] %v4228_v18  ;;  %v12437_v18 = vld [vmem:[#allocation57_spill] sm:$0xff] }
 0xae5   : > { %v4432_v33 = vpop.permute.xlu1 %4431 }
 0xae6   : > { %v4439_v49 = vsel %vm12409_vm1, %v4432_v33, %v4434_v35  ;;  %vm12489_vm1 = vcmask 121856  }
 0xae7   : > { %4447 = vst [vmem:[#allocation3 + $0x5b0] sm:$0xff] %v4439_v49  ;;  %v12438_v49 = vld [vmem:[#allocation75_spill] sm:$0xff] }
 0xae9   : > { %v4547_v14 = vpop.permute.xlu1 %4546 }
 0xaea   : > { %v4551_v17 = vsel %vm12410_vm11, %v4545_v11, %v4547_v14  ;;  %vm12501_vm11 = vmmov %vm12492_vm3 }
 0xaeb   : > { %4559 = vst [vmem:[#allocation3 + $0x178] sm:$0xff] %v4551_v17  ;;  %v12440_v17 = vld [vmem:[#allocation58_spill] sm:$0xff] }
 0xaed   : > { %v4793_v45 = vpop.permute.xlu1 %4792 }
 0xaee   : > { %v4800_v12 = vsel %vm12411_vm14, %v4793_v45, %v4795_v21  ;;  %vm12503_vm14 = vcmask 15360  }
 0xaef   : > { %4808 = vst [vmem:[#allocation3 + $0x5d0] sm:$0xff] %v4800_v12  ;;  %v12441_v12 = vld [vmem:[#allocation76_spill] sm:$0xff] }
 0xaf1   : > { %v4908_v51 = vpop.permute.xlu1 %4907 }
 0xaf2   : > { %v4912_v2 = vsel %vm12412_vm8, %v10672_v63, %v4908_v51 }
 0xaf3   : > { %4920 = vst [vmem:[#allocation3 + $0x198] sm:$0xff] %v4912_v2  ;;  %v12443_v2 = vld [vmem:[#allocation78_spill] sm:$0xff] }
 0xaf9   : > { %v2986_v55 = vpop.f32.mrb[16].mxu1 }
 0xafa   : > { %v10676_v60 = vmax.f32 %v2986_v55, 0.0  ;;  %v2988_v7 = vpop.f32.mrb[17].mxu1 }
 0xafb   : > { %v10678_v9 = vmax.f32 %v2988_v7, 0.0  ;;  %v12444_v7 = vld [vmem:[#allocation61_spill] sm:$0xff] }
 0xafc   : > { %2993 = vst [vmem:[#allocation2 + $0x8] sm:$0xff] %v10676_v60  ;;  %v3882_v24 = vmul.f32 %v12413_v58, %v10676_v60  ;;  %v4252_v35 = vmul.f32 %v12414_v34, %v10676_v60  ;;  %v4575_v13 = vmul.f32 %v12415_v53, %v10676_v60  ;;  %v4936_v38 = vmul.f32 %v12418_v25, %v10676_v60  ;;  %v10752_v58 = vld [vmem:[#allocation2] sm:$0xff]  ;;  %v12451_v25 = vld [vmem:[#allocation158_spill] sm:$0xff] }
 0xafd   : > { %2994 = vst [vmem:[#allocation2 + $0x10] sm:$0xff] %v10678_v9  ;;  %v3883_v11 = vmul.f32 %v12417_v4, %v10678_v9  ;;  %v4253_v21 = vmul.f32 %v12420_v27, %v10678_v9  ;;  %v5297_v22 = vmul.f32 %v12421_v20, %v10676_v60  ;;  %v4576_v31 = vmul.f32 %v12423_v47, %v10678_v9  ;;  %v12449_v4 = vld [vmem:[#allocation81_spill] sm:$0xff]  ;;  %v12452_v27 = vld [vmem:[#allocation83_spill] sm:$0xff] }
 0xafe   : > { %3895 = vrot.lane.b32.xlu0 %v3882_v24, %s11903_s10  ;;  %v3185_v1 = vmul.f32 %v12424_v40, %v10676_v60  ;;  %v10711_v42 = vmul.f32 %v12426_v44, %v10678_v9  ;;  %v10715_v56 = vmul.f32 %v12427_v39, %v10676_v60  ;;  %v4937_v28 = vmul.f32 %v12428_v19, %v10678_v9  ;;  %v12446_v24 = vld [vmem:[#allocation154_spill] sm:$0xff]  ;;  %v12455_v20 = vld [vmem:[#allocation157_spill] sm:$0xff]  ;;  %v12462_v39 = vld [vmem:[#allocation59_spill] sm:$0xff] }
 0xaff   : > { %3897 = vrot.lane.b32.xlu1 %v3883_v11, %s11903_s10  ;;  %s12425_s10 = smov 3   ;;  %v3560_v59 = vmul.f32 %v12429_v3, %v10676_v60  ;;  %v5298_v29 = vmul.f32 %v12431_v36, %v10678_v9  ;;  %v3932_v43 = vmul.f32 %v12432_v52, %v10676_v60  ;;  %v3186_v8 = vmul.f32 %v12434_v30, %v10678_v9 }
 0xb00   : > { %v4624_v5 = vmul.f32 %v12435_v57, %v10676_v60  ;;  %v3561_v33 = vmul.f32 %v12437_v18, %v10678_v9  ;;  %v4985_v14 = vmul.f32 %v12438_v49, %v10676_v60  ;;  %v3933_v45 = vmul.f32 %v12440_v17, %v10678_v9  ;;  %v12468_v57 = vld [vmem:[#allocation14_spill] sm:$0xff]  ;;  %v12470_v49 = vld [vmem:[#allocation71_spill] sm:$0xff]  ;;  %v12471_v17 = vld [vmem:[#allocation105_spill] sm:$0xff] }
 0xb01   : > { %v5346_v51 = vmul.f32 %v12441_v12, %v10676_v60  ;;  %v3236_v55 = vmul.f32 %v12443_v2, %v10676_v60  ;;  %v10756_v34 = vmul.f32 %v10752_v58, %v12446_v24  ;;  %v3981_v11 = vmul.f32 %v12449_v4, %v10676_v60  ;;  %v12469_v18 = vld [vmem:[#allocation186_spill] sm:$0xff]  ;;  %v12473_v2 = vld [vmem:[#allocation191_spill] sm:$0xff] }
 0xb02   : > { %4265 = vrot.lane.b32.xlu0 %v4252_v35, %s12016_s17  ;;  %v12447_v35 = vld [vmem:[#allocation80_spill] sm:$0xff]  ;;  %v10794_v19 = vmul.f32 %v10752_v58, %v12462_v39  ;;  %v12472_v12 = vld [vmem:[#allocation74_spill] sm:$0xff] }
 0xb03   : > { %4267 = vrot.lane.b32.xlu1 %v4253_v21, %s12016_s17  ;;  %s12430_s17 = smov 2   ;;  %v3611_v53 = vmul.f32 %v12447_v35, %v10676_v60  ;;  %v4313_v21 = vmul.f32 %v12452_v27, %v10676_v60  ;;  %v12475_v35 = vld [vmem:[#allocation110_spill] sm:$0xff] }
 0xb04   : > { %v12478_v27 = vld [vmem:[#allocation90_spill] sm:$0xff] }
 0xb06   : > { %4588 = vrot.lane.b32.xlu0 %v4575_v13, %s12416_s18  ;;  %v5138_v13 = vmul.f32 %v10447_v15, %v12363_v32  ;;  %v10777_v15 = vmul.f32 %v10752_v58, %v12455_v20 }
 0xb07   : > { %4590 = vrot.lane.b32.xlu1 %v4576_v31, %s12416_s18  ;;  %s12433_s18 = smov 1   ;;  %v10783_v31 = vld [vmem:[#allocation2 + $0x38] sm:$0xff] }
 0xb0a   : > { %4949 = vrot.lane.b32.xlu0 %v4936_v38, %s12419_s0  ;;  %v5251_v38 = vmul.f32 %v10519_v16, %v12451_v25  ;;  %v12458_v16 = vld [vmem:[#allocation174_spill] sm:$0xff] }
 0xb0b   : > { %4951 = vrot.lane.b32.xlu1 %v4937_v28, %s12419_s0  ;;  %s12436_s0 = smov 127   ;;  %v3137_v40 = vmul.f32 %v12458_v16, %v10783_v31  ;;  %v12463_v28 = vld [vmem:[#allocation95_spill] sm:$0xff] }
 0xb0c   : > { %v5396_v3 = vmul.f32 %v12463_v28, %v10676_v60 }
 0xb0e   : > { %5310 = vrot.lane.b32.xlu0 %v5297_v22, %s12422_s23  ;;  %v12456_v22 = vld [vmem:[#allocation87_spill] sm:$0xff] }
 0xb0f   : > { %5312 = vrot.lane.b32.xlu1 %v5298_v29, %s12422_s23  ;;  %s12439_s23 = smov 126   ;;  %v4674_v47 = vmul.f32 %v12456_v22, %v10676_v60  ;;  %v12465_v29 = vld [vmem:[#allocation33_spill] sm:$0xff]  ;;  %v12479_v22 = vld [vmem:[#allocation116_spill] sm:$0xff] }
 0xb10   : > { %v3029_v52 = vmul.f32 %v12465_v29, %v10676_v60 }
 0xb12   : > { %3198 = vrot.lane.b32.xlu0 %v3185_v1, %s12425_s10  ;;  %v12459_v1 = vld [vmem:[#allocation91_spill] sm:$0xff] }
 0xb13   : > { %3200 = vrot.lane.b32.xlu1 %v3186_v8, %s12425_s10  ;;  %s12442_s10 = smov 125   ;;  %v5035_v44 = vmul.f32 %v12459_v1, %v10676_v60  ;;  %v10810_v8 = vld [vmem:[#allocation2 + $0x30] sm:$0xff] }
 0xb16   : > { %3573 = vrot.lane.b32.xlu0 %v3560_v59, %s12430_s17  ;;  %v12464_v59 = vld [vmem:[#allocation180_spill] sm:$0xff] }
 0xb17   : > { %3575 = vrot.lane.b32.xlu1 %v3561_v33, %s12430_s17  ;;  %s12448_s17 = smov 114   ;;  %v5498_v36 = vmul.f32 %v10752_v58, %v12464_v59  ;;  %v3404_v33 = vmul.f32 %v12469_v18, %v10676_v60  ;;  %v3457_v18 = vmul.f32 %v12320_v6, %v10678_v9 }
 0xb1a   : > { %3945 = vrot.lane.b32.xlu0 %v3932_v43, %s12433_s18  ;;  %v12467_v43 = vld [vmem:[#allocation100_spill] sm:$0xff] }
 0xb1b   : > { %3947 = vrot.lane.b32.xlu1 %v3933_v45, %s12433_s18  ;;  %s12450_s18 = smov 113   ;;  %v3288_v30 = vmul.f32 %v12467_v43, %v10676_v60  ;;  %v3663_v45 = vmul.f32 %v12471_v17, %v10676_v60  ;;  %v3082_v43 = vmul.f32 %v12309_v61, %v10678_v9  ;;  %v3832_v61 = vmul.f32 %v12328_v10, %v10678_v9  ;;  %v12488_v10 = vld [vmem:[#allocation93_spill] sm:$0xff] }
 0xb1e   : > { %4636 = vrot.lane.b32.xlu0 %v4624_v5, %s12436_s0  ;;  %s12445_s0 = smov 115   ;;  %v5499_v5 = vmul.f32 %v12468_v57, %v10810_v8 }
 0xb1f   : > { %5157 = vrot.lane.b32.xlu1 %v12444_v7, %s12186_s15  ;;  %v12474_v7 = vld [vmem:[#allocation79_spill] sm:$0xff] }
 0xb20   : > { %v3780_v24 = vmul.f32 %v12474_v7, %v10678_v9 }
 0xb22   : > { %4997 = vrot.lane.b32.xlu0 %v4985_v14, %s12439_s23  ;;  %v3030_v14 = vmul.f32 %v12470_v49, %v10678_v9 }
 0xb23   : > { %4903 = vrot.lane.b32.xlu1 %v10756_v34, %s12366_s1 }
 0xb26   : > { %5358 = vrot.lane.b32.xlu0 %v5346_v51, %s12442_s10  ;;  %s12454_s10 = smov 112   ;;  %v3405_v51 = vmul.f32 %v12472_v12, %v10678_v9  ;;  %v12486_v12 = vld [vmem:[#allocation34_spill] sm:$0xff] }
 0xb27   : > { %5153 = vrot.lane.b32.xlu1 %v5138_v13, %s12186_s15  ;;  %v12476_v13 = vld [vmem:[#allocation84_spill] sm:$0xff] }
 0xb28   : > { %v4150_v4 = vmul.f32 %v12476_v13, %v10678_v9  ;;  %v4526_v13 = vmul.f32 %v12348_v37, %v10678_v9  ;;  %v4887_v37 = vmul.f32 %v12357_v41, %v10678_v9  ;;  %v12495_v41 = vld [vmem:[#allocation182_spill] sm:$0xff] }
 0xb2a   : > { %3248 = vrot.lane.b32.xlu0 %v3236_v55, %s12445_s0  ;;  %s12453_s0 = smov 29   ;;  %v3779_v55 = vmul.f32 %v12473_v2, %v10676_v60  ;;  %v12487_v2 = vld [vmem:[#allocation89_spill] sm:$0xff] }
 0xb2b   : > { %5268 = vrot.lane.b32.xlu1 %v5251_v38, %s12453_s0 }
 0xb2e   : > { %3623 = vrot.lane.b32.xlu0 %v3611_v53, %s12448_s17  ;;  %s12461_s17 = smov 110   ;;  %v4032_v53 = vmul.f32 %v12475_v35, %v10676_v60 }
 0xb2f   : > { %5264 = vrot.lane.b32.xlu1 %v10777_v15, %s12453_s0 }
 0xb32   : > { %3993 = vrot.lane.b32.xlu0 %v3981_v11, %s12450_s18  ;;  %s12457_s18 = smov 111   ;;  %v12477_v11 = vld [vmem:[#allocation195_spill] sm:$0xff] }
 0xb33   : > { %v4149_v38 = vmul.f32 %v12477_v11, %v10676_v60 }
 0xb36   : > { %4325 = vrot.lane.b32.xlu0 %v4313_v21, %s12454_s10  ;;  %s12460_s10 = smov 19   ;;  %v4476_v21 = vmul.f32 %v12478_v27, %v10678_v9 }
 0xb37   : > { %3154 = vrot.lane.b32.xlu1 %v3137_v40, %s12460_s10  ;;  %v12480_v40 = vld [vmem:[#allocation94_spill] sm:$0xff] }
 0xb38   : > { %v4837_v1 = vmul.f32 %v12480_v40, %v10678_v9 }
 0xb3a   : > { %4686 = vrot.lane.b32.xlu0 %v4674_v47, %s12457_s18  ;;  %s12466_s18 = smov 77   ;;  %v4363_v47 = vmul.f32 %v12479_v22, %v10676_v60 }
 0xb3b   : > { %3150 = vrot.lane.b32.xlu1 %v10794_v19, %s12460_s10 }
 0xb3e   : > { %5047 = vrot.lane.b32.xlu0 %v5035_v44, %s12461_s17  ;;  %v12481_v44 = vld [vmem:[#allocation120_spill] sm:$0xff] }
 0xb3f   : > { %5512 = vrot.lane.b32.xlu1 %v5498_v36, %s12466_s18  ;;  %v4475_v28 = vmul.f32 %v12481_v44, %v10676_v60  ;;  %v3340_v44 = vmul.f32 %v12315_v46, %v10676_v60  ;;  %v12496_v46 = vld [vmem:[#allocation92_spill] sm:$0xff] }
 0xb42   : > { %5408 = vrot.lane.b32.xlu0 %v5396_v3, %s12210_s16  ;;  %v5198_v3 = vmul.f32 %v12288_v48, %v10678_v9 }
 0xb43   : > { %5518 = vrot.lane.b32.xlu1 %v5498_v36, %s12466_s18  ;;  %v12482_v36 = vld [vmem:[#allocation122_spill] sm:$0xff] }
 0xb44   : > { %v4724_v29 = vmul.f32 %v12482_v36, %v10676_v60  ;;  %v5624_v36 = vld [vmem:[#allocation3 + $0x238] sm:$0xff] }
 0xb46   : > { %3042 = vrot.lane.b32.xlu0 %v3029_v52, %s12214_s28  ;;  %v10860_v52 = vpop.permute.xlu0 %5155 }
 0xb47   : > { %5514 = vrot.lane.b32.xlu1 %v5499_v5, %s12466_s18 }
 0xb4a   : > { %3300 = vrot.lane.b32.xlu0 %v3288_v30, %s12218_s20  ;;  %v12483_v30 = vld [vmem:[#allocation177_spill] sm:$0xff] }
 0xb4b   : > { %3044 = vrot.lane.b32.xlu1 %v3030_v14, %s12214_s28  ;;  %v4836_v5 = vmul.f32 %v12483_v30, %v10676_v60  ;;  %v12485_v14 = vld [vmem:[#allocation126_spill] sm:$0xff]  ;;  %s12547_s28 = sld [smem:[#allocation198_spill]] }
 0xb4c   : > { %v5085_v17 = vmul.f32 %v12485_v14, %v10676_v60 }
 0xb4e   : > { %3417 = vrot.lane.b32.xlu0 %v3404_v33, %s12223_s6  ;;  %v12484_v33 = vld [vmem:[#allocation85_spill] sm:$0xff] }
 0xb4f   : > { %3419 = vrot.lane.b32.xlu1 %v3405_v51, %s12223_s6  ;;  %v5197_v51 = vmul.f32 %v12486_v12, %v10676_v60  ;;  %s12539_s6 = smov 114  }
 0xb52   : > { %3675 = vrot.lane.b32.xlu0 %v3663_v45, %s12229_s11 }
 0xb53   : > { %3794 = vrot.lane.b32.xlu1 %v3780_v24, %s12234_s27  ;;  %v5446_v24 = vmul.f32 %v12300_v26, %v10676_v60  ;;  %v12491_v26 = vld [vmem:[#allocation97_spill] sm:$0xff] }
 0xb56   : > { %3792 = vrot.lane.b32.xlu0 %v3779_v55, %s12234_s27  ;;  %v4202_v55 = vmul.f32 %v12338_v50, %v10678_v9  ;;  %v5620_v50 = vld [vmem:[#allocation3 + $0x218] sm:$0xff]  ;;  %s12546_s27 = smov 112  }
 0xb57   : > { %4164 = vrot.lane.b32.xlu1 %v4150_v4, %s12244_s29 }
 0xb5a   : > { %4044 = vrot.lane.b32.xlu0 %v4032_v53, %s12239_s8 }
 0xb5b   : > { %4490 = vrot.lane.b32.xlu1 %v4476_v21, %s12265_s2 }
 0xb5e   : > { %4162 = vrot.lane.b32.xlu0 %v4149_v38, %s12244_s29  ;;  %v12490_v38 = vld [vmem:[#allocation37_spill] sm:$0xff]  ;;  %s12532_s29 = smov 125  }
 0xb5f   : > { %4851 = vrot.lane.b32.xlu1 %v4837_v1, %s12284_s24  ;;  %v3081_v27 = vmul.f32 %v12490_v38, %v10676_v60 }
 0xb62   : > { %4375 = vrot.lane.b32.xlu0 %v4363_v47, %s12255_s30  ;;  %v5619_v47 = vld [vmem:[#allocation3 + $0x210] sm:$0xff] }
 0xb63   : > { %5212 = vrot.lane.b32.xlu1 %v5198_v3, %s12305_s25 }
 0xb66   : > { %4488 = vrot.lane.b32.xlu0 %v4475_v28, %s12265_s2  ;;  %s12498_s2 = smov 18  }
 0xb67   : > { %3096 = vrot.lane.b32.xlu1 %v3082_v43, %s12319_s3 }
 0xb6a   : > { %4736 = vrot.lane.b32.xlu0 %v4724_v29, %s12275_s4  ;;  %v12493_v29 = vld [vmem:[#allocation102_spill] sm:$0xff] }
 0xb6b   : > { %3471 = vrot.lane.b32.xlu1 %v3457_v18, %s12079_s7  ;;  %v3512_v18 = vmul.f32 %v12495_v41, %v10783_v31 }
 0xb6e   : > { %4849 = vrot.lane.b32.xlu0 %v4836_v5, %s12284_s24  ;;  %v5623_v5 = vld [vmem:[#allocation3 + $0x230] sm:$0xff]  ;;  %s12516_s24 = smov 79  }
 0xb6f   : > { %3846 = vrot.lane.b32.xlu1 %v3832_v61, %s12082_s26  ;;  %v5628_v61 = vld [vmem:[#allocation3 + $0x258] sm:$0xff] }
 0xb70   : > { %v3896_v48 = vpop.permute.xlu0 %3895 }
 0xb71   : > { %v3905_v49 = vsel %vm278_vm7, %v12484_v33, %v3896_v48  ;;  %v3898_v53 = vpop.permute.xlu1 %3897 }
 0xb72   : > { %3913 = vst [vmem:[#allocation3 + $0x200] sm:$0xff] %v3905_v49  ;;  %5097 = vrot.lane.b32.xlu0 %v5085_v17, %s12076_s19  ;;  %v3906_v4 = vsel %vm278_vm7, %v3896_v48, %v3898_v53  ;;  %v7134_v40 = vpack.c.bf16 %v5619_v47, %v3905_v49  ;;  %vm12494_vm7 = vcmask 105472   ;;  %v3456_v49 = vmul.f32 %v12496_v46, %v10676_v60  ;;  %v5639_v46 = vld [vmem:[#allocation3 + $0x2b0] sm:$0xff] }
 0xb73   : > { %4216 = vrot.lane.b32.xlu1 %v4202_v55, %s12084_s5  ;;  %v7132_v22 = vpack.c.bf16 %v5620_v50, %v3906_v4  ;;  %v5248_v55 = vmul.f32 %v12451_v25, %v10678_v9  ;;  %v12502_v4 = vld [vmem:[#allocation112_spill] sm:$0xff]  ;;  %vm12505_vm8 = vmmov %vm12494_vm7 }
 0xb74   : > { %v4266_v45 = vpop.permute.xlu0 %4265 }
 0xb75   : > { %v4275_v6 = vsel %vm384_vm6, %v12487_v2, %v4266_v45  ;;  %7133 = vmatprep.subr.bf16.mxu0 %v7132_v22  ;;  %v4268_v1 = vpop.permute.xlu1 %4267  ;;  %v5627_v2 = vld [vmem:[#allocation3 + $0x250] sm:$0xff] }
 0xb76   : > { %4283 = vst [vmem:[#allocation3 + $0x220] sm:$0xff] %v4275_v6  ;;  %5210 = vrot.lane.b32.xlu0 %v5197_v51, %s12305_s25  ;;  %7135 = vmatpush1.bf16.msra.mxu0 %v7134_v40  ;;  %v4276_v28 = vsel %vm384_vm6, %v4266_v45, %v4268_v1  ;;  %v7138_v48 = vpack.c.bf16 %v5623_v5, %v4275_v6  ;;  %vm12497_vm6 = vmmov %vm12489_vm1  ;;  %v12499_v45 = vld [vmem:[#allocation107_spill] sm:$0xff]  ;;  %v12506_v1 = vld [vmem:[#allocation118_spill] sm:$0xff]  ;;  %s12526_s25 = smov 127  }
 0xb77   : > { %4540 = vrot.lane.b32.xlu1 %v4526_v13, %s12087_s9  ;;  %v7136_v30 = vpack.c.bf16 %v5624_v36, %v4276_v28  ;;  %v5632_v13 = vld [vmem:[#allocation3 + $0x278] sm:$0xff] }
 0xb78   : > { %v4589_v7 = vpop.permute.xlu0 %4588 }
 0xb79   : > { %v4598_v35 = vsel %vm12489_vm1, %v12488_v10, %v4589_v7  ;;  %v4591_v33 = vpop.permute.xlu1 %4590  ;;  %7137 = vmatprep.subr.bf16.mxu0 %v7136_v30  ;;  %vm12507_vm1 = vcmask 7168  }
 0xb7a   : > { %4606 = vst [vmem:[#allocation3 + $0x240] sm:$0xff] %v4598_v35  ;;  %5458 = vrot.lane.b32.xlu0 %v5446_v24, %s12085_s12  ;;  %v4599_v14 = vsel %vm12497_vm6, %v4589_v7, %v4591_v33  ;;  %7139 = vmatpush1.bf16.msra.mxu0 %v7138_v48  ;;  %v7142_v6 = vpack.c.bf16 %v5627_v2, %v4598_v35  ;;  %v5631_v35 = vld [vmem:[#allocation3 + $0x270] sm:$0xff]  ;;  %v5644_v2 = vld [vmem:[#allocation3 + $0x2d8] sm:$0xff]  ;;  %vm12512_vm6 = vmmov %vm12507_vm1 }
 0xb7b   : > { %4901 = vrot.lane.b32.xlu1 %v4887_v37, %s12366_s1  ;;  %v7140_v51 = vpack.c.bf16 %v5628_v61, %v4599_v14  ;;  %v3715_v7 = vmul.f32 %v12325_v0, %v10676_v60  ;;  %v12504_v0 = vld [vmem:[#allocation159_spill] sm:$0xff]  ;;  %v5636_v37 = vld [vmem:[#allocation3 + $0x298] sm:$0xff] }
 0xb7c   : > { %v4950_v11 = vpop.permute.xlu0 %4949 }
 0xb7d   : > { %v4959_v21 = vsel %vm12492_vm3, %v12491_v26, %v4950_v11  ;;  %v4952_v24 = vpop.permute.xlu1 %4951  ;;  %7141 = vmatprep.subr.bf16.mxu0 %v7140_v51  ;;  %v3134_v26 = vmul.f32 %v12458_v16, %v10678_v9  ;;  %vm12508_vm3 = vmmov %vm12500_vm15 }
 0xb7e   : > { %3094 = vrot.lane.b32.xlu0 %v3081_v27, %s12319_s3  ;;  %v4960_v10 = vsel %vm12501_vm11, %v4950_v11, %v4952_v24  ;;  %7143 = vmatpush1.bf16.msra.mxu0 %v7142_v6  ;;  %v7146_v27 = vpack.c.bf16 %v5631_v35, %v4959_v21  ;;  %v3831_v11 = vmul.f32 %v12504_v0, %v10676_v60  ;;  %v5635_v21 = vld [vmem:[#allocation3 + $0x290] sm:$0xff]  ;;  %vm12515_vm11 = vcmask 244736   ;;  %s12549_s3 = smov 111  }
 0xb7f   : > { %3529 = vrot.lane.b32.xlu1 %v3512_v18, %s12498_s2  ;;  %v7144_v38 = vpack.c.bf16 %v5632_v13, %v4960_v10  ;;  %v5640_v18 = vld [vmem:[#allocation3 + $0x2b8] sm:$0xff]  ;;  %v4413_v24 = vmul.f32 %v12343_v62, %v10676_v60 }
 0xb80   : > { %v5311_v3 = vpop.permute.xlu0 %5310 }
 0xb81   : > { %v5320_v43 = vsel %vm12494_vm7, %v12493_v29, %v5311_v3  ;;  %v5313_v22 = vpop.permute.xlu1 %5312  ;;  %7145 = vmatprep.subr.bf16.mxu0 %v7144_v38  ;;  %v3509_v29 = vmul.f32 %v12495_v41, %v10678_v9  ;;  %vm12511_vm7 = vmmov %vm12503_vm14 }
 0xb82   : > { %3352 = vrot.lane.b32.xlu0 %v3340_v44, %s12092_s13  ;;  %v5321_v47 = vsel %vm12505_vm8, %v5311_v3, %v5313_v22  ;;  %7147 = vmatpush1.bf16.msra.mxu0 %v7146_v27  ;;  %v7150_v36 = vpack.c.bf16 %v5635_v21, %v5320_v43  ;;  %v4084_v3 = vmul.f32 %v12334_v54, %v10676_v60  ;;  %v12510_v54 = vld [vmem:[#allocation168_spill] sm:$0xff] }
 0xb83   : > { %5262 = vrot.lane.b32.xlu1 %v5248_v55, %s12453_s0  ;;  %v7148_v28 = vpack.c.bf16 %v5636_v37, %v5321_v47  ;;  %v7400_v27 = vld [vmem:[#allocation3 + $0x318] sm:$0xff] }
 0xb84   : > { %v3199_v17 = vpop.permute.xlu0 %3198 }
 0xb85   : > { %v3209_v12 = vsel %vm12500_vm15, %v12499_v45, %v3199_v17  ;;  %v3201_v30 = vpop.permute.xlu1 %3200  ;;  %7149 = vmatprep.subr.bf16.mxu0 %v7148_v28  ;;  %vm12514_vm15 = vcmask 637952   ;;  %v12517_v28 = vld [vmem:[#allocation42_spill] sm:$0xff] }
 0xb86   : > { %3469 = vrot.lane.b32.xlu0 %v3456_v49, %s12079_s7  ;;  %v3210_v5 = vsel %vm12508_vm3, %v3199_v17, %v3201_v30  ;;  %7151 = vmatpush1.bf16.msra.mxu0 %v7150_v36  ;;  %v7154_v43 = vpack.c.bf16 %v5639_v46, %v3209_v12  ;;  %v12509_v49 = vld [vmem:[#allocation15_spill] sm:$0xff]  ;;  %v4201_v17 = vmul.f32 %v12510_v54, %v10676_v60  ;;  %s12541_s7 = smov 113  }
 0xb87   : > { %3148 = vrot.lane.b32.xlu1 %v3134_v26, %s12460_s10  ;;  %v7152_v33 = vpack.c.bf16 %v5640_v18, %v3210_v5  ;;  %v10949_v14 = vmul.f32 %v10752_v58, %v12509_v49  ;;  %v5643_v12 = vld [vmem:[#allocation3 + $0x2d0] sm:$0xff]  ;;  %v12513_v26 = vld [vmem:[#allocation169_spill] sm:$0xff]  ;;  %v4886_v21 = vmul.f32 %v12517_v28, %v10676_v60  ;;  %v5135_v30 = vmul.f32 %v12363_v32, %v10676_v60 }
 0xb88   : > { %v3574_v53 = vpop.permute.xlu0 %3573  ;;  %v4525_v22 = vmul.f32 %v12513_v26, %v10676_v60  ;;  %v7402_v46 = vld [vmem:[#allocation2 + $0x30] sm:$0xff]  ;;  %v5496_v28 = vmul.f32 %v12468_v57, %v10676_v60 }
 0xb89   : > { %v3584_v50 = vsel %vm12503_vm14, %v12502_v4, %v3574_v53  ;;  %v3576_v61 = vpop.permute.xlu1 %3575  ;;  %7153 = vmatprep.subr.bf16.mxu0 %v7152_v33  ;;  %v5647_v4 = vld [vmem:[#allocation3 + $0x2f0] sm:$0xff]  ;;  %vm12518_vm14 = vmmov %vm12514_vm15 }
 0xb8a   : > { %3727 = vrot.lane.b32.xlu0 %v3715_v7, %s12106_s22  ;;  %v3585_v45 = vsel %vm12511_vm7, %v3574_v53, %v3576_v61  ;;  %7155 = vmatpush1.bf16.msra.mxu0 %v7154_v43  ;;  %v7158_v58 = vpack.c.bf16 %v5643_v12, %v3584_v50  ;;  %v5648_v53 = vld [vmem:[#allocation3 + $0x2f8] sm:$0xff]  ;;  %v7164_v50 = vpack.c.bf16 %v7400_v27, %v10711_v42  ;;  %vm12544_vm7 = vcmask 367616  }
 0xb8b   : > { %3523 = vrot.lane.b32.xlu1 %v3509_v29, %s12498_s2  ;;  %v7156_v6 = vpack.c.bf16 %v5644_v2, %v3585_v45  ;;  %v4774_v42 = vmul.f32 %v12353_v23, %v10676_v60 }
 0xb8c   : > { %v3946_v40 = vpop.permute.xlu0 %3945 }
 0xb8d   : > { %v3955_v44 = vsel %vm12507_vm1, %v12506_v1, %v3946_v40  ;;  %v3948_v55 = vpop.permute.xlu1 %3947  ;;  %7157 = vmatprep.subr.bf16.mxu0 %v7156_v6  ;;  %vm12537_vm1 = vcmask 375808  }
 0xb8e   : > { %3844 = vrot.lane.b32.xlu0 %v3831_v11, %s12082_s26  ;;  %v3956_v7 = vsel %vm12512_vm6, %v3946_v40, %v3948_v55  ;;  %7159 = vmatpush1.bf16.msra.mxu0 %v7158_v58  ;;  %v7162_v38 = vpack.c.bf16 %v5647_v4, %v3955_v44  ;;  %v7401_v11 = vld [vmem:[#allocation3 + $0x310] sm:$0xff]  ;;  %vm12538_vm3 = vmmov %vm12537_vm1 }
 0xb8f   : > { %3525 = vrot.lane.b32.xlu1 %v10949_v14, %s12498_s2  ;;  %v7160_v13 = vpack.c.bf16 %v5648_v53, %v3956_v7  ;;  %v7166_v47 = vpack.c.bf16 %v7401_v11, %v10715_v56  ;;  %v5556_v53 = vld [vmem:[#allocation3 + $0x18] sm:$0xff]  ;;  %vm12545_vm6 = vmmov %vm12544_vm7 }
 0xb90   : > { %v10943_v48 = vpop.permute.xlu0 %4636  ;;  %v5560_v11 = vld [vmem:[#allocation3 + $0x38] sm:$0xff] }
 0xb91   : > { %v5158_v35 = vpop.permute.xlu1 %5157  ;;  %7161 = vmatprep.subr.bf16.mxu0 %v7160_v13  ;;  %v11045_v13 = vsel %vm3052_vm10, %v12468_v57, %v12464_v59  ;;  %v12521_v59 = vld [vmem:[#allocation30_spill] sm:$0xff] }
 0xb92   : > { %4096 = vrot.lane.b32.xlu0 %v4084_v3, %s12124_s21  ;;  %v5162_v62 = vsel %vm12514_vm15, %v10860_v52, %v5158_v35  ;;  %7163 = vmatpush1.bf16.msra.mxu0 %v7162_v38  ;;  %v5555_v38 = vld [vmem:[#allocation3 + $0x10] sm:$0xff]  ;;  %v5500_v26 = vmul.f32 %v11045_v13, %v10783_v31  ;;  %vm12552_vm15 = vcmask 285696  }
 0xb93   : > { %5170 = vst [vmem:[#allocation3 + $0x5f8] sm:$0xff] %v5162_v62  ;;  %7165 = vmatprep.subr.bf16.mxu0 %v7164_v50  ;;  %v5559_v50 = vld [vmem:[#allocation3 + $0x30] sm:$0xff] }
 0xb94   : > { %v10954_v51 = vpop.permute.xlu0 %4997 }
 0xb95   : > { %v4904_v40 = vpop.permute.xlu1 %4903 }
 0xb96   : > { %4214 = vrot.lane.b32.xlu0 %v4201_v17, %s12084_s5  ;;  %v10978_v37 = vsel %vm12515_vm11, %v4904_v40, %v10672_v63  ;;  %7167 = vmatpush1.bf16.msra.mxu0 %v7166_v47  ;;  %v3128_v17 = vsel %vm3127_vm4, %v12462_v39, %v12458_v16  ;;  %s12534_s5 = smov 115   ;;  %vm12553_vm11 = vmmov %vm12552_vm15 }
 0xb97   : > { %4919 = vst [vmem:[#allocation3 + $0x190] sm:$0xff] %v10978_v37  ;;  %v3133_v2 = vmul.f32 %v3128_v17, %v10676_v60  ;;  %v3136_v58 = vmul.f32 %v3128_v17, %v10810_v8  ;;  %v5567_v17 = vld [vmem:[#allocation3 + $0x70] sm:$0xff] }
 0xb98   : > { %v10962_v10 = vpop.permute.xlu0 %5358 }
 0xb99   : > { %v5154_v44 = vpop.permute.xlu1 %5153 }
 0xb9a   : > { %4425 = vrot.lane.b32.xlu0 %v4413_v24, %s12143_s14  ;;  %v5161_v56 = vsel %vm12518_vm14, %v5154_v44, %v10860_v52  ;;  %v5242_v52 = vsel %vm3312_vm0, %v12455_v20, %v12451_v25  ;;  %v12519_v25 = vld [vmem:[#allocation17_spill] sm:$0xff]  ;;  %v5563_v44 = vld [vmem:[#allocation3 + $0x50] sm:$0xff]  ;;  %vm12557_vm14 = vcmask 277504  }
 0xb9b   : > { %5169 = vst [vmem:[#allocation3 + $0x5f0] sm:$0xff] %v5161_v56  ;;  %v5247_v18 = vmul.f32 %v5242_v52, %v10676_v60  ;;  %v5250_v32 = vmul.f32 %v7402_v46, %v5242_v52  ;;  %v12520_v24 = vld [vmem:[#allocation29_spill] sm:$0xff]  ;;  %v5564_v56 = vld [vmem:[#allocation3 + $0x58] sm:$0xff] }
 0xb9c   : > { %v10970_v0 = vpop.permute.xlu0 %3248 }
 0xb9d   : > { %v10991_v23 = vpop.permute.xlu1 %5268 }
 0xb9e   : > { %4538 = vrot.lane.b32.xlu0 %v4525_v22, %s12087_s9 }
 0xba0   : > { %v10980_v1 = vpop.permute.xlu0 %3623 }
 0xba1   : > { %v10997_v29 = vpop.permute.xlu1 %5264 }
 0xba2   : > { %4786 = vrot.lane.b32.xlu0 %v4774_v42, %s12516_s24 }
 0xba4   : > { %v10988_v36 = vpop.permute.xlu0 %3993 }
 0xba6   : > { %4899 = vrot.lane.b32.xlu0 %v4886_v21, %s12366_s1 }
 0xba8   : > { %v10993_v63 = vpop.permute.xlu0 %4325 }
 0xba9   : > { %v11007_v5 = vpop.permute.xlu1 %3154 }
 0xbaa   : > { %4897 = vrot.lane.b32.xlu0 %v10756_v34, %s12366_s1 }
 0xbac   : > { %v11001_v3 = vpop.permute.xlu0 %4686 }
 0xbad   : > { %v11013_v34 = vpop.permute.xlu1 %3150 }
 0xbae   : > { %5147 = vrot.lane.b32.xlu0 %v5135_v30, %s12186_s15 }
 0xbb0   : > { %v11010_v33 = vpop.permute.xlu0 %5047 }
 0xbb1   : > { %v11018_v61 = vpop.permute.xlu1 %5512 }
 0xbb2   : > { %5260 = vrot.lane.b32.xlu0 %v5247_v18, %s12453_s0  ;;  %v12522_v18 = vld [vmem:[#allocation19_spill] sm:$0xff] }
 0xbb3   : > { %v4625_v46 = vmul.f32 %v12522_v18, %v10678_v9 }
 0xbb4   : > { %v11015_v43 = vpop.permute.xlu0 %5408 }
 0xbb5   : > { %v11027_v45 = vpop.permute.xlu1 %5518 }
 0xbb6   : > { %5266 = vrot.lane.b32.xlu0 %v5250_v32, %s12453_s0 }
 0xbb8   : > { %v3043_v54 = vpop.permute.xlu0 %3042 }
 0xbb9   : > { %v3053_v20 = vsel %vm3052_vm10, %v12519_v25, %v3043_v54  ;;  %v11033_v12 = vpop.permute.xlu1 %5514  ;;  %v12523_v25 = vld [vmem:[#allocation9_spill] sm:$0xff] }
 0xbba   : > { %3061 = vst [vmem:[#allocation3] sm:$0xff] %v3053_v20  ;;  %5258 = vrot.lane.b32.xlu0 %v10777_v15, %s12453_s0  ;;  %v7070_v35 = vpack.c.bf16 %v5555_v38, %v3053_v20  ;;  %v5568_v20 = vld [vmem:[#allocation3 + $0x78] sm:$0xff] }
 0xbbb   : > { %v12529_v38 = vld [vmem:[#allocation8_spill] sm:$0xff] }
 0xbbc   : > { %v11030_v6 = vpop.permute.xlu0 %3300 }
 0xbbd   : > { %v3045_v16 = vpop.permute.xlu1 %3044 }
 0xbbe   : > { %3146 = vrot.lane.b32.xlu0 %v3133_v2, %s12460_s10  ;;  %v3054_v39 = vsel %vm3052_vm10, %v3043_v54, %v3045_v16  ;;  %vm12524_vm10 = vcmask 392192   ;;  %v12528_v16 = vld [vmem:[#allocation13_spill] sm:$0xff] }
 0xbbf   : > { %v7068_v4 = vpack.c.bf16 %v5556_v53, %v3054_v39  ;;  %v5347_v39 = vmul.f32 %v12528_v16, %v10678_v9  ;;  %v5579_v16 = vld [vmem:[#allocation3 + $0xd0] sm:$0xff] }
 0xbc0   : > { %v3418_v55 = vpop.permute.xlu0 %3417 }
 0xbc1   : > { %v3428_v15 = vsel %vm3427_vm13, %v12520_v24, %v3418_v55  ;;  %v3420_v27 = vpop.permute.xlu1 %3419  ;;  %7069 = vmatprep.subr.bf16.mxu1 %v7068_v4 }
 0xbc2   : > { %3436 = vst [vmem:[#allocation3 + $0x20] sm:$0xff] %v3428_v15  ;;  %3152 = vrot.lane.b32.xlu0 %v3136_v58, %s12460_s10  ;;  %v3429_v22 = vsel %vm3427_vm13, %v3418_v55, %v3420_v27  ;;  %7071 = vmatpush1.bf16.msra.mxu1 %v7070_v35  ;;  %v7074_v47 = vpack.c.bf16 %v5559_v50, %v3428_v15  ;;  %vm12525_vm13 = vmmov %vm12524_vm10  ;;  %v12527_v55 = vld [vmem:[#allocation22_spill] sm:$0xff]  ;;  %v5572_v50 = vld [vmem:[#allocation3 + $0x98] sm:$0xff] }
 0xbc3   : > { %v7072_v42 = vpack.c.bf16 %v5560_v11, %v3429_v22  ;;  %v4986_v24 = vmul.f32 %v12527_v55, %v10678_v9  ;;  %v12533_v11 = vld [vmem:[#allocation24_spill] sm:$0xff] }
 0xbc4   : > { %v11040_v7 = vpop.permute.xlu0 %3675 }
 0xbc5   : > { %7073 = vmatprep.subr.bf16.mxu1 %v7072_v42 }
 0xbc6   : > { %3144 = vrot.lane.b32.xlu0 %v10794_v19, %s12460_s10  ;;  %v3795_v19 = vpop.permute.xlu1 %3794  ;;  %7075 = vmatpush1.bf16.msra.mxu1 %v7074_v47  ;;  %v3237_v47 = vmul.f32 %v12533_v11, %v10678_v9  ;;  %v12551_v11 = vld [vmem:[#allocation187_spill] sm:$0xff] }
 0xbc8   : > { %v3793_v62 = vpop.permute.xlu0 %3792 }
 0xbc9   : > { %v3803_v40 = vsel %vm3802_vm9, %v12521_v59, %v3793_v62  ;;  %v3804_v31 = vsel %vm3802_vm9, %v3793_v62, %v3795_v19  ;;  %vm12530_vm9 = vcmask 384000  }
 0xbca   : > { %3811 = vst [vmem:[#allocation3 + $0x40] sm:$0xff] %v3803_v40  ;;  %5516 = vrot.lane.b32.xlu0 %v5500_v26, %s12466_s18  ;;  %v7078_v30 = vpack.c.bf16 %v5563_v44, %v3803_v40  ;;  %v7076_v52 = vpack.c.bf16 %v5564_v56, %v3804_v31  ;;  %v4165_v32 = vpop.permute.xlu1 %4164  ;;  %vm12531_vm8 = vmmov %vm12530_vm9  ;;  %v5571_v26 = vld [vmem:[#allocation3 + $0x90] sm:$0xff]  ;;  %v12535_v40 = vld [vmem:[#allocation25_spill] sm:$0xff] }
 0xbcb   : > { %v3612_v42 = vmul.f32 %v12535_v40, %v10678_v9 }
 0xbcc   : > { %v11058_v21 = vpop.permute.xlu0 %4044  ;;  %7077 = vmatprep.subr.bf16.mxu1 %v7076_v52  ;;  %v5575_v52 = vld [vmem:[#allocation3 + $0xb0] sm:$0xff] }
 0xbcd   : > { %7079 = vmatpush1.bf16.msra.mxu1 %v7078_v30  ;;  %v5576_v30 = vld [vmem:[#allocation3 + $0xb8] sm:$0xff] }
 0xbce   : > { %5508 = vrot.lane.b32.xlu0 %v5496_v28, %s12466_s18  ;;  %v4491_v53 = vpop.permute.xlu1 %4490  ;;  %v12536_v28 = vld [vmem:[#allocation67_spill] sm:$0xff] }
 0xbd0   : > { %v4163_v54 = vpop.permute.xlu0 %4162 }
 0xbd1   : > { %v4173_v60 = vsel %vm12524_vm10, %v12523_v25, %v4163_v54  ;;  %v4174_v57 = vsel %vm12525_vm13, %v4163_v54, %v4165_v32  ;;  %v12540_v32 = vld [vmem:[#allocation27_spill] sm:$0xff]  ;;  %vm12558_vm10 = vmmov %vm12557_vm14  ;;  %vm12562_vm13 = vcmask 269312  }
 0xbd2   : > { %4181 = vst [vmem:[#allocation3 + $0x60] sm:$0xff] %v4173_v60  ;;  %4638 = vrot.lane.b32.xlu0 %v4625_v46, %s12526_s25  ;;  %v7080_v2 = vpack.c.bf16 %v5568_v20, %v4174_v57  ;;  %v7082_v58 = vpack.c.bf16 %v5567_v17, %v4173_v60  ;;  %v4852_v19 = vpop.permute.xlu1 %4851  ;;  %v3982_v54 = vmul.f32 %v12540_v32, %v10678_v9  ;;  %v12542_v60 = vld [vmem:[#allocation62_spill] sm:$0xff] }
 0xbd3   : > { %v4314_v57 = vmul.f32 %v12542_v60, %v10678_v9 }
 0xbd4   : > { %v11069_v15 = vpop.permute.xlu0 %4375  ;;  %7081 = vmatprep.subr.bf16.mxu1 %v7080_v2  ;;  %v12543_v2 = vld [vmem:[#allocation185_spill] sm:$0xff] }
 0xbd5   : > { %7083 = vmatpush1.bf16.msra.mxu1 %v7082_v58 }
 0xbd6   : > { %4999 = vrot.lane.b32.xlu0 %v4986_v24, %s12439_s23  ;;  %v5213_v20 = vpop.permute.xlu1 %5212  ;;  %v5580_v24 = vld [vmem:[#allocation3 + $0xd8] sm:$0xff] }
 0xbd8   : > { %v4489_v4 = vpop.permute.xlu0 %4488 }
 0xbd9   : > { %v4498_v35 = vsel %vm12530_vm9, %v12529_v38, %v4489_v4  ;;  %v4499_v27 = vsel %vm12531_vm8, %v4489_v4, %v4491_v53  ;;  %v5535_v4 = vld [vmem:[%s12547_s28 + $0x210] sm:$0xff]  ;;  %vm12563_vm9 = vmmov %vm12562_vm13  ;;  %vm12567_vm8 = vcmask 261120  }
 0xbda   : > { %4506 = vst [vmem:[#allocation3 + $0x80] sm:$0xff] %v4498_v35  ;;  %5360 = vrot.lane.b32.xlu0 %v5347_v39, %s12532_s29  ;;  %v7084_v22 = vpack.c.bf16 %v5572_v50, %v4499_v27  ;;  %v7086_v62 = vpack.c.bf16 %v5571_v26, %v4498_v35  ;;  %5907 = vmatprep.mubr.f32.mxu0 %v5535_v4  ;;  %v12548_v38 = vld [vmem:[#allocation63_spill] sm:$0xff]  ;;  %v12550_v50 = vld [vmem:[#allocation20_spill] sm:$0xff] }
 0xbdb   : > { %v4675_v35 = vmul.f32 %v12548_v38, %v10678_v9  ;;  %v5036_v26 = vmul.f32 %v12550_v50, %v10678_v9 }
 0xbdc   : > { %v11080_v59 = vpop.permute.xlu0 %4736  ;;  %7085 = vmatprep.subr.bf16.mxu1 %v7084_v22  ;;  %v3097_v22 = vpop.permute.xlu1 %3096 }
 0xbdd   : > { %7087 = vmatpush1.bf16.msra.mxu1 %v7086_v62 }
 0xbde   : > { %3250 = vrot.lane.b32.xlu0 %v3237_v47, %s12534_s5 }
 0xbe0   : > { %v4850_v44 = vpop.permute.xlu0 %4849 }
 0xbe1   : > { %v4859_v31 = vsel %vm12537_vm1, %v12536_v28, %v4850_v44  ;;  %v4860_v56 = vsel %vm12538_vm3, %v4850_v44, %v4852_v19  ;;  %v5583_v19 = vld [vmem:[#allocation3 + $0xf0] sm:$0xff]  ;;  %vm12568_vm1 = vmmov %vm12567_vm8  ;;  %vm12572_vm3 = vcmask 252928  }
 0xbe2   : > { %4867 = vst [vmem:[#allocation3 + $0xa0] sm:$0xff] %v4859_v31  ;;  %3625 = vrot.lane.b32.xlu0 %v3612_v42, %s12539_s6  ;;  %v7088_v18 = vpack.c.bf16 %v5576_v30, %v4860_v56  ;;  %v7090_v46 = vpack.c.bf16 %v5575_v52, %v4859_v31  ;;  %v5584_v42 = vld [vmem:[#allocation3 + $0xf8] sm:$0xff]  ;;  %s12666_s6 = sld [smem:[#allocation202_spill]] }
 0xbe3   : > { %v12554_v31 = vld [vmem:[#allocation64_spill] sm:$0xff] }
 0xbe4   : > { %v11091_v25 = vpop.permute.xlu0 %5097  ;;  %7089 = vmatprep.subr.bf16.mxu1 %v7088_v18  ;;  %v5397_v56 = vmul.f32 %v12554_v31, %v10678_v9  ;;  %v12555_v52 = vld [vmem:[#allocation32_spill] sm:$0xff] }
 0xbe5   : > { %7091 = vmatpush1.bf16.msra.mxu1 %v7090_v46  ;;  %v3289_v18 = vmul.f32 %v12555_v52, %v10678_v9  ;;  %v3472_v46 = vpop.permute.xlu1 %3471  ;;  %v12566_v52 = vld [vmem:[#allocation194_spill] sm:$0xff] }
 0xbe6   : > { %3995 = vrot.lane.b32.xlu0 %v3982_v54, %s12541_s7  ;;  %v12556_v54 = vld [vmem:[#allocation190_spill] sm:$0xff] }
 0xbe8   : > { %v5211_v17 = vpop.permute.xlu0 %5210 }
 0xbe9   : > { %v5220_v58 = vsel %vm12544_vm7, %v12543_v2, %v5211_v17  ;;  %v5221_v55 = vsel %vm12545_vm6, %v5211_v17, %v5213_v20  ;;  %v5588_v20 = vld [vmem:[#allocation3 + $0x118] sm:$0xff]  ;;  %v5587_v17 = vld [vmem:[#allocation3 + $0x110] sm:$0xff]  ;;  %v3847_v4 = vpop.permute.xlu1 %3846  ;;  %vm12573_vm7 = vmmov %vm12572_vm3  ;;  %vm12576_vm6 = vcmask 244736  }
 0xbea   : > { %5228 = vst [vmem:[#allocation3 + $0xc0] sm:$0xff] %v5220_v58  ;;  %4327 = vrot.lane.b32.xlu0 %v4314_v57, %s12546_s27  ;;  %v7092_v39 = vpack.c.bf16 %v5580_v24, %v5221_v55  ;;  %v7094_v53 = vpack.c.bf16 %v5579_v16, %v5220_v58  ;;  %v12559_v55 = vld [vmem:[#allocation189_spill] sm:$0xff] }
 0xbeb   : > { %v3664_v24 = vmul.f32 %v12559_v55, %v10678_v9 }
 0xbec   : > { %v11105_v27 = vpop.permute.xlu0 %5458  ;;  %7093 = vmatprep.subr.bf16.mxu1 %v7092_v39  ;;  %v12560_v39 = vld [vmem:[#allocation193_spill] sm:$0xff] }
 0xbed   : > { %7095 = vmatpush1.bf16.msra.mxu1 %v7094_v53  ;;  %v4033_v53 = vmul.f32 %v12560_v39, %v10678_v9  ;;  %v4217_v31 = vpop.permute.xlu1 %4216 }
 0xbee   : > { %4688 = vrot.lane.b32.xlu0 %v4675_v35, %s12549_s3  ;;  %v12561_v35 = vld [vmem:[#allocation192_spill] sm:$0xff] }
 0xbf0   : > { %v3095_v62 = vpop.permute.xlu0 %3094 }
 0xbf1   : > { %v3105_v47 = vsel %vm12552_vm15, %v12551_v11, %v3095_v62  ;;  %v3106_v40 = vsel %vm12553_vm11, %v3095_v62, %v3097_v22  ;;  %v5592_v22 = vld [vmem:[#allocation3 + $0x138] sm:$0xff]  ;;  %v5591_v62 = vld [vmem:[#allocation3 + $0x130] sm:$0xff]  ;;  %vm12578_vm15 = vmmov %vm12576_vm6  ;;  %vm12581_vm11 = vcmask 236544  }
 0xbf2   : > { %3113 = vst [vmem:[#allocation3 + $0xe0] sm:$0xff] %v3105_v47  ;;  %5049 = vrot.lane.b32.xlu0 %v5036_v26, %s12461_s17  ;;  %v7096_v44 = vpack.c.bf16 %v5584_v42, %v3106_v40  ;;  %v7098_v28 = vpack.c.bf16 %v5583_v19, %v3105_v47  ;;  %v12564_v40 = vld [vmem:[#allocation86_spill] sm:$0xff] }
 0xbf3   : > { %v4364_v42 = vmul.f32 %v12564_v40, %v10678_v9  ;;  %v12575_v40 = vld [vmem:[#allocation41_spill] sm:$0xff] }
 0xbf4   : > { %v11116_v30 = vpop.permute.xlu0 %3352  ;;  %7097 = vmatprep.subr.bf16.mxu1 %v7096_v44  ;;  %v12565_v44 = vld [vmem:[#allocation38_spill] sm:$0xff] }
 0xbf5   : > { %7099 = vmatpush1.bf16.msra.mxu1 %v7098_v28  ;;  %v4725_v28 = vmul.f32 %v12565_v44, %v10678_v9 }
 0xbf6   : > { %5410 = vrot.lane.b32.xlu0 %v5397_v56, %s12210_s16  ;;  %s12586_s16 = sld [smem:[#allocation199_spill]] }
 0xbf8   : > { %v3470_v32 = vpop.permute.xlu0 %3469 }
 0xbf9   : > { %v3480_v60 = vsel %vm12557_vm14, %v12556_v54, %v3470_v32  ;;  %v3481_v57 = vsel %vm12558_vm10, %v3470_v32, %v3472_v46  ;;  %v5596_v32 = vld [vmem:[#allocation3 + $0x158] sm:$0xff]  ;;  %v5595_v54 = vld [vmem:[#allocation3 + $0x150] sm:$0xff]  ;;  %vm12583_vm14 = vmmov %vm12581_vm11 }
 0xbfa   : > { %3488 = vst [vmem:[#allocation3 + $0x100] sm:$0xff] %v3480_v60  ;;  %3302 = vrot.lane.b32.xlu0 %v3289_v18, %s12218_s20  ;;  %v7100_v2 = vpack.c.bf16 %v5588_v20, %v3481_v57  ;;  %v7102_v58 = vpack.c.bf16 %v5587_v17, %v3480_v60  ;;  %v12569_v20 = vld [vmem:[#allocation132_spill] sm:$0xff]  ;;  %vm12584_vm10 = vmmov %vm12581_vm11 }
 0xbfb   : > { %v5086_v17 = vmul.f32 %v12569_v20, %v10678_v9  ;;  %v7403_v20 = vld [vmem:[#allocation2 + $0x10] sm:$0xff] }
 0xbfc   : > { %v11127_v16 = vpop.permute.xlu0 %3727  ;;  %7101 = vmatprep.subr.bf16.mxu1 %v7100_v2 }
 0xbfd   : > { %7103 = vmatpush1.bf16.msra.mxu1 %v7102_v58  ;;  %v12570_v58 = vld [vmem:[#allocation36_spill] sm:$0xff] }
 0xbfe   : > { %3677 = vrot.lane.b32.xlu0 %v3664_v24, %s12229_s11  ;;  %v5447_v55 = vmul.f32 %v12570_v58, %v10678_v9  ;;  %v4541_v24 = vpop.permute.xlu1 %4540 }
 0xc00   : > { %v3845_v38 = vpop.permute.xlu0 %3844 }
 0xc01   : > { %v3855_v50 = vsel %vm12562_vm13, %v12561_v35, %v3845_v38  ;;  %v3856_v26 = vsel %vm12563_vm9, %v3845_v38, %v3847_v4  ;;  %v5600_v35 = vld [vmem:[#allocation3 + $0x178] sm:$0xff]  ;;  %vm12585_vm13 = vmmov %vm12584_vm10  ;;  %vm12587_vm9 = vcmask 154624  }
 0xc02   : > { %3863 = vst [vmem:[#allocation3 + $0x120] sm:$0xff] %v3855_v50  ;;  %3864 = vst [vmem:[#allocation3 + $0x128] sm:$0xff] %v3856_v26  ;;  %4046 = vrot.lane.b32.xlu0 %v4033_v53, %s12239_s8  ;;  %v7104_v11 = vpack.c.bf16 %v5592_v22, %v3856_v26  ;;  %v7106_v47 = vpack.c.bf16 %v5591_v62, %v3855_v50  ;;  %v12571_v53 = vld [vmem:[#allocation197_spill] sm:$0xff]  ;;  %v5599_v50 = vld [vmem:[#allocation3 + $0x170] sm:$0xff]  ;;  %v4902_v44 = vpop.permute.xlu1 %4901 }
 0xc03   : > { %v12574_v62 = vld [vmem:[#allocation165_spill] sm:$0xff] }
 0xc04   : > { %v11138_v19 = vpop.permute.xlu0 %4096  ;;  %7105 = vmatprep.subr.bf16.mxu1 %v7104_v11  ;;  %v3341_v11 = vmul.f32 %v12574_v62, %v10678_v9  ;;  %v3503_v62 = vsel %vm3502_vm12, %v12509_v49, %v12495_v41  ;;  %v11201_v41 = vld [vmem:[%s12586_s16 + $0x320] sm:$0xff] }
 0xc05   : > { %7107 = vmatpush1.bf16.msra.mxu1 %v7106_v47 }
 0xc06   : > { %4377 = vrot.lane.b32.xlu0 %v4364_v42, %s12255_s30  ;;  %v3716_v42 = vmul.f32 %v12575_v40, %v10678_v9 }
 0xc08   : > { %v4215_v56 = vpop.permute.xlu0 %4214 }
 0xc09   : > { %v4225_v18 = vsel %vm12567_vm8, %v12566_v52, %v4215_v56  ;;  %v4226_v46 = vsel %vm12568_vm1, %v4215_v56, %v4217_v31  ;;  %v5604_v56 = vld [vmem:[#allocation3 + $0x198] sm:$0xff]  ;;  %vm12588_vm8 = vmmov %vm12587_vm9 }
 0xc0a   : > { %4233 = vst [vmem:[#allocation3 + $0x140] sm:$0xff] %v4225_v18  ;;  %4738 = vrot.lane.b32.xlu0 %v4725_v28, %s12275_s4  ;;  %v7108_v60 = vpack.c.bf16 %v5596_v32, %v4226_v46  ;;  %v7110_v57 = vpack.c.bf16 %v5595_v54, %v4225_v18  ;;  %v12577_v18 = vld [vmem:[#allocation179_spill] sm:$0xff]  ;;  %vm12589_vm1 = vmmov %vm12588_vm8 }
 0xc0b   : > { %v4085_v46 = vmul.f32 %v12577_v18, %v10678_v9  ;;  %v12580_v9 = vld [vmem:[#allocation134_spill] sm:$0xff] }
 0xc0c   : > { %v11149_v2 = vpop.permute.xlu0 %4425  ;;  %7109 = vmatprep.subr.bf16.mxu1 %v7108_v60  ;;  %v11170_v60 = vpop.permute.xlu1 %3529 }
 0xc0d   : > { %7111 = vmatpush1.bf16.msra.mxu1 %v7110_v57 }
 0xc0e   : > { %5099 = vrot.lane.b32.xlu0 %v5086_v17, %s12076_s19  ;;  %v12579_v17 = vld [vmem:[#allocation124_spill] sm:$0xff] }
 0xc0f   : > { %v4414_v58 = vmul.f32 %v7403_v20, %v12579_v17 }
 0xc10   : > { %v4539_v39 = vpop.permute.xlu0 %4538 }
 0xc11   : > { %v4548_v4 = vsel %vm12572_vm3, %v12571_v53, %v4539_v39  ;;  %v4549_v38 = vsel %vm12573_vm7, %v4539_v39, %v4541_v24  ;;  %v4775_v24 = vmul.f32 %v7403_v20, %v12580_v9  ;;  %v5263_v39 = vpop.permute.xlu1 %5262  ;;  %vm12590_vm3 = vmmov %vm12589_vm1  ;;  %vm12591_vm7 = vcmask 629760  }
 0xc12   : > { %4556 = vst [vmem:[#allocation3 + $0x160] sm:$0xff] %v4548_v4  ;;  %5460 = vrot.lane.b32.xlu0 %v5447_v55, %s12085_s12  ;;  %v7112_v26 = vpack.c.bf16 %v5600_v35, %v4549_v38  ;;  %v7114_v22 = vpack.c.bf16 %v5599_v50, %v4548_v4  ;;  %v12582_v38 = vld [vmem:[#allocation162_spill] sm:$0xff] }
 0xc13   : > { %v5136_v35 = vmul.f32 %v7403_v20, %v12582_v38 }
 0xc14   : > { %v11160_v47 = vpop.permute.xlu0 %4786  ;;  %7113 = vmatprep.subr.bf16.mxu1 %v7112_v26 }
 0xc15   : > { %7115 = vmatpush1.bf16.msra.mxu1 %v7114_v22 }
 0xc16   : > { %3354 = vrot.lane.b32.xlu0 %v3341_v11, %s12092_s13  ;;  %v7404_v11 = vld [vmem:[#allocation2 + $0x8] sm:$0xff] }
 0xc17   : > { %v3508_v40 = vmul.f32 %v7404_v11, %v3503_v62 }
 0xc18   : > { %v4900_v28 = vpop.permute.xlu0 %4899 }
 0xc19   : > { %v4910_v31 = vsel %vm12576_vm6, %v4900_v28, %v4902_v44  ;;  %vm12592_vm6 = vmmov %vm12591_vm7 }
 0xc1a   : > { %3729 = vrot.lane.b32.xlu0 %v3716_v42, %s12106_s22  ;;  %v7116_v52 = vpack.c.bf16 %v5604_v56, %v4910_v31  ;;  %v11196_v56 = vld [vmem:[%s12586_s16 + $0x328] sm:$0xff] }
 0xc1c   : > { %v4898_v32 = vpop.permute.xlu0 %4897  ;;  %7117 = vmatprep.subr.bf16.mxu1 %v7116_v52  ;;  %v5533_v52 = vld [vmem:[%s12547_s28 + $0x200] sm:$0xff] }
 0xc1d   : > { %v4909_v54 = vsel %vm12578_vm15, %v4898_v32, %v4900_v28  ;;  %v3149_v28 = vpop.permute.xlu1 %3148  ;;  %5824 = vmatprep.mubr.f32.mxu1 %v5533_v52  ;;  %vm12593_vm15 = vcmask 1039360   ;;  %v12603_v52 = vld [vmem:[#allocation119_spill] sm:$0xff] }
 0xc1e   : > { %4917 = vst [vmem:[#allocation3 + $0x180] sm:$0xff] %v4909_v54  ;;  %4098 = vrot.lane.b32.xlu0 %v4085_v46, %s12124_s21  ;;  %v7118_v57 = vpack.c.bf16 %v10978_v37, %v4909_v54 }
 0xc20   : > { %v11175_v55 = vpop.permute.xlu0 %5147  ;;  %7119 = vmatpush1.bf16.msra.mxu1 %v7118_v57 }
 0xc22   : > { %4427 = vrot.lane.b32.xlu0 %v4414_v58, %s12143_s14 }
 0xc24   : > { %v5261_v53 = vpop.permute.xlu0 %5260 }
 0xc25   : > { %v5271_v4 = vsel %vm12581_vm11, %v5261_v53, %v5263_v39  ;;  %v12594_v39 = vld [vmem:[#allocation98_spill] sm:$0xff]  ;;  %vm12595_vm11 = vmmov %vm12593_vm15 }
 0xc26   : > { %4788 = vrot.lane.b32.xlu0 %v4775_v24, %s12516_s24  ;;  %s12664_s24 = sld [smem:[#allocation7_spill]] }
 0xc28   : > { %v5267_v50 = vpop.permute.xlu0 %5266 }
 0xc29   : > { %v5272_v37 = vsel %vm12583_vm14, %v10997_v29, %v5267_v50  ;;  %v5273_v26 = vsel %vm12584_vm10, %v5267_v50, %v10991_v23  ;;  %v3511_v23 = vmul.f32 %v3503_v62, %v10810_v8  ;;  %v5497_v8 = vmul.f32 %v7403_v20, %v11045_v13 }
 0xc2a   : > { %5280 = vst [vmem:[#allocation3 + $0x1b0] sm:$0xff] %v5272_v37  ;;  %5149 = vrot.lane.b32.xlu0 %v5136_v35, %s12186_s15  ;;  %v7120_v22 = vpack.c.bf16 %v5273_v26, %v5271_v4  ;;  %v5655_v4 = vld [vmem:[#allocation3 + $0x330] sm:$0xff]  ;;  %vm12596_vm14 = vcmask 1031168   ;;  %v5660_v26 = vld [vmem:[#allocation3 + $0x358] sm:$0xff] }
 0xc2b   : > { %vm12598_vm10 = vmmov %vm12596_vm14 }
 0xc2c   : > { %v5259_v42 = vpop.permute.xlu0 %5258  ;;  %7121 = vmatprep.subr.bf16.mxu1 %v7120_v22  ;;  %v5659_v22 = vld [vmem:[#allocation3 + $0x350] sm:$0xff] }
 0xc2d   : > { %v5270_v44 = vsel %vm12585_vm13, %v5259_v42, %v5261_v53  ;;  %v5656_v53 = vld [vmem:[#allocation3 + $0x338] sm:$0xff]  ;;  %vm12599_vm13 = vcmask 1022976   ;;  %v12600_v42 = vld [vmem:[#allocation111_spill] sm:$0xff] }
 0xc2e   : > { %5278 = vst [vmem:[#allocation3 + $0x1a0] sm:$0xff] %v5270_v44  ;;  %3521 = vrot.lane.b32.xlu0 %v3508_v40, %s12498_s2  ;;  %v7122_v29 = vpack.c.bf16 %v5272_v37, %v5270_v44 }
 0xc30   : > { %v3147_v31 = vpop.permute.xlu0 %3146  ;;  %7123 = vmatpush1.bf16.msra.mxu1 %v7122_v29  ;;  %v5664_v29 = vld [vmem:[#allocation3 + $0x378] sm:$0xff] }
 0xc31   : > { %v3158_v49 = vsel %vm12587_vm9, %v3147_v31, %v3149_v28  ;;  %vm12601_vm9 = vmmov %vm12599_vm13 }
 0xc32   : > { %3527 = vrot.lane.b32.xlu0 %v3511_v23, %s12498_s2  ;;  %v5663_v23 = vld [vmem:[#allocation3 + $0x370] sm:$0xff] }
 0xc34   : > { %v3153_v18 = vpop.permute.xlu0 %3152 }
 0xc35   : > { %v3159_v46 = vsel %vm12588_vm8, %v11013_v34, %v3153_v18  ;;  %v3160_v32 = vsel %vm12589_vm1, %v3153_v18, %v11007_v5  ;;  %vm12602_vm8 = vcmask 941056   ;;  %v5668_v18 = vld [vmem:[#allocation3 + $0x398] sm:$0xff] }
 0xc36   : > { %3167 = vst [vmem:[#allocation3 + $0x1d0] sm:$0xff] %v3159_v46  ;;  %5510 = vrot.lane.b32.xlu0 %v5497_v8, %s12466_s18  ;;  %v7124_v54 = vpack.c.bf16 %v3160_v32, %v3158_v49  ;;  %vm12604_vm1 = vmmov %vm12602_vm8  ;;  %s12663_s18 = sld [smem:[#allocation201_spill]] }
 0xc38   : > { %v3145_v57 = vpop.permute.xlu0 %3144  ;;  %7125 = vmatprep.subr.bf16.mxu1 %v7124_v54 }
 0xc39   : > { %v3157_v17 = vsel %vm12590_vm3, %v3145_v57, %v3147_v31  ;;  %vm12605_vm3 = vcmask 932864  }
 0xc3a   : > { %3165 = vst [vmem:[#allocation3 + $0x1c0] sm:$0xff] %v3157_v17  ;;  %3519 = vrot.lane.b32.xlu0 %v10949_v14, %s12498_s2  ;;  %v7126_v13 = vpack.c.bf16 %v3159_v46, %v3157_v17  ;;  %v5667_v46 = vld [vmem:[#allocation3 + $0x390] sm:$0xff] }
 0xc3b   : > { %v12606_v17 = vld [vmem:[#allocation127_spill] sm:$0xff] }
 0xc3c   : > { %v5517_v20 = vpop.permute.xlu0 %5516  ;;  %7127 = vmatpush1.bf16.msra.mxu1 %v7126_v13 }
 0xc3d   : > { %v11219_v34 = vsel %vm12591_vm7, %v11033_v12, %v5517_v20  ;;  %v11223_v5 = vsel %vm12592_vm6, %v5517_v20, %v11027_v45  ;;  %v12597_v45 = vld [vmem:[#allocation104_spill] sm:$0xff]  ;;  %vm12607_vm7 = vmmov %vm12605_vm3 }
 0xc3e   : > { %v5672_v20 = vld [vmem:[#allocation3 + $0x3b8] sm:$0xff] }
 0xc40   : > { %v11225_v58 = vpop.permute.xlu0 %5508 }
 0xc44   : > { %v4639_v9 = vpop.permute.xlu0 %4638 }
 0xc45   : > { %v4648_v24 = vsel %vm12593_vm15, %v10943_v48, %v4639_v9  ;;  %v4649_v14 = vsel %vm12595_vm11, %v4639_v9, %v12594_v39  ;;  %v5671_v9 = vld [vmem:[#allocation3 + $0x3b0] sm:$0xff]  ;;  %vm12622_vm15 = vcmask 785408  }
 0xc46   : > { %v7168_v38 = vpack.c.bf16 %v5656_v53, %v4649_v14  ;;  %v7170_v35 = vpack.c.bf16 %v5655_v4, %v4648_v24  ;;  %v12608_v53 = vld [vmem:[#allocation139_spill] sm:$0xff]  ;;  %vm12624_vm11 = vmmov %vm12622_vm15 }
 0xc48   : > { %v5000_v50 = vpop.permute.xlu0 %4999  ;;  %7169 = vmatprep.subr.bf16.mxu0 %v7168_v38  ;;  %v5676_v38 = vld [vmem:[#allocation3 + $0x3d8] sm:$0xff] }
 0xc49   : > { %v5009_v12 = vsel %vm12596_vm14, %v10954_v51, %v5000_v50  ;;  %v5010_v37 = vsel %vm12598_vm10, %v5000_v50, %v12597_v45  ;;  %7171 = vmatpush1.bf16.msra.mxu0 %v7170_v35  ;;  %v5675_v35 = vld [vmem:[#allocation3 + $0x3d0] sm:$0xff]  ;;  %vm12625_vm14 = vcmask 777216  }
 0xc4a   : > { %v7172_v62 = vpack.c.bf16 %v5660_v26, %v5010_v37  ;;  %v7174_v48 = vpack.c.bf16 %v5659_v22, %v5009_v12  ;;  %v12609_v37 = vld [vmem:[#allocation146_spill] sm:$0xff]  ;;  %v5680_v22 = vld [vmem:[#allocation3 + $0x3f8] sm:$0xff]  ;;  %vm12627_vm10 = vmmov %vm12625_vm14 }
 0xc4c   : > { %v5361_v11 = vpop.permute.xlu0 %5360  ;;  %7173 = vmatprep.subr.bf16.mxu0 %v7172_v62  ;;  %v5679_v62 = vld [vmem:[#allocation3 + $0x3f0] sm:$0xff] }
 0xc4d   : > { %v5370_v40 = vsel %vm12599_vm13, %v10962_v10, %v5361_v11  ;;  %v5371_v44 = vsel %vm12601_vm9, %v5361_v11, %v12600_v42  ;;  %7175 = vmatpush1.bf16.msra.mxu0 %v7174_v48  ;;  %v12611_v42 = vld [vmem:[#allocation153_spill] sm:$0xff]  ;;  %vm12628_vm13 = vcmask 769024  }
 0xc4e   : > { %v7176_v51 = vpack.c.bf16 %v5664_v29, %v5371_v44  ;;  %v7178_v28 = vpack.c.bf16 %v5663_v23, %v5370_v40  ;;  %v5684_v29 = vld [vmem:[#allocation3 + $0x418] sm:$0xff]  ;;  %v5683_v23 = vld [vmem:[#allocation3 + $0x410] sm:$0xff]  ;;  %vm12630_vm9 = vmmov %vm12628_vm13 }
 0xc50   : > { %v3251_v31 = vpop.permute.xlu0 %3250  ;;  %7177 = vmatprep.subr.bf16.mxu0 %v7176_v51 }
 0xc51   : > { %v3261_v49 = vsel %vm12602_vm8, %v10970_v0, %v3251_v31  ;;  %v3262_v8 = vsel %vm12604_vm1, %v3251_v31, %v12603_v52  ;;  %7179 = vmatpush1.bf16.msra.mxu0 %v7178_v28  ;;  %v5542_v31 = vld [vmem:[%s12547_s28 + $0x248] sm:$0xff]  ;;  %v12613_v52 = vld [vmem:[#allocation173_spill] sm:$0xff]  ;;  %vm12631_vm8 = vcmask 760832  }
 0xc52   : > { %v7180_v10 = vpack.c.bf16 %v5668_v18, %v3262_v8  ;;  %v7182_v32 = vpack.c.bf16 %v5667_v46, %v3261_v49  ;;  %v5688_v18 = vld [vmem:[#allocation3 + $0x438] sm:$0xff]  ;;  %v5687_v46 = vld [vmem:[#allocation3 + $0x430] sm:$0xff]  ;;  %vm12633_vm1 = vmmov %vm12631_vm8 }
 0xc54   : > { %v3626_v54 = vpop.permute.xlu0 %3625  ;;  %7181 = vmatprep.subr.bf16.mxu0 %v7180_v10  ;;  %v5541_v10 = vld [vmem:[%s12547_s28 + $0x240] sm:$0xff] }
 0xc55   : > { %v3636_v57 = vsel %vm12605_vm3, %v10980_v1, %v3626_v54  ;;  %v3637_v13 = vsel %vm12607_vm7, %v3626_v54, %v12606_v17  ;;  %7183 = vmatpush1.bf16.msra.mxu0 %v7182_v32  ;;  %vm12634_vm3 = vcmask 678912  }
 0xc56   : > { %v7184_v0 = vpack.c.bf16 %v5672_v20, %v3637_v13  ;;  %v7186_v24 = vpack.c.bf16 %v5671_v9, %v3636_v57  ;;  %v5549_v57 = vld [vmem:[%s12547_s28 + $0x280] sm:$0xff]  ;;  %v12614_v13 = vld [vmem:[#allocation176_spill] sm:$0xff]  ;;  %vm12636_vm7 = vmmov %vm12634_vm3 }
 0xc57   : > { %v5692_v9 = vld [vmem:[#allocation3 + $0x458] sm:$0xff] }
 0xc58   : > { %v3996_v39 = vpop.permute.xlu0 %3995  ;;  %7185 = vmatprep.subr.bf16.mxu0 %v7184_v0  ;;  %v5691_v0 = vld [vmem:[#allocation3 + $0x450] sm:$0xff] }
 0xc59   : > { %v4005_v14 = vsel %vm340_vm5, %v10988_v36, %v3996_v39  ;;  %v4006_v4 = vsel %vm340_vm5, %v3996_v39, %v12608_v53  ;;  %7187 = vmatpush1.bf16.msra.mxu0 %v7186_v24  ;;  %vm12610_vm5 = vcmask 908288   ;;  %v5548_v24 = vld [vmem:[%s12547_s28 + $0x278] sm:$0xff]  ;;  %v5537_v53 = vld [vmem:[%s12547_s28 + $0x220] sm:$0xff] }
 0xc5a   : > { %v7188_v1 = vpack.c.bf16 %v5676_v38, %v4006_v4  ;;  %v7190_v50 = vpack.c.bf16 %v5675_v35, %v4005_v14  ;;  %vm12612_vm6 = vmmov %vm12610_vm5  ;;  %v12615_v38 = vld [vmem:[#allocation184_spill] sm:$0xff] }
 0xc5c   : > { %v4328_v12 = vpop.permute.xlu0 %4327  ;;  %7189 = vmatprep.subr.bf16.mxu0 %v7188_v1  ;;  %v5696_v1 = vld [vmem:[#allocation3 + $0x478] sm:$0xff] }
 0xc5d   : > { %v4337_v45 = vsel %vm367_vm2, %v10993_v63, %v4328_v12  ;;  %v4338_v26 = vsel %vm367_vm2, %v4328_v12, %v12609_v37  ;;  %7191 = vmatpush1.bf16.msra.mxu0 %v7190_v50  ;;  %v5534_v63 = vld [vmem:[%s12547_s28 + $0x208] sm:$0xff]  ;;  %v5695_v50 = vld [vmem:[#allocation3 + $0x470] sm:$0xff]  ;;  %vm12616_vm2 = vcmask 801792  }
 0xc5e   : > { %v7192_v36 = vpack.c.bf16 %v5680_v22, %v4338_v26  ;;  %v7194_v48 = vpack.c.bf16 %v5679_v62, %v4337_v45  ;;  %v12617_v22 = vld [vmem:[#allocation43_spill] sm:$0xff] }
 0xc60   : > { %v4689_v11 = vpop.permute.xlu0 %4688  ;;  %7193 = vmatprep.subr.bf16.mxu0 %v7192_v36  ;;  %v5700_v36 = vld [vmem:[#allocation3 + $0x498] sm:$0xff] }
 0xc61   : > { %v4698_v40 = vsel %vm12610_vm5, %v11001_v3, %v4689_v11  ;;  %v4699_v44 = vsel %vm12612_vm6, %v4689_v11, %v12611_v42  ;;  %7195 = vmatpush1.bf16.msra.mxu0 %v7194_v48  ;;  %vm12637_vm5 = vcmask 670720  }
 0xc62   : > { %v7196_v51 = vpack.c.bf16 %v5684_v29, %v4699_v44  ;;  %v7198_v28 = vpack.c.bf16 %v5683_v23, %v4698_v40  ;;  %v12620_v44 = vld [vmem:[#allocation60_spill] sm:$0xff]  ;;  %v5703_v23 = vld [vmem:[#allocation3 + $0x4b0] sm:$0xff]  ;;  %vm12639_vm6 = vmmov %vm12637_vm5 }
 0xc64   : > { %v5050_v49 = vpop.permute.xlu0 %5049  ;;  %7197 = vmatprep.subr.bf16.mxu0 %v7196_v51  ;;  %5908 = vmatmul.mubr.f32.vlgmr.msra.gmra.mrb[22].mxu0 %v5534_v63  ;;  %v5704_v63 = vld [vmem:[#allocation3 + $0x4b8] sm:$0xff] }
 0xc65   : > { %v5059_v3 = vsel %vm3502_vm12, %v11010_v33, %v5050_v49  ;;  %v5060_v8 = vsel %vm3502_vm12, %v5050_v49, %v12613_v52  ;;  %7199 = vmatpush1.bf16.msra.mxu0 %v7198_v28  ;;  %5913 = vmatprep.mubr.f32.mxu0 %v5542_v31  ;;  %v12623_v49 = vld [vmem:[#allocation18_spill] sm:$0xff]  ;;  %v5708_v52 = vld [vmem:[#allocation3 + $0x4d8] sm:$0xff] }
 0xc66   : > { %v7200_v32 = vpack.c.bf16 %v5688_v18, %v5060_v8  ;;  %v7202_v54 = vpack.c.bf16 %v5687_v46, %v5059_v3  ;;  %v5707_v8 = vld [vmem:[#allocation3 + $0x4d0] sm:$0xff] }
 0xc68   : > { %v5411_v17 = vpop.permute.xlu0 %5410  ;;  %7201 = vmatprep.subr.bf16.mxu0 %v7200_v32  ;;  %5914 = vmatmul.mubr.f32.gmra.mrb[24].mxu0 %v5541_v10  ;;  %v12626_v32 = vld [vmem:[#allocation65_spill] sm:$0xff] }
 0xc69   : > { %v5420_v33 = vsel %vm3127_vm4, %v11015_v43, %v5411_v17  ;;  %v5421_v20 = vsel %vm3127_vm4, %v5411_v17, %v12614_v13  ;;  %7203 = vmatpush1.bf16.msra.mxu0 %v7202_v54  ;;  %5919 = vmatprep.mubr.f32.mxu0 %v5549_v57  ;;  %vm12618_vm4 = vmmov %vm12616_vm2  ;;  %v5712_v57 = vld [vmem:[#allocation3 + $0x4f8] sm:$0xff]  ;;  %v5711_v17 = vld [vmem:[#allocation3 + $0x4f0] sm:$0xff] }
 0xc6a   : > { %v7204_v39 = vpack.c.bf16 %v5692_v9, %v5421_v20  ;;  %v7206_v14 = vpack.c.bf16 %v5691_v0, %v5420_v33  ;;  %v12629_v9 = vld [vmem:[#allocation188_spill] sm:$0xff] }
 0xc6c   : > { %v3303_v4 = vpop.permute.xlu0 %3302  ;;  %7205 = vmatprep.subr.bf16.mxu0 %v7204_v39  ;;  %5920 = vmatmul.mubr.f32.gmra.mrb[26].mxu0 %v5548_v24  ;;  %v5716_v24 = vld [vmem:[#allocation3 + $0x518] sm:$0xff]  ;;  %v5715_v39 = vld [vmem:[#allocation3 + $0x510] sm:$0xff] }
 0xc6d   : > { %v3313_v43 = vsel %vm3312_vm0, %v11030_v6, %v3303_v4  ;;  %v3314_v35 = vsel %vm3312_vm0, %v3303_v4, %v12615_v38  ;;  %7207 = vmatpush1.bf16.msra.mxu0 %v7206_v14  ;;  %5990 = vmatprep.mubr.f32.mxu0 %v5537_v53  ;;  %v5699_v6 = vld [vmem:[#allocation3 + $0x490] sm:$0xff]  ;;  %vm12619_vm0 = vcmask 793600  }
 0xc6e   : > { %v7208_v12 = vpack.c.bf16 %v5696_v1, %v3314_v35  ;;  %v7210_v45 = vpack.c.bf16 %v5695_v50, %v3313_v43  ;;  %vm12621_vm12 = vmmov %vm12619_vm0  ;;  %v12632_v43 = vld [vmem:[#allocation196_spill] sm:$0xff]  ;;  %v5719_v1 = vld [vmem:[#allocation3 + $0x530] sm:$0xff] }
 0xc6f   : > { %v5720_v35 = vld [vmem:[#allocation3 + $0x538] sm:$0xff] }
 0xc70   : > { %v3678_v37 = vpop.permute.xlu0 %3677  ;;  %7209 = vmatprep.subr.bf16.mxu0 %v7208_v12 }
 0xc71   : > { %v3688_v26 = vsel %vm12616_vm2, %v11040_v7, %v3678_v37  ;;  %v3689_v62 = vsel %vm12618_vm4, %v3678_v37, %v12617_v22  ;;  %7211 = vmatpush1.bf16.msra.mxu0 %v7210_v45  ;;  %v12635_v37 = vld [vmem:[#allocation114_spill] sm:$0xff]  ;;  %v5724_v22 = vld [vmem:[#allocation3 + $0x558] sm:$0xff]  ;;  %vm12640_vm2 = vcmask 662528  }
 0xc72   : > { %v7212_v48 = vpack.c.bf16 %v5700_v36, %v3689_v62  ;;  %v7214_v11 = vpack.c.bf16 %v5699_v6, %v3688_v26  ;;  %v5723_v62 = vld [vmem:[#allocation3 + $0x550] sm:$0xff]  ;;  %vm12642_vm4 = vmmov %vm12640_vm2 }
 0xc74   : > { %v4047_v40 = vpop.permute.xlu0 %4046  ;;  %7213 = vmatprep.subr.bf16.mxu0 %v7212_v48 }
 0xc75   : > { %v4057_v42 = vsel %vm12619_vm0, %v11058_v21, %v4047_v40  ;;  %v4058_v29 = vsel %vm12621_vm12, %v4047_v40, %v12620_v44  ;;  %7215 = vmatpush1.bf16.msra.mxu0 %v7214_v11  ;;  %v12638_v11 = vld [vmem:[#allocation11_spill] sm:$0xff]  ;;  %vm12643_vm0 = vcmask 654336  }
 0xc76   : > { %v7216_v7 = vpack.c.bf16 %v5704_v63, %v4058_v29  ;;  %v7218_v51 = vpack.c.bf16 %v5703_v23, %v4057_v42  ;;  %v5728_v42 = vld [vmem:[#allocation3 + $0x578] sm:$0xff]  ;;  %v5727_v44 = vld [vmem:[#allocation3 + $0x570] sm:$0xff]  ;;  %vm12645_vm12 = vmmov %vm12643_vm0 }
 0xc78   : > { %v4378_v28 = vpop.permute.xlu0 %4377  ;;  %7217 = vmatprep.subr.bf16.mxu0 %v7216_v7  ;;  %v12641_v7 = vld [vmem:[#allocation160_spill] sm:$0xff] }
 0xc79   : > { %v4387_v31 = vsel %vm12622_vm15, %v11069_v15, %v4378_v28  ;;  %v4388_v3 = vsel %vm12624_vm11, %v4378_v28, %v12623_v49  ;;  %7219 = vmatpush1.bf16.msra.mxu0 %v7218_v51  ;;  %v5732_v28 = vld [vmem:[#allocation3 + $0x598] sm:$0xff]  ;;  %vm12646_vm15 = vcmask 646144  }
 0xc7a   : > { %v7220_v21 = vpack.c.bf16 %v5708_v52, %v4388_v3  ;;  %v7222_v18 = vpack.c.bf16 %v5707_v8, %v4387_v31  ;;  %v5731_v31 = vld [vmem:[#allocation3 + $0x590] sm:$0xff]  ;;  %v12644_v8 = vld [vmem:[#allocation40_spill] sm:$0xff]  ;;  %vm12648_vm11 = vmmov %vm12646_vm15 }
 0xc7c   : > { %v4739_v46 = vpop.permute.xlu0 %4738  ;;  %7221 = vmatprep.subr.bf16.mxu0 %v7220_v21 }
 0xc7d   : > { %v4748_v10 = vsel %vm12625_vm14, %v11080_v59, %v4739_v46  ;;  %v4749_v54 = vsel %vm12627_vm10, %v4739_v46, %v12626_v32  ;;  %7223 = vmatpush1.bf16.msra.mxu0 %v7222_v18  ;;  %v5736_v18 = vld [vmem:[#allocation3 + $0x5b8] sm:$0xff]  ;;  %v5735_v46 = vld [vmem:[#allocation3 + $0x5b0] sm:$0xff]  ;;  %vm12649_vm14 = vcmask 637952  }
 0xc7e   : > { %v7224_v15 = vpack.c.bf16 %v5712_v57, %v4749_v54  ;;  %v7226_v33 = vpack.c.bf16 %v5711_v17, %v4748_v10  ;;  %v12647_v57 = vld [vmem:[#allocation44_spill] sm:$0xff]  ;;  %vm12651_vm10 = vmmov %vm12649_vm14 }
 0xc80   : > { %v5100_v13 = vpop.permute.xlu0 %5099  ;;  %7225 = vmatprep.subr.bf16.mxu0 %v7224_v15  ;;  %v5740_v15 = vld [vmem:[#allocation3 + $0x5d8] sm:$0xff] }
 0xc81   : > { %v5109_v20 = vsel %vm12628_vm13, %v11091_v25, %v5100_v13  ;;  %v5110_v0 = vsel %vm12630_vm9, %v5100_v13, %v12629_v9  ;;  %7227 = vmatpush1.bf16.msra.mxu0 %v7226_v33  ;;  %v5739_v33 = vld [vmem:[#allocation3 + $0x5d0] sm:$0xff]  ;;  %vm12652_vm13 = vcmask 146432  }
 0xc82   : > { %v7228_v59 = vpack.c.bf16 %v5716_v24, %v5110_v0  ;;  %v7230_v14 = vpack.c.bf16 %v5715_v39, %v5109_v20  ;;  %v12650_v0 = vld [vmem:[#allocation166_spill] sm:$0xff]  ;;  %v5744_v39 = vld [vmem:[#allocation3 + $0x5f8] sm:$0xff]  ;;  %vm12653_vm9 = vmmov %vm12652_vm13 }
 0xc84   : > { %v5461_v53 = vpop.permute.xlu0 %5460  ;;  %7229 = vmatprep.subr.bf16.mxu0 %v7228_v59  ;;  %v5743_v59 = vld [vmem:[#allocation3 + $0x5f0] sm:$0xff] }
 0xc85   : > { %v5470_v4 = vsel %vm12631_vm8, %v11105_v27, %v5461_v53  ;;  %v5471_v38 = vsel %vm12633_vm1, %v5461_v53, %v12632_v43  ;;  %7231 = vmatpush1.bf16.msra.mxu0 %v7230_v14  ;;  %vm12654_vm8 = vmmov %vm12653_vm9  ;;  %vm12655_vm1 = vcmask 629760  }
 0xc86   : > { %v7232_v25 = vpack.c.bf16 %v5720_v35, %v5471_v38  ;;  %v7234_v50 = vpack.c.bf16 %v5719_v1, %v5470_v4  ;;  %v5536_v38 = vld [vmem:[%s12547_s28 + $0x218] sm:$0xff] }
 0xc88   : > { %v3355_v12 = vpop.permute.xlu0 %3354  ;;  %7233 = vmatprep.subr.bf16.mxu0 %v7232_v25 }
 0xc89   : > { %v3365_v45 = vsel %vm12634_vm3, %v11116_v30, %v3355_v12  ;;  %v3366_v26 = vsel %vm12636_vm7, %v3355_v12, %v12635_v37  ;;  %7235 = vmatpush1.bf16.msra.mxu0 %v7234_v50  ;;  %v5543_v12 = vld [vmem:[%s12547_s28 + $0x250] sm:$0xff]  ;;  %vm12656_vm3 = vmmov %vm12655_vm1 }
 0xc8a   : > { %v7236_v27 = vpack.c.bf16 %v5724_v22, %v3366_v26  ;;  %v7238_v36 = vpack.c.bf16 %v5723_v62, %v3365_v45  ;;  %v5551_v37 = vld [vmem:[%s12547_s28 + $0x290] sm:$0xff]  ;;  %v5550_v62 = vld [vmem:[%s12547_s28 + $0x288] sm:$0xff]  ;;  %vm12657_vm7 = vmmov %vm12654_vm8 }
 0xc8c   : > { %v3730_v6 = vpop.permute.xlu0 %3729  ;;  %7237 = vmatprep.subr.bf16.mxu0 %v7236_v27 }
 0xc8d   : > { %v3740_v48 = vsel %vm12637_vm5, %v11127_v16, %v3730_v6  ;;  %v3741_v40 = vsel %vm12639_vm6, %v3730_v6, %v12638_v11  ;;  %7239 = vmatpush1.bf16.msra.mxu0 %v7238_v36  ;;  %v7405_v11 = vld [vmem:[#allocation2] sm:$0xff]  ;;  %vm12658_vm5 = vcmask 195584  }
 0xc8e   : > { %v7240_v30 = vpack.c.bf16 %v5728_v42, %v3741_v40  ;;  %v7242_v29 = vpack.c.bf16 %v5727_v44, %v3740_v48  ;;  %v5539_v40 = vld [vmem:[%s12547_s28 + $0x230] sm:$0xff]  ;;  %vm12659_vm6 = vmmov %vm12658_vm5  ;;  %v5552_v42 = vld [vmem:[%s12547_s28 + $0x298] sm:$0xff] }
 0xc8f   : > { %v5546_v44 = vld [vmem:[%s12547_s28 + $0x268] sm:$0xff] }
 0xc90   : > { %v4099_v63 = vpop.permute.xlu0 %4098  ;;  %7241 = vmatprep.subr.bf16.mxu0 %v7240_v30 }
 0xc91   : > { %v4109_v23 = vsel %vm12640_vm2, %v11138_v19, %v4099_v63  ;;  %v4110_v51 = vsel %vm12642_vm4, %v4099_v63, %v12641_v7  ;;  %7243 = vmatpush1.bf16.msra.mxu0 %v7242_v29  ;;  %vm12660_vm2 = vmmov %vm12658_vm5  ;;  %vm6146_vm4 = vcmask 1044480  }
 0xc92   : > { %v7244_v16 = vpack.c.bf16 %v5732_v28, %v4110_v51  ;;  %v7246_v49 = vpack.c.bf16 %v5731_v31, %v4109_v23 }
 0xc94   : > { %v4428_v3 = vpop.permute.xlu0 %4427  ;;  %7245 = vmatprep.subr.bf16.mxu0 %v7244_v16 }
 0xc95   : > { %v4437_v52 = vsel %vm12643_vm0, %v11149_v2, %v4428_v3  ;;  %v4438_v21 = vsel %vm12645_vm12, %v4428_v3, %v12644_v8  ;;  %7247 = vmatpush1.bf16.msra.mxu0 %v7246_v49  ;;  %vm6201_vm0 = vcmask 1047557   ;;  %vm6203_vm12 = vcmask 1041408  }
 0xc96   : > { %v7248_v19 = vpack.c.bf16 %v5736_v18, %v4438_v21  ;;  %v7250_v10 = vpack.c.bf16 %v5735_v46, %v4437_v52 }
 0xc98   : > { %v4789_v32 = vpop.permute.xlu0 %4788  ;;  %7249 = vmatprep.subr.bf16.mxu0 %v7248_v19 }
 0xc99   : > { %v4798_v54 = vsel %vm12646_vm15, %v11160_v47, %v4789_v32  ;;  %v4799_v17 = vsel %vm12648_vm11, %v4789_v32, %v12647_v57  ;;  %7251 = vmatpush1.bf16.msra.mxu0 %v7250_v10  ;;  %v3524_v47 = vpop.permute.xlu1 %3523  ;;  %vm6094_vm15 = vcmask 1047556   ;;  %vm6284_vm11 = vcmask 1047554  }
 0xc9a   : > { %v7252_v2 = vpack.c.bf16 %v5740_v15, %v4799_v17  ;;  %v7254_v13 = vpack.c.bf16 %v5739_v33, %v4798_v54 }
 0xc9c   : > { %v5150_v20 = vpop.permute.xlu0 %5149  ;;  %7253 = vmatprep.subr.bf16.mxu0 %v7252_v2 }
 0xc9d   : > { %v5159_v9 = vsel %vm12649_vm14, %v11175_v55, %v5150_v20  ;;  %v5160_v24 = vsel %vm12651_vm10, %v5150_v20, %v12650_v0  ;;  %7255 = vmatpush1.bf16.msra.mxu0 %v7254_v13  ;;  %v5544_v55 = vld [vmem:[%s12547_s28 + $0x258] sm:$0xff]  ;;  %v3526_v35 = vpop.permute.xlu1 %3525  ;;  %vm6121_vm14 = vcmask 1043456   ;;  %vm6237_vm10 = vcmask 1042432  }
 0xc9e   : > { %v7256_v14 = vpack.c.bf16 %v5744_v39, %v5160_v24  ;;  %v7258_v53 = vpack.c.bf16 %v5743_v59, %v5159_v9 }
 0xca0   : > { %v3522_v4 = vpop.permute.xlu0 %3521  ;;  %7257 = vmatprep.subr.bf16.mxu0 %v7256_v14 }
 0xca1   : > { %v3533_v43 = vsel %vm12652_vm13, %v3522_v4, %v3524_v47  ;;  %7259 = vmatpush1.bf16.msra.mxu0 %v7258_v53  ;;  %vm6319_vm13 = vcmask 1045504  }
 0xca4   : > { %v3528_v1 = vpop.permute.xlu0 %3527  ;;  %5991 = vmatmul.mubr.f32.vlgmr.msra.gmra.mrb[22].mxu0 %v5536_v38 }
 0xca5   : > { %v3534_v25 = vsel %vm12653_vm9, %v3526_v35, %v3528_v1  ;;  %v3535_v50 = vsel %vm12654_vm8, %v3528_v1, %v11170_v60  ;;  %5996 = vmatprep.mubr.f32.mxu0 %v5544_v55  ;;  %vm6386_vm9 = vcmask 1040384   ;;  %vm12665_vm8 = vmmov %vm12660_vm2 }
 0xca6   : > { %3542 = vst [vmem:[#allocation3 + $0x1f0] sm:$0xff] %v3534_v25  ;;  %v7128_v45 = vpack.c.bf16 %v3535_v50, %v3533_v43 }
 0xca8   : > { %v5511_v26 = vpop.permute.xlu0 %5510  ;;  %7129 = vmatprep.subr.bf16.mxu1 %v7128_v45  ;;  %5997 = vmatmul.mubr.f32.gmra.mrb[24].mxu0 %v5543_v12 }
 0xca9   : > { %v5520_v22 = vsel %vm12655_vm1, %v11225_v58, %v5511_v26  ;;  %v5521_v60 = vsel %vm12656_vm3, %v5511_v26, %v11018_v61  ;;  %6002 = vmatprep.mubr.f32.mxu0 %v5551_v37  ;;  %v5538_v61 = vld [vmem:[%s12547_s28 + $0x228] sm:$0xff]  ;;  %vm6540_vm1 = vcmask 1042434  }
 0xcaa   : > { %v7260_v27 = vpack.c.bf16 %v11223_v5, %v5521_v60  ;;  %v7262_v36 = vpack.c.bf16 %v11219_v34, %v5520_v22  ;;  %v5532_v34 = vld [vmem:[%s12547_s28 + $0x1f8] sm:$0xff]  ;;  %vm6541_vm3 = vmor %vm6386_vm9, %vm6540_vm1 }
 0xcab   : > { %v5540_v5 = vld [vmem:[%s12547_s28 + $0x238] sm:$0xff] }
 0xcac   : > { %v3520_v6 = vpop.permute.xlu0 %3519  ;;  %7261 = vmatprep.subr.bf16.mxu0 %v7260_v27  ;;  %6003 = vmatmul.mubr.f32.gmra.mrb[26].mxu0 %v5550_v62 }
 0xcad   : > { %v3532_v48 = vsel %vm12657_vm7, %v3520_v6, %v3522_v4  ;;  %7263 = vmatpush1.bf16.msra.mxu0 %v7262_v36  ;;  %6073 = vmatprep.mubr.f32.mxu0 %v7405_v11  ;;  %vm6542_vm7 = vcmask 1044484  }
 0xcae   : > { %3540 = vst [vmem:[#allocation3 + $0x1e0] sm:$0xff] %v3532_v48  ;;  %v7130_v58 = vpack.c.bf16 %v3534_v25, %v3532_v48  ;;  %6013 = vmatprep.subr.mxu0 %v11196_v56  ;;  %v5545_v56 = vld [vmem:[%s12547_s28 + $0x260] sm:$0xff] }
 0xcb0   : > { %7131 = vmatpush1.bf16.msra.mxu1 %v7130_v58 }
 0xcb1   : > { %6014 = vmatpush1.msra.mxu0 %v11201_v41  ;;  %v5547_v41 = vld [vmem:[%s12547_s28 + $0x270] sm:$0xff]  ;;  %s12662_s28 = sld [smem:[#allocation6_spill]] }
 0xcb2   : > { %6684 = vmatmul.mubr.msk.f32.vlgmr.msra.gmra.mrb[22].mxu0 %vm12658_vm5, %v5538_v61  ;;  %vm6543_vm5 = vmor %vm6541_vm3, %vm6542_vm7 }
 0xcb3   : > { %5825 = vmatmul.mubr.f32.vlgmr.msra.gmra.mrb[18].mxu1 %v5532_v34  ;;  %6079 = vmatprep.mubr.f32.mxu0 %v7405_v11 }
 0xcb4   : > { %5830 = vmatprep.mubr.f32.mxu1 %v5540_v5 }
 0xcb6   : > { %6685 = vmatmul.mubr.msk.f32.gmra.mrb[24].mxu0 %vm12659_vm6, %v5545_v56  ;;  %vm6544_vm6 = vcmask 1046534  }
 0xcb7   : > { %5831 = vmatmul.mubr.f32.gmra.mrb[20].mxu1 %v5539_v40  ;;  %6085 = vmatprep.mubr.f32.mxu0 %v7405_v11  ;;  %s7288_s23 = smul.u32 48, %s12662_s28  ;;  %s6694_s25 = sshll.u32 %s12662_s28, 2 }
 0xcb8   : > { %5836 = vmatprep.mubr.f32.mxu1 %v5547_v41  ;;  %s210_s7 = scalar_lea.vmem %s12666_s6, %s6694_s25 }
 0xcb9   : > { %s11511_s2 = scalar_lea.vmem %s12663_s18, %s7288_s23 }
 0xcba   : > { %6686 = vmatmul.mubr.msk.f32.gmra.mrb[26].mxu0 %vm12660_vm2, %v5552_v42  ;;  %vm6545_vm2 = vmor %vm6543_vm5, %vm6544_vm6 }
 0xcbb   : > { %5837 = vmatmul.mubr.f32.gmra.mrb[22].mxu1 %v5546_v44 }
 0xcbc   : > { %6512 = vmatprep.mubr.f32.mxu1 %v7405_v11 }
 0xd85   : > { %v6075_v30 = vpop.f32.mrb[22].mxu0 }
 0xd86   : > { %v5826_v29 = vpop.f32.mrb[18].mxu1  ;;  %v6077_v63 = vpop.f32.mrb[23].mxu0 }
 0xd87   : > { %v11392_v23 = vadd.f32 %v6075_v30, %v5826_v29  ;;  %v5828_v7 = vpop.f32.mrb[19].mxu1 }
 0xd88   : > { %v11394_v51 = vadd.f32 %v6077_v63, %v5828_v7 }
 0xd89   : > { %v6147_v28 = vsel %vm6146_vm4, %v11392_v23, -inf  ;;  %v6081_v31 = vpop.f32.mrb[24].mxu0  ;;  %v6202_v10 = vsel %vm6201_vm0, %v11392_v23, -inf }
 0xd8a   : > { %v6148_v16 = vrot.slane %v6147_v28, 4  ;;  %v6154_v49 = vsel %vm6146_vm4, %v11394_v51, -inf  ;;  %v5832_v3 = vpop.f32.mrb[20].mxu1  ;;  %v6083_v52 = vpop.f32.mrb[25].mxu0  ;;  %v6212_v15 = vsel %vm6201_vm0, %v11394_v51, -inf }
 0xd8b   : > { %v6155_v8 = vrot.slane %v6154_v49, 4  ;;  %v11400_v21 = vadd.f32 %v6081_v31, %v5832_v3  ;;  %v5834_v18 = vpop.f32.mrb[21].mxu1 }
 0xd8c   : > { %v6149_v46 = vmax.f32 %v6147_v28, %v6148_v16  ;;  %v11402_v19 = vadd.f32 %v6083_v52, %v5834_v18 }
 0xd8d   : > { %v6156_v32 = vmax.f32 %v6154_v49, %v6155_v8  ;;  %v6204_v54 = vsel %vm6203_vm12, %v11400_v21, -inf  ;;  %v6087_v57 = vpop.f32.mrb[26].mxu0  ;;  %v6285_v39 = vsel %vm6284_vm11, %v11400_v21, -inf }
 0xd8e   : > { %v6150_v17 = vrot.slane %v6149_v46, 2  ;;  %v6205_v33 = vmax.f32 %v6202_v10, %v6204_v54  ;;  %v6213_v2 = vsel %vm6203_vm12, %v11402_v19, -inf  ;;  %v5838_v13 = vpop.f32.mrb[22].mxu1  ;;  %v6089_v20 = vpop.f32.mrb[27].mxu0  ;;  %v6294_v4 = vsel %vm6284_vm11, %v11402_v19, -inf }
 0xd8f   : > { %v6157_v9 = vrot.slane %v6156_v32, 2  ;;  %v6214_v0 = vmax.f32 %v6212_v15, %v6213_v2  ;;  %v11412_v24 = vadd.f32 %v6087_v57, %v5838_v13  ;;  %v5840_v59 = vpop.f32.mrb[23].mxu1 }
 0xd90   : > { %v6151_v47 = vmax.f32 %v6149_v46, %v6150_v17  ;;  %v6206_v14 = vrot.slane %v6205_v33, 4  ;;  %v11416_v53 = vadd.f32 %v6089_v20, %v5840_v59 }
 0xd91   : > { %v6158_v43 = vmax.f32 %v6156_v32, %v6157_v9  ;;  %v6215_v38 = vrot.slane %v6214_v0, 4  ;;  %v11421_v55 = vmul.f32 10.0, %v11412_v24  ;;  %v6286_v35 = vsel %vm6121_vm14, %v11412_v24, -inf }
 0xd92   : > { %v6152_v1 = vrot.slane %v6151_v47, 1  ;;  %v6207_v25 = vmax.f32 %v6205_v33, %v6206_v14  ;;  %v6287_v50 = vmax.f32 %v6285_v39, %v6286_v35  ;;  %v11426_v12 = vmul.f32 10.0, %v11416_v53 }
 0xd93   : > { %v6159_v45 = vrot.slane %v6158_v43, 1  ;;  %v6216_v37 = vmax.f32 %v6214_v0, %v6215_v38  ;;  %v6095_v26 = vsel %vm6094_vm15, %v11421_v55, -inf  ;;  %v6295_v22 = vsel %vm6121_vm14, %v11416_v53, -inf }
 0xd94   : > { %v6153_v60 = vmax.f32 %v6151_v47, %v6152_v1  ;;  %v6208_v62 = vrot.slane %v6207_v25, 2  ;;  %v6096_v27 = vrot.slane %v6095_v26, 4  ;;  %v6288_v36 = vrot.slane %v6287_v50, 4 }
 0xd95   : > { %v6160_v6 = vmax.f32 %v6158_v43, %v6159_v45  ;;  %v6217_v48 = vrot.slane %v6216_v37, 2  ;;  %v6102_v11 = vsel %vm6094_vm15, %v11426_v12, -inf  ;;  %v6296_v58 = vmax.f32 %v6294_v4, %v6295_v22 }
 0xd96   : > { %v6161_v61 = vsub.f32 %v11392_v23, %v6153_v60  ;;  %v6209_v34 = vmax.f32 %v6207_v25, %v6208_v62  ;;  %v6097_v5 = vmax.f32 %v6095_v26, %v6096_v27  ;;  %v6289_v56 = vmax.f32 %v6287_v50, %v6288_v36 }
 0xd97   : > { %v6162_v40 = vsub.f32 %v11394_v51, %v6160_v6  ;;  %v6218_v41 = vmax.f32 %v6216_v37, %v6217_v48  ;;  %v6103_v42 = vrot.slane %v6102_v11, 4  ;;  %v6297_v44 = vrot.slane %v6296_v58, 4 }
 0xd98   : > { %v6163_v30 = vmul.f32 1.442695, %v6161_v61  ;;  %v6210_v29 = vrot.slane %v6209_v34, 1  ;;  %v6098_v63 = vrot.slane %v6097_v5, 2  ;;  %v6290_v7 = vrot.slane %v6289_v56, 2 }
 0xd99   : > { %v6165_v28 = vmul.f32 1.442695, %v6162_v40  ;;  %v6219_v31 = vrot.slane %v6218_v41, 1  ;;  %v6104_v16 = vmax.f32 %v6102_v11, %v6103_v42  ;;  %v6298_v49 = vmax.f32 %v6296_v58, %v6297_v44 }
 0xd9a   : > { %7354 = vpow2.f32 %v6163_v30  ;;  %v6211_v3 = vmax.f32 %v6209_v34, %v6210_v29  ;;  %v6099_v52 = vmax.f32 %v6097_v5, %v6098_v63  ;;  %v6291_v8 = vmax.f32 %v6289_v56, %v6290_v7 }
 0xd9b   : > { %7356 = vpow2.f32 %v6165_v28  ;;  %v6220_v18 = vmax.f32 %v6218_v41, %v6219_v31  ;;  %v6105_v46 = vrot.slane %v6104_v16, 2  ;;  %v6299_v10 = vrot.slane %v6298_v49, 2 }
 0xd9c   : > { %v6221_v32 = vsub.f32 %v11392_v23, %v6211_v3  ;;  %v6223_v54 = vsub.f32 %v11400_v21, %v6211_v3  ;;  %v6100_v57 = vrot.slane %v6099_v52, 1  ;;  %v6292_v17 = vrot.slane %v6291_v8, 1 }
 0xd9d   : > { %v6222_v15 = vsub.f32 %v11394_v51, %v6220_v18  ;;  %v6224_v33 = vsub.f32 %v11402_v19, %v6220_v18  ;;  %v6106_v2 = vmax.f32 %v6104_v16, %v6105_v46  ;;  %v6300_v13 = vmax.f32 %v6298_v49, %v6299_v10 }
 0xd9e   : > { %v6225_v20 = vmul.f32 1.442695, %v6221_v32  ;;  %v6229_v9 = vmul.f32 1.442695, %v6223_v54  ;;  %v6101_v0 = vmax.f32 %v6099_v52, %v6100_v57  ;;  %v6293_v39 = vmax.f32 %v6291_v8, %v6292_v17 }
 0xd9f   : > { %v6227_v59 = vmul.f32 1.442695, %v6222_v15  ;;  %v6231_v47 = vmul.f32 1.442695, %v6224_v33  ;;  %v6107_v14 = vrot.slane %v6106_v2, 1  ;;  %v6301_v4 = vrot.slane %v6300_v13, 1 }
 0xda0   : > { %7358 = vpow2.f32 %v6225_v20  ;;  %v6109_v23 = vsub.f32 %v11421_v55, %v6101_v0  ;;  %v6303_v43 = vsub.f32 %v11400_v21, %v6293_v39  ;;  %v6305_v38 = vsub.f32 %v11412_v24, %v6293_v39 }
 0xda1   : > { %7360 = vpow2.f32 %v6229_v9  ;;  %v6108_v51 = vmax.f32 %v6106_v2, %v6107_v14  ;;  %v6302_v35 = vmax.f32 %v6300_v13, %v6301_v4 }
 0xda2   : > { %7362 = vpow2.f32 %v6227_v59  ;;  %v6111_v1 = vmul.f32 1.442695, %v6109_v23  ;;  %v6307_v25 = vmul.f32 1.442695, %v6303_v43  ;;  %v6311_v50 = vmul.f32 1.442695, %v6305_v38 }
 0xda3   : > { %7364 = vpow2.f32 %v6231_v47  ;;  %v6110_v45 = vsub.f32 %v11426_v12, %v6108_v51  ;;  %v6304_v37 = vsub.f32 %v11402_v19, %v6302_v35  ;;  %v6306_v26 = vsub.f32 %v11416_v53, %v6302_v35 }
 0xda4   : > { %v11446_v22 = vpop.eup %7354  ;;  %7366 = vpow2.f32 %v6111_v1 }
 0xda5   : > { %v11448_v21 = vpop.eup %7356  ;;  %v6167_v24 = vsel %vm6146_vm4, %v11446_v22, 0.0  ;;  %7368 = vpow2.f32 %v6307_v25  ;;  %v6113_v55 = vmul.f32 1.442695, %v6110_v45  ;;  %v6309_v60 = vmul.f32 1.442695, %v6304_v37 }
 0xda6   : > { %v6168_v62 = vrot.slane %v6167_v24, 4  ;;  %v6174_v27 = vsel %vm6146_vm4, %v11448_v21, 0.0  ;;  %7370 = vpow2.f32 %v6311_v50  ;;  %v6313_v12 = vmul.f32 1.442695, %v6306_v26 }
 0xda7   : > { %v6175_v19 = vrot.slane %v6174_v27, 4  ;;  %7372 = vpow2.f32 %v6113_v55 }
 0xda8   : > { %v6169_v53 = vadd.f32 %v6168_v62, %v6167_v24  ;;  %7374 = vpow2.f32 %v6309_v60 }
 0xda9   : > { %v6176_v36 = vadd.f32 %v6175_v19, %v6174_v27  ;;  %7376 = vpow2.f32 %v6313_v12 }
 0xdaa   : > { %v11454_v6 = vpop.eup %7358  ;;  %v6170_v48 = vrot.slane %v6169_v53, 2 }
 0xdab   : > { %v11456_v11 = vpop.eup %7360  ;;  %v6177_v58 = vrot.slane %v6176_v36, 2  ;;  %v6238_v61 = vrot.slane %v11454_v6, 5 }
 0xdac   : > { %v11459_v34 = vpop.eup %7362  ;;  %v6171_v5 = vadd.f32 %v6170_v48, %v6169_v53  ;;  %v6239_v56 = vrot.slane %v11456_v11, 5 }
 0xdad   : > { %v11462_v40 = vpop.eup %7364  ;;  %v6178_v41 = vadd.f32 %v6177_v58, %v6176_v36  ;;  %v6241_v42 = vrot.slane %v11459_v34, 5 }
 0xdae   : > { %v11465_v44 = vpop.eup %7366  ;;  %v6240_v30 = vsel %vm6237_vm10, %v6238_v61, %v6239_v56  ;;  %v6242_v29 = vrot.slane %v11462_v40, 5  ;;  %v6172_v7 = vrot.slane %v6171_v5, 1 }
 0xdaf   : > { %v11469_v63 = vpop.eup %7368  ;;  %v6117_v28 = vrot.slane %v11465_v44, 4  ;;  %v6179_v31 = vrot.slane %v6178_v41, 1  ;;  %v6246_v16 = vsel %vm6146_vm4, %v6240_v30, 0.0 }
 0xdb0   : > { %v11473_v49 = vpop.eup %7370  ;;  %v6243_v3 = vsel %vm6237_vm10, %v6241_v42, %v6242_v29  ;;  %v6247_v52 = vrot.slane %v6246_v16, 4  ;;  %v6320_v8 = vrot.slane %v11469_v63, 2  ;;  %v6173_v39 = vadd.f32 %v6172_v7, %v6171_v5 }
 0xdb1   : > { %v11477_v18 = vpop.eup %7372  ;;  %v6122_v46 = vsel %vm6121_vm14, %v6117_v28, 0.0  ;;  %v6321_v10 = vrot.slane %v11473_v49, 2  ;;  %v6180_v32 = vadd.f32 %v6179_v31, %v6178_v41  ;;  %v6253_v54 = vsel %vm6146_vm4, %v6243_v3, 0.0 }
 0xdb2   : > { %v11482_v57 = vpop.eup %7374  ;;  %v6123_v17 = vrot.slane %v6122_v46, 4  ;;  %v6118_v15 = vrot.slane %v11477_v18, 4  ;;  %v6248_v33 = vadd.f32 %v6247_v52, %v6246_v16  ;;  %v6254_v2 = vrot.slane %v6253_v54, 4 }
 0xdb3   : > { %v11485_v13 = vpop.eup %7376  ;;  %v6322_v20 = vsel %vm6319_vm13, %v6320_v8, %v6321_v10  ;;  %v6323_v9 = vrot.slane %v11482_v57, 2  ;;  %v6330_v0 = vsel %vm6203_vm12, %v6321_v10, 0.0  ;;  %7378 = vrcp.f32 %v6180_v32 }
 0xdb4   : > { %v6124_v59 = vadd.f32 %v6123_v17, %v6122_v46  ;;  %v6129_v47 = vsel %vm6121_vm14, %v6118_v15, 0.0  ;;  %v6324_v14 = vrot.slane %v11485_v13, 2  ;;  %v6249_v4 = vrot.slane %v6248_v33, 2 }
 0xdb5   : > { %v6130_v23 = vrot.slane %v6129_v47, 4  ;;  %v6255_v43 = vadd.f32 %v6254_v2, %v6253_v54  ;;  %v6331_v38 = vadd.f32 %v6330_v0, %v6322_v20  ;;  %7380 = vrcp.f32 %v6173_v39 }
 0xdb6   : > { %v6125_v51 = vrot.slane %v6124_v59, 2  ;;  %v6250_v35 = vadd.f32 %v6249_v4, %v6248_v33  ;;  %v6325_v1 = vsel %vm6319_vm13, %v6323_v9, %v6324_v14  ;;  %v6338_v25 = vsel %vm6203_vm12, %v6324_v14, 0.0 }
 0xdb7   : > { %v6131_v50 = vadd.f32 %v6130_v23, %v6129_v47  ;;  %v6256_v45 = vrot.slane %v6255_v43, 2  ;;  %v6332_v37 = vrot.slane %v6331_v38, 4  ;;  %v6339_v26 = vadd.f32 %v6338_v25, %v6325_v1 }
 0xdb8   : > { %v6126_v24 = vadd.f32 %v6125_v51, %v6124_v59  ;;  %v6251_v55 = vrot.slane %v6250_v35, 1 }
 0xdb9   : > { %v6132_v60 = vrot.slane %v6131_v50, 2  ;;  %v6257_v62 = vadd.f32 %v6256_v45, %v6255_v43  ;;  %v6333_v27 = vadd.f32 %v6332_v37, %v6331_v38  ;;  %v6340_v12 = vrot.slane %v6339_v26, 4  ;;  %v12661_v38 = vld [vmem:[#allocation5_spill] sm:$0xff] }
 0xdba   : > { %v6127_v19 = vrot.slane %v6126_v24, 1  ;;  %v6252_v53 = vadd.f32 %v6251_v55, %v6250_v35  ;;  %v6274_v35 = vsub.s32 6, %v12661_v38 }
 0xdbb   : > { %v6133_v36 = vadd.f32 %v6132_v60, %v6131_v50  ;;  %v6258_v48 = vrot.slane %v6257_v62, 1  ;;  %v6334_v58 = vrot.slane %v6333_v27, 2  ;;  %v6341_v61 = vadd.f32 %v6340_v12, %v6339_v26 }
 0xdbc   : > { %v6128_v5 = vadd.f32 %v6127_v19, %v6126_v24  ;;  %7382 = vrcp.f32 %v6252_v53  ;;  %v6360_v24 = vsub.s32 7, %v12661_v38 }
 0xdbd   : > { %v6134_v56 = vrot.slane %v6133_v36, 1  ;;  %v6259_v41 = vadd.f32 %v6258_v48, %v6257_v62  ;;  %v6335_v42 = vadd.f32 %v6334_v58, %v6333_v27  ;;  %v6342_v30 = vrot.slane %v6341_v61, 2  ;;  %v7379_v29 = vpop.eup %7378 }
 0xdbe   : > { %7384 = vrcp.f32 %v6128_v5  ;;  %v6184_v8 = vmul.f32 %v7379_v29, %v6180_v32  ;;  %v6193_v32 = vsub.s32 5, %v12661_v38 }
 0xdbf   : > { %v6135_v7 = vadd.f32 %v6134_v56, %v6133_v36  ;;  %7386 = vrcp.f32 %v6259_v41  ;;  %v6336_v28 = vrot.slane %v6335_v42, 1  ;;  %v6343_v31 = vadd.f32 %v6342_v30, %v6341_v61  ;;  %v7381_v52 = vpop.eup %7380 }
 0xdc0   : > { %v6183_v10 = vmul.f32 %v7381_v52, %v6173_v39  ;;  %v6186_v17 = vsub.f32 2.0, %v6184_v8 }
 0xdc1   : > { %7388 = vrcp.f32 %v6135_v7  ;;  %v6337_v16 = vadd.f32 %v6336_v28, %v6335_v42  ;;  %v6344_v3 = vrot.slane %v6343_v31, 1 }
 0xdc2   : > { %v6185_v9 = vsub.f32 2.0, %v6183_v10  ;;  %v6188_v4 = vmul.f32 %v7379_v29, %v6186_v17 }
 0xdc3   : > { %v6345_v46 = vadd.f32 %v6344_v3, %v6343_v31  ;;  %7390 = vrcp.f32 %v6337_v16 }
 0xdc4   : > { %v6187_v25 = vmul.f32 %v7381_v52, %v6185_v9  ;;  %v6190_v27 = vmul.f32 %v11448_v21, %v6188_v4 }
 0xdc5   : > { %7392 = vrcp.f32 %v6345_v46 }
 0xdc6   : > { %v7383_v54 = vpop.eup %7382 }
 0xdc7   : > { %v6262_v15 = vmul.f32 %v7383_v54, %v6252_v53 }
 0xdc8   : > { %v7385_v33 = vpop.eup %7384 }
 0xdc9   : > { %v7387_v2 = vpop.eup %7386  ;;  %v6138_v20 = vmul.f32 %v7385_v33, %v6128_v5  ;;  %v6264_v0 = vsub.f32 2.0, %v6262_v15 }
 0xdca   : > { %v6263_v59 = vmul.f32 %v7387_v2, %v6259_v41 }
 0xdcb   : > { %v7389_v47 = vpop.eup %7388  ;;  %v6140_v14 = vsub.f32 2.0, %v6138_v20  ;;  %v6266_v23 = vmul.f32 %v7383_v54, %v6264_v0 }
 0xdcc   : > { %v6139_v43 = vmul.f32 %v7389_v47, %v6135_v7  ;;  %v6265_v51 = vsub.f32 2.0, %v6263_v59 }
 0xdcd   : > { %v7391_v39 = vpop.eup %7390  ;;  %v6142_v1 = vmul.f32 %v7385_v33, %v6140_v14  ;;  %v6268_v50 = vmul.f32 %v11454_v6, %v6266_v23  ;;  %v6270_v45 = vmul.f32 %v11456_v11, %v6266_v23  ;;  %v6189_v11 = vmul.f32 %v11446_v22, %v6187_v25 }
 0xdce   : > { %v6141_v37 = vsub.f32 2.0, %v6139_v43  ;;  %v6267_v26 = vmul.f32 %v7387_v2, %v6265_v51  ;;  %v6348_v55 = vmul.f32 %v7391_v39, %v6337_v16 }
 0xdcf   : > { %v7393_v60 = vpop.eup %7392  ;;  %v6144_v62 = vmul.f32 %v11465_v44, %v6142_v1 }
 0xdd0   : > { %v6143_v12 = vmul.f32 %v7389_v47, %v6141_v37  ;;  %v6269_v19 = vmul.f32 %v11459_v34, %v6267_v26  ;;  %v6271_v53 = vmul.f32 %v11462_v40, %v6267_v26  ;;  %v6349_v6 = vmul.f32 %v7393_v60, %v6345_v46  ;;  %v6443_v37 = vld [vmem:[%s12664_s24] sm:$0x18] }
 0xdd1   : > { %v6194_v36 = vrot.slane %v6144_v62, %v6193_v32  ;;  %v6275_v48 = vrot.slane %v6144_v62, %v6274_v35  ;;  %v6350_v58 = vsub.f32 2.0, %v6348_v55  ;;  %v6361_v56 = vrot.slane %v6144_v62, %v6360_v24 }
 0xdd2   : > { %v6145_v61 = vmul.f32 %v11477_v18, %v6143_v12  ;;  %v6351_v5 = vsub.f32 2.0, %v6349_v6  ;;  %v6372_v41 = vrot.slane %v6144_v62, 4 }
 0xdd3   : > { %v6199_v44 = vmul.f32 %v6194_v36, %v6189_v11  ;;  %v6280_v21 = vmul.f32 %v6275_v48, %v6268_v50  ;;  %v6282_v42 = vmul.f32 %v6275_v48, %v6270_v45  ;;  %v6352_v30 = vmul.f32 %v7391_v39, %v6350_v58 }
 0xdd4   : > { %v6198_v29 = vrot.slane %v6145_v61, %v6193_v32  ;;  %v6279_v34 = vrot.slane %v6145_v61, %v6274_v35  ;;  %v6353_v7 = vmul.f32 %v7393_v60, %v6351_v5  ;;  %v6365_v40 = vrot.slane %v6145_v61, %v6360_v24 }
 0xdd5   : > { %v6373_v28 = vrot.slane %v6145_v61, 4  ;;  %v6354_v22 = vmul.f32 %v11469_v63, %v6352_v30  ;;  %v6378_v31 = vrot.slane %v6199_v44, 7  ;;  %v6387_v16 = vrot.slane %v6280_v21, 7  ;;  %v6425_v44 = vld [vmem:[%s12664_s24] sm:$0x6] }
 0xdd6   : > { %v6200_v3 = vmul.f32 %v6198_v29, %v6190_v27  ;;  %v6281_v52 = vmul.f32 %v6279_v34, %v6269_v19  ;;  %v6283_v18 = vmul.f32 %v6279_v34, %v6271_v53  ;;  %v6355_v8 = vmul.f32 %v11482_v57, %v6353_v7 }
 0xdd7   : > { %v6366_v46 = vmul.f32 %v6361_v56, %v6354_v22  ;;  %v6389_v10 = vrot.slane %v6282_v42, 7  ;;  %v6411_v54 = vsel %vm6386_vm9, %v6372_v41, %v6378_v31  ;;  %v6357_v17 = vmul.f32 %v11485_v13, %v6353_v7  ;;  %v6426_v42 = vld [vmem:[%s12664_s24 + $0x8] sm:$0x6] }
 0xdd8   : > { %v6367_v63 = vmul.f32 %v6365_v40, %v6355_v8  ;;  %v6379_v15 = vrot.slane %v6200_v3, 7  ;;  %v6388_v33 = vrot.slane %v6281_v52, 7  ;;  %v6391_v2 = vrot.slane %v6283_v18, 7 }
 0xdd9   : > { %v6390_v57 = vsel %vm6386_vm9, %v6387_v16, %v6389_v10  ;;  %v6401_v20 = vrot.slane %v6366_v46, 7  ;;  %v6413_v9 = vsel %vm6319_vm13, %v6411_v54, %v6387_v16  ;;  %v6369_v0 = vmul.f32 %v6365_v40, %v6357_v17 }
 0xdda   : > { %v6392_v59 = vsel %vm6386_vm9, %v6388_v33, %v6391_v2  ;;  %v6402_v47 = vrot.slane %v6367_v63, 7  ;;  %v6412_v14 = vsel %vm6386_vm9, %v6373_v28, %v6379_v15  ;;  %6419 = vst [vmem:[%s11511_s2] sm:$0xff] %v6413_v9  ;;  %v6356_v13 = vmul.f32 %v11473_v49, %v6352_v30 }
 0xddb   : > { %v6414_v4 = vsel %vm6319_vm13, %v6412_v14, %v6388_v33  ;;  %v6415_v23 = vsel %vm6237_vm10, %v6390_v57, %v6401_v20  ;;  %v6405_v43 = vrot.slane %v6369_v0, 7  ;;  %v6445_v60 = vrot.slane %v6443_v37, 3 }
 0xddc   : > { %v6416_v32 = vsel %vm6237_vm10, %v6392_v59, %v6402_v47  ;;  %6420 = vst [vmem:[%s11511_s2 + $0x8] sm:$0xff] %v6414_v4  ;;  %6421 = vst [vmem:[%s11511_s2 + $0x10] sm:$0xff] %v6415_v23  ;;  %v7266_v51 = vpack.c.bf16 %v6415_v23, %v6413_v9  ;;  %v6368_v35 = vmul.f32 %v6361_v56, %v6356_v13  ;;  %v7470_v5 = vmov 1983009808  }
 0xddd   : > { %v6427_v39 = vadd.f32 %v6415_v23, %v6413_v9  ;;  %6422 = vst [vmem:[%s11511_s2 + $0x18] sm:$0xff] %v6416_v32  ;;  %v7264_v1 = vpack.c.bf16 %v6416_v32, %v6414_v4  ;;  %v6406_v25 = vsel %vm6386_vm9, %v6402_v47, %v6405_v43  ;;  %v6435_v49 = vadd.f32 %v6416_v32, %v6414_v4 }
 0xdde   : > { %v6418_v50 = vsel %vm6146_vm4, %v6406_v25, 0.0  ;;  %v6403_v45 = vrot.slane %v6368_v35, 7  ;;  %v6533_v56 = vunpack.c.l.s4 %v7470_v5 }
 0xddf   : > { %7265 = vmatprep.subr.bf16.mxu1 %v7264_v1  ;;  %6424 = vst [vmem:[%s11511_s2 + $0x28] sm:$0xff] %v6418_v50  ;;  %v6436_v26 = vadd.f32 %v6435_v49, %v6418_v50 }
 0xde0   : > { %7267 = vmatpush1.bf16.msra.mxu1 %v7266_v51  ;;  %v6404_v24 = vsel %vm6386_vm9, %v6401_v20, %v6403_v45  ;;  %v6534_v29 = vunpack.c.0.s8 %v6533_v56 }
 0xde1   : > { %6687 = vmatprep.subr.msk.mxu1 %vm6146_vm4, %v6406_v25  ;;  %v6417_v55 = vsel %vm6146_vm4, %v6404_v24, 0.0  ;;  %v6437_v12 = vrot.slane %v6436_v26, 4 }
 0xde2   : > { %6423 = vst [vmem:[%s11511_s2 + $0x20] sm:$0xff] %v6417_v55  ;;  %v6428_v62 = vadd.f32 %v6427_v39, %v6417_v55  ;;  %v6537_v3 = vsub.s32 %v6534_v29, %v12661_v38 }
 0xde3   : > { %v6438_v53 = vadd.f32 %v6437_v12, %v6436_v26 }
 0xde4   : > { %6688 = vmatpush1.msk.msra.mxu1 %vm6146_vm4, %v6404_v24  ;;  %v6429_v27 = vrot.slane %v6428_v62, 4 }
 0xde5   : > { %6689 = vmatmul.mubr.msk.f32.vlgmr.msra.gmra.mrb[24].mxu1 %vm12665_vm8, %v6445_v60  ;;  %v6439_v11 = vrot.slane %v6438_v53, 2 }
 0xde6   : > { %v6430_v19 = vadd.f32 %v6429_v27, %v6428_v62 }
 0xde7   : > { %v6440_v48 = vadd.f32 %v6439_v11, %v6438_v53 }
 0xde8   : > { %v6431_v6 = vrot.slane %v6430_v19, 2 }
 0xde9   : > { %v6441_v61 = vrot.slane %v6440_v48, 1 }
 0xdea   : > { %v6432_v36 = vadd.f32 %v6431_v6, %v6430_v19 }
 0xdeb   : > { %v6442_v21 = vadd.f32 %v6441_v61, %v6440_v48 }
 0xdec   : > { %v6433_v58 = vrot.slane %v6432_v36, 1 }
 0xded   : > { %v6520_v28 = vmul.f32 %v6442_v21, %v6426_v42 }
 0xdee   : > { %v6434_v41 = vadd.f32 %v6433_v58, %v6432_v36 }
 0xdf0   : > { %v6519_v34 = vmul.f32 %v6434_v41, %v6425_v44 }
 0xeb8   : > { %v6514_v30 = vpop.f32.mrb[24].mxu1 }
 0xeb9   : > { %v6523_v7 = vrot.slane %v6514_v30, 7  ;;  %v6516_v40 = vpop.f32.mrb[25].mxu1 }
 0xeba   : > { %v6524_v22 = vrot.slane %v6516_v40, 7 }
 0xebb   : > { %v6527_v31 = vsub.f32 %v6519_v34, %v6523_v7 }
 0xebc   : > { %v6528_v16 = vsub.f32 %v6520_v28, %v6524_v22 }
 0xebe   : > { %v6531_v52 = vcombine.low %v6527_v31, %v6528_v16 }
 0xec0   : > { %v6538_v18 = vrot.slane %v6531_v52, %v6537_v3 }
 0xec2   : > { %v6539_v8 = vcombine.high %v6538_v18, %v6538_v18  ;;  %v6690_v46 = vrot.slane %v6538_v18, 9 }
 0xec4   : > { %v6548_v10 = vrot.slane %v6539_v8, 7 }
 0xec6   : > { %v6549_v54 = vsel %vm6545_vm2, %v6690_v46, %v6548_v10 }
 0xec7   : > { %6551 = vst [vmem:[%s210_s7] sm:$0xf] %v6549_v54 }
 0xec8 PF: > { %s12667_s27 = sld [smem:[#allocation4_spill]] }
 0xece   : > { %s15_s15 = sadd.s32 1, %s12667_s27  }
 0xecf   : > { %p12_p4 = scmp.ge.s32.totalorder %s15_s15, 4  }
 0xed1   :  { %14 = sbr.rel (!%p12_p4) target bundleno = 6 (0x6), region = 86 }

</bundles_post_ra>
